<compile_context>
chip_gen: v7x
topology: tpu7x:2x2x1
jax: 0.10.0
libtpu: 0.0.40
codegen_flags: <defaults>
</compile_context>

<pallas_src>
import jax
import jax.numpy as jnp
from jax.experimental import pallas as pl
from jax.experimental.pallas import tpu as pltpu

# ----------------------------- model sizes ---------------------------------
B = 2
IN_CHANS = 1                 # encoder.in_chans
ENCODER_STRIDE = 2           # encoder_stride
PATCH = (2, 2, 2)            # encoder.patch_size
FEAT = 512                   # encoder.num_features (hard-coded in forward)
GRID3 = 16                   # encoder output spatial size (hard-coded in forward)
IMG = GRID3 * ENCODER_STRIDE                            # 32
N_TOK = B * GRID3 ** 3                                  # 8192 tokens
PATCH_DIM = IN_CHANS * PATCH[0] * PATCH[1] * PATCH[2]   # 8
DEC_OUT = ENCODER_STRIDE ** 3                           # 8
BN_EPS = 1e-5
N_VOX = B * 1 * IMG ** 3                                # 65536 voxels for BN

TOK_TILE = 2048                                         # tokens per grid step
NUM_TILES = N_TOK // TOK_TILE                           # 4
SMALL_COLS = 16                                         # packed small-weight block

# recon-L1 layout invariance (patch layout == inverse pixel shuffle) needs:
assert PATCH_DIM == DEC_OUT
assert N_TOK % TOK_TILE == 0


# ----------------------- fused forward kernel ------------------------------
# Layout: channels on sublanes, tokens on lanes.
#   d  = Wdiff_aug @ patch_aug                      (FEAT, T)   feature-L1
#   lf = where(masked, c, sum_c |d|)                (1, T)
#   y  = where(masked, ym, We_aug @ patch_aug)      (DEC_OUT, T) decoder1_1
# Epilogue (last grid step): BatchNorm3d(1) over all of y (batch stats,
# gamma=1, beta=0), recon L1 against the resident patches, loss write-out.
def _fused_simmim_kernel(p_ref, m_ref, wdiff_ref, small_ref,
                         xhat_ref, loss_ref,
                         y_sc, p_sc, lf_sc):
    i = pl.program_id(0)

    p_aug = p_ref[...]                       # (PATCH_DIM + 1, TOK_TILE); row 8 = ones
    masked = m_ref[...] > 0.5                # (1, TOK_TILE)
    small = small_ref[...]                   # (DEC_OUT, SMALL_COLS)

    # ---- feature-L1 branch (z2 removed via Wdiff trick) --------------------
    # bias folded into the augmented ones row -> pure MXU matmul, no VALU add.
    d = jnp.dot(wdiff_ref[...], p_aug, preferred_element_type=jnp.float32)
    base = jnp.sum(jnp.abs(d), axis=0, keepdims=True)          # (1, TOK_TILE)
    c = small[0:1, 10:11]                     # sum_c |mt1 - mt2| (masked tokens)
    lf_sc[i] = jnp.where(masked, c, base)

    # ---- decoder1_1 conv folded through the encoder (z1 never materialized)
    we_aug = small[:, 0:9]                    # [(Wd@W1) | (Wd@b1 + bd)]
    ym = small[:, 9:10]                       # Wd@mt1 + bd
    y = jnp.dot(we_aug, p_aug, preferred_element_type=jnp.float32)  # (8, T)
    y = jnp.where(masked, ym, y)
    y_sc[i] = y
    p_sc[i] = p_aug[0:PATCH_DIM, :]           # stash patches for recon L1

    # ---- epilogue: BatchNorm3d(1) + both L1 reductions ---------------------
    @pl.when(i == pl.num_programs(0) - 1)
    def _():
        y_all = y_sc[...]                                 # (NUM_TILES, 8, T)
        inv_n = 1.0 / N_VOX
        mean = jnp.sum(y_all) * inv_n
        # one-pass variance; fine at these magnitudes / 5e-3 tolerance.
        var = jnp.sum(y_all * y_all) * inv_n - mean * mean
        inv_std = jax.lax.rsqrt(var + BN_EPS)
        xhat = (y_all - mean) * inv_std
        xhat_ref[...] = xhat
        # recon L1 in patch layout == pixel-shuffled layout (in_chans == 1,
        # patch == stride == 2), so no pixel shuffle needed before the loss.
        lr_sum = jnp.sum(jnp.abs(p_sc[...] - xhat))
        lf_sum = jnp.sum(lf_sc[...])
        rows = jax.lax.broadcasted_iota(jnp.int32, (2, 128), 0)
        loss_ref[...] = jnp.where(rows == 0, lf_sum, lr_sum)


def fused_forward(p_aug, mask_t, wdiff_aug, small):
    cost = pl.CostEstimate(flops=77_000_000, transcendentals=1,
                           bytes_accessed=620_000)
    xhat_tiled, losses = pl.pallas_call(
        _fused_simmim_kernel,
        out_shape=(jax.ShapeDtypeStruct((NUM_TILES, DEC_OUT, TOK_TILE), jnp.float32),
                   jax.ShapeDtypeStruct((2, 128), jnp.float32)),
        grid=(NUM_TILES,),
        in_specs=[pl.BlockSpec((PATCH_DIM + 1, TOK_TILE), lambda i: (0, i)),
                  pl.BlockSpec((1, TOK_TILE), lambda i: (0, i)),
                  pl.BlockSpec((FEAT, PATCH_DIM + 1), lambda i: (0, 0)),
                  pl.BlockSpec((DEC_OUT, SMALL_COLS), lambda i: (0, 0))],
        out_specs=(pl.BlockSpec((NUM_TILES, DEC_OUT, TOK_TILE), lambda i: (0, 0, 0)),
                   pl.BlockSpec((2, 128), lambda i: (0, 0))),
        scratch_shapes=[pltpu.VMEM((NUM_TILES, DEC_OUT, TOK_TILE), jnp.float32),
                        pltpu.VMEM((NUM_TILES, PATCH_DIM, TOK_TILE), jnp.float32),
                        pltpu.VMEM((NUM_TILES, 1, TOK_TILE), jnp.float32)],
        compiler_params=pltpu.CompilerParams(
            dimension_semantics=("arbitrary",),
            vmem_limit_bytes=32 * 1024 * 1024),
        cost_estimate=cost,
    )(p_aug, mask_t, wdiff_aug, small)
    return xhat_tiled, losses


# ------------------------------ glue (JAX) ----------------------------------
def _extract_patches_t(x):
    # x: (B, C, D, H, W) -> (C*2*2*2, B * D/2 * H/2 * W/2)
    # rows = (ci, kd, kh, kw) (flattened Conv3d weight layout), columns =
    # (b, d, h, w) row-major.
    b, c, d, h, w = x.shape
    p = x.reshape(b, c, d // 2, 2, h // 2, 2, w // 2, 2)
    p = p.transpose(1, 3, 5, 7, 0, 2, 4, 6)
    return p.reshape(c * 8, b * (d // 2) * (h // 2) * (w // 2))


def _pixel_shuffle3d_t(y_t):
    # PixelShuffle3d(2): y_t (DEC_OUT, N_TOK), row c = (sd*2+sh)*2+sw, column
    # t = (b, d, h, w) row-major  ->  x_rec[b, 0, 2d+sd, 2h+sh, 2w+sw].
    y = y_t.reshape(2, 2, 2, B, GRID3, GRID3, GRID3)        # (sd,sh,sw,b,d,h,w)
    y = y.transpose(3, 4, 0, 5, 1, 6, 2)                    # (b,d,sd,h,sh,w,sw)
    return y.reshape(B, 1, IMG, IMG, IMG)


def my_simmim_forward(params, x, mask, path=None, name=None):
    # path / name mirror the PyTorch signature; static strings, unused here.
    hi = jax.lax.Precision.HIGHEST
    w1, b1, mt1 = params["w1"], params["b1"], params["mt1"]
    w2, b2, mt2 = params["w2"], params["b2"], params["mt2"]
    wd, bd = params["wd"], params["bd"]

    # Tiny once-per-call algebraic folds (z2 only feeds the L1 term; z1 only
    # feeds the L1 term and the 1x1x1 decoder conv):
    wdiff_aug = jnp.concatenate([w1 - w2, b1 - b2], axis=1)          # (FEAT, 9)
    we = jnp.dot(wd, w1, precision=hi)                               # (8, 8)
    be = jnp.dot(wd, b1, precision=hi) + bd                          # (8, 1)
    ym = jnp.dot(wd, mt1, precision=hi) + bd                         # (8, 1)
    c = jnp.sum(jnp.abs(mt1 - mt2))                                  # scalar
    small = jnp.concatenate(
        [we, be, ym, jnp.broadcast_to(c, (DEC_OUT, 1)),
         jnp.zeros((DEC_OUT, SMALL_COLS - 11), jnp.float32)], axis=1)

    patches = _extract_patches_t(x)                                  # (8, N_TOK)
    p_aug = jnp.concatenate(
        [patches, jnp.ones((1, N_TOK), patches.dtype)], axis=0)      # (9, N_TOK)
    mask_t = mask.reshape(1, N_TOK).astype(jnp.float32)              # (1, N_TOK)

    xhat_tiled, losses = fused_forward(p_aug, mask_t, wdiff_aug, small)

    lf_sum = losses[0, 0]                                            # sum |z1 - z2|
    lr_sum = losses[1, 0]                                            # sum |x - x_rec|

    xhat_t = jnp.transpose(xhat_tiled, (1, 0, 2)).reshape(DEC_OUT, N_TOK)
    x_rec = _pixel_shuffle3d_t(xhat_t)                               # (B,1,32,32,32)

    # hard-coded normalizers exactly as in the PyTorch forward
    loss_features = lf_sum / (x.shape[0] * 512 * 16 * 16 * 16)
    loss_recon = lr_sum / (x.shape[0] * x.shape[1] * x.shape[2] * x.shape[3] * x.shape[4])
    loss = loss_features + loss_recon

    mask_up = jnp.repeat(mask, PATCH[0], axis=1)
    mask_up = jnp.repeat(mask_up, PATCH[1], axis=2)
    mask_up = jnp.repeat(mask_up, PATCH[2], axis=3)[:, None]         # (B,1,32,32,32)

    # TODO(synk): decoder1_2 and decoder2 exist in __init__ but are never used
    # in forward; they are intentionally not implemented.
    return loss, x_rec, x, mask_up


# --------------------------- pure-JAX reference ------------------------------
def _reference_forward(params, x, mask):
    hi = jax.lax.Precision.HIGHEST
    p_t = _extract_patches_t(x)
    m_t = mask.reshape(1, N_TOK) > 0.5
    z1 = jnp.dot(params["w1"], p_t, precision=hi) + params["b1"]
    z1 = jnp.where(m_t, params["mt1"], z1)
    z2 = jnp.dot(params["w2"], p_t, precision=hi) + params["b2"]
    z2 = jnp.where(m_t, params["mt2"], z2)
    lf = jnp.sum(jnp.abs(z1 - z2))
    y_t = jnp.dot(params["wd"], z1, precision=hi) + params["bd"]
    xr_raw = _pixel_shuffle3d_t(y_t)
    mean = jnp.mean(xr_raw)
    var = jnp.mean(jnp.square(xr_raw - mean))
    xr = (xr_raw - mean) * jax.lax.rsqrt(var + BN_EPS)
    lr = jnp.sum(jnp.abs(x - xr))
    loss = lf / (B * 512 * 16 * 16 * 16) + lr / (B * 1 * IMG * IMG * IMG)
    return loss, xr


# ------------------------------- main ---------------------------------------
if __name__ == "__main__":
    key = jax.random.PRNGKey(0)
    ks = jax.random.split(key, 10)

    params = {
        # synthetic encoder: Conv3d(1, 512, k=2, s=2) weight flattened to
        # (out_ch, in_ch*k^3), bias / mask token as columns.
        "w1": jax.random.normal(ks[0], (FEAT, PATCH_DIM), jnp.float32) * 0.02,
        "b1": jax.random.normal(ks[1], (FEAT, 1), jnp.float32) * 0.02,
        "mt1": jax.random.normal(ks[2], (FEAT, 1), jnp.float32) * 0.02,
        # synthetic encoder1
        "w2": jax.random.normal(ks[3], (FEAT, PATCH_DIM), jnp.float32) * 0.02,
        "b2": jax.random.normal(ks[4], (FEAT, 1), jnp.float32) * 0.02,
        "mt2": jax.random.normal(ks[5], (FEAT, 1), jnp.float32) * 0.02,
        # decoder1_1 Conv3d(512, stride**3, k=1): weight (out_ch, in_ch), bias
        "wd": jax.random.normal(ks[6], (DEC_OUT, FEAT), jnp.float32) * 0.02,
        "bd": jax.random.normal(ks[7], (DEC_OUT, 1), jnp.float32) * 0.02,
    }

    x = jax.random.normal(ks[8], (B, IN_CHANS, IMG, IMG, IMG), jnp.float32)
    mask = jax.random.bernoulli(ks[9], 0.5, (B, GRID3, GRID3, GRID3)).astype(jnp.float32)

    fwd = jax.jit(my_simmim_forward, static_argnames=("path", "name"))
    loss, x_rec, x_out, mask_up = fwd(params, x, mask, path="", name="")
    jax.block_until_ready((loss, x_rec, x_out, mask_up))

    assert loss.shape == ()
    assert x_rec.shape == (B, 1, IMG, IMG, IMG)
    assert x_out.shape == (B, IN_CHANS, IMG, IMG, IMG)
    assert mask_up.shape == (B, 1, IMG, IMG, IMG)

    loss_ref, xr_ref = _reference_forward(params, x, mask)
    assert bool(jnp.isfinite(loss))
    assert bool(jnp.allclose(loss, loss_ref, rtol=5e-3, atol=5e-3)), \
        (float(loss), float(loss_ref))
    assert bool(jnp.allclose(x_rec, xr_ref, rtol=5e-3, atol=5e-3)), \
        float(jnp.max(jnp.abs(x_rec - xr_ref)))

    print("KERNEL_OK")
</pallas_src>

<mosaic_0001>
module attributes {stable_mosaic.version = 11 : i64} {
  func.func @_fused_simmim_kernel(%arg0: i32, %arg1: memref<9x2048xf32, #tpu.memory_space<vmem>>, %arg2: memref<1x2048xf32, #tpu.memory_space<vmem>>, %arg3: memref<512x9xf32, #tpu.memory_space<vmem>>, %arg4: memref<8x16xf32, #tpu.memory_space<vmem>>, %arg5: memref<4x8x2048xf32, #tpu.memory_space<vmem>>, %arg6: memref<2x128xf32, #tpu.memory_space<vmem>>, %arg7: memref<4x8x2048xf32, #tpu.memory_space<vmem>>, %arg8: memref<4x8x2048xf32, #tpu.memory_space<vmem>>, %arg9: memref<4x1x2048xf32, #tpu.memory_space<vmem>>) attributes {dimension_semantics = [#tpu.dimension_semantics<arbitrary>], iteration_bounds = array<i64: 4>, scalar_prefetch = 0 : i64, scratch_operands = 3 : i64, tpu.core_type = #tpu.core_type<tc>, window_params = [{transform_indices = @transform_0, window_bounds = array<i64: 9, 2048>}, {transform_indices = @transform_1, window_bounds = array<i64: 1, 2048>}, {pipeline_mode = #tpu.pipeline_mode<synchronous>, transform_indices = @transform_2, window_bounds = array<i64: 512, 9>}, {pipeline_mode = #tpu.pipeline_mode<synchronous>, transform_indices = @transform_3, window_bounds = array<i64: 8, 16>}, {pipeline_mode = #tpu.pipeline_mode<synchronous>, transform_indices = @transform_4, window_bounds = array<i64: 4, 8, 2048>}, {pipeline_mode = #tpu.pipeline_mode<synchronous>, transform_indices = @transform_5, window_bounds = array<i64: 2, 128>}]} {
    %c0 = arith.constant 0 : index
    %c0_0 = arith.constant 0 : index
    %0 = vector.load %arg1[%c0, %c0_0] : memref<9x2048xf32, #tpu.memory_space<vmem>>, vector<9x2048xf32>
    %c0_1 = arith.constant 0 : index
    %c0_2 = arith.constant 0 : index
    %1 = vector.load %arg2[%c0_1, %c0_2] : memref<1x2048xf32, #tpu.memory_space<vmem>>, vector<1x2048xf32>
    %cst = arith.constant 5.000000e-01 : f32
    %2 = vector.broadcast %cst : f32 to vector<1x2048xf32>
    %3 = arith.cmpf ogt, %1, %2 : vector<1x2048xf32>
    %c0_3 = arith.constant 0 : index
    %c0_4 = arith.constant 0 : index
    %4 = vector.load %arg4[%c0_3, %c0_4] : memref<8x16xf32, #tpu.memory_space<vmem>>, vector<8x16xf32>
    %c0_5 = arith.constant 0 : index
    %c0_6 = arith.constant 0 : index
    %5 = vector.load %arg3[%c0_5, %c0_6] : memref<512x9xf32, #tpu.memory_space<vmem>>, vector<512x9xf32>
    %cst_7 = arith.constant dense<0.000000e+00> : vector<512x2048xf32>
    %6 = tpu.matmul %5, %0, %cst_7 {dimension_numbers = #tpu.dot_dimension_numbers<[1], [0], [0], [1], [0, 0, 1, 1], [], []>} : vector<512x9xf32>, vector<9x2048xf32>, vector<512x2048xf32> -> vector<512x2048xf32>
    %7 = math.absf %6 : vector<512x2048xf32>
    %cst_8 = arith.constant dense<0.000000e+00> : vector<2048xf32>
    %8 = vector.multi_reduction <add>, %7, %cst_8 [0] : vector<512x2048xf32> to vector<2048xf32>
    %9 = vector.shape_cast %8 : vector<2048xf32> to vector<1x2048xf32>
    %10 = vector.extract_strided_slice %4 {offsets = [0, 10], sizes = [1, 1], strides = [1, 1]} : vector<8x16xf32> to vector<1x1xf32>
    %11 = vector.shape_cast %10 : vector<1x1xf32> to vector<1x1xf32>
    %12 = vector.broadcast %11 : vector<1x1xf32> to vector<1x2048xf32>
    %13 = arith.select %3, %12, %9 : vector<1x2048xi1>, vector<1x2048xf32>
    %14 = arith.index_cast %arg0 : i32 to index
    %c0_9 = arith.constant 0 : index
    %c0_10 = arith.constant 0 : index
    %15 = vector.load %arg9[%14, %c0_9, %c0_10] : memref<4x1x2048xf32, #tpu.memory_space<vmem>>, vector<1x1x2048xf32>
    %16 = vector.shape_cast %15 : vector<1x1x2048xf32> to vector<1x2048xf32>
    %17 = vector.shape_cast %13 : vector<1x2048xf32> to vector<1x1x2048xf32>
    tpu.vector_store %arg9[%14, %c0_9, %c0_10], %17 {strides = array<i32>} : memref<4x1x2048xf32, #tpu.memory_space<vmem>>, vector<1x1x2048xf32>,
    %18 = vector.extract_strided_slice %4 {offsets = [0, 0], sizes = [8, 9], strides = [1, 1]} : vector<8x16xf32> to vector<8x9xf32>
    %19 = vector.extract_strided_slice %4 {offsets = [0, 9], sizes = [8, 1], strides = [1, 1]} : vector<8x16xf32> to vector<8x1xf32>
    %cst_11 = arith.constant dense<0.000000e+00> : vector<8x2048xf32>
    %20 = tpu.matmul %18, %0, %cst_11 {dimension_numbers = #tpu.dot_dimension_numbers<[1], [0], [0], [1], [0, 0, 1, 1], [], []>} : vector<8x9xf32>, vector<9x2048xf32>, vector<8x2048xf32> -> vector<8x2048xf32>
    %21 = vector.shape_cast %3 : vector<1x2048xi1> to vector<1x2048xi1>
    %22 = vector.broadcast %21 : vector<1x2048xi1> to vector<8x2048xi1>
    %23 = vector.shape_cast %19 : vector<8x1xf32> to vector<8x1xf32>
    %24 = vector.broadcast %23 : vector<8x1xf32> to vector<8x2048xf32>
    %25 = arith.select %22, %24, %20 : vector<8x2048xi1>, vector<8x2048xf32>
    %26 = arith.index_cast %arg0 : i32 to index
    %c0_12 = arith.constant 0 : index
    %c0_13 = arith.constant 0 : index
    %27 = vector.load %arg7[%26, %c0_12, %c0_13] : memref<4x8x2048xf32, #tpu.memory_space<vmem>>, vector<1x8x2048xf32>
    %28 = vector.shape_cast %27 : vector<1x8x2048xf32> to vector<8x2048xf32>
    %29 = vector.shape_cast %25 : vector<8x2048xf32> to vector<1x8x2048xf32>
    tpu.vector_store %arg7[%26, %c0_12, %c0_13], %29 {strides = array<i32>} : memref<4x8x2048xf32, #tpu.memory_space<vmem>>, vector<1x8x2048xf32>,
    %30 = vector.extract_strided_slice %0 {offsets = [0, 0], sizes = [8, 2048], strides = [1, 1]} : vector<9x2048xf32> to vector<8x2048xf32>
    %31 = arith.index_cast %arg0 : i32 to index
    %c0_14 = arith.constant 0 : index
    %c0_15 = arith.constant 0 : index
    %32 = vector.load %arg8[%31, %c0_14, %c0_15] : memref<4x8x2048xf32, #tpu.memory_space<vmem>>, vector<1x8x2048xf32>
    %33 = vector.shape_cast %32 : vector<1x8x2048xf32> to vector<8x2048xf32>
    %34 = vector.shape_cast %30 : vector<8x2048xf32> to vector<1x8x2048xf32>
    tpu.vector_store %arg8[%31, %c0_14, %c0_15], %34 {strides = array<i32>} : memref<4x8x2048xf32, #tpu.memory_space<vmem>>, vector<1x8x2048xf32>,
    %c3_i32 = arith.constant 3 : i32
    %35 = arith.cmpi eq, %arg0, %c3_i32 : i32
    %36 = arith.extui %35 : i1 to i32
    %c0_i32 = arith.constant 0 : i32
    %37 = arith.cmpi ne, %36, %c0_i32 : i32
    scf.if %37 {
      %c0_16 = arith.constant 0 : index
      %c0_17 = arith.constant 0 : index
      %c0_18 = arith.constant 0 : index
      %38 = vector.load %arg7[%c0_16, %c0_17, %c0_18] : memref<4x8x2048xf32, #tpu.memory_space<vmem>>, vector<4x8x2048xf32>
      %39 = vector.shape_cast %38 : vector<4x8x2048xf32> to vector<1x4x8x2048xf32>
      %cst_19 = arith.constant dense<0.000000e+00> : vector<1xf32>
      %40 = vector.multi_reduction <add>, %39, %cst_19 [1, 2, 3] : vector<1x4x8x2048xf32> to vector<1xf32>
      %41 = vector.shape_cast %40 : vector<1xf32> to vector<1x1x1x1xf32>
      %42 = vector.extract %41[0, 0, 0, 0] : f32 from vector<1x1x1x1xf32>
      %cst_20 = arith.constant 1.52587891E-5 : f32
      %43 = arith.mulf %42, %cst_20 : f32
      %44 = arith.mulf %38, %38 : vector<4x8x2048xf32>
      %45 = vector.shape_cast %44 : vector<4x8x2048xf32> to vector<1x4x8x2048xf32>
      %cst_21 = arith.constant dense<0.000000e+00> : vector<1xf32>
      %46 = vector.multi_reduction <add>, %45, %cst_21 [1, 2, 3] : vector<1x4x8x2048xf32> to vector<1xf32>
      %47 = vector.shape_cast %46 : vector<1xf32> to vector<1x1x1x1xf32>
      %48 = vector.extract %47[0, 0, 0, 0] : f32 from vector<1x1x1x1xf32>
      %cst_22 = arith.constant 1.52587891E-5 : f32
      %49 = arith.mulf %48, %cst_22 : f32
      %50 = arith.mulf %43, %43 : f32
      %51 = arith.subf %49, %50 : f32
      %cst_23 = arith.constant 9.99999974E-6 : f32
      %52 = arith.addf %51, %cst_23 : f32
      %53 = math.rsqrt %52 : f32
      %54 = vector.broadcast %43 : f32 to vector<4x8x2048xf32>
      %55 = arith.subf %38, %54 : vector<4x8x2048xf32>
      %56 = vector.broadcast %53 : f32 to vector<4x8x2048xf32>
      %57 = arith.mulf %55, %56 : vector<4x8x2048xf32>
      %c0_24 = arith.constant 0 : index
      %c0_25 = arith.constant 0 : index
      %c0_26 = arith.constant 0 : index
      %58 = vector.load %arg5[%c0_24, %c0_25, %c0_26] : memref<4x8x2048xf32, #tpu.memory_space<vmem>>, vector<4x8x2048xf32>
      tpu.vector_store %arg5[%c0_24, %c0_25, %c0_26], %57 {strides = array<i32>} : memref<4x8x2048xf32, #tpu.memory_space<vmem>>, vector<4x8x2048xf32>,
      %c0_27 = arith.constant 0 : index
      %c0_28 = arith.constant 0 : index
      %c0_29 = arith.constant 0 : index
      %59 = vector.load %arg8[%c0_27, %c0_28, %c0_29] : memref<4x8x2048xf32, #tpu.memory_space<vmem>>, vector<4x8x2048xf32>
      %60 = arith.subf %59, %57 : vector<4x8x2048xf32>
      %61 = math.absf %60 : vector<4x8x2048xf32>
      %62 = vector.shape_cast %61 : vector<4x8x2048xf32> to vector<1x4x8x2048xf32>
      %cst_30 = arith.constant dense<0.000000e+00> : vector<1xf32>
      %63 = vector.multi_reduction <add>, %62, %cst_30 [1, 2, 3] : vector<1x4x8x2048xf32> to vector<1xf32>
      %64 = vector.shape_cast %63 : vector<1xf32> to vector<1x1x1x1xf32>
      %65 = vector.extract %64[0, 0, 0, 0] : f32 from vector<1x1x1x1xf32>
      %c0_31 = arith.constant 0 : index
      %c0_32 = arith.constant 0 : index
      %c0_33 = arith.constant 0 : index
      %66 = vector.load %arg9[%c0_31, %c0_32, %c0_33] : memref<4x1x2048xf32, #tpu.memory_space<vmem>>, vector<4x1x2048xf32>
      %67 = vector.shape_cast %66 : vector<4x1x2048xf32> to vector<1x4x1x2048xf32>
      %cst_34 = arith.constant dense<0.000000e+00> : vector<1xf32>
      %68 = vector.multi_reduction <add>, %67, %cst_34 [1, 2, 3] : vector<1x4x1x2048xf32> to vector<1xf32>
      %69 = vector.shape_cast %68 : vector<1xf32> to vector<1x1x1x1xf32>
      %70 = vector.extract %69[0, 0, 0, 0] : f32 from vector<1x1x1x1xf32>
      %71 = tpu.iota {dimensions = array<i32: 0>} : vector<2x128xi32>
      %c0_i32_35 = arith.constant 0 : i32
      %72 = vector.broadcast %c0_i32_35 : i32 to vector<2x128xi32>
      %73 = arith.cmpi eq, %71, %72 : vector<2x128xi32>
      %74 = vector.broadcast %70 : f32 to vector<2x128xf32>
      %75 = vector.broadcast %65 : f32 to vector<2x128xf32>
      %76 = arith.select %73, %74, %75 : vector<2x128xi1>, vector<2x128xf32>
      %c0_36 = arith.constant 0 : index
      %c0_37 = arith.constant 0 : index
      %77 = vector.load %arg6[%c0_36, %c0_37] : memref<2x128xf32, #tpu.memory_space<vmem>>, vector<2x128xf32>
      tpu.vector_store %arg6[%c0_36, %c0_37], %76 {strides = array<i32>} : memref<2x128xf32, #tpu.memory_space<vmem>>, vector<2x128xf32>,
    } else {
    }
    return
  }
  func.func @transform_0(%arg0: i32) -> (i32, i32) {
    %c0_i32 = arith.constant 0 : i32
    %c0_i32_0 = arith.constant 0 : i32
    return %c0_i32, %arg0 : i32, i32
  }
  func.func @transform_1(%arg0: i32) -> (i32, i32) {
    %c0_i32 = arith.constant 0 : i32
    %c0_i32_0 = arith.constant 0 : i32
    return %c0_i32, %arg0 : i32, i32
  }
  func.func @transform_2(%arg0: i32) -> (i32, i32) {
    %c0_i32 = arith.constant 0 : i32
    %c0_i32_0 = arith.constant 0 : i32
    %c0_i32_1 = arith.constant 0 : i32
    return %c0_i32, %c0_i32_0 : i32, i32
  }
  func.func @transform_3(%arg0: i32) -> (i32, i32) {
    %c0_i32 = arith.constant 0 : i32
    %c0_i32_0 = arith.constant 0 : i32
    %c0_i32_1 = arith.constant 0 : i32
    return %c0_i32, %c0_i32_0 : i32, i32
  }
  func.func @transform_4(%arg0: i32) -> (i32, i32, i32) {
    %c0_i32 = arith.constant 0 : i32
    %c0_i32_0 = arith.constant 0 : i32
    %c0_i32_1 = arith.constant 0 : i32
    %c0_i32_2 = arith.constant 0 : i32
    return %c0_i32, %c0_i32_0, %c0_i32_1 : i32, i32, i32
  }
  func.func @transform_5(%arg0: i32) -> (i32, i32) {
    %c0_i32 = arith.constant 0 : i32
    %c0_i32_0 = arith.constant 0 : i32
    %c0_i32_1 = arith.constant 0 : i32
    return %c0_i32, %c0_i32_0 : i32, i32
  }
}

</mosaic_0001>

<bundles_post_ra>
// kernel: sub.4
= control target key start
LH: loop header
LB: loop body
LE: loop exit
PB: predicated region body
PF: predicated region fallthrough
CT: control target
= control target key end

     0   :  { %s100_s0 = inlined_call_operand.vmem [shape: f32[512,1], index: 0, kind: input, shape index: {}]   ;;  %s101_s1 = inlined_call_operand.vmem [shape: f32[512,1], index: 1, kind: input, shape index: {}]   ;;  %s102_s2 = inlined_call_operand.vmem [shape: f32[512,1], index: 2, kind: output, shape index: {}]  }
   0x1   :  { %v3_v0 = vld [vmem:[%s100_s0] sm:$0x1]  ;;  %v40_v2 = vld [vmem:[%s100_s0 + $0x1] sm:$0x1]  ;;  %v43_v5 = vld [vmem:[%s100_s0 + $0x2] sm:$0x1] }
   0x2   :  { %v4_v1 = vld [vmem:[%s101_s1] sm:$0x1]  ;;  %v41_v4 = vld [vmem:[%s101_s1 + $0x1] sm:$0x1]  ;;  %v44_v6 = vld [vmem:[%s101_s1 + $0x2] sm:$0x1] }
   0x3   :  { %v7_v3 = vsub.f32 %v3_v0, %v4_v1  ;;  %v16_v7 = vsub.f32 %v40_v2, %v41_v4  ;;  %v26_v8 = vsub.f32 %v43_v5, %v44_v6  ;;  %v46_v9 = vld [vmem:[%s100_s0 + $0x3] sm:$0x1] }
   0x4   :  { %v47_v10 = vld [vmem:[%s101_s1 + $0x3] sm:$0x1] }
   0x5   :  { %9 = vst [vmem:[%s102_s2] sm:$0x1] %v7_v3  ;;  %v36_v11 = vsub.f32 %v46_v9, %v47_v10  ;;  %42 = vst [vmem:[%s102_s2 + $0x1] sm:$0x1] %v16_v7 }
   0x6   :  { %45 = vst [vmem:[%s102_s2 + $0x2] sm:$0x1] %v26_v8 }
   0x7   :  { %48 = vst [vmem:[%s102_s2 + $0x3] sm:$0x1] %v36_v11 }

// kernel: sub.3
= control target key start
LH: loop header
LB: loop body
LE: loop exit
PB: predicated region body
PF: predicated region fallthrough
CT: control target
= control target key end

     0   :  { %s100_s0 = inlined_call_operand.vmem [shape: f32[512,8], index: 0, kind: input, shape index: {}]   ;;  %s101_s1 = inlined_call_operand.vmem [shape: f32[512,8], index: 1, kind: input, shape index: {}]   ;;  %s102_s2 = inlined_call_operand.vmem [shape: f32[512,8], index: 2, kind: output, shape index: {}]  }
   0x1   :  { %v3_v0 = vld [vmem:[%s100_s0] sm:$0xff]  ;;  %v40_v2 = vld [vmem:[%s100_s0 + $0x8] sm:$0xff]  ;;  %v43_v5 = vld [vmem:[%s100_s0 + $0x10] sm:$0xff] }
   0x2   :  { %v4_v1 = vld [vmem:[%s101_s1] sm:$0xff]  ;;  %v41_v4 = vld [vmem:[%s101_s1 + $0x8] sm:$0xff]  ;;  %v44_v6 = vld [vmem:[%s101_s1 + $0x10] sm:$0xff] }
   0x3   :  { %v7_v3 = vsub.f32 %v3_v0, %v4_v1  ;;  %v16_v7 = vsub.f32 %v40_v2, %v41_v4  ;;  %v26_v8 = vsub.f32 %v43_v5, %v44_v6  ;;  %v46_v9 = vld [vmem:[%s100_s0 + $0x18] sm:$0xff] }
   0x4   :  { %v47_v10 = vld [vmem:[%s101_s1 + $0x18] sm:$0xff] }
   0x5   :  { %9 = vst [vmem:[%s102_s2] sm:$0xff] %v7_v3  ;;  %v36_v11 = vsub.f32 %v46_v9, %v47_v10  ;;  %42 = vst [vmem:[%s102_s2 + $0x8] sm:$0xff] %v16_v7 }
   0x6   :  { %45 = vst [vmem:[%s102_s2 + $0x10] sm:$0xff] %v26_v8 }
   0x7   :  { %48 = vst [vmem:[%s102_s2 + $0x18] sm:$0xff] %v36_v11 }

// kernel: my_simmim_forward.1
= control target key start
LH: loop header
LB: loop body
LE: loop exit
PB: predicated region body
PF: predicated region fallthrough
CT: control target
= control target key end

     0   :  { %s9449_s18 = smov 0   ;;  %s9451_s19 = smov 0   ;;  %s13225_s0 = inlined_call_operand.vmem [shape: f32[9,8192], index: 0, kind: input, shape index: {}]   ;;  %s13226_s1 = inlined_call_operand.vmem [shape: f32[1,8192], index: 1, kind: input, shape index: {}]   ;;  %s13227_s2 = inlined_call_operand.vmem [shape: f32[512,9], index: 2, kind: input, shape index: {}]   ;;  %s13228_s3 = inlined_call_operand.vmem [shape: f32[8,16], index: 3, kind: input, shape index: {}]   ;;  %s13229_s4 = inlined_call_operand.vmem [shape: f32[4,8,2048], index: 4, kind: output, shape index: {0}]   ;;  %s13230_s5 = inlined_call_operand.vmem [shape: f32[2,128], index: 5, kind: output, shape index: {1}]  }
   0x1   :  { %s9453_s20 = smov 0  }
   0x2 LB: > { %s9465_s21 = sadd.s32 4294967295, %s9411_s20   ;;  %s9468_s22 = sadd.s32 1, %s9411_s20   ;;  %s9411_s20 = sphi %s9453_s20, %s13575_s20   ;;  %s9407_s19 = sphi %s9451_s19, %s13574_s19   ;;  %s9403_s18 = sphi %s9449_s18, %s13573_s18  }
   0x3   : > { %s20_s23 = ssub.s32 %s9411_s20, %s9468_s22  ;;  %s23_s24 = sadd.s32 1, %s9407_s19 }
   0x4   : > { %p21_p0 = scmp.eq.s32.totalorder %s20_s23, 0  ;;  %p30_p1 = scmp.ne.s32.totalorder %s9407_s19, %s9403_s18 }
   0x5   : > { %p31_p2 = scmp.eq.s32.totalorder %s9411_s20, 0  ;;  %p8490_p4 = scmp.ge.s32.totalorder %s9411_s20, 4 }
   0x6   : > { %s9477_s25 = scalar_select %p21_p0, %s9407_s19, %s23_s24  }
   0x7   : > { %p32_p3 = por %p31_p2, %p30_p1  ;;  %172 = sbr.rel (%p8490_p4) target bundleno = 34 (0x22), region = 24 }
   0xe   : > { %175 = sbr.rel (!%p32_p3) target bundleno = 34 (0x22), region = 28  ;;  %s177_s26 = sand.u32 (%p32_p3), 1, %s9407_s19  }
   0xf   : > { %s9055_s27 = sshll.u32 (%p32_p3), %s9411_s20, 7  ;;  %s8491_s28 = sshll.u32 (%p32_p3), %s177_s26, 8 }
  0x10   : > { %s9485_s6 = scalar_lea.vmem (%p32_p3), %s13225_s0, %s9055_s27  ;;  %s9490_s7 = scalar_lea.vmem (%p32_p3), [#allocation5], %s8491_s28 }
  0x11   : > { %v195_v0 = vld [vmem:[%s9485_s6] sm:$0xff] (%p32_p3)  ;;  %v197_v1 = vld [vmem:[%s9485_s6 + $0x8] sm:$0xff] (%p32_p3)  ;;  %v199_v2 = vld [vmem:[%s9485_s6 + $0x10] sm:$0xff] (%p32_p3) }
  0x12   : > { %196 = vst [vmem:[%s9490_s7] sm:$0xff] (%p32_p3), %v195_v0  ;;  %198 = vst [vmem:[%s9490_s7 + $0x8] sm:$0xff] (%p32_p3), %v197_v1  ;;  %v201_v3 = vld [vmem:[%s9485_s6 + $0x18] sm:$0xff] (%p32_p3)  ;;  %v203_v4 = vld [vmem:[%s9485_s6 + $0x20] sm:$0xff] (%p32_p3) }
  0x13   : > { %200 = vst [vmem:[%s9490_s7 + $0x10] sm:$0xff] (%p32_p3), %v199_v2  ;;  %v205_v5 = vld [vmem:[%s9485_s6 + $0x28] sm:$0xff] (%p32_p3)  ;;  %202 = vst [vmem:[%s9490_s7 + $0x18] sm:$0xff] (%p32_p3), %v201_v3  ;;  %v207_v6 = vld [vmem:[%s9485_s6 + $0x30] sm:$0xff] (%p32_p3) }
  0x14   : > { %204 = vst [vmem:[%s9490_s7 + $0x20] sm:$0xff] (%p32_p3), %v203_v4  ;;  %206 = vst [vmem:[%s9490_s7 + $0x28] sm:$0xff] (%p32_p3), %v205_v5  ;;  %v209_v7 = vld [vmem:[%s9485_s6 + $0x38] sm:$0xff] (%p32_p3)  ;;  %v211_v8 = vld [vmem:[%s9485_s6 + $0x40] sm:$0xff] (%p32_p3) }
  0x15   : > { %208 = vst [vmem:[%s9490_s7 + $0x30] sm:$0xff] %v207_v6  ;;  %210 = vst [vmem:[%s9490_s7 + $0x38] sm:$0xff] %v209_v7  ;;  %v213_v9 = vld [vmem:[%s9485_s6 + $0x48] sm:$0xff]  ;;  %v215_v10 = vld [vmem:[%s9485_s6 + $0x50] sm:$0xff] }
  0x16   : > { %212 = vst [vmem:[%s9490_s7 + $0x40] sm:$0xff] %v211_v8  ;;  %v217_v11 = vld [vmem:[%s9485_s6 + $0x58] sm:$0xff]  ;;  %214 = vst [vmem:[%s9490_s7 + $0x48] sm:$0xff] %v213_v9  ;;  %v219_v12 = vld [vmem:[%s9485_s6 + $0x60] sm:$0xff] }
  0x17   : > { %216 = vst [vmem:[%s9490_s7 + $0x50] sm:$0xff] %v215_v10  ;;  %218 = vst [vmem:[%s9490_s7 + $0x58] sm:$0xff] %v217_v11  ;;  %v221_v13 = vld [vmem:[%s9485_s6 + $0x68] sm:$0xff]  ;;  %v223_v14 = vld [vmem:[%s9485_s6 + $0x70] sm:$0xff] }
  0x18   : > { %220 = vst [vmem:[%s9490_s7 + $0x60] sm:$0xff] %v219_v12  ;;  %222 = vst [vmem:[%s9490_s7 + $0x68] sm:$0xff] %v221_v13  ;;  %v225_v15 = vld [vmem:[%s9485_s6 + $0x78] sm:$0xff]  ;;  %v227_v16 = vld [vmem:[%s9485_s6 + $0x200] sm:$0xff] }
  0x19   : > { %224 = vst [vmem:[%s9490_s7 + $0x70] sm:$0xff] %v223_v14  ;;  %v229_v17 = vld [vmem:[%s9485_s6 + $0x208] sm:$0xff]  ;;  %226 = vst [vmem:[%s9490_s7 + $0x78] sm:$0xff] %v225_v15  ;;  %v231_v18 = vld [vmem:[%s9485_s6 + $0x210] sm:$0xff] }
  0x1a   : > { %228 = vst [vmem:[%s9490_s7 + $0x80] sm:$0xff] %v227_v16  ;;  %230 = vst [vmem:[%s9490_s7 + $0x88] sm:$0xff] %v229_v17  ;;  %v233_v19 = vld [vmem:[%s9485_s6 + $0x218] sm:$0xff]  ;;  %v235_v20 = vld [vmem:[%s9485_s6 + $0x220] sm:$0xff] }
  0x1b   : > { %232 = vst [vmem:[%s9490_s7 + $0x90] sm:$0xff] %v231_v18  ;;  %234 = vst [vmem:[%s9490_s7 + $0x98] sm:$0xff] %v233_v19  ;;  %v237_v21 = vld [vmem:[%s9485_s6 + $0x228] sm:$0xff]  ;;  %v239_v22 = vld [vmem:[%s9485_s6 + $0x230] sm:$0xff] }
  0x1c   : > { %236 = vst [vmem:[%s9490_s7 + $0xa0] sm:$0xff] %v235_v20  ;;  %v241_v23 = vld [vmem:[%s9485_s6 + $0x238] sm:$0xff]  ;;  %238 = vst [vmem:[%s9490_s7 + $0xa8] sm:$0xff] %v237_v21  ;;  %v243_v24 = vld [vmem:[%s9485_s6 + $0x240] sm:$0xff] }
  0x1d   : > { %240 = vst [vmem:[%s9490_s7 + $0xb0] sm:$0xff] %v239_v22  ;;  %242 = vst [vmem:[%s9490_s7 + $0xb8] sm:$0xff] %v241_v23  ;;  %v245_v25 = vld [vmem:[%s9485_s6 + $0x248] sm:$0xff]  ;;  %v247_v26 = vld [vmem:[%s9485_s6 + $0x250] sm:$0xff] }
  0x1e   : > { %244 = vst [vmem:[%s9490_s7 + $0xc0] sm:$0xff] %v243_v24  ;;  %246 = vst [vmem:[%s9490_s7 + $0xc8] sm:$0xff] %v245_v25  ;;  %v249_v27 = vld [vmem:[%s9485_s6 + $0x258] sm:$0xff]  ;;  %v251_v28 = vld [vmem:[%s9485_s6 + $0x260] sm:$0xff] }
  0x1f   : > { %248 = vst [vmem:[%s9490_s7 + $0xd0] sm:$0xff] %v247_v26  ;;  %v253_v29 = vld [vmem:[%s9485_s6 + $0x268] sm:$0xff]  ;;  %250 = vst [vmem:[%s9490_s7 + $0xd8] sm:$0xff] %v249_v27  ;;  %v255_v30 = vld [vmem:[%s9485_s6 + $0x270] sm:$0xff] }
  0x20   : > { %252 = vst [vmem:[%s9490_s7 + $0xe0] sm:$0xff] %v251_v28  ;;  %254 = vst [vmem:[%s9490_s7 + $0xe8] sm:$0xff] %v253_v29  ;;  %v257_v31 = vld [vmem:[%s9485_s6 + $0x278] sm:$0xff] }
  0x21   : > { %256 = vst [vmem:[%s9490_s7 + $0xf0] sm:$0xff] %v255_v30  ;;  %258 = vst [vmem:[%s9490_s7 + $0xf8] sm:$0xff] %v257_v31 }
  0x22 PF: > { %p8494_p5 = scmp.ge.s32.totalorder %s9411_s20, 1  ;;  %p271_p6 = scmp.lt.s32.totalorder %s9411_s20, 5 }
  0x24   : > { %p272_p7 = pnand %p8494_p5, %p271_p6 }
  0x26   : > { %275 = sbr.rel (%p272_p7) target bundleno = 2115 (0x843), region = 55 }
  0x2d   : > { %s278_s8 = sand.u32 1, %s9403_s18   ;;  %vm604_vm0 = vcmask 1040384   ;;  %s9056_s9 = sshll.u32 %s9465_s21, 7  ;;  %v9413_v32 = vmov 0.0   ;;  %vm9414_vm1 = vmmov 1   ;;  %v9590_v45 = vld [vmem:[%s13227_s2] sm:$0xff] }
  0x2e   : > { %s8495_s10 = sshll.u32 %s278_s8, 8  ;;  %717 = vmatprep.mubr.f32.mxu0 %v9413_v32  ;;  %1166 = vmatprep.mubr.f32.mxu1 %v9413_v32  ;;  %vm9560_vm2 = vmpackc.low %vm604_vm0, %vm9414_vm1  ;;  %s9573_s12 = scalar_lea.vmem [#allocation3], %s9056_s9  ;;  %vm411_vm3 = vcmask 72704   ;;  %v9643_v59 = vld [vmem:[%s13227_s2 + $0x8] sm:$0xff]  ;;  %v9658_v60 = vld [vmem:[%s13227_s2 + $0x10] sm:$0xff] }
  0x2f   : > { %s9564_s11 = scalar_lea.vmem [#allocation5], %s8495_s10  ;;  %v9669_v61 = vld [vmem:[%s13227_s2 + $0x18] sm:$0xff]  ;;  %v351_v62 = vld [vmem:[%s13227_s2 + $0x20] sm:$0xff]  ;;  %v352_v63 = vld [vmem:[%s13227_s2 + $0x28] sm:$0xff]  ;;  %s11021_s20 = sshll.u32 %s9465_s21, 4 }
  0x30   : > { %v311_v34 = vld [vmem:[%s9564_s11 + $0x8] sm:$0xff]  ;;  %v313_v36 = vld [vmem:[%s9564_s11 + $0x18] sm:$0xff]  ;;  %v310_v39 = vld [vmem:[%s9564_s11] sm:$0xff]  ;;  %p306_p8 = scmp.lt.s32.totalorder %s11021_s20, 63  ;;  %s6501_s14 = scalar_lea.vmem [#allocation4], %s11021_s20 }
  0x31   : > { %v327_v35 = vld [vmem:[%s9564_s11 + $0x88] sm:$0x1]  ;;  %7197 = vst [vmem:[%s9573_s12 + $0x8] sm:$0xff] %v311_v34  ;;  %v329_v38 = vld [vmem:[%s9564_s11 + $0x98] sm:$0x1]  ;;  %7199 = vst [vmem:[%s9573_s12 + $0x18] sm:$0xff] %v313_v36 }
  0x32   : > { %v9569_v37 = vpack.c.bf16 %v327_v35, %v311_v34  ;;  %v326_v40 = vld [vmem:[%s9564_s11 + $0x80] sm:$0x1]  ;;  %v9580_v41 = vpack.c.bf16 %v329_v38, %v313_v36  ;;  %7196 = vst [vmem:[%s9573_s12] sm:$0xff] %v310_v39  ;;  %v312_v43 = vld [vmem:[%s9564_s11 + $0x10] sm:$0xff]  ;;  %v315_v46 = vld [vmem:[%s9564_s11 + $0x28] sm:$0xff]  ;;  %s307_s26 = scalar_select %p306_p8, %s11021_s20, 63 }
  0x33   : > { %v9582_v42 = vpack.c.bf16 %v326_v40, %v310_v39  ;;  %v328_v44 = vld [vmem:[%s9564_s11 + $0x90] sm:$0x1]  ;;  %7198 = vst [vmem:[%s9573_s12 + $0x10] sm:$0xff] %v312_v43  ;;  %v331_v48 = vld [vmem:[%s9564_s11 + $0xa8] sm:$0x1]  ;;  %7201 = vst [vmem:[%s9573_s12 + $0x28] sm:$0xff] %v315_v46 }
  0x34   : > { %9060 = vmatprep.subr.msk.bf16.mxu0 %vm9560_vm2, %v9569_v37  ;;  %v9596_v47 = vpack.c.bf16 %v328_v44, %v312_v43  ;;  %v317_v49 = vld [vmem:[%s9564_s11 + $0x38] sm:$0xff]  ;;  %9066 = vmatprep.subr.msk.bf16.mxu1 %vm9560_vm2, %v9580_v41  ;;  %v9609_v51 = vpack.c.bf16 %v331_v48, %v315_v46  ;;  %v314_v53 = vld [vmem:[%s9564_s11 + $0x20] sm:$0xff]  ;;  %v316_v55 = vld [vmem:[%s9564_s11 + $0x30] sm:$0xff]  ;;  %s11047_s6 = scalar_lea.vmem %s13226_s1, %s307_s26  ;;  %p9052_p9 = scmp.ne.s32.totalorder %s9465_s21, 3 }
  0x35   : > { %v333_v50 = vld [vmem:[%s9564_s11 + $0xb8] sm:$0x1]  ;;  %9063 = vmatpush1.bf16.msk.msra.mxu0 %vm9560_vm2, %v9582_v42  ;;  %7203 = vst [vmem:[%s9573_s12 + $0x38] sm:$0xff] %v317_v49  ;;  %v330_v54 = vld [vmem:[%s9564_s11 + $0xa0] sm:$0x1]  ;;  %7200 = vst [vmem:[%s9573_s12 + $0x20] sm:$0xff] %v314_v53 }
  0x36   : > { %v9611_v52 = vpack.c.bf16 %v333_v50, %v317_v49  ;;  %9069 = vmatpush1.bf16.msk.msra.mxu1 %vm9560_vm2, %v9596_v47  ;;  %v9620_v56 = vpack.c.bf16 %v330_v54, %v314_v53  ;;  %v332_v57 = vld [vmem:[%s9564_s11 + $0xb0] sm:$0x1]  ;;  %7202 = vst [vmem:[%s9573_s12 + $0x30] sm:$0xff] %v316_v55  ;;  %9072 = vmatprep.subr.msk.bf16.mxu0 %vm9560_vm2, %v9609_v51  ;;  %v354_v1 = vld [vmem:[%s13227_s2 + $0x38] sm:$0xff]  ;;  %v355_v2 = vld [vmem:[%s13227_s2 + $0x40] sm:$0xff] }
  0x37   : > { %v9631_v58 = vpack.c.bf16 %v332_v57, %v316_v55  ;;  %v353_v0 = vld [vmem:[%s13227_s2 + $0x30] sm:$0xff]  ;;  %v356_v3 = vld [vmem:[%s13227_s2 + $0x48] sm:$0xff]  ;;  %v358_v5 = vld [vmem:[%s13227_s2 + $0x58] sm:$0xff] }
  0x38   : > { %9078 = vmatprep.subr.msk.bf16.mxu1 %vm9560_vm2, %v9611_v52  ;;  %8499 = vmatmul.mubr.msk.f32.vlgmr.msra.gmra.mrb[0].mxu0 %vm411_vm3, %v9590_v45  ;;  %v357_v4 = vld [vmem:[%s13227_s2 + $0x50] sm:$0xff]  ;;  %v359_v6 = vld [vmem:[%s13227_s2 + $0x60] sm:$0xff]  ;;  %v360_v7 = vld [vmem:[%s13227_s2 + $0x68] sm:$0xff] }
  0x39   : > { %8565 = vmatmul.mubr.msk.f32.vlgmr.msra.gmra.mrb[0].mxu1 %vm411_vm3, %v9590_v45  ;;  %9075 = vmatpush1.bf16.msk.msra.mxu0 %vm9560_vm2, %v9620_v56  ;;  %v361_v8 = vld [vmem:[%s13227_s2 + $0x70] sm:$0xff]  ;;  %v362_v9 = vld [vmem:[%s13227_s2 + $0x78] sm:$0xff]  ;;  %v363_v10 = vld [vmem:[%s13227_s2 + $0x80] sm:$0xff] }
  0x3a   : > { %9081 = vmatpush1.bf16.msk.msra.mxu1 %vm9560_vm2, %v9631_v58  ;;  %723 = vmatprep.mubr.f32.mxu0 %v9413_v32  ;;  %v364_v11 = vld [vmem:[%s13227_s2 + $0x88] sm:$0xff]  ;;  %v365_v12 = vld [vmem:[%s13227_s2 + $0x90] sm:$0xff]  ;;  %v366_v13 = vld [vmem:[%s13227_s2 + $0x98] sm:$0xff] }
  0x3b   : > { %1172 = vmatprep.mubr.f32.mxu1 %v9413_v32  ;;  %v367_v14 = vld [vmem:[%s13227_s2 + $0xa0] sm:$0xff]  ;;  %v368_v15 = vld [vmem:[%s13227_s2 + $0xa8] sm:$0xff]  ;;  %v369_v16 = vld [vmem:[%s13227_s2 + $0xb0] sm:$0xff] }
  0x3c   : > { %8500 = vmatmul.mubr.msk.f32.gmra.mrb[2].mxu0 %vm411_vm3, %v9643_v59  ;;  %v370_v17 = vld [vmem:[%s13227_s2 + $0xb8] sm:$0xff]  ;;  %v371_v18 = vld [vmem:[%s13227_s2 + $0xc0] sm:$0xff]  ;;  %v372_v19 = vld [vmem:[%s13227_s2 + $0xc8] sm:$0xff] }
  0x3d   : > { %8566 = vmatmul.mubr.msk.f32.gmra.mrb[2].mxu1 %vm411_vm3, %v9643_v59  ;;  %729 = vmatprep.mubr.f32.mxu0 %v9413_v32  ;;  %v373_v20 = vld [vmem:[%s13227_s2 + $0xd0] sm:$0xff]  ;;  %v374_v21 = vld [vmem:[%s13227_s2 + $0xd8] sm:$0xff]  ;;  %v375_v22 = vld [vmem:[%s13227_s2 + $0xe0] sm:$0xff] }
  0x3e   : > { %1178 = vmatprep.mubr.f32.mxu1 %v9413_v32  ;;  %v376_v23 = vld [vmem:[%s13227_s2 + $0xe8] sm:$0xff]  ;;  %v377_v24 = vld [vmem:[%s13227_s2 + $0xf0] sm:$0xff]  ;;  %v378_v25 = vld [vmem:[%s13227_s2 + $0xf8] sm:$0xff] }
  0x3f   : > { %v379_v26 = vld [vmem:[%s13227_s2 + $0x100] sm:$0xff]  ;;  %v380_v27 = vld [vmem:[%s13227_s2 + $0x108] sm:$0xff]  ;;  %v321_v30 = vld [vmem:[%s9564_s11 + $0x58] sm:$0xff] }
  0x40   : > { %8501 = vmatmul.mubr.msk.f32.gmra.mrb[4].mxu0 %vm411_vm3, %v9658_v60  ;;  %v319_v28 = vld [vmem:[%s9564_s11 + $0x48] sm:$0xff]  ;;  %v381_v31 = vld [vmem:[%s13227_s2 + $0x110] sm:$0xff]  ;;  %v337_v35 = vld [vmem:[%s9564_s11 + $0xd8] sm:$0x1]  ;;  %7207 = vst [vmem:[%s9573_s12 + $0x58] sm:$0xff] %v321_v30 }
  0x41   : > { %8567 = vmatmul.mubr.msk.f32.gmra.mrb[4].mxu1 %vm411_vm3, %v9658_v60  ;;  %735 = vmatprep.mubr.f32.mxu0 %v9413_v32  ;;  %v335_v29 = vld [vmem:[%s9564_s11 + $0xc8] sm:$0x1]  ;;  %7205 = vst [vmem:[%s9573_s12 + $0x48] sm:$0xff] %v319_v28  ;;  %v9899_v36 = vld [vmem:[%s9564_s11 + $0x40] sm:$0xff]  ;;  %v9902_v38 = vpack.c.bf16 %v337_v35, %v321_v30  ;;  %v9907_v39 = vld [vmem:[%s9564_s11 + $0x50] sm:$0xff] }
  0x42   : > { %1184 = vmatprep.mubr.f32.mxu1 %v9413_v32  ;;  %v9893_v34 = vpack.c.bf16 %v335_v29, %v319_v28  ;;  %7204 = vst [vmem:[%s9573_s12 + $0x40] sm:$0xff] %v9899_v36  ;;  %7206 = vst [vmem:[%s9573_s12 + $0x50] sm:$0xff] %v9907_v39  ;;  %v382_v40 = vld [vmem:[%s13227_s2 + $0x118] sm:$0xff]  ;;  %v383_v43 = vld [vmem:[%s13227_s2 + $0x120] sm:$0xff] }
  0x43   : > { %9090 = vmatprep.subr.msk.bf16.mxu1 %vm9560_vm2, %v9902_v38  ;;  %v384_v44 = vld [vmem:[%s13227_s2 + $0x128] sm:$0xff]  ;;  %v385_v46 = vld [vmem:[%s13227_s2 + $0x130] sm:$0xff]  ;;  %v386_v48 = vld [vmem:[%s13227_s2 + $0x138] sm:$0xff] }
  0x44   : > { %8502 = vmatmul.mubr.msk.f32.gmra.mrb[6].mxu0 %vm411_vm3, %v9669_v61  ;;  %9084 = vmatprep.subr.msk.bf16.mxu0 %vm9560_vm2, %v9893_v34  ;;  %v387_v49 = vld [vmem:[%s13227_s2 + $0x140] sm:$0xff]  ;;  %v388_v50 = vld [vmem:[%s13227_s2 + $0x148] sm:$0xff]  ;;  %v389_v53 = vld [vmem:[%s13227_s2 + $0x150] sm:$0xff] }
  0x45   : > { %8568 = vmatmul.mubr.msk.f32.gmra.mrb[6].mxu1 %vm411_vm3, %v9669_v61  ;;  %741 = vmatprep.mubr.f32.mxu0 %v9413_v32  ;;  %v390_v54 = vld [vmem:[%s13227_s2 + $0x158] sm:$0xff]  ;;  %v391_v55 = vld [vmem:[%s13227_s2 + $0x160] sm:$0xff]  ;;  %v392_v57 = vld [vmem:[%s13227_s2 + $0x168] sm:$0xff] }
  0x46   : > { %1190 = vmatprep.mubr.f32.mxu1 %v9413_v32 }
  0x48   : > { %8503 = vmatmul.mubr.msk.f32.gmra.mrb[8].mxu0 %vm411_vm3, %v351_v62 }
  0x49   : > { %8569 = vmatmul.mubr.msk.f32.gmra.mrb[8].mxu1 %vm411_vm3, %v351_v62  ;;  %747 = vmatprep.mubr.f32.mxu0 %v9413_v32  ;;  %v393_v62 = vld [vmem:[%s13227_s2 + $0x170] sm:$0xff] }
  0x4a   : > { %1196 = vmatprep.mubr.f32.mxu1 %v9413_v32 }
  0x4c   : > { %8504 = vmatmul.mubr.msk.f32.gmra.mrb[10].mxu0 %vm411_vm3, %v352_v63 }
  0x4d   : > { %8570 = vmatmul.mubr.msk.f32.gmra.mrb[10].mxu1 %vm411_vm3, %v352_v63  ;;  %753 = vmatprep.mubr.f32.mxu0 %v9413_v32  ;;  %v394_v63 = vld [vmem:[%s13227_s2 + $0x178] sm:$0xff] }
  0x4e   : > { %1202 = vmatprep.mubr.f32.mxu1 %v9413_v32 }
  0x50   : > { %8505 = vmatmul.mubr.msk.f32.gmra.mrb[12].mxu0 %vm411_vm3, %v353_v0 }
  0x51   : > { %8571 = vmatmul.mubr.msk.f32.gmra.mrb[12].mxu1 %vm411_vm3, %v353_v0  ;;  %759 = vmatprep.mubr.f32.mxu0 %v9413_v32  ;;  %v395_v0 = vld [vmem:[%s13227_s2 + $0x180] sm:$0xff] }
  0x52   : > { %1208 = vmatprep.mubr.f32.mxu1 %v9413_v32 }
  0x54   : > { %8506 = vmatmul.mubr.msk.f32.gmra.mrb[14].mxu0 %vm411_vm3, %v354_v1 }
  0x55   : > { %8572 = vmatmul.mubr.msk.f32.gmra.mrb[14].mxu1 %vm411_vm3, %v354_v1  ;;  %765 = vmatprep.mubr.f32.mxu0 %v9413_v32  ;;  %v396_v1 = vld [vmem:[%s13227_s2 + $0x188] sm:$0xff] }
  0x56   : > { %1214 = vmatprep.mubr.f32.mxu1 %v9413_v32 }
  0x58   : > { %8507 = vmatmul.mubr.msk.f32.gmra.mrb[16].mxu0 %vm411_vm3, %v355_v2 }
  0x59   : > { %8573 = vmatmul.mubr.msk.f32.gmra.mrb[16].mxu1 %vm411_vm3, %v355_v2  ;;  %771 = vmatprep.mubr.f32.mxu0 %v9413_v32  ;;  %v397_v2 = vld [vmem:[%s13227_s2 + $0x190] sm:$0xff] }
  0x5a   : > { %1220 = vmatprep.mubr.f32.mxu1 %v9413_v32 }
  0x5c   : > { %8508 = vmatmul.mubr.msk.f32.gmra.mrb[18].mxu0 %vm411_vm3, %v356_v3 }
  0x5d   : > { %8574 = vmatmul.mubr.msk.f32.gmra.mrb[18].mxu1 %vm411_vm3, %v356_v3  ;;  %777 = vmatprep.mubr.f32.mxu0 %v9413_v32  ;;  %v398_v3 = vld [vmem:[%s13227_s2 + $0x198] sm:$0xff] }
  0x5e   : > { %1226 = vmatprep.mubr.f32.mxu1 %v9413_v32 }
  0x60   : > { %8509 = vmatmul.mubr.msk.f32.gmra.mrb[20].mxu0 %vm411_vm3, %v357_v4 }
  0x61   : > { %8575 = vmatmul.mubr.msk.f32.gmra.mrb[20].mxu1 %vm411_vm3, %v357_v4  ;;  %783 = vmatprep.mubr.f32.mxu0 %v9413_v32  ;;  %v399_v4 = vld [vmem:[%s13227_s2 + $0x1a0] sm:$0xff] }
  0x62   : > { %1232 = vmatprep.mubr.f32.mxu1 %v9413_v32 }
  0x64   : > { %8510 = vmatmul.mubr.msk.f32.gmra.mrb[22].mxu0 %vm411_vm3, %v358_v5 }
  0x65   : > { %8576 = vmatmul.mubr.msk.f32.gmra.mrb[22].mxu1 %vm411_vm3, %v358_v5  ;;  %789 = vmatprep.mubr.f32.mxu0 %v9413_v32  ;;  %v400_v5 = vld [vmem:[%s13227_s2 + $0x1a8] sm:$0xff] }
  0x66   : > { %1238 = vmatprep.mubr.f32.mxu1 %v9413_v32 }
  0x68   : > { %8511 = vmatmul.mubr.msk.f32.gmra.mrb[24].mxu0 %vm411_vm3, %v359_v6 }
  0x69   : > { %8577 = vmatmul.mubr.msk.f32.gmra.mrb[24].mxu1 %vm411_vm3, %v359_v6  ;;  %795 = vmatprep.mubr.f32.mxu0 %v9413_v32 }
  0x6a   : > { %1244 = vmatprep.mubr.f32.mxu1 %v9413_v32 }
  0x6c   : > { %8512 = vmatmul.mubr.msk.f32.gmra.mrb[26].mxu0 %vm411_vm3, %v360_v7 }
  0x6d   : > { %8578 = vmatmul.mubr.msk.f32.gmra.mrb[26].mxu1 %vm411_vm3, %v360_v7  ;;  %801 = vmatprep.mubr.f32.mxu0 %v9413_v32 }
  0x6e   : > { %1250 = vmatprep.mubr.f32.mxu1 %v9413_v32 }
  0x70   : > { %8513 = vmatmul.mubr.msk.f32.gmra.mrb[28].mxu0 %vm411_vm3, %v361_v8 }
  0x71   : > { %8579 = vmatmul.mubr.msk.f32.gmra.mrb[28].mxu1 %vm411_vm3, %v361_v8  ;;  %807 = vmatprep.mubr.f32.mxu0 %v9413_v32 }
  0x72   : > { %1256 = vmatprep.mubr.f32.mxu1 %v9413_v32 }
  0x74   : > { %8514 = vmatmul.mubr.msk.f32.gmra.mrb[30].mxu0 %vm411_vm3, %v362_v9 }
  0x75   : > { %8580 = vmatmul.mubr.msk.f32.gmra.mrb[30].mxu1 %vm411_vm3, %v362_v9  ;;  %813 = vmatprep.mubr.f32.mxu0 %v9413_v32 }
  0x76   : > { %1262 = vmatprep.mubr.f32.mxu1 %v9413_v32 }
  0x78   : > { %8515 = vmatmul.mubr.msk.f32.gmra.mrb[32].mxu0 %vm411_vm3, %v363_v10 }
  0x79   : > { %8581 = vmatmul.mubr.msk.f32.gmra.mrb[32].mxu1 %vm411_vm3, %v363_v10  ;;  %819 = vmatprep.mubr.f32.mxu0 %v9413_v32  ;;  %v401_v10 = vld [vmem:[%s13227_s2 + $0x1b0] sm:$0xff] }
  0x7a   : > { %1268 = vmatprep.mubr.f32.mxu1 %v9413_v32 }
  0x7c   : > { %8516 = vmatmul.mubr.msk.f32.gmra.mrb[34].mxu0 %vm411_vm3, %v364_v11 }
  0x7d   : > { %8582 = vmatmul.mubr.msk.f32.gmra.mrb[34].mxu1 %vm411_vm3, %v364_v11  ;;  %825 = vmatprep.mubr.f32.mxu0 %v9413_v32 }
  0x7e   : > { %1274 = vmatprep.mubr.f32.mxu1 %v9413_v32 }
  0x80   : > { %8517 = vmatmul.mubr.msk.f32.gmra.mrb[36].mxu0 %vm411_vm3, %v365_v12 }
  0x81   : > { %8583 = vmatmul.mubr.msk.f32.gmra.mrb[36].mxu1 %vm411_vm3, %v365_v12  ;;  %831 = vmatprep.mubr.f32.mxu0 %v9413_v32 }
  0x82   : > { %1280 = vmatprep.mubr.f32.mxu1 %v9413_v32 }
  0x84   : > { %8518 = vmatmul.mubr.msk.f32.gmra.mrb[38].mxu0 %vm411_vm3, %v366_v13 }
  0x85   : > { %8584 = vmatmul.mubr.msk.f32.gmra.mrb[38].mxu1 %vm411_vm3, %v366_v13  ;;  %837 = vmatprep.mubr.f32.mxu0 %v9413_v32 }
  0x86   : > { %1286 = vmatprep.mubr.f32.mxu1 %v9413_v32 }
  0x88   : > { %8519 = vmatmul.mubr.msk.f32.gmra.mrb[40].mxu0 %vm411_vm3, %v367_v14 }
  0x89   : > { %8585 = vmatmul.mubr.msk.f32.gmra.mrb[40].mxu1 %vm411_vm3, %v367_v14  ;;  %843 = vmatprep.mubr.f32.mxu0 %v9413_v32 }
  0x8a   : > { %1292 = vmatprep.mubr.f32.mxu1 %v9413_v32 }
  0x8c   : > { %8520 = vmatmul.mubr.msk.f32.gmra.mrb[42].mxu0 %vm411_vm3, %v368_v15 }
  0x8d   : > { %8586 = vmatmul.mubr.msk.f32.gmra.mrb[42].mxu1 %vm411_vm3, %v368_v15  ;;  %849 = vmatprep.mubr.f32.mxu0 %v9413_v32 }
  0x8e   : > { %1298 = vmatprep.mubr.f32.mxu1 %v9413_v32 }
  0x90   : > { %8521 = vmatmul.mubr.msk.f32.gmra.mrb[44].mxu0 %vm411_vm3, %v369_v16 }
  0x91   : > { %8587 = vmatmul.mubr.msk.f32.gmra.mrb[44].mxu1 %vm411_vm3, %v369_v16  ;;  %855 = vmatprep.mubr.f32.mxu0 %v9413_v32 }
  0x92   : > { %1304 = vmatprep.mubr.f32.mxu1 %v9413_v32 }
  0x94   : > { %8522 = vmatmul.mubr.msk.f32.gmra.mrb[46].mxu0 %vm411_vm3, %v370_v17 }
  0x95   : > { %8588 = vmatmul.mubr.msk.f32.gmra.mrb[46].mxu1 %vm411_vm3, %v370_v17  ;;  %861 = vmatprep.mubr.f32.mxu0 %v9413_v32 }
  0x96   : > { %1310 = vmatprep.mubr.f32.mxu1 %v9413_v32 }
  0x98   : > { %8523 = vmatmul.mubr.msk.f32.gmra.mrb[48].mxu0 %vm411_vm3, %v371_v18 }
  0x99   : > { %8589 = vmatmul.mubr.msk.f32.gmra.mrb[48].mxu1 %vm411_vm3, %v371_v18  ;;  %867 = vmatprep.mubr.f32.mxu0 %v9413_v32 }
  0x9a   : > { %1316 = vmatprep.mubr.f32.mxu1 %v9413_v32 }
  0x9c   : > { %8524 = vmatmul.mubr.msk.f32.gmra.mrb[50].mxu0 %vm411_vm3, %v372_v19 }
  0x9d   : > { %8590 = vmatmul.mubr.msk.f32.gmra.mrb[50].mxu1 %vm411_vm3, %v372_v19  ;;  %873 = vmatprep.mubr.f32.mxu0 %v9413_v32 }
  0x9e   : > { %1322 = vmatprep.mubr.f32.mxu1 %v9413_v32 }
  0xa0   : > { %8525 = vmatmul.mubr.msk.f32.gmra.mrb[52].mxu0 %vm411_vm3, %v373_v20 }
  0xa1   : > { %8591 = vmatmul.mubr.msk.f32.gmra.mrb[52].mxu1 %vm411_vm3, %v373_v20  ;;  %879 = vmatprep.mubr.f32.mxu0 %v9413_v32 }
  0xa2   : > { %1328 = vmatprep.mubr.f32.mxu1 %v9413_v32 }
  0xa4   : > { %8526 = vmatmul.mubr.msk.f32.gmra.mrb[54].mxu0 %vm411_vm3, %v374_v21 }
  0xa5   : > { %8592 = vmatmul.mubr.msk.f32.gmra.mrb[54].mxu1 %vm411_vm3, %v374_v21  ;;  %885 = vmatprep.mubr.f32.mxu0 %v9413_v32  ;;  %v402_v21 = vld [vmem:[%s13227_s2 + $0x1b8] sm:$0xff] }
  0xa6   : > { %1334 = vmatprep.mubr.f32.mxu1 %v9413_v32 }
  0xa8   : > { %8527 = vmatmul.mubr.msk.f32.gmra.mrb[56].mxu0 %vm411_vm3, %v375_v22 }
  0xa9   : > { %8593 = vmatmul.mubr.msk.f32.gmra.mrb[56].mxu1 %vm411_vm3, %v375_v22  ;;  %891 = vmatprep.mubr.f32.mxu0 %v9413_v32 }
  0xaa   : > { %1340 = vmatprep.mubr.f32.mxu1 %v9413_v32 }
  0xac   : > { %8528 = vmatmul.mubr.msk.f32.gmra.mrb[58].mxu0 %vm411_vm3, %v376_v23 }
  0xad   : > { %8594 = vmatmul.mubr.msk.f32.gmra.mrb[58].mxu1 %vm411_vm3, %v376_v23  ;;  %897 = vmatprep.mubr.f32.mxu0 %v9413_v32 }
  0xae   : > { %1346 = vmatprep.mubr.f32.mxu1 %v9413_v32 }
  0xb0   : > { %8529 = vmatmul.mubr.msk.f32.gmra.mrb[60].mxu0 %vm411_vm3, %v377_v24 }
  0xb1   : > { %8595 = vmatmul.mubr.msk.f32.gmra.mrb[60].mxu1 %vm411_vm3, %v377_v24  ;;  %903 = vmatprep.mubr.f32.mxu0 %v9413_v32 }
  0xb2   : > { %1352 = vmatprep.mubr.f32.mxu1 %v9413_v32 }
  0xb4   : > { %8530 = vmatmul.mubr.msk.f32.gmra.mrb[62].mxu0 %vm411_vm3, %v378_v25 }
  0xb5   : > { %8596 = vmatmul.mubr.msk.f32.gmra.mrb[62].mxu1 %vm411_vm3, %v378_v25  ;;  %909 = vmatprep.mubr.f32.mxu0 %v9413_v32 }
  0xb6   : > { %1358 = vmatprep.mubr.f32.mxu1 %v9413_v32 }
  0xb8   : > { %8531 = vmatmul.mubr.msk.f32.gmra.mrb[64].mxu0 %vm411_vm3, %v379_v26 }
  0xb9   : > { %8597 = vmatmul.mubr.msk.f32.gmra.mrb[64].mxu1 %vm411_vm3, %v379_v26  ;;  %915 = vmatprep.mubr.f32.mxu0 %v9413_v32 }
  0xba   : > { %1364 = vmatprep.mubr.f32.mxu1 %v9413_v32 }
  0xbc   : > { %8532 = vmatmul.mubr.msk.f32.gmra.mrb[66].mxu0 %vm411_vm3, %v380_v27 }
  0xbd   : > { %8598 = vmatmul.mubr.msk.f32.gmra.mrb[66].mxu1 %vm411_vm3, %v380_v27  ;;  %921 = vmatprep.mubr.f32.mxu0 %v9413_v32 }
  0xbe   : > { %1370 = vmatprep.mubr.f32.mxu1 %v9413_v32 }
  0xc0   : > { %8533 = vmatmul.mubr.msk.f32.gmra.mrb[68].mxu0 %vm411_vm3, %v381_v31 }
  0xc1   : > { %8599 = vmatmul.mubr.msk.f32.gmra.mrb[68].mxu1 %vm411_vm3, %v381_v31  ;;  %927 = vmatprep.mubr.f32.mxu0 %v9413_v32 }
  0xc2   : > { %1376 = vmatprep.mubr.f32.mxu1 %v9413_v32 }
  0xc4   : > { %8534 = vmatmul.mubr.msk.f32.gmra.mrb[70].mxu0 %vm411_vm3, %v382_v40 }
  0xc5   : > { %8600 = vmatmul.mubr.msk.f32.gmra.mrb[70].mxu1 %vm411_vm3, %v382_v40  ;;  %933 = vmatprep.mubr.f32.mxu0 %v9413_v32 }
  0xc6   : > { %1382 = vmatprep.mubr.f32.mxu1 %v9413_v32 }
  0xc8   : > { %8535 = vmatmul.mubr.msk.f32.gmra.mrb[72].mxu0 %vm411_vm3, %v383_v43 }
  0xc9   : > { %8601 = vmatmul.mubr.msk.f32.gmra.mrb[72].mxu1 %vm411_vm3, %v383_v43  ;;  %939 = vmatprep.mubr.f32.mxu0 %v9413_v32 }
  0xca   : > { %1388 = vmatprep.mubr.f32.mxu1 %v9413_v32 }
  0xcc   : > { %8536 = vmatmul.mubr.msk.f32.gmra.mrb[74].mxu0 %vm411_vm3, %v384_v44 }
  0xcd   : > { %8602 = vmatmul.mubr.msk.f32.gmra.mrb[74].mxu1 %vm411_vm3, %v384_v44  ;;  %945 = vmatprep.mubr.f32.mxu0 %v9413_v32  ;;  %v403_v44 = vld [vmem:[%s13227_s2 + $0x1c0] sm:$0xff] }
  0xce   : > { %1394 = vmatprep.mubr.f32.mxu1 %v9413_v32 }
  0xd0   : > { %8537 = vmatmul.mubr.msk.f32.gmra.mrb[76].mxu0 %vm411_vm3, %v385_v46 }
  0xd1   : > { %8603 = vmatmul.mubr.msk.f32.gmra.mrb[76].mxu1 %vm411_vm3, %v385_v46  ;;  %951 = vmatprep.mubr.f32.mxu0 %v9413_v32 }
  0xd2   : > { %1400 = vmatprep.mubr.f32.mxu1 %v9413_v32 }
  0xd4   : > { %8538 = vmatmul.mubr.msk.f32.gmra.mrb[78].mxu0 %vm411_vm3, %v386_v48 }
  0xd5   : > { %8604 = vmatmul.mubr.msk.f32.gmra.mrb[78].mxu1 %vm411_vm3, %v386_v48  ;;  %957 = vmatprep.mubr.f32.mxu0 %v9413_v32 }
  0xd6   : > { %1406 = vmatprep.mubr.f32.mxu1 %v9413_v32 }
  0xd8   : > { %8539 = vmatmul.mubr.msk.f32.gmra.mrb[80].mxu0 %vm411_vm3, %v387_v49 }
  0xd9   : > { %8605 = vmatmul.mubr.msk.f32.gmra.mrb[80].mxu1 %vm411_vm3, %v387_v49  ;;  %963 = vmatprep.mubr.f32.mxu0 %v9413_v32 }
  0xda   : > { %1412 = vmatprep.mubr.f32.mxu1 %v9413_v32 }
  0xdc   : > { %8540 = vmatmul.mubr.msk.f32.gmra.mrb[82].mxu0 %vm411_vm3, %v388_v50 }
  0xdd   : > { %8606 = vmatmul.mubr.msk.f32.gmra.mrb[82].mxu1 %vm411_vm3, %v388_v50  ;;  %969 = vmatprep.mubr.f32.mxu0 %v9413_v32 }
  0xde   : > { %1418 = vmatprep.mubr.f32.mxu1 %v9413_v32 }
  0xe0   : > { %8541 = vmatmul.mubr.msk.f32.gmra.mrb[84].mxu0 %vm411_vm3, %v389_v53 }
  0xe1   : > { %8607 = vmatmul.mubr.msk.f32.gmra.mrb[84].mxu1 %vm411_vm3, %v389_v53  ;;  %975 = vmatprep.mubr.f32.mxu0 %v9413_v32 }
  0xe2   : > { %1424 = vmatprep.mubr.f32.mxu1 %v9413_v32 }
  0xe4   : > { %8542 = vmatmul.mubr.msk.f32.gmra.mrb[86].mxu0 %vm411_vm3, %v390_v54 }
  0xe5   : > { %8608 = vmatmul.mubr.msk.f32.gmra.mrb[86].mxu1 %vm411_vm3, %v390_v54  ;;  %981 = vmatprep.mubr.f32.mxu0 %v9413_v32 }
  0xe6   : > { %1430 = vmatprep.mubr.f32.mxu1 %v9413_v32 }
  0xe8   : > { %8543 = vmatmul.mubr.msk.f32.gmra.mrb[88].mxu0 %vm411_vm3, %v391_v55 }
  0xe9   : > { %8609 = vmatmul.mubr.msk.f32.gmra.mrb[88].mxu1 %vm411_vm3, %v391_v55  ;;  %987 = vmatprep.mubr.f32.mxu0 %v9413_v32 }
  0xea   : > { %1436 = vmatprep.mubr.f32.mxu1 %v9413_v32 }
  0xec   : > { %8544 = vmatmul.mubr.msk.f32.gmra.mrb[90].mxu0 %vm411_vm3, %v392_v57 }
  0xed   : > { %8610 = vmatmul.mubr.msk.f32.gmra.mrb[90].mxu1 %vm411_vm3, %v392_v57  ;;  %993 = vmatprep.mubr.f32.mxu0 %v9413_v32 }
  0xee   : > { %1442 = vmatprep.mubr.f32.mxu1 %v9413_v32 }
  0xf0   : > { %8545 = vmatmul.mubr.msk.f32.gmra.mrb[92].mxu0 %vm411_vm3, %v393_v62 }
  0xf1   : > { %8611 = vmatmul.mubr.msk.f32.gmra.mrb[92].mxu1 %vm411_vm3, %v393_v62  ;;  %999 = vmatprep.mubr.f32.mxu0 %v9413_v32 }
  0xf2   : > { %1448 = vmatprep.mubr.f32.mxu1 %v9413_v32 }
  0xf4   : > { %8546 = vmatmul.mubr.msk.f32.gmra.mrb[94].mxu0 %vm411_vm3, %v394_v63 }
  0xf5   : > { %8612 = vmatmul.mubr.msk.f32.gmra.mrb[94].mxu1 %vm411_vm3, %v394_v63  ;;  %1005 = vmatprep.mubr.f32.mxu0 %v9413_v32 }
  0xf6   : > { %1454 = vmatprep.mubr.f32.mxu1 %v9413_v32 }
  0xf8   : > { %8547 = vmatmul.mubr.msk.f32.gmra.mrb[96].mxu0 %vm411_vm3, %v395_v0 }
  0xf9   : > { %8613 = vmatmul.mubr.msk.f32.gmra.mrb[96].mxu1 %vm411_vm3, %v395_v0  ;;  %1011 = vmatprep.mubr.f32.mxu0 %v9413_v32 }
  0xfa   : > { %1460 = vmatprep.mubr.f32.mxu1 %v9413_v32 }
  0xfc   : > { %8548 = vmatmul.mubr.msk.f32.gmra.mrb[98].mxu0 %vm411_vm3, %v396_v1 }
  0xfd   : > { %8614 = vmatmul.mubr.msk.f32.gmra.mrb[98].mxu1 %vm411_vm3, %v396_v1  ;;  %1017 = vmatprep.mubr.f32.mxu0 %v9413_v32 }
  0xfe   : > { %1466 = vmatprep.mubr.f32.mxu1 %v9413_v32 }
 0x100   : > { %8549 = vmatmul.mubr.msk.f32.gmra.mrb[100].mxu0 %vm411_vm3, %v397_v2 }
 0x101   : > { %8615 = vmatmul.mubr.msk.f32.gmra.mrb[100].mxu1 %vm411_vm3, %v397_v2  ;;  %1023 = vmatprep.mubr.f32.mxu0 %v9413_v32  ;;  %v404_v2 = vld [vmem:[%s13227_s2 + $0x1c8] sm:$0xff] }
 0x102   : > { %1472 = vmatprep.mubr.f32.mxu1 %v9413_v32 }
 0x104   : > { %8550 = vmatmul.mubr.msk.f32.gmra.mrb[102].mxu0 %vm411_vm3, %v398_v3 }
 0x105   : > { %8616 = vmatmul.mubr.msk.f32.gmra.mrb[102].mxu1 %vm411_vm3, %v398_v3  ;;  %1029 = vmatprep.mubr.f32.mxu0 %v9413_v32 }
 0x106   : > { %1478 = vmatprep.mubr.f32.mxu1 %v9413_v32 }
 0x108   : > { %8551 = vmatmul.mubr.msk.f32.gmra.mrb[104].mxu0 %vm411_vm3, %v399_v4 }
 0x109   : > { %8617 = vmatmul.mubr.msk.f32.gmra.mrb[104].mxu1 %vm411_vm3, %v399_v4  ;;  %1035 = vmatprep.mubr.f32.mxu0 %v9413_v32 }
 0x10a   : > { %1484 = vmatprep.mubr.f32.mxu1 %v9413_v32 }
 0x10b   : > { %v719_v6 = vpop.f32.mrb[0].mxu0 }
 0x10c   : > { %v1168_v7 = vpop.f32.mrb[0].mxu1  ;;  %v721_v8 = vpop.f32.mrb[1].mxu0  ;;  %8552 = vmatmul.mubr.msk.f32.gmra.mrb[106].mxu0 %vm411_vm3, %v400_v5  ;;  %v4245_v11 = vand.u32 2147483647, %v719_v6 }
 0x10d   : > { %v1170_v9 = vpop.f32.mrb[1].mxu1  ;;  %8618 = vmatmul.mubr.msk.f32.gmra.mrb[106].mxu1 %vm411_vm3, %v400_v5  ;;  %1041 = vmatprep.mubr.f32.mxu0 %v9413_v32  ;;  %v4247_v12 = vand.u32 2147483647, %v1168_v7  ;;  %v4246_v14 = vand.u32 2147483647, %v721_v8 }
 0x10e   : > { %1490 = vmatprep.mubr.f32.mxu1 %v9413_v32  ;;  %v4248_v22 = vand.u32 2147483647, %v1170_v9 }
 0x10f   : > { %v725_v13 = vpop.f32.mrb[2].mxu0 }
 0x110   : > { %v4261_v15 = vand.u32 2147483647, %v725_v13  ;;  %v1174_v16 = vpop.f32.mrb[2].mxu1  ;;  %v727_v17 = vpop.f32.mrb[3].mxu0  ;;  %8553 = vmatmul.mubr.msk.f32.gmra.mrb[108].mxu0 %vm411_vm3, %v401_v10 }
 0x111   : > { %v4263_v18 = vand.u32 2147483647, %v1174_v16  ;;  %v4262_v19 = vand.u32 2147483647, %v727_v17  ;;  %v1176_v20 = vpop.f32.mrb[3].mxu1  ;;  %8619 = vmatmul.mubr.msk.f32.gmra.mrb[108].mxu1 %vm411_vm3, %v401_v10  ;;  %1047 = vmatprep.mubr.f32.mxu0 %v9413_v32 }
 0x112   : > { %v5269_v23 = vadd.f32 %v4261_v15, %v4245_v11  ;;  %v4264_v24 = vand.u32 2147483647, %v1176_v20  ;;  %1496 = vmatprep.mubr.f32.mxu1 %v9413_v32  ;;  %v405_v15 = vld [vmem:[%s13227_s2 + $0x1d0] sm:$0xff] }
 0x113   : > { %v5407_v25 = vadd.f32 %v4263_v18, %v4247_v12  ;;  %v5338_v26 = vadd.f32 %v4262_v19, %v4246_v14  ;;  %v731_v27 = vpop.f32.mrb[4].mxu0 }
 0x114   : > { %v5476_v28 = vadd.f32 %v4264_v24, %v4248_v22  ;;  %v4277_v29 = vand.u32 2147483647, %v731_v27  ;;  %v1180_v30 = vpop.f32.mrb[4].mxu1  ;;  %v733_v31 = vpop.f32.mrb[5].mxu0  ;;  %8554 = vmatmul.mubr.msk.f32.gmra.mrb[110].mxu0 %vm411_vm3, %v402_v21 }
 0x115   : > { %v4279_v35 = vand.u32 2147483647, %v1180_v30  ;;  %v4278_v40 = vand.u32 2147483647, %v733_v31  ;;  %v1182_v43 = vpop.f32.mrb[5].mxu1  ;;  %8620 = vmatmul.mubr.msk.f32.gmra.mrb[110].mxu1 %vm411_vm3, %v402_v21  ;;  %1053 = vmatprep.mubr.f32.mxu0 %v9413_v32 }
 0x116   : > { %v5270_v46 = vadd.f32 %v5269_v23, %v4277_v29  ;;  %v4280_v48 = vand.u32 2147483647, %v1182_v43  ;;  %1502 = vmatprep.mubr.f32.mxu1 %v9413_v32 }
 0x117   : > { %v5408_v49 = vadd.f32 %v5407_v25, %v4279_v35  ;;  %v5339_v50 = vadd.f32 %v5338_v26, %v4278_v40  ;;  %v737_v53 = vpop.f32.mrb[6].mxu0 }
 0x118   : > { %v5477_v54 = vadd.f32 %v5476_v28, %v4280_v48  ;;  %v4293_v55 = vand.u32 2147483647, %v737_v53  ;;  %v1186_v57 = vpop.f32.mrb[6].mxu1  ;;  %v739_v62 = vpop.f32.mrb[7].mxu0  ;;  %8555 = vmatmul.mubr.msk.f32.gmra.mrb[112].mxu0 %vm411_vm3, %v403_v44  ;;  %v406_v28 = vld [vmem:[%s13227_s2 + $0x1d8] sm:$0xff] }
 0x119   : > { %v4295_v63 = vand.u32 2147483647, %v1186_v57  ;;  %v4294_v0 = vand.u32 2147483647, %v739_v62  ;;  %v1188_v1 = vpop.f32.mrb[7].mxu1  ;;  %8621 = vmatmul.mubr.msk.f32.gmra.mrb[112].mxu1 %vm411_vm3, %v403_v44  ;;  %1059 = vmatprep.mubr.f32.mxu0 %v9413_v32 }
 0x11a   : > { %v5271_v3 = vadd.f32 %v5270_v46, %v4293_v55  ;;  %v4296_v4 = vand.u32 2147483647, %v1188_v1  ;;  %1508 = vmatprep.mubr.f32.mxu1 %v9413_v32 }
 0x11b   : > { %v5409_v5 = vadd.f32 %v5408_v49, %v4295_v63  ;;  %v5340_v6 = vadd.f32 %v5339_v50, %v4294_v0  ;;  %v743_v7 = vpop.f32.mrb[8].mxu0 }
 0x11c   : > { %v5478_v8 = vadd.f32 %v5477_v54, %v4296_v4  ;;  %v4309_v9 = vand.u32 2147483647, %v743_v7  ;;  %v1192_v10 = vpop.f32.mrb[8].mxu1  ;;  %v745_v11 = vpop.f32.mrb[9].mxu0  ;;  %8556 = vmatmul.mubr.msk.f32.gmra.mrb[114].mxu0 %vm411_vm3, %v404_v2  ;;  %v407_v54 = vld [vmem:[%s13227_s2 + $0x1e0] sm:$0xff] }
 0x11d   : > { %v4311_v12 = vand.u32 2147483647, %v1192_v10  ;;  %v4310_v13 = vand.u32 2147483647, %v745_v11  ;;  %v1194_v14 = vpop.f32.mrb[9].mxu1  ;;  %8622 = vmatmul.mubr.msk.f32.gmra.mrb[114].mxu1 %vm411_vm3, %v404_v2  ;;  %1065 = vmatprep.mubr.f32.mxu0 %v9413_v32 }
 0x11e   : > { %v5272_v16 = vadd.f32 %v5271_v3, %v4309_v9  ;;  %v4312_v17 = vand.u32 2147483647, %v1194_v14  ;;  %1514 = vmatprep.mubr.f32.mxu1 %v9413_v32 }
 0x11f   : > { %v5410_v18 = vadd.f32 %v5409_v5, %v4311_v12  ;;  %v5341_v19 = vadd.f32 %v5340_v6, %v4310_v13  ;;  %v749_v20 = vpop.f32.mrb[10].mxu0 }
 0x120   : > { %v5479_v21 = vadd.f32 %v5478_v8, %v4312_v17  ;;  %v4325_v22 = vand.u32 2147483647, %v749_v20  ;;  %v1198_v23 = vpop.f32.mrb[10].mxu1  ;;  %v751_v24 = vpop.f32.mrb[11].mxu0  ;;  %8557 = vmatmul.mubr.msk.f32.gmra.mrb[116].mxu0 %vm411_vm3, %v405_v15  ;;  %v408_v8 = vld [vmem:[%s13227_s2 + $0x1e8] sm:$0xff] }
 0x121   : > { %v4327_v25 = vand.u32 2147483647, %v1198_v23  ;;  %v4326_v26 = vand.u32 2147483647, %v751_v24  ;;  %v1200_v27 = vpop.f32.mrb[11].mxu1  ;;  %8623 = vmatmul.mubr.msk.f32.gmra.mrb[116].mxu1 %vm411_vm3, %v405_v15  ;;  %1071 = vmatprep.mubr.f32.mxu0 %v9413_v32 }
 0x122   : > { %v5273_v29 = vadd.f32 %v5272_v16, %v4325_v22  ;;  %v4328_v30 = vand.u32 2147483647, %v1200_v27  ;;  %1520 = vmatprep.mubr.f32.mxu1 %v9413_v32 }
 0x123   : > { %v5411_v31 = vadd.f32 %v5410_v18, %v4327_v25  ;;  %v5342_v35 = vadd.f32 %v5341_v19, %v4326_v26  ;;  %v755_v40 = vpop.f32.mrb[12].mxu0 }
 0x124   : > { %v5480_v43 = vadd.f32 %v5479_v21, %v4328_v30  ;;  %v4341_v44 = vand.u32 2147483647, %v755_v40  ;;  %v1204_v46 = vpop.f32.mrb[12].mxu1  ;;  %v757_v48 = vpop.f32.mrb[13].mxu0  ;;  %8558 = vmatmul.mubr.msk.f32.gmra.mrb[118].mxu0 %vm411_vm3, %v406_v28  ;;  %v409_v21 = vld [vmem:[%s13227_s2 + $0x1f0] sm:$0xff] }
 0x125   : > { %v4343_v49 = vand.u32 2147483647, %v1204_v46  ;;  %v4342_v50 = vand.u32 2147483647, %v757_v48  ;;  %v1206_v53 = vpop.f32.mrb[13].mxu1  ;;  %8624 = vmatmul.mubr.msk.f32.gmra.mrb[118].mxu1 %vm411_vm3, %v406_v28  ;;  %1077 = vmatprep.mubr.f32.mxu0 %v9413_v32 }
 0x126   : > { %v5274_v55 = vadd.f32 %v5273_v29, %v4341_v44  ;;  %v4344_v57 = vand.u32 2147483647, %v1206_v53  ;;  %1526 = vmatprep.mubr.f32.mxu1 %v9413_v32  ;;  %v334_v48 = vld [vmem:[%s9564_s11 + $0xc0] sm:$0x1] }
 0x127   : > { %v5412_v62 = vadd.f32 %v5411_v31, %v4343_v49  ;;  %v5343_v63 = vadd.f32 %v5342_v35, %v4342_v50  ;;  %v761_v0 = vpop.f32.mrb[14].mxu0 }
 0x128   : > { %v5481_v1 = vadd.f32 %v5480_v43, %v4344_v57  ;;  %v4357_v2 = vand.u32 2147483647, %v761_v0  ;;  %v1210_v3 = vpop.f32.mrb[14].mxu1  ;;  %v763_v4 = vpop.f32.mrb[15].mxu0  ;;  %8559 = vmatmul.mubr.msk.f32.gmra.mrb[120].mxu0 %vm411_vm3, %v407_v54  ;;  %v410_v43 = vld [vmem:[%s13227_s2 + $0x1f8] sm:$0xff] }
 0x129   : > { %v4359_v5 = vand.u32 2147483647, %v1210_v3  ;;  %v4358_v6 = vand.u32 2147483647, %v763_v4  ;;  %v1212_v7 = vpop.f32.mrb[15].mxu1  ;;  %8625 = vmatmul.mubr.msk.f32.gmra.mrb[120].mxu1 %vm411_vm3, %v407_v54  ;;  %1083 = vmatprep.mubr.f32.mxu0 %v9413_v32  ;;  %v10126_v3 = vpack.c.bf16 %v334_v48, %v9899_v36 }
 0x12a   : > { %v5275_v9 = vadd.f32 %v5274_v55, %v4357_v2  ;;  %v4360_v10 = vand.u32 2147483647, %v1212_v7  ;;  %1532 = vmatprep.mubr.f32.mxu1 %v9413_v32  ;;  %v336_v54 = vld [vmem:[%s9564_s11 + $0xd0] sm:$0x1] }
 0x12b   : > { %v5413_v11 = vadd.f32 %v5412_v62, %v4359_v5  ;;  %v5344_v12 = vadd.f32 %v5343_v63, %v4358_v6  ;;  %v767_v13 = vpop.f32.mrb[16].mxu0  ;;  %v10130_v6 = vpack.c.bf16 %v336_v54, %v9907_v39 }
 0x12c   : > { %v5482_v14 = vadd.f32 %v5481_v1, %v4360_v10  ;;  %v4373_v15 = vand.u32 2147483647, %v767_v13  ;;  %v1216_v16 = vpop.f32.mrb[16].mxu1  ;;  %v769_v17 = vpop.f32.mrb[17].mxu0  ;;  %8560 = vmatmul.mubr.msk.f32.gmra.mrb[122].mxu0 %vm411_vm3, %v408_v8 }
 0x12d   : > { %v4375_v18 = vand.u32 2147483647, %v1216_v16  ;;  %v4374_v19 = vand.u32 2147483647, %v769_v17  ;;  %v1218_v20 = vpop.f32.mrb[17].mxu1  ;;  %8626 = vmatmul.mubr.msk.f32.gmra.mrb[122].mxu1 %vm411_vm3, %v408_v8  ;;  %1089 = vmatprep.mubr.f32.mxu0 %v9413_v32 }
 0x12e   : > { %v5276_v22 = vadd.f32 %v5275_v9, %v4373_v15  ;;  %v4376_v23 = vand.u32 2147483647, %v1218_v20  ;;  %1538 = vmatprep.mubr.f32.mxu1 %v9413_v32 }
 0x12f   : > { %v5414_v24 = vadd.f32 %v5413_v11, %v4375_v18  ;;  %v5345_v25 = vadd.f32 %v5344_v12, %v4374_v19  ;;  %v773_v26 = vpop.f32.mrb[18].mxu0 }
 0x130   : > { %v5483_v27 = vadd.f32 %v5482_v14, %v4376_v23  ;;  %v4389_v28 = vand.u32 2147483647, %v773_v26  ;;  %v1222_v29 = vpop.f32.mrb[18].mxu1  ;;  %v775_v30 = vpop.f32.mrb[19].mxu0  ;;  %8561 = vmatmul.mubr.msk.f32.gmra.mrb[124].mxu0 %vm411_vm3, %v409_v21 }
 0x131   : > { %v4391_v31 = vand.u32 2147483647, %v1222_v29  ;;  %v4390_v35 = vand.u32 2147483647, %v775_v30  ;;  %v1224_v40 = vpop.f32.mrb[19].mxu1  ;;  %8627 = vmatmul.mubr.msk.f32.gmra.mrb[124].mxu1 %vm411_vm3, %v409_v21  ;;  %1095 = vmatprep.mubr.f32.mxu0 %v9413_v32 }
 0x132   : > { %v5277_v44 = vadd.f32 %v5276_v22, %v4389_v28  ;;  %v4392_v46 = vand.u32 2147483647, %v1224_v40  ;;  %1544 = vmatprep.mubr.f32.mxu1 %v9413_v32 }
 0x133   : > { %v5415_v49 = vadd.f32 %v5414_v24, %v4391_v31  ;;  %v5346_v50 = vadd.f32 %v5345_v25, %v4390_v35  ;;  %v779_v53 = vpop.f32.mrb[20].mxu0 }
 0x134   : > { %v5484_v55 = vadd.f32 %v5483_v27, %v4392_v46  ;;  %v4405_v57 = vand.u32 2147483647, %v779_v53  ;;  %v1228_v62 = vpop.f32.mrb[20].mxu1  ;;  %v781_v63 = vpop.f32.mrb[21].mxu0  ;;  %8562 = vmatmul.mubr.msk.f32.gmra.mrb[126].mxu0 %vm411_vm3, %v410_v43 }
 0x135   : > { %v4407_v0 = vand.u32 2147483647, %v1228_v62  ;;  %v4406_v1 = vand.u32 2147483647, %v781_v63  ;;  %v1230_v2 = vpop.f32.mrb[21].mxu1  ;;  %8628 = vmatmul.mubr.msk.f32.gmra.mrb[126].mxu1 %vm411_vm3, %v410_v43  ;;  %1615 = vmatprep.mubr.f32.mxu0 %v9413_v32 }
 0x136   : > { %v5278_v4 = vadd.f32 %v5277_v44, %v4405_v57  ;;  %v4408_v5 = vand.u32 2147483647, %v1230_v2  ;;  %2064 = vmatprep.mubr.f32.mxu1 %v9413_v32 }
 0x137   : > { %v5416_v7 = vadd.f32 %v5415_v49, %v4407_v0  ;;  %v5347_v8 = vadd.f32 %v5346_v50, %v4406_v1  ;;  %v785_v9 = vpop.f32.mrb[22].mxu0 }
 0x138   : > { %v5485_v10 = vadd.f32 %v5484_v55, %v4408_v5  ;;  %v4421_v11 = vand.u32 2147483647, %v785_v9  ;;  %v1234_v12 = vpop.f32.mrb[22].mxu1  ;;  %v787_v13 = vpop.f32.mrb[23].mxu0  ;;  %8631 = vmatmul.mubr.msk.f32.vlgmr.msra.gmra.mrb[128].mxu0 %vm411_vm3, %v9590_v45 }
 0x139   : > { %v4423_v14 = vand.u32 2147483647, %v1234_v12  ;;  %v4422_v36 = vand.u32 2147483647, %v787_v13  ;;  %v1236_v15 = vpop.f32.mrb[23].mxu1  ;;  %8697 = vmatmul.mubr.msk.f32.vlgmr.msra.gmra.mrb[128].mxu1 %vm411_vm3, %v9590_v45  ;;  %9087 = vmatpush1.bf16.msk.msra.mxu0 %vm9560_vm2, %v10126_v3  ;;  %v9196_v13 = vld [vmem:[%s13227_s2 + $0x20] sm:$0xff] }
 0x13a   : > { %v5279_v39 = vadd.f32 %v5278_v4, %v4421_v11  ;;  %v4424_v16 = vand.u32 2147483647, %v1236_v15  ;;  %9093 = vmatpush1.bf16.msk.msra.mxu1 %vm9560_vm2, %v10130_v6  ;;  %1621 = vmatprep.mubr.f32.mxu0 %v9413_v32 }
 0x13b   : > { %v5417_v17 = vadd.f32 %v5416_v7, %v4423_v14  ;;  %v5348_v18 = vadd.f32 %v5347_v8, %v4422_v36  ;;  %v791_v19 = vpop.f32.mrb[24].mxu0  ;;  %2070 = vmatprep.mubr.f32.mxu1 %v9413_v32 }
 0x13c   : > { %v5486_v20 = vadd.f32 %v5485_v10, %v4424_v16  ;;  %v4437_v21 = vand.u32 2147483647, %v791_v19  ;;  %v1240_v45 = vpop.f32.mrb[24].mxu1  ;;  %v793_v22 = vpop.f32.mrb[25].mxu0  ;;  %8632 = vmatmul.mubr.msk.f32.gmra.mrb[130].mxu0 %vm411_vm3, %v9643_v59 }
 0x13d   : > { %v4439_v23 = vand.u32 2147483647, %v1240_v45  ;;  %v4438_v24 = vand.u32 2147483647, %v793_v22  ;;  %v1242_v25 = vpop.f32.mrb[25].mxu1  ;;  %8698 = vmatmul.mubr.msk.f32.gmra.mrb[130].mxu1 %vm411_vm3, %v9643_v59  ;;  %1627 = vmatprep.mubr.f32.mxu0 %v9413_v32  ;;  %v9197_v22 = vld [vmem:[%s13227_s2 + $0x28] sm:$0xff] }
 0x13e   : > { %v5280_v26 = vadd.f32 %v5279_v39, %v4437_v21  ;;  %v4440_v27 = vand.u32 2147483647, %v1242_v25  ;;  %2076 = vmatprep.mubr.f32.mxu1 %v9413_v32 }
 0x13f   : > { %v5418_v28 = vadd.f32 %v5417_v17, %v4439_v23  ;;  %v5349_v29 = vadd.f32 %v5348_v18, %v4438_v24  ;;  %v797_v30 = vpop.f32.mrb[26].mxu0 }
 0x140   : > { %v5487_v31 = vadd.f32 %v5486_v20, %v4440_v27  ;;  %v4453_v35 = vand.u32 2147483647, %v797_v30  ;;  %v1246_v40 = vpop.f32.mrb[26].mxu1  ;;  %v799_v43 = vpop.f32.mrb[27].mxu0  ;;  %8633 = vmatmul.mubr.msk.f32.gmra.mrb[132].mxu0 %vm411_vm3, %v9658_v60 }
 0x141   : > { %v4455_v44 = vand.u32 2147483647, %v1246_v40  ;;  %v4454_v46 = vand.u32 2147483647, %v799_v43  ;;  %v1248_v48 = vpop.f32.mrb[27].mxu1  ;;  %8699 = vmatmul.mubr.msk.f32.gmra.mrb[132].mxu1 %vm411_vm3, %v9658_v60  ;;  %1633 = vmatprep.mubr.f32.mxu0 %v9413_v32 }
 0x142   : > { %v5281_v59 = vadd.f32 %v5280_v26, %v4453_v35  ;;  %v4456_v49 = vand.u32 2147483647, %v1248_v48  ;;  %2082 = vmatprep.mubr.f32.mxu1 %v9413_v32 }
 0x143   : > { %v5419_v50 = vadd.f32 %v5418_v28, %v4455_v44  ;;  %v5350_v53 = vadd.f32 %v5349_v29, %v4454_v46  ;;  %v803_v54 = vpop.f32.mrb[28].mxu0  ;;  %v9198_v44 = vld [vmem:[%s13227_s2 + $0x30] sm:$0xff] }
 0x144   : > { %v5488_v55 = vadd.f32 %v5487_v31, %v4456_v49  ;;  %v4469_v57 = vand.u32 2147483647, %v803_v54  ;;  %v1252_v62 = vpop.f32.mrb[28].mxu1  ;;  %v805_v63 = vpop.f32.mrb[29].mxu0  ;;  %8634 = vmatmul.mubr.msk.f32.gmra.mrb[134].mxu0 %vm411_vm3, %v9669_v61 }
 0x145   : > { %v4471_v0 = vand.u32 2147483647, %v1252_v62  ;;  %v4470_v1 = vand.u32 2147483647, %v805_v63  ;;  %v1254_v2 = vpop.f32.mrb[29].mxu1  ;;  %8700 = vmatmul.mubr.msk.f32.gmra.mrb[134].mxu1 %vm411_vm3, %v9669_v61  ;;  %1639 = vmatprep.mubr.f32.mxu0 %v9413_v32 }
 0x146   : > { %v5282_v60 = vadd.f32 %v5281_v59, %v4469_v57  ;;  %v4472_v4 = vand.u32 2147483647, %v1254_v2  ;;  %2088 = vmatprep.mubr.f32.mxu1 %v9413_v32 }
 0x147   : > { %v5420_v5 = vadd.f32 %v5419_v50, %v4471_v0  ;;  %v5351_v7 = vadd.f32 %v5350_v53, %v4470_v1  ;;  %v809_v8 = vpop.f32.mrb[30].mxu0  ;;  %v9199_v1 = vld [vmem:[%s13227_s2 + $0x38] sm:$0xff] }
 0x148   : > { %v5489_v9 = vadd.f32 %v5488_v55, %v4472_v4  ;;  %v4485_v10 = vand.u32 2147483647, %v809_v8  ;;  %v1258_v11 = vpop.f32.mrb[30].mxu1  ;;  %v811_v12 = vpop.f32.mrb[31].mxu0  ;;  %8635 = vmatmul.mubr.msk.f32.gmra.mrb[136].mxu0 %vm411_vm3, %v9196_v13 }
 0x149   : > { %v4487_v61 = vand.u32 2147483647, %v1258_v11  ;;  %v4486_v14 = vand.u32 2147483647, %v811_v12  ;;  %v1260_v36 = vpop.f32.mrb[31].mxu1  ;;  %8701 = vmatmul.mubr.msk.f32.gmra.mrb[136].mxu1 %vm411_vm3, %v9196_v13  ;;  %1645 = vmatprep.mubr.f32.mxu0 %v9413_v32 }
 0x14a   : > { %v5283_v15 = vadd.f32 %v5282_v60, %v4485_v10  ;;  %v4488_v39 = vand.u32 2147483647, %v1260_v36  ;;  %2094 = vmatprep.mubr.f32.mxu1 %v9413_v32 }
 0x14b   : > { %v5421_v16 = vadd.f32 %v5420_v5, %v4487_v61  ;;  %v5352_v17 = vadd.f32 %v5351_v7, %v4486_v14  ;;  %v815_v18 = vpop.f32.mrb[32].mxu0  ;;  %v9200_v14 = vld [vmem:[%s13227_s2 + $0x40] sm:$0xff] }
 0x14c   : > { %v5490_v19 = vadd.f32 %v5489_v9, %v4488_v39  ;;  %v4501_v20 = vand.u32 2147483647, %v815_v18  ;;  %v1264_v21 = vpop.f32.mrb[32].mxu1  ;;  %v817_v45 = vpop.f32.mrb[33].mxu0  ;;  %8636 = vmatmul.mubr.msk.f32.gmra.mrb[138].mxu0 %vm411_vm3, %v9197_v22 }
 0x14d   : > { %v4503_v23 = vand.u32 2147483647, %v1264_v21  ;;  %v4502_v24 = vand.u32 2147483647, %v817_v45  ;;  %v1266_v25 = vpop.f32.mrb[33].mxu1  ;;  %8702 = vmatmul.mubr.msk.f32.gmra.mrb[138].mxu1 %vm411_vm3, %v9197_v22  ;;  %1651 = vmatprep.mubr.f32.mxu0 %v9413_v32 }
 0x14e   : > { %v5284_v26 = vadd.f32 %v5283_v15, %v4501_v20  ;;  %v4504_v27 = vand.u32 2147483647, %v1266_v25  ;;  %2100 = vmatprep.mubr.f32.mxu1 %v9413_v32 }
 0x14f   : > { %v5422_v28 = vadd.f32 %v5421_v16, %v4503_v23  ;;  %v5353_v29 = vadd.f32 %v5352_v17, %v4502_v24  ;;  %v821_v30 = vpop.f32.mrb[34].mxu0  ;;  %v9201_v24 = vld [vmem:[%s13227_s2 + $0x48] sm:$0xff] }
 0x150   : > { %v5491_v31 = vadd.f32 %v5490_v19, %v4504_v27  ;;  %v4517_v35 = vand.u32 2147483647, %v821_v30  ;;  %v1270_v40 = vpop.f32.mrb[34].mxu1  ;;  %v823_v43 = vpop.f32.mrb[35].mxu0  ;;  %8637 = vmatmul.mubr.msk.f32.gmra.mrb[140].mxu0 %vm411_vm3, %v9198_v44 }
 0x151   : > { %v4519_v46 = vand.u32 2147483647, %v1270_v40  ;;  %v4518_v48 = vand.u32 2147483647, %v823_v43  ;;  %v1272_v59 = vpop.f32.mrb[35].mxu1  ;;  %8703 = vmatmul.mubr.msk.f32.gmra.mrb[140].mxu1 %vm411_vm3, %v9198_v44  ;;  %1657 = vmatprep.mubr.f32.mxu0 %v9413_v32 }
 0x152   : > { %v5285_v49 = vadd.f32 %v5284_v26, %v4517_v35  ;;  %v4520_v50 = vand.u32 2147483647, %v1272_v59  ;;  %2106 = vmatprep.mubr.f32.mxu1 %v9413_v32 }
 0x153   : > { %v5423_v53 = vadd.f32 %v5422_v28, %v4519_v46  ;;  %v5354_v54 = vadd.f32 %v5353_v29, %v4518_v48  ;;  %v827_v55 = vpop.f32.mrb[36].mxu0  ;;  %v9202_v48 = vld [vmem:[%s13227_s2 + $0x50] sm:$0xff] }
 0x154   : > { %v5492_v57 = vadd.f32 %v5491_v31, %v4520_v50  ;;  %v4533_v62 = vand.u32 2147483647, %v827_v55  ;;  %v1276_v63 = vpop.f32.mrb[36].mxu1  ;;  %v829_v0 = vpop.f32.mrb[37].mxu0  ;;  %8638 = vmatmul.mubr.msk.f32.gmra.mrb[142].mxu0 %vm411_vm3, %v9199_v1 }
 0x155   : > { %v4535_v2 = vand.u32 2147483647, %v1276_v63  ;;  %v4534_v60 = vand.u32 2147483647, %v829_v0  ;;  %v1278_v4 = vpop.f32.mrb[37].mxu1  ;;  %8704 = vmatmul.mubr.msk.f32.gmra.mrb[142].mxu1 %vm411_vm3, %v9199_v1  ;;  %1663 = vmatprep.mubr.f32.mxu0 %v9413_v32 }
 0x156   : > { %v5286_v5 = vadd.f32 %v5285_v49, %v4533_v62  ;;  %v4536_v7 = vand.u32 2147483647, %v1278_v4  ;;  %2112 = vmatprep.mubr.f32.mxu1 %v9413_v32 }
 0x157   : > { %v5424_v8 = vadd.f32 %v5423_v53, %v4535_v2  ;;  %v5355_v9 = vadd.f32 %v5354_v54, %v4534_v60  ;;  %v833_v10 = vpop.f32.mrb[38].mxu0  ;;  %v9203_v60 = vld [vmem:[%s13227_s2 + $0x58] sm:$0xff] }
 0x158   : > { %v5493_v11 = vadd.f32 %v5492_v57, %v4536_v7  ;;  %v4549_v12 = vand.u32 2147483647, %v833_v10  ;;  %v1282_v13 = vpop.f32.mrb[38].mxu1  ;;  %v835_v61 = vpop.f32.mrb[39].mxu0  ;;  %8639 = vmatmul.mubr.msk.f32.gmra.mrb[144].mxu0 %vm411_vm3, %v9200_v14 }
 0x159   : > { %v4551_v36 = vand.u32 2147483647, %v1282_v13  ;;  %v4550_v15 = vand.u32 2147483647, %v835_v61  ;;  %v1284_v39 = vpop.f32.mrb[39].mxu1  ;;  %8705 = vmatmul.mubr.msk.f32.gmra.mrb[144].mxu1 %vm411_vm3, %v9200_v14  ;;  %1669 = vmatprep.mubr.f32.mxu0 %v9413_v32 }
 0x15a   : > { %v5287_v16 = vadd.f32 %v5286_v5, %v4549_v12  ;;  %v4552_v17 = vand.u32 2147483647, %v1284_v39  ;;  %2118 = vmatprep.mubr.f32.mxu1 %v9413_v32 }
 0x15b   : > { %v5425_v18 = vadd.f32 %v5424_v8, %v4551_v36  ;;  %v5356_v19 = vadd.f32 %v5355_v9, %v4550_v15  ;;  %v839_v20 = vpop.f32.mrb[40].mxu0  ;;  %v9204_v15 = vld [vmem:[%s13227_s2 + $0x60] sm:$0xff] }
 0x15c   : > { %v5494_v21 = vadd.f32 %v5493_v11, %v4552_v17  ;;  %v4565_v45 = vand.u32 2147483647, %v839_v20  ;;  %v1288_v22 = vpop.f32.mrb[40].mxu1  ;;  %v841_v23 = vpop.f32.mrb[41].mxu0  ;;  %8640 = vmatmul.mubr.msk.f32.gmra.mrb[146].mxu0 %vm411_vm3, %v9201_v24 }
 0x15d   : > { %v4567_v25 = vand.u32 2147483647, %v1288_v22  ;;  %v4566_v26 = vand.u32 2147483647, %v841_v23  ;;  %v1290_v27 = vpop.f32.mrb[41].mxu1  ;;  %8706 = vmatmul.mubr.msk.f32.gmra.mrb[146].mxu1 %vm411_vm3, %v9201_v24  ;;  %1675 = vmatprep.mubr.f32.mxu0 %v9413_v32 }
 0x15e   : > { %v5288_v28 = vadd.f32 %v5287_v16, %v4565_v45  ;;  %v4568_v29 = vand.u32 2147483647, %v1290_v27  ;;  %2124 = vmatprep.mubr.f32.mxu1 %v9413_v32 }
 0x15f   : > { %v5426_v30 = vadd.f32 %v5425_v18, %v4567_v25  ;;  %v5357_v31 = vadd.f32 %v5356_v19, %v4566_v26  ;;  %v845_v35 = vpop.f32.mrb[42].mxu0  ;;  %v9205_v26 = vld [vmem:[%s13227_s2 + $0x68] sm:$0xff] }
 0x160   : > { %v5495_v40 = vadd.f32 %v5494_v21, %v4568_v29  ;;  %v4581_v43 = vand.u32 2147483647, %v845_v35  ;;  %v1294_v44 = vpop.f32.mrb[42].mxu1  ;;  %v847_v46 = vpop.f32.mrb[43].mxu0  ;;  %8641 = vmatmul.mubr.msk.f32.gmra.mrb[148].mxu0 %vm411_vm3, %v9202_v48 }
 0x161   : > { %v4583_v59 = vand.u32 2147483647, %v1294_v44  ;;  %v4582_v49 = vand.u32 2147483647, %v847_v46  ;;  %v1296_v50 = vpop.f32.mrb[43].mxu1  ;;  %8707 = vmatmul.mubr.msk.f32.gmra.mrb[148].mxu1 %vm411_vm3, %v9202_v48  ;;  %1681 = vmatprep.mubr.f32.mxu0 %v9413_v32 }
 0x162   : > { %v5289_v53 = vadd.f32 %v5288_v28, %v4581_v43  ;;  %v4584_v54 = vand.u32 2147483647, %v1296_v50  ;;  %2130 = vmatprep.mubr.f32.mxu1 %v9413_v32 }
 0x163   : > { %v5427_v55 = vadd.f32 %v5426_v30, %v4583_v59  ;;  %v5358_v57 = vadd.f32 %v5357_v31, %v4582_v49  ;;  %v851_v62 = vpop.f32.mrb[44].mxu0  ;;  %v9206_v49 = vld [vmem:[%s13227_s2 + $0x70] sm:$0xff] }
 0x164   : > { %v5496_v63 = vadd.f32 %v5495_v40, %v4584_v54  ;;  %v4597_v0 = vand.u32 2147483647, %v851_v62  ;;  %v1300_v1 = vpop.f32.mrb[44].mxu1  ;;  %v853_v2 = vpop.f32.mrb[45].mxu0  ;;  %8642 = vmatmul.mubr.msk.f32.gmra.mrb[150].mxu0 %vm411_vm3, %v9203_v60 }
 0x165   : > { %v4599_v4 = vand.u32 2147483647, %v1300_v1  ;;  %v4598_v5 = vand.u32 2147483647, %v853_v2  ;;  %v1302_v7 = vpop.f32.mrb[45].mxu1  ;;  %8708 = vmatmul.mubr.msk.f32.gmra.mrb[150].mxu1 %vm411_vm3, %v9203_v60  ;;  %1687 = vmatprep.mubr.f32.mxu0 %v9413_v32 }
 0x166   : > { %v5290_v8 = vadd.f32 %v5289_v53, %v4597_v0  ;;  %v4600_v9 = vand.u32 2147483647, %v1302_v7  ;;  %2136 = vmatprep.mubr.f32.mxu1 %v9413_v32 }
 0x167   : > { %v5428_v10 = vadd.f32 %v5427_v55, %v4599_v4  ;;  %v5359_v11 = vadd.f32 %v5358_v57, %v4598_v5  ;;  %v857_v12 = vpop.f32.mrb[46].mxu0  ;;  %v9207_v5 = vld [vmem:[%s13227_s2 + $0x78] sm:$0xff] }
 0x168   : > { %v5497_v13 = vadd.f32 %v5496_v63, %v4600_v9  ;;  %v4613_v61 = vand.u32 2147483647, %v857_v12  ;;  %v1306_v14 = vpop.f32.mrb[46].mxu1  ;;  %v859_v36 = vpop.f32.mrb[47].mxu0  ;;  %8643 = vmatmul.mubr.msk.f32.gmra.mrb[152].mxu0 %vm411_vm3, %v9204_v15 }
 0x169   : > { %v4615_v39 = vand.u32 2147483647, %v1306_v14  ;;  %v4614_v16 = vand.u32 2147483647, %v859_v36  ;;  %v1308_v17 = vpop.f32.mrb[47].mxu1  ;;  %8709 = vmatmul.mubr.msk.f32.gmra.mrb[152].mxu1 %vm411_vm3, %v9204_v15  ;;  %1693 = vmatprep.mubr.f32.mxu0 %v9413_v32 }
 0x16a   : > { %v5291_v18 = vadd.f32 %v5290_v8, %v4613_v61  ;;  %v4616_v19 = vand.u32 2147483647, %v1308_v17  ;;  %2142 = vmatprep.mubr.f32.mxu1 %v9413_v32 }
 0x16b   : > { %v5429_v20 = vadd.f32 %v5428_v10, %v4615_v39  ;;  %v5360_v21 = vadd.f32 %v5359_v11, %v4614_v16  ;;  %v863_v45 = vpop.f32.mrb[48].mxu0  ;;  %v9208_v16 = vld [vmem:[%s13227_s2 + $0x80] sm:$0xff] }
 0x16c   : > { %v5498_v22 = vadd.f32 %v5497_v13, %v4616_v19  ;;  %v4629_v23 = vand.u32 2147483647, %v863_v45  ;;  %v1312_v24 = vpop.f32.mrb[48].mxu1  ;;  %v865_v25 = vpop.f32.mrb[49].mxu0  ;;  %8644 = vmatmul.mubr.msk.f32.gmra.mrb[154].mxu0 %vm411_vm3, %v9205_v26 }
 0x16d   : > { %v4631_v27 = vand.u32 2147483647, %v1312_v24  ;;  %v4630_v28 = vand.u32 2147483647, %v865_v25  ;;  %v1314_v29 = vpop.f32.mrb[49].mxu1  ;;  %8710 = vmatmul.mubr.msk.f32.gmra.mrb[154].mxu1 %vm411_vm3, %v9205_v26  ;;  %1699 = vmatprep.mubr.f32.mxu0 %v9413_v32 }
 0x16e   : > { %v5292_v30 = vadd.f32 %v5291_v18, %v4629_v23  ;;  %v4632_v31 = vand.u32 2147483647, %v1314_v29  ;;  %2148 = vmatprep.mubr.f32.mxu1 %v9413_v32 }
 0x16f   : > { %v5430_v35 = vadd.f32 %v5429_v20, %v4631_v27  ;;  %v5361_v40 = vadd.f32 %v5360_v21, %v4630_v28  ;;  %v869_v43 = vpop.f32.mrb[50].mxu0  ;;  %v9209_v28 = vld [vmem:[%s13227_s2 + $0x88] sm:$0xff] }
 0x170   : > { %v5499_v44 = vadd.f32 %v5498_v22, %v4632_v31  ;;  %v4645_v46 = vand.u32 2147483647, %v869_v43  ;;  %v1318_v48 = vpop.f32.mrb[50].mxu1  ;;  %v871_v59 = vpop.f32.mrb[51].mxu0  ;;  %8645 = vmatmul.mubr.msk.f32.gmra.mrb[156].mxu0 %vm411_vm3, %v9206_v49 }
 0x171   : > { %v4647_v50 = vand.u32 2147483647, %v1318_v48  ;;  %v4646_v53 = vand.u32 2147483647, %v871_v59  ;;  %v1320_v54 = vpop.f32.mrb[51].mxu1  ;;  %8711 = vmatmul.mubr.msk.f32.gmra.mrb[156].mxu1 %vm411_vm3, %v9206_v49  ;;  %1705 = vmatprep.mubr.f32.mxu0 %v9413_v32 }
 0x172   : > { %v5293_v55 = vadd.f32 %v5292_v30, %v4645_v46  ;;  %v4648_v57 = vand.u32 2147483647, %v1320_v54  ;;  %2154 = vmatprep.mubr.f32.mxu1 %v9413_v32 }
 0x173   : > { %v5431_v62 = vadd.f32 %v5430_v35, %v4647_v50  ;;  %v5362_v63 = vadd.f32 %v5361_v40, %v4646_v53  ;;  %v875_v0 = vpop.f32.mrb[52].mxu0  ;;  %v9210_v53 = vld [vmem:[%s13227_s2 + $0x90] sm:$0xff] }
 0x174   : > { %v5500_v1 = vadd.f32 %v5499_v44, %v4648_v57  ;;  %v4661_v2 = vand.u32 2147483647, %v875_v0  ;;  %v1324_v60 = vpop.f32.mrb[52].mxu1  ;;  %v877_v4 = vpop.f32.mrb[53].mxu0  ;;  %8646 = vmatmul.mubr.msk.f32.gmra.mrb[158].mxu0 %vm411_vm3, %v9207_v5 }
 0x175   : > { %v4663_v7 = vand.u32 2147483647, %v1324_v60  ;;  %v4662_v8 = vand.u32 2147483647, %v877_v4  ;;  %v1326_v9 = vpop.f32.mrb[53].mxu1  ;;  %8712 = vmatmul.mubr.msk.f32.gmra.mrb[158].mxu1 %vm411_vm3, %v9207_v5  ;;  %1711 = vmatprep.mubr.f32.mxu0 %v9413_v32 }
 0x176   : > { %v5294_v10 = vadd.f32 %v5293_v55, %v4661_v2  ;;  %v4664_v11 = vand.u32 2147483647, %v1326_v9  ;;  %2160 = vmatprep.mubr.f32.mxu1 %v9413_v32 }
 0x177   : > { %v5432_v12 = vadd.f32 %v5431_v62, %v4663_v7  ;;  %v5363_v13 = vadd.f32 %v5362_v63, %v4662_v8  ;;  %v881_v61 = vpop.f32.mrb[54].mxu0  ;;  %v9211_v8 = vld [vmem:[%s13227_s2 + $0x98] sm:$0xff] }
 0x178   : > { %v5501_v14 = vadd.f32 %v5500_v1, %v4664_v11  ;;  %v4677_v36 = vand.u32 2147483647, %v881_v61  ;;  %v1330_v15 = vpop.f32.mrb[54].mxu1  ;;  %v883_v39 = vpop.f32.mrb[55].mxu0  ;;  %8647 = vmatmul.mubr.msk.f32.gmra.mrb[160].mxu0 %vm411_vm3, %v9208_v16 }
 0x179   : > { %v4679_v17 = vand.u32 2147483647, %v1330_v15  ;;  %v4678_v18 = vand.u32 2147483647, %v883_v39  ;;  %v1332_v19 = vpop.f32.mrb[55].mxu1  ;;  %8713 = vmatmul.mubr.msk.f32.gmra.mrb[160].mxu1 %vm411_vm3, %v9208_v16  ;;  %1717 = vmatprep.mubr.f32.mxu0 %v9413_v32 }
 0x17a   : > { %v5295_v20 = vadd.f32 %v5294_v10, %v4677_v36  ;;  %v4680_v21 = vand.u32 2147483647, %v1332_v19  ;;  %2166 = vmatprep.mubr.f32.mxu1 %v9413_v32 }
 0x17b   : > { %v5433_v45 = vadd.f32 %v5432_v12, %v4679_v17  ;;  %v5364_v22 = vadd.f32 %v5363_v13, %v4678_v18  ;;  %v887_v23 = vpop.f32.mrb[56].mxu0  ;;  %v9212_v18 = vld [vmem:[%s13227_s2 + $0xa0] sm:$0xff] }
 0x17c   : > { %v5502_v24 = vadd.f32 %v5501_v14, %v4680_v21  ;;  %v4693_v25 = vand.u32 2147483647, %v887_v23  ;;  %v1336_v26 = vpop.f32.mrb[56].mxu1  ;;  %v889_v27 = vpop.f32.mrb[57].mxu0  ;;  %8648 = vmatmul.mubr.msk.f32.gmra.mrb[162].mxu0 %vm411_vm3, %v9209_v28 }
 0x17d   : > { %v4695_v29 = vand.u32 2147483647, %v1336_v26  ;;  %v4694_v30 = vand.u32 2147483647, %v889_v27  ;;  %v1338_v31 = vpop.f32.mrb[57].mxu1  ;;  %8714 = vmatmul.mubr.msk.f32.gmra.mrb[162].mxu1 %vm411_vm3, %v9209_v28  ;;  %1723 = vmatprep.mubr.f32.mxu0 %v9413_v32 }
 0x17e   : > { %v5296_v35 = vadd.f32 %v5295_v20, %v4693_v25  ;;  %v4696_v40 = vand.u32 2147483647, %v1338_v31  ;;  %2172 = vmatprep.mubr.f32.mxu1 %v9413_v32 }
 0x17f   : > { %v5434_v43 = vadd.f32 %v5433_v45, %v4695_v29  ;;  %v5365_v44 = vadd.f32 %v5364_v22, %v4694_v30  ;;  %v893_v46 = vpop.f32.mrb[58].mxu0  ;;  %v9213_v30 = vld [vmem:[%s13227_s2 + $0xa8] sm:$0xff] }
 0x180   : > { %v5503_v48 = vadd.f32 %v5502_v24, %v4696_v40  ;;  %v4709_v59 = vand.u32 2147483647, %v893_v46  ;;  %v1342_v49 = vpop.f32.mrb[58].mxu1  ;;  %v895_v50 = vpop.f32.mrb[59].mxu0  ;;  %8649 = vmatmul.mubr.msk.f32.gmra.mrb[164].mxu0 %vm411_vm3, %v9210_v53 }
 0x181   : > { %v4711_v54 = vand.u32 2147483647, %v1342_v49  ;;  %v4710_v55 = vand.u32 2147483647, %v895_v50  ;;  %v1344_v57 = vpop.f32.mrb[59].mxu1  ;;  %8715 = vmatmul.mubr.msk.f32.gmra.mrb[164].mxu1 %vm411_vm3, %v9210_v53  ;;  %1729 = vmatprep.mubr.f32.mxu0 %v9413_v32 }
 0x182   : > { %v5297_v62 = vadd.f32 %v5296_v35, %v4709_v59  ;;  %v4712_v63 = vand.u32 2147483647, %v1344_v57  ;;  %2178 = vmatprep.mubr.f32.mxu1 %v9413_v32 }
 0x183   : > { %v5435_v0 = vadd.f32 %v5434_v43, %v4711_v54  ;;  %v5366_v1 = vadd.f32 %v5365_v44, %v4710_v55  ;;  %v899_v2 = vpop.f32.mrb[60].mxu0  ;;  %v9214_v55 = vld [vmem:[%s13227_s2 + $0xb0] sm:$0xff] }
 0x184   : > { %v5504_v60 = vadd.f32 %v5503_v48, %v4712_v63  ;;  %v4725_v4 = vand.u32 2147483647, %v899_v2  ;;  %v1348_v5 = vpop.f32.mrb[60].mxu1  ;;  %v901_v7 = vpop.f32.mrb[61].mxu0  ;;  %8650 = vmatmul.mubr.msk.f32.gmra.mrb[166].mxu0 %vm411_vm3, %v9211_v8 }
 0x185   : > { %v4727_v9 = vand.u32 2147483647, %v1348_v5  ;;  %v4726_v10 = vand.u32 2147483647, %v901_v7  ;;  %v1350_v11 = vpop.f32.mrb[61].mxu1  ;;  %8716 = vmatmul.mubr.msk.f32.gmra.mrb[166].mxu1 %vm411_vm3, %v9211_v8  ;;  %1735 = vmatprep.mubr.f32.mxu0 %v9413_v32 }
 0x186   : > { %v5298_v12 = vadd.f32 %v5297_v62, %v4725_v4  ;;  %v4728_v13 = vand.u32 2147483647, %v1350_v11  ;;  %2184 = vmatprep.mubr.f32.mxu1 %v9413_v32 }
 0x187   : > { %v5436_v61 = vadd.f32 %v5435_v0, %v4727_v9  ;;  %v5367_v14 = vadd.f32 %v5366_v1, %v4726_v10  ;;  %v905_v36 = vpop.f32.mrb[62].mxu0  ;;  %v9215_v10 = vld [vmem:[%s13227_s2 + $0xb8] sm:$0xff] }
 0x188   : > { %v5505_v15 = vadd.f32 %v5504_v60, %v4728_v13  ;;  %v4741_v39 = vand.u32 2147483647, %v905_v36  ;;  %v1354_v16 = vpop.f32.mrb[62].mxu1  ;;  %v907_v17 = vpop.f32.mrb[63].mxu0  ;;  %8651 = vmatmul.mubr.msk.f32.gmra.mrb[168].mxu0 %vm411_vm3, %v9212_v18 }
 0x189   : > { %v4743_v19 = vand.u32 2147483647, %v1354_v16  ;;  %v4742_v20 = vand.u32 2147483647, %v907_v17  ;;  %v1356_v21 = vpop.f32.mrb[63].mxu1  ;;  %8717 = vmatmul.mubr.msk.f32.gmra.mrb[168].mxu1 %vm411_vm3, %v9212_v18  ;;  %1741 = vmatprep.mubr.f32.mxu0 %v9413_v32 }
 0x18a   : > { %v5299_v45 = vadd.f32 %v5298_v12, %v4741_v39  ;;  %v4744_v22 = vand.u32 2147483647, %v1356_v21  ;;  %2190 = vmatprep.mubr.f32.mxu1 %v9413_v32 }
 0x18b   : > { %v5437_v23 = vadd.f32 %v5436_v61, %v4743_v19  ;;  %v5368_v24 = vadd.f32 %v5367_v14, %v4742_v20  ;;  %v911_v25 = vpop.f32.mrb[64].mxu0  ;;  %v9216_v20 = vld [vmem:[%s13227_s2 + $0xc0] sm:$0xff] }
 0x18c   : > { %v5506_v26 = vadd.f32 %v5505_v15, %v4744_v22  ;;  %v4757_v27 = vand.u32 2147483647, %v911_v25  ;;  %v1360_v28 = vpop.f32.mrb[64].mxu1  ;;  %v913_v29 = vpop.f32.mrb[65].mxu0  ;;  %8652 = vmatmul.mubr.msk.f32.gmra.mrb[170].mxu0 %vm411_vm3, %v9213_v30 }
 0x18d   : > { %v4759_v31 = vand.u32 2147483647, %v1360_v28  ;;  %v4758_v35 = vand.u32 2147483647, %v913_v29  ;;  %v1362_v40 = vpop.f32.mrb[65].mxu1  ;;  %8718 = vmatmul.mubr.msk.f32.gmra.mrb[170].mxu1 %vm411_vm3, %v9213_v30  ;;  %1747 = vmatprep.mubr.f32.mxu0 %v9413_v32 }
 0x18e   : > { %v5300_v43 = vadd.f32 %v5299_v45, %v4757_v27  ;;  %v4760_v44 = vand.u32 2147483647, %v1362_v40  ;;  %2196 = vmatprep.mubr.f32.mxu1 %v9413_v32 }
 0x18f   : > { %v5438_v46 = vadd.f32 %v5437_v23, %v4759_v31  ;;  %v5369_v48 = vadd.f32 %v5368_v24, %v4758_v35  ;;  %v917_v59 = vpop.f32.mrb[66].mxu0  ;;  %v9217_v35 = vld [vmem:[%s13227_s2 + $0xc8] sm:$0xff] }
 0x190   : > { %v5507_v49 = vadd.f32 %v5506_v26, %v4760_v44  ;;  %v4773_v50 = vand.u32 2147483647, %v917_v59  ;;  %v1366_v53 = vpop.f32.mrb[66].mxu1  ;;  %v919_v54 = vpop.f32.mrb[67].mxu0  ;;  %8653 = vmatmul.mubr.msk.f32.gmra.mrb[172].mxu0 %vm411_vm3, %v9214_v55 }
 0x191   : > { %v4775_v57 = vand.u32 2147483647, %v1366_v53  ;;  %v4774_v62 = vand.u32 2147483647, %v919_v54  ;;  %v1368_v63 = vpop.f32.mrb[67].mxu1  ;;  %8719 = vmatmul.mubr.msk.f32.gmra.mrb[172].mxu1 %vm411_vm3, %v9214_v55  ;;  %1753 = vmatprep.mubr.f32.mxu0 %v9413_v32 }
 0x192   : > { %v5301_v0 = vadd.f32 %v5300_v43, %v4773_v50  ;;  %v4776_v1 = vand.u32 2147483647, %v1368_v63  ;;  %2202 = vmatprep.mubr.f32.mxu1 %v9413_v32 }
 0x193   : > { %v5439_v2 = vadd.f32 %v5438_v46, %v4775_v57  ;;  %v5370_v60 = vadd.f32 %v5369_v48, %v4774_v62  ;;  %v923_v4 = vpop.f32.mrb[68].mxu0  ;;  %v9218_v62 = vld [vmem:[%s13227_s2 + $0xd0] sm:$0xff] }
 0x194   : > { %v5508_v5 = vadd.f32 %v5507_v49, %v4776_v1  ;;  %v4789_v7 = vand.u32 2147483647, %v923_v4  ;;  %v1372_v8 = vpop.f32.mrb[68].mxu1  ;;  %v925_v9 = vpop.f32.mrb[69].mxu0  ;;  %8654 = vmatmul.mubr.msk.f32.gmra.mrb[174].mxu0 %vm411_vm3, %v9215_v10 }
 0x195   : > { %v4791_v11 = vand.u32 2147483647, %v1372_v8  ;;  %v4790_v12 = vand.u32 2147483647, %v925_v9  ;;  %v1374_v13 = vpop.f32.mrb[69].mxu1  ;;  %8720 = vmatmul.mubr.msk.f32.gmra.mrb[174].mxu1 %vm411_vm3, %v9215_v10  ;;  %1759 = vmatprep.mubr.f32.mxu0 %v9413_v32 }
 0x196   : > { %v5302_v61 = vadd.f32 %v5301_v0, %v4789_v7  ;;  %v4792_v14 = vand.u32 2147483647, %v1374_v13  ;;  %2208 = vmatprep.mubr.f32.mxu1 %v9413_v32 }
 0x197   : > { %v5440_v36 = vadd.f32 %v5439_v2, %v4791_v11  ;;  %v5371_v15 = vadd.f32 %v5370_v60, %v4790_v12  ;;  %v929_v39 = vpop.f32.mrb[70].mxu0  ;;  %v9219_v12 = vld [vmem:[%s13227_s2 + $0xd8] sm:$0xff] }
 0x198   : > { %v5509_v16 = vadd.f32 %v5508_v5, %v4792_v14  ;;  %v4805_v17 = vand.u32 2147483647, %v929_v39  ;;  %v1378_v18 = vpop.f32.mrb[70].mxu1  ;;  %v931_v19 = vpop.f32.mrb[71].mxu0  ;;  %8655 = vmatmul.mubr.msk.f32.gmra.mrb[176].mxu0 %vm411_vm3, %v9216_v20 }
 0x199   : > { %v4807_v21 = vand.u32 2147483647, %v1378_v18  ;;  %v4806_v45 = vand.u32 2147483647, %v931_v19  ;;  %v1380_v22 = vpop.f32.mrb[71].mxu1  ;;  %8721 = vmatmul.mubr.msk.f32.gmra.mrb[176].mxu1 %vm411_vm3, %v9216_v20  ;;  %1765 = vmatprep.mubr.f32.mxu0 %v9413_v32 }
 0x19a   : > { %v5303_v23 = vadd.f32 %v5302_v61, %v4805_v17  ;;  %v4808_v24 = vand.u32 2147483647, %v1380_v22  ;;  %2214 = vmatprep.mubr.f32.mxu1 %v9413_v32 }
 0x19b   : > { %v5441_v25 = vadd.f32 %v5440_v36, %v4807_v21  ;;  %v5372_v26 = vadd.f32 %v5371_v15, %v4806_v45  ;;  %v935_v27 = vpop.f32.mrb[72].mxu0  ;;  %v9220_v45 = vld [vmem:[%s13227_s2 + $0xe0] sm:$0xff] }
 0x19c   : > { %v5510_v28 = vadd.f32 %v5509_v16, %v4808_v24  ;;  %v4821_v29 = vand.u32 2147483647, %v935_v27  ;;  %v1384_v30 = vpop.f32.mrb[72].mxu1  ;;  %v937_v31 = vpop.f32.mrb[73].mxu0  ;;  %8656 = vmatmul.mubr.msk.f32.gmra.mrb[178].mxu0 %vm411_vm3, %v9217_v35 }
 0x19d   : > { %v4823_v40 = vand.u32 2147483647, %v1384_v30  ;;  %v4822_v43 = vand.u32 2147483647, %v937_v31  ;;  %v1386_v44 = vpop.f32.mrb[73].mxu1  ;;  %8722 = vmatmul.mubr.msk.f32.gmra.mrb[178].mxu1 %vm411_vm3, %v9217_v35  ;;  %1771 = vmatprep.mubr.f32.mxu0 %v9413_v32 }
 0x19e   : > { %v5304_v46 = vadd.f32 %v5303_v23, %v4821_v29  ;;  %v4824_v48 = vand.u32 2147483647, %v1386_v44  ;;  %2220 = vmatprep.mubr.f32.mxu1 %v9413_v32 }
 0x19f   : > { %v5442_v59 = vadd.f32 %v5441_v25, %v4823_v40  ;;  %v5373_v49 = vadd.f32 %v5372_v26, %v4822_v43  ;;  %v941_v50 = vpop.f32.mrb[74].mxu0  ;;  %v9221_v43 = vld [vmem:[%s13227_s2 + $0xe8] sm:$0xff] }
 0x1a0   : > { %v5511_v53 = vadd.f32 %v5510_v28, %v4824_v48  ;;  %v4837_v54 = vand.u32 2147483647, %v941_v50  ;;  %v1390_v55 = vpop.f32.mrb[74].mxu1  ;;  %v943_v57 = vpop.f32.mrb[75].mxu0  ;;  %8657 = vmatmul.mubr.msk.f32.gmra.mrb[180].mxu0 %vm411_vm3, %v9218_v62 }
 0x1a1   : > { %v4839_v63 = vand.u32 2147483647, %v1390_v55  ;;  %v4838_v0 = vand.u32 2147483647, %v943_v57  ;;  %v1392_v1 = vpop.f32.mrb[75].mxu1  ;;  %8723 = vmatmul.mubr.msk.f32.gmra.mrb[180].mxu1 %vm411_vm3, %v9218_v62  ;;  %1777 = vmatprep.mubr.f32.mxu0 %v9413_v32 }
 0x1a2   : > { %v5305_v2 = vadd.f32 %v5304_v46, %v4837_v54  ;;  %v4840_v60 = vand.u32 2147483647, %v1392_v1  ;;  %2226 = vmatprep.mubr.f32.mxu1 %v9413_v32 }
 0x1a3   : > { %v5443_v4 = vadd.f32 %v5442_v59, %v4839_v63  ;;  %v5374_v5 = vadd.f32 %v5373_v49, %v4838_v0  ;;  %v947_v7 = vpop.f32.mrb[76].mxu0  ;;  %v9222_v0 = vld [vmem:[%s13227_s2 + $0xf0] sm:$0xff] }
 0x1a4   : > { %v5512_v8 = vadd.f32 %v5511_v53, %v4840_v60  ;;  %v4853_v9 = vand.u32 2147483647, %v947_v7  ;;  %v1396_v10 = vpop.f32.mrb[76].mxu1  ;;  %v949_v11 = vpop.f32.mrb[77].mxu0  ;;  %8658 = vmatmul.mubr.msk.f32.gmra.mrb[182].mxu0 %vm411_vm3, %v9219_v12 }
 0x1a5   : > { %v4855_v13 = vand.u32 2147483647, %v1396_v10  ;;  %v4854_v61 = vand.u32 2147483647, %v949_v11  ;;  %v1398_v14 = vpop.f32.mrb[77].mxu1  ;;  %8724 = vmatmul.mubr.msk.f32.gmra.mrb[182].mxu1 %vm411_vm3, %v9219_v12  ;;  %1783 = vmatprep.mubr.f32.mxu0 %v9413_v32 }
 0x1a6   : > { %v5306_v36 = vadd.f32 %v5305_v2, %v4853_v9  ;;  %v4856_v15 = vand.u32 2147483647, %v1398_v14  ;;  %2232 = vmatprep.mubr.f32.mxu1 %v9413_v32 }
 0x1a7   : > { %v5444_v39 = vadd.f32 %v5443_v4, %v4855_v13  ;;  %v5375_v16 = vadd.f32 %v5374_v5, %v4854_v61  ;;  %v953_v17 = vpop.f32.mrb[78].mxu0  ;;  %v9223_v61 = vld [vmem:[%s13227_s2 + $0xf8] sm:$0xff] }
 0x1a8   : > { %v5513_v18 = vadd.f32 %v5512_v8, %v4856_v15  ;;  %v4869_v19 = vand.u32 2147483647, %v953_v17  ;;  %v1402_v20 = vpop.f32.mrb[78].mxu1  ;;  %v955_v21 = vpop.f32.mrb[79].mxu0  ;;  %8659 = vmatmul.mubr.msk.f32.gmra.mrb[184].mxu0 %vm411_vm3, %v9220_v45 }
 0x1a9   : > { %v4871_v22 = vand.u32 2147483647, %v1402_v20  ;;  %v4870_v23 = vand.u32 2147483647, %v955_v21  ;;  %v1404_v24 = vpop.f32.mrb[79].mxu1  ;;  %8725 = vmatmul.mubr.msk.f32.gmra.mrb[184].mxu1 %vm411_vm3, %v9220_v45  ;;  %1789 = vmatprep.mubr.f32.mxu0 %v9413_v32 }
 0x1aa   : > { %v5307_v25 = vadd.f32 %v5306_v36, %v4869_v19  ;;  %v4872_v26 = vand.u32 2147483647, %v1404_v24  ;;  %2238 = vmatprep.mubr.f32.mxu1 %v9413_v32 }
 0x1ab   : > { %v5445_v27 = vadd.f32 %v5444_v39, %v4871_v22  ;;  %v5376_v28 = vadd.f32 %v5375_v16, %v4870_v23  ;;  %v959_v29 = vpop.f32.mrb[80].mxu0  ;;  %v9224_v23 = vld [vmem:[%s13227_s2 + $0x100] sm:$0xff] }
 0x1ac   : > { %v5514_v30 = vadd.f32 %v5513_v18, %v4872_v26  ;;  %v4885_v31 = vand.u32 2147483647, %v959_v29  ;;  %v1408_v35 = vpop.f32.mrb[80].mxu1  ;;  %v961_v40 = vpop.f32.mrb[81].mxu0  ;;  %8660 = vmatmul.mubr.msk.f32.gmra.mrb[186].mxu0 %vm411_vm3, %v9221_v43 }
 0x1ad   : > { %v4887_v44 = vand.u32 2147483647, %v1408_v35  ;;  %v4886_v46 = vand.u32 2147483647, %v961_v40  ;;  %v1410_v48 = vpop.f32.mrb[81].mxu1  ;;  %8726 = vmatmul.mubr.msk.f32.gmra.mrb[186].mxu1 %vm411_vm3, %v9221_v43  ;;  %1795 = vmatprep.mubr.f32.mxu0 %v9413_v32 }
 0x1ae   : > { %v5308_v59 = vadd.f32 %v5307_v25, %v4885_v31  ;;  %v4888_v49 = vand.u32 2147483647, %v1410_v48  ;;  %2244 = vmatprep.mubr.f32.mxu1 %v9413_v32  ;;  %v323_v48 = vld [vmem:[%s9564_s11 + $0x68] sm:$0xff] }
 0x1af   : > { %v5446_v50 = vadd.f32 %v5445_v27, %v4887_v44  ;;  %v5377_v53 = vadd.f32 %v5376_v28, %v4886_v46  ;;  %v965_v54 = vpop.f32.mrb[82].mxu0  ;;  %v9225_v46 = vld [vmem:[%s13227_s2 + $0x108] sm:$0xff]  ;;  %7209 = vst [vmem:[%s9573_s12 + $0x68] sm:$0xff] %v323_v48 }
 0x1b0   : > { %v5515_v55 = vadd.f32 %v5514_v30, %v4888_v49  ;;  %v4901_v57 = vand.u32 2147483647, %v965_v54  ;;  %v1414_v62 = vpop.f32.mrb[82].mxu1  ;;  %v967_v63 = vpop.f32.mrb[83].mxu0  ;;  %8661 = vmatmul.mubr.msk.f32.gmra.mrb[188].mxu0 %vm411_vm3, %v9222_v0  ;;  %v322_v54 = vld [vmem:[%s9564_s11 + $0x60] sm:$0xff] }
 0x1b1   : > { %v4903_v1 = vand.u32 2147483647, %v1414_v62  ;;  %v4902_v2 = vand.u32 2147483647, %v967_v63  ;;  %v1416_v60 = vpop.f32.mrb[83].mxu1  ;;  %8727 = vmatmul.mubr.msk.f32.gmra.mrb[188].mxu1 %vm411_vm3, %v9222_v0  ;;  %1801 = vmatprep.mubr.f32.mxu0 %v9413_v32  ;;  %7208 = vst [vmem:[%s9573_s12 + $0x60] sm:$0xff] %v322_v54 }
 0x1b2   : > { %v5309_v4 = vadd.f32 %v5308_v59, %v4901_v57  ;;  %v4904_v5 = vand.u32 2147483647, %v1416_v60  ;;  %2250 = vmatprep.mubr.f32.mxu1 %v9413_v32  ;;  %v325_v59 = vld [vmem:[%s9564_s11 + $0x78] sm:$0xff]  ;;  %v339_v62 = vld [vmem:[%s9564_s11 + $0xe8] sm:$0x1] }
 0x1b3   : > { %v5447_v7 = vadd.f32 %v5446_v50, %v4903_v1  ;;  %v5378_v8 = vadd.f32 %v5377_v53, %v4902_v2  ;;  %v971_v9 = vpop.f32.mrb[84].mxu0  ;;  %7211 = vst [vmem:[%s9573_s12 + $0x78] sm:$0xff] %v325_v59  ;;  %v341_v63 = vld [vmem:[%s9564_s11 + $0xf8] sm:$0x1]  ;;  %v10380_v60 = vpack.c.bf16 %v339_v62, %v323_v48 }
 0x1b4   : > { %v5516_v10 = vadd.f32 %v5515_v55, %v4904_v5  ;;  %v4917_v11 = vand.u32 2147483647, %v971_v9  ;;  %v1420_v12 = vpop.f32.mrb[84].mxu1  ;;  %v973_v13 = vpop.f32.mrb[85].mxu0  ;;  %8662 = vmatmul.mubr.msk.f32.gmra.mrb[190].mxu0 %vm411_vm3, %v9223_v61  ;;  %v324_v5 = vld [vmem:[%s9564_s11 + $0x70] sm:$0xff] }
 0x1b5   : > { %v4919_v14 = vand.u32 2147483647, %v1420_v12  ;;  %v4918_v36 = vand.u32 2147483647, %v973_v13  ;;  %v1422_v15 = vpop.f32.mrb[85].mxu1  ;;  %8728 = vmatmul.mubr.msk.f32.gmra.mrb[190].mxu1 %vm411_vm3, %v9223_v61  ;;  %1807 = vmatprep.mubr.f32.mxu0 %v9413_v32  ;;  %7210 = vst [vmem:[%s9573_s12 + $0x70] sm:$0xff] %v324_v5 }
 0x1b6   : > { %v5310_v39 = vadd.f32 %v5309_v4, %v4917_v11  ;;  %v4920_v16 = vand.u32 2147483647, %v1422_v15  ;;  %2256 = vmatprep.mubr.f32.mxu1 %v9413_v32  ;;  %v10382_v4 = vpack.c.bf16 %v341_v63, %v325_v59  ;;  %v9226_v11 = vld [vmem:[%s13227_s2 + $0x110] sm:$0xff]  ;;  %9096 = vmatprep.subr.msk.bf16.mxu0 %vm9560_vm2, %v10380_v60  ;;  %v9229_v63 = vld [vmem:[%s13227_s2 + $0x128] sm:$0xff] }
 0x1b7   : > { %v5448_v17 = vadd.f32 %v5447_v7, %v4919_v14  ;;  %v5379_v18 = vadd.f32 %v5378_v8, %v4918_v36  ;;  %v977_v19 = vpop.f32.mrb[86].mxu0 }
 0x1b8   : > { %v5517_v20 = vadd.f32 %v5516_v10, %v4920_v16  ;;  %v4933_v21 = vand.u32 2147483647, %v977_v19  ;;  %v1426_v45 = vpop.f32.mrb[86].mxu1  ;;  %v979_v22 = vpop.f32.mrb[87].mxu0  ;;  %8663 = vmatmul.mubr.msk.f32.gmra.mrb[192].mxu0 %vm411_vm3, %v9224_v23  ;;  %9102 = vmatprep.subr.msk.bf16.mxu1 %vm9560_vm2, %v10382_v4 }
 0x1b9   : > { %v4935_v24 = vand.u32 2147483647, %v1426_v45  ;;  %v4934_v25 = vand.u32 2147483647, %v979_v22  ;;  %v1428_v26 = vpop.f32.mrb[87].mxu1  ;;  %8729 = vmatmul.mubr.msk.f32.gmra.mrb[192].mxu1 %vm411_vm3, %v9224_v23  ;;  %1813 = vmatprep.mubr.f32.mxu0 %v9413_v32 }
 0x1ba   : > { %v5311_v27 = vadd.f32 %v5310_v39, %v4933_v21  ;;  %v4936_v28 = vand.u32 2147483647, %v1428_v26  ;;  %2262 = vmatprep.mubr.f32.mxu1 %v9413_v32  ;;  %v9227_v21 = vld [vmem:[%s13227_s2 + $0x118] sm:$0xff] }
 0x1bb   : > { %v5449_v29 = vadd.f32 %v5448_v17, %v4935_v24  ;;  %v5380_v30 = vadd.f32 %v5379_v18, %v4934_v25  ;;  %v983_v31 = vpop.f32.mrb[88].mxu0 }
 0x1bc   : > { %v5518_v35 = vadd.f32 %v5517_v20, %v4936_v28  ;;  %v4949_v40 = vand.u32 2147483647, %v983_v31  ;;  %v1432_v43 = vpop.f32.mrb[88].mxu1  ;;  %v985_v44 = vpop.f32.mrb[89].mxu0  ;;  %8664 = vmatmul.mubr.msk.f32.gmra.mrb[194].mxu0 %vm411_vm3, %v9225_v46 }
 0x1bd   : > { %v4951_v49 = vand.u32 2147483647, %v1432_v43  ;;  %v4950_v50 = vand.u32 2147483647, %v985_v44  ;;  %v1434_v53 = vpop.f32.mrb[89].mxu1  ;;  %8730 = vmatmul.mubr.msk.f32.gmra.mrb[194].mxu1 %vm411_vm3, %v9225_v46  ;;  %1819 = vmatprep.mubr.f32.mxu0 %v9413_v32 }
 0x1be   : > { %v5312_v55 = vadd.f32 %v5311_v27, %v4949_v40  ;;  %v4952_v57 = vand.u32 2147483647, %v1434_v53  ;;  %2268 = vmatprep.mubr.f32.mxu1 %v9413_v32  ;;  %v9228_v40 = vld [vmem:[%s13227_s2 + $0x120] sm:$0xff] }
 0x1bf   : > { %v5450_v0 = vadd.f32 %v5449_v29, %v4951_v49  ;;  %v5381_v1 = vadd.f32 %v5380_v30, %v4950_v50  ;;  %v989_v2 = vpop.f32.mrb[90].mxu0 }
 0x1c0   : > { %v5519_v7 = vadd.f32 %v5518_v35, %v4952_v57  ;;  %v4965_v8 = vand.u32 2147483647, %v989_v2  ;;  %v1438_v9 = vpop.f32.mrb[90].mxu1  ;;  %v991_v10 = vpop.f32.mrb[91].mxu0  ;;  %8665 = vmatmul.mubr.msk.f32.gmra.mrb[196].mxu0 %vm411_vm3, %v9226_v11 }
 0x1c1   : > { %v4967_v12 = vand.u32 2147483647, %v1438_v9  ;;  %v4966_v13 = vand.u32 2147483647, %v991_v10  ;;  %v1440_v61 = vpop.f32.mrb[91].mxu1  ;;  %8731 = vmatmul.mubr.msk.f32.gmra.mrb[196].mxu1 %vm411_vm3, %v9226_v11  ;;  %1825 = vmatprep.mubr.f32.mxu0 %v9413_v32 }
 0x1c2   : > { %v5313_v14 = vadd.f32 %v5312_v55, %v4965_v8  ;;  %v4968_v36 = vand.u32 2147483647, %v1440_v61  ;;  %2274 = vmatprep.mubr.f32.mxu1 %v9413_v32 }
 0x1c3   : > { %v5451_v15 = vadd.f32 %v5450_v0, %v4967_v12  ;;  %v5382_v39 = vadd.f32 %v5381_v1, %v4966_v13  ;;  %v995_v16 = vpop.f32.mrb[92].mxu0 }
 0x1c4   : > { %v5520_v17 = vadd.f32 %v5519_v7, %v4968_v36  ;;  %v4981_v18 = vand.u32 2147483647, %v995_v16  ;;  %v1444_v19 = vpop.f32.mrb[92].mxu1  ;;  %v997_v20 = vpop.f32.mrb[93].mxu0  ;;  %8666 = vmatmul.mubr.msk.f32.gmra.mrb[198].mxu0 %vm411_vm3, %v9227_v21 }
 0x1c5   : > { %v4983_v45 = vand.u32 2147483647, %v1444_v19  ;;  %v4982_v22 = vand.u32 2147483647, %v997_v20  ;;  %v1446_v23 = vpop.f32.mrb[93].mxu1  ;;  %8732 = vmatmul.mubr.msk.f32.gmra.mrb[198].mxu1 %vm411_vm3, %v9227_v21  ;;  %1831 = vmatprep.mubr.f32.mxu0 %v9413_v32 }
 0x1c6   : > { %v5314_v24 = vadd.f32 %v5313_v14, %v4981_v18  ;;  %v4984_v25 = vand.u32 2147483647, %v1446_v23  ;;  %2280 = vmatprep.mubr.f32.mxu1 %v9413_v32  ;;  %v9230_v14 = vld [vmem:[%s13227_s2 + $0x130] sm:$0xff] }
 0x1c7   : > { %v5452_v26 = vadd.f32 %v5451_v15, %v4983_v45  ;;  %v5383_v27 = vadd.f32 %v5382_v39, %v4982_v22  ;;  %v1001_v28 = vpop.f32.mrb[94].mxu0 }
 0x1c8   : > { %v5521_v29 = vadd.f32 %v5520_v17, %v4984_v25  ;;  %v4997_v30 = vand.u32 2147483647, %v1001_v28  ;;  %v1450_v31 = vpop.f32.mrb[94].mxu1  ;;  %v1003_v35 = vpop.f32.mrb[95].mxu0  ;;  %8667 = vmatmul.mubr.msk.f32.gmra.mrb[200].mxu0 %vm411_vm3, %v9228_v40 }
 0x1c9   : > { %v4999_v43 = vand.u32 2147483647, %v1450_v31  ;;  %v4998_v44 = vand.u32 2147483647, %v1003_v35  ;;  %v1452_v46 = vpop.f32.mrb[95].mxu1  ;;  %8733 = vmatmul.mubr.msk.f32.gmra.mrb[200].mxu1 %vm411_vm3, %v9228_v40  ;;  %1837 = vmatprep.mubr.f32.mxu0 %v9413_v32 }
 0x1ca   : > { %v5315_v48 = vadd.f32 %v5314_v24, %v4997_v30  ;;  %v5000_v59 = vand.u32 2147483647, %v1452_v46  ;;  %2286 = vmatprep.mubr.f32.mxu1 %v9413_v32  ;;  %v9231_v24 = vld [vmem:[%s13227_s2 + $0x138] sm:$0xff] }
 0x1cb   : > { %v5453_v49 = vadd.f32 %v5452_v26, %v4999_v43  ;;  %v5384_v50 = vadd.f32 %v5383_v27, %v4998_v44  ;;  %v1007_v53 = vpop.f32.mrb[96].mxu0 }
 0x1cc   : > { %v5522_v54 = vadd.f32 %v5521_v29, %v5000_v59  ;;  %v5013_v55 = vand.u32 2147483647, %v1007_v53  ;;  %v1456_v57 = vpop.f32.mrb[96].mxu1  ;;  %v1009_v62 = vpop.f32.mrb[97].mxu0  ;;  %8668 = vmatmul.mubr.msk.f32.gmra.mrb[202].mxu0 %vm411_vm3, %v9229_v63 }
 0x1cd   : > { %v5015_v0 = vand.u32 2147483647, %v1456_v57  ;;  %v5014_v1 = vand.u32 2147483647, %v1009_v62  ;;  %v1458_v2 = vpop.f32.mrb[97].mxu1  ;;  %8734 = vmatmul.mubr.msk.f32.gmra.mrb[202].mxu1 %vm411_vm3, %v9229_v63  ;;  %1843 = vmatprep.mubr.f32.mxu0 %v9413_v32 }
 0x1ce   : > { %v5316_v5 = vadd.f32 %v5315_v48, %v5013_v55  ;;  %v5016_v7 = vand.u32 2147483647, %v1458_v2  ;;  %2292 = vmatprep.mubr.f32.mxu1 %v9413_v32  ;;  %v9232_v48 = vld [vmem:[%s13227_s2 + $0x140] sm:$0xff] }
 0x1cf   : > { %v5454_v8 = vadd.f32 %v5453_v49, %v5015_v0  ;;  %v5385_v9 = vadd.f32 %v5384_v50, %v5014_v1  ;;  %v1013_v10 = vpop.f32.mrb[98].mxu0 }
 0x1d0   : > { %v5523_v11 = vadd.f32 %v5522_v54, %v5016_v7  ;;  %v5029_v12 = vand.u32 2147483647, %v1013_v10  ;;  %v1462_v13 = vpop.f32.mrb[98].mxu1  ;;  %v1015_v61 = vpop.f32.mrb[99].mxu0  ;;  %8669 = vmatmul.mubr.msk.f32.gmra.mrb[204].mxu0 %vm411_vm3, %v9230_v14 }
 0x1d1   : > { %v5031_v36 = vand.u32 2147483647, %v1462_v13  ;;  %v5030_v15 = vand.u32 2147483647, %v1015_v61  ;;  %v1464_v39 = vpop.f32.mrb[99].mxu1  ;;  %8735 = vmatmul.mubr.msk.f32.gmra.mrb[204].mxu1 %vm411_vm3, %v9230_v14  ;;  %1849 = vmatprep.mubr.f32.mxu0 %v9413_v32 }
 0x1d2   : > { %v5317_v16 = vadd.f32 %v5316_v5, %v5029_v12  ;;  %v5032_v17 = vand.u32 2147483647, %v1464_v39  ;;  %2298 = vmatprep.mubr.f32.mxu1 %v9413_v32  ;;  %v9233_v5 = vld [vmem:[%s13227_s2 + $0x148] sm:$0xff] }
 0x1d3   : > { %v5455_v18 = vadd.f32 %v5454_v8, %v5031_v36  ;;  %v5386_v19 = vadd.f32 %v5385_v9, %v5030_v15  ;;  %v1019_v20 = vpop.f32.mrb[100].mxu0 }
 0x1d4   : > { %v5524_v21 = vadd.f32 %v5523_v11, %v5032_v17  ;;  %v5045_v45 = vand.u32 2147483647, %v1019_v20  ;;  %v1468_v22 = vpop.f32.mrb[100].mxu1  ;;  %v1021_v23 = vpop.f32.mrb[101].mxu0  ;;  %8670 = vmatmul.mubr.msk.f32.gmra.mrb[206].mxu0 %vm411_vm3, %v9231_v24 }
 0x1d5   : > { %v5047_v25 = vand.u32 2147483647, %v1468_v22  ;;  %v5046_v26 = vand.u32 2147483647, %v1021_v23  ;;  %v1470_v27 = vpop.f32.mrb[101].mxu1  ;;  %8736 = vmatmul.mubr.msk.f32.gmra.mrb[206].mxu1 %vm411_vm3, %v9231_v24  ;;  %1855 = vmatprep.mubr.f32.mxu0 %v9413_v32 }
 0x1d6   : > { %v5318_v28 = vadd.f32 %v5317_v16, %v5045_v45  ;;  %v5048_v29 = vand.u32 2147483647, %v1470_v27  ;;  %2304 = vmatprep.mubr.f32.mxu1 %v9413_v32  ;;  %v9234_v16 = vld [vmem:[%s13227_s2 + $0x150] sm:$0xff] }
 0x1d7   : > { %v5456_v30 = vadd.f32 %v5455_v18, %v5047_v25  ;;  %v5387_v31 = vadd.f32 %v5386_v19, %v5046_v26  ;;  %v1025_v35 = vpop.f32.mrb[102].mxu0 }
 0x1d8   : > { %v5525_v40 = vadd.f32 %v5524_v21, %v5048_v29  ;;  %v5061_v43 = vand.u32 2147483647, %v1025_v35  ;;  %v1474_v44 = vpop.f32.mrb[102].mxu1  ;;  %v1027_v46 = vpop.f32.mrb[103].mxu0  ;;  %8671 = vmatmul.mubr.msk.f32.gmra.mrb[208].mxu0 %vm411_vm3, %v9232_v48 }
 0x1d9   : > { %v5063_v59 = vand.u32 2147483647, %v1474_v44  ;;  %v5062_v49 = vand.u32 2147483647, %v1027_v46  ;;  %v1476_v50 = vpop.f32.mrb[103].mxu1  ;;  %8737 = vmatmul.mubr.msk.f32.gmra.mrb[208].mxu1 %vm411_vm3, %v9232_v48  ;;  %1861 = vmatprep.mubr.f32.mxu0 %v9413_v32 }
 0x1da   : > { %v5319_v53 = vadd.f32 %v5318_v28, %v5061_v43  ;;  %v5064_v54 = vand.u32 2147483647, %v1476_v50  ;;  %2310 = vmatprep.mubr.f32.mxu1 %v9413_v32  ;;  %v9235_v28 = vld [vmem:[%s13227_s2 + $0x158] sm:$0xff] }
 0x1db   : > { %v5457_v55 = vadd.f32 %v5456_v30, %v5063_v59  ;;  %v5388_v57 = vadd.f32 %v5387_v31, %v5062_v49  ;;  %v1031_v62 = vpop.f32.mrb[104].mxu0 }
 0x1dc   : > { %v5526_v63 = vadd.f32 %v5525_v40, %v5064_v54  ;;  %v5077_v0 = vand.u32 2147483647, %v1031_v62  ;;  %v1480_v1 = vpop.f32.mrb[104].mxu1  ;;  %v1033_v2 = vpop.f32.mrb[105].mxu0  ;;  %8672 = vmatmul.mubr.msk.f32.gmra.mrb[210].mxu0 %vm411_vm3, %v9233_v5 }
 0x1dd   : > { %v5079_v7 = vand.u32 2147483647, %v1480_v1  ;;  %v5078_v8 = vand.u32 2147483647, %v1033_v2  ;;  %v1482_v9 = vpop.f32.mrb[105].mxu1  ;;  %8738 = vmatmul.mubr.msk.f32.gmra.mrb[210].mxu1 %vm411_vm3, %v9233_v5  ;;  %1867 = vmatprep.mubr.f32.mxu0 %v9413_v32 }
 0x1de   : > { %v5320_v10 = vadd.f32 %v5319_v53, %v5077_v0  ;;  %v5080_v11 = vand.u32 2147483647, %v1482_v9  ;;  %2316 = vmatprep.mubr.f32.mxu1 %v9413_v32  ;;  %v9236_v53 = vld [vmem:[%s13227_s2 + $0x160] sm:$0xff] }
 0x1df   : > { %v5458_v12 = vadd.f32 %v5457_v55, %v5079_v7  ;;  %v5389_v13 = vadd.f32 %v5388_v57, %v5078_v8  ;;  %v1037_v61 = vpop.f32.mrb[106].mxu0 }
 0x1e0   : > { %v5527_v14 = vadd.f32 %v5526_v63, %v5080_v11  ;;  %v5093_v36 = vand.u32 2147483647, %v1037_v61  ;;  %v1486_v15 = vpop.f32.mrb[106].mxu1  ;;  %v1039_v39 = vpop.f32.mrb[107].mxu0  ;;  %8673 = vmatmul.mubr.msk.f32.gmra.mrb[212].mxu0 %vm411_vm3, %v9234_v16 }
 0x1e1   : > { %v5095_v17 = vand.u32 2147483647, %v1486_v15  ;;  %v5094_v18 = vand.u32 2147483647, %v1039_v39  ;;  %v1488_v19 = vpop.f32.mrb[107].mxu1  ;;  %8739 = vmatmul.mubr.msk.f32.gmra.mrb[212].mxu1 %vm411_vm3, %v9234_v16  ;;  %1873 = vmatprep.mubr.f32.mxu0 %v9413_v32 }
 0x1e2   : > { %v5321_v20 = vadd.f32 %v5320_v10, %v5093_v36  ;;  %v5096_v21 = vand.u32 2147483647, %v1488_v19  ;;  %2322 = vmatprep.mubr.f32.mxu1 %v9413_v32  ;;  %v9237_v10 = vld [vmem:[%s13227_s2 + $0x168] sm:$0xff] }
 0x1e3   : > { %v5459_v45 = vadd.f32 %v5458_v12, %v5095_v17  ;;  %v5390_v22 = vadd.f32 %v5389_v13, %v5094_v18  ;;  %v1043_v23 = vpop.f32.mrb[108].mxu0 }
 0x1e4   : > { %v5528_v24 = vadd.f32 %v5527_v14, %v5096_v21  ;;  %v5109_v25 = vand.u32 2147483647, %v1043_v23  ;;  %v1492_v26 = vpop.f32.mrb[108].mxu1  ;;  %v1045_v27 = vpop.f32.mrb[109].mxu0  ;;  %8674 = vmatmul.mubr.msk.f32.gmra.mrb[214].mxu0 %vm411_vm3, %v9235_v28 }
 0x1e5   : > { %v5111_v29 = vand.u32 2147483647, %v1492_v26  ;;  %v5110_v30 = vand.u32 2147483647, %v1045_v27  ;;  %v1494_v31 = vpop.f32.mrb[109].mxu1  ;;  %8740 = vmatmul.mubr.msk.f32.gmra.mrb[214].mxu1 %vm411_vm3, %v9235_v28  ;;  %1879 = vmatprep.mubr.f32.mxu0 %v9413_v32 }
 0x1e6   : > { %v5322_v35 = vadd.f32 %v5321_v20, %v5109_v25  ;;  %v5112_v40 = vand.u32 2147483647, %v1494_v31  ;;  %2328 = vmatprep.mubr.f32.mxu1 %v9413_v32  ;;  %v9238_v20 = vld [vmem:[%s13227_s2 + $0x170] sm:$0xff] }
 0x1e7   : > { %v5460_v43 = vadd.f32 %v5459_v45, %v5111_v29  ;;  %v5391_v44 = vadd.f32 %v5390_v22, %v5110_v30  ;;  %v1049_v46 = vpop.f32.mrb[110].mxu0 }
 0x1e8   : > { %v5529_v48 = vadd.f32 %v5528_v24, %v5112_v40  ;;  %v5125_v59 = vand.u32 2147483647, %v1049_v46  ;;  %v1498_v49 = vpop.f32.mrb[110].mxu1  ;;  %v1051_v50 = vpop.f32.mrb[111].mxu0  ;;  %8675 = vmatmul.mubr.msk.f32.gmra.mrb[216].mxu0 %vm411_vm3, %v9236_v53 }
 0x1e9   : > { %v5127_v54 = vand.u32 2147483647, %v1498_v49  ;;  %v5126_v55 = vand.u32 2147483647, %v1051_v50  ;;  %v1500_v57 = vpop.f32.mrb[111].mxu1  ;;  %8741 = vmatmul.mubr.msk.f32.gmra.mrb[216].mxu1 %vm411_vm3, %v9236_v53  ;;  %1885 = vmatprep.mubr.f32.mxu0 %v9413_v32 }
 0x1ea   : > { %v5323_v62 = vadd.f32 %v5322_v35, %v5125_v59  ;;  %v5128_v63 = vand.u32 2147483647, %v1500_v57  ;;  %2334 = vmatprep.mubr.f32.mxu1 %v9413_v32  ;;  %v9239_v35 = vld [vmem:[%s13227_s2 + $0x178] sm:$0xff] }
 0x1eb   : > { %v5461_v0 = vadd.f32 %v5460_v43, %v5127_v54  ;;  %v5392_v1 = vadd.f32 %v5391_v44, %v5126_v55  ;;  %v1055_v2 = vpop.f32.mrb[112].mxu0 }
 0x1ec   : > { %v5530_v5 = vadd.f32 %v5529_v48, %v5128_v63  ;;  %v5141_v7 = vand.u32 2147483647, %v1055_v2  ;;  %v1504_v8 = vpop.f32.mrb[112].mxu1  ;;  %v1057_v9 = vpop.f32.mrb[113].mxu0  ;;  %8676 = vmatmul.mubr.msk.f32.gmra.mrb[218].mxu0 %vm411_vm3, %v9237_v10 }
 0x1ed   : > { %v5143_v11 = vand.u32 2147483647, %v1504_v8  ;;  %v5142_v12 = vand.u32 2147483647, %v1057_v9  ;;  %v1506_v13 = vpop.f32.mrb[113].mxu1  ;;  %8742 = vmatmul.mubr.msk.f32.gmra.mrb[218].mxu1 %vm411_vm3, %v9237_v10  ;;  %1891 = vmatprep.mubr.f32.mxu0 %v9413_v32 }
 0x1ee   : > { %v5324_v61 = vadd.f32 %v5323_v62, %v5141_v7  ;;  %v5144_v14 = vand.u32 2147483647, %v1506_v13  ;;  %2340 = vmatprep.mubr.f32.mxu1 %v9413_v32  ;;  %v9240_v62 = vld [vmem:[%s13227_s2 + $0x180] sm:$0xff] }
 0x1ef   : > { %v5462_v36 = vadd.f32 %v5461_v0, %v5143_v11  ;;  %v5393_v15 = vadd.f32 %v5392_v1, %v5142_v12  ;;  %v1061_v39 = vpop.f32.mrb[114].mxu0 }
 0x1f0   : > { %v5531_v16 = vadd.f32 %v5530_v5, %v5144_v14  ;;  %v5157_v17 = vand.u32 2147483647, %v1061_v39  ;;  %v1510_v18 = vpop.f32.mrb[114].mxu1  ;;  %v1063_v19 = vpop.f32.mrb[115].mxu0  ;;  %8677 = vmatmul.mubr.msk.f32.gmra.mrb[220].mxu0 %vm411_vm3, %v9238_v20 }
 0x1f1   : > { %v5159_v21 = vand.u32 2147483647, %v1510_v18  ;;  %v5158_v45 = vand.u32 2147483647, %v1063_v19  ;;  %v1512_v22 = vpop.f32.mrb[115].mxu1  ;;  %8743 = vmatmul.mubr.msk.f32.gmra.mrb[220].mxu1 %vm411_vm3, %v9238_v20  ;;  %1897 = vmatprep.mubr.f32.mxu0 %v9413_v32 }
 0x1f2   : > { %v5325_v23 = vadd.f32 %v5324_v61, %v5157_v17  ;;  %v5160_v24 = vand.u32 2147483647, %v1512_v22  ;;  %2346 = vmatprep.mubr.f32.mxu1 %v9413_v32  ;;  %v9241_v61 = vld [vmem:[%s13227_s2 + $0x188] sm:$0xff] }
 0x1f3   : > { %v5463_v25 = vadd.f32 %v5462_v36, %v5159_v21  ;;  %v5394_v26 = vadd.f32 %v5393_v15, %v5158_v45  ;;  %v1067_v27 = vpop.f32.mrb[116].mxu0 }
 0x1f4   : > { %v5532_v28 = vadd.f32 %v5531_v16, %v5160_v24  ;;  %v5173_v29 = vand.u32 2147483647, %v1067_v27  ;;  %v1516_v30 = vpop.f32.mrb[116].mxu1  ;;  %v1069_v31 = vpop.f32.mrb[117].mxu0  ;;  %8678 = vmatmul.mubr.msk.f32.gmra.mrb[222].mxu0 %vm411_vm3, %v9239_v35 }
 0x1f5   : > { %v5175_v40 = vand.u32 2147483647, %v1516_v30  ;;  %v5174_v43 = vand.u32 2147483647, %v1069_v31  ;;  %v1518_v44 = vpop.f32.mrb[117].mxu1  ;;  %8744 = vmatmul.mubr.msk.f32.gmra.mrb[222].mxu1 %vm411_vm3, %v9239_v35  ;;  %1903 = vmatprep.mubr.f32.mxu0 %v9413_v32 }
 0x1f6   : > { %v5326_v46 = vadd.f32 %v5325_v23, %v5173_v29  ;;  %v5176_v48 = vand.u32 2147483647, %v1518_v44  ;;  %2352 = vmatprep.mubr.f32.mxu1 %v9413_v32  ;;  %v9242_v23 = vld [vmem:[%s13227_s2 + $0x190] sm:$0xff] }
 0x1f7   : > { %v5464_v59 = vadd.f32 %v5463_v25, %v5175_v40  ;;  %v5395_v49 = vadd.f32 %v5394_v26, %v5174_v43  ;;  %v1073_v50 = vpop.f32.mrb[118].mxu0 }
 0x1f8   : > { %v5533_v53 = vadd.f32 %v5532_v28, %v5176_v48  ;;  %v5189_v54 = vand.u32 2147483647, %v1073_v50  ;;  %v1522_v55 = vpop.f32.mrb[118].mxu1  ;;  %v1075_v57 = vpop.f32.mrb[119].mxu0  ;;  %8679 = vmatmul.mubr.msk.f32.gmra.mrb[224].mxu0 %vm411_vm3, %v9240_v62 }
 0x1f9   : > { %v5191_v63 = vand.u32 2147483647, %v1522_v55  ;;  %v5190_v0 = vand.u32 2147483647, %v1075_v57  ;;  %v1524_v1 = vpop.f32.mrb[119].mxu1  ;;  %8745 = vmatmul.mubr.msk.f32.gmra.mrb[224].mxu1 %vm411_vm3, %v9240_v62  ;;  %1909 = vmatprep.mubr.f32.mxu0 %v9413_v32 }
 0x1fa   : > { %v5327_v2 = vadd.f32 %v5326_v46, %v5189_v54  ;;  %v5192_v5 = vand.u32 2147483647, %v1524_v1  ;;  %2358 = vmatprep.mubr.f32.mxu1 %v9413_v32  ;;  %v9243_v46 = vld [vmem:[%s13227_s2 + $0x198] sm:$0xff] }
 0x1fb   : > { %v5465_v7 = vadd.f32 %v5464_v59, %v5191_v63  ;;  %v5396_v8 = vadd.f32 %v5395_v49, %v5190_v0  ;;  %v1079_v9 = vpop.f32.mrb[120].mxu0 }
 0x1fc   : > { %v5534_v10 = vadd.f32 %v5533_v53, %v5192_v5  ;;  %v5205_v11 = vand.u32 2147483647, %v1079_v9  ;;  %v1528_v12 = vpop.f32.mrb[120].mxu1  ;;  %v1081_v13 = vpop.f32.mrb[121].mxu0  ;;  %8680 = vmatmul.mubr.msk.f32.gmra.mrb[226].mxu0 %vm411_vm3, %v9241_v61 }
 0x1fd   : > { %v5207_v14 = vand.u32 2147483647, %v1528_v12  ;;  %v5206_v36 = vand.u32 2147483647, %v1081_v13  ;;  %v1530_v15 = vpop.f32.mrb[121].mxu1  ;;  %8746 = vmatmul.mubr.msk.f32.gmra.mrb[226].mxu1 %vm411_vm3, %v9241_v61  ;;  %1915 = vmatprep.mubr.f32.mxu0 %v9413_v32 }
 0x1fe   : > { %v5328_v39 = vadd.f32 %v5327_v2, %v5205_v11  ;;  %v5208_v16 = vand.u32 2147483647, %v1530_v15  ;;  %2364 = vmatprep.mubr.f32.mxu1 %v9413_v32  ;;  %v9244_v2 = vld [vmem:[%s13227_s2 + $0x1a0] sm:$0xff]  ;;  %v6377_v11 = vlaneseq }
 0x1ff   : > { %v5466_v17 = vadd.f32 %v5465_v7, %v5207_v14  ;;  %v5397_v18 = vadd.f32 %v5396_v8, %v5206_v36  ;;  %v1085_v19 = vpop.f32.mrb[122].mxu0 }
 0x200   : > { %v5535_v20 = vadd.f32 %v5534_v10, %v5208_v16  ;;  %v5221_v21 = vand.u32 2147483647, %v1085_v19  ;;  %v1534_v45 = vpop.f32.mrb[122].mxu1  ;;  %v1087_v22 = vpop.f32.mrb[123].mxu0  ;;  %8681 = vmatmul.mubr.msk.f32.gmra.mrb[228].mxu0 %vm411_vm3, %v9242_v23  ;;  %v9245_v16 = vld [vmem:[%s13227_s2 + $0x1a8] sm:$0xff] }
 0x201   : > { %v5223_v24 = vand.u32 2147483647, %v1534_v45  ;;  %v5222_v25 = vand.u32 2147483647, %v1087_v22  ;;  %v1536_v26 = vpop.f32.mrb[123].mxu1  ;;  %8747 = vmatmul.mubr.msk.f32.gmra.mrb[228].mxu1 %vm411_vm3, %v9242_v23  ;;  %1921 = vmatprep.mubr.f32.mxu0 %v9413_v32 }
 0x202   : > { %v5329_v27 = vadd.f32 %v5328_v39, %v5221_v21  ;;  %v5224_v28 = vand.u32 2147483647, %v1536_v26  ;;  %2370 = vmatprep.mubr.f32.mxu1 %v9413_v32 }
 0x203   : > { %v5467_v29 = vadd.f32 %v5466_v17, %v5223_v24  ;;  %v5398_v30 = vadd.f32 %v5397_v18, %v5222_v25  ;;  %v1091_v31 = vpop.f32.mrb[124].mxu0  ;;  %v9415_v17 = vmov 1966171168   ;;  %v10532_v24 = vshrl.u32 %v6377_v11, 7 }
 0x204   : > { %v5536_v35 = vadd.f32 %v5535_v20, %v5224_v28  ;;  %v5237_v40 = vand.u32 2147483647, %v1091_v31  ;;  %v1540_v43 = vpop.f32.mrb[124].mxu1  ;;  %v1093_v44 = vpop.f32.mrb[125].mxu0  ;;  %8682 = vmatmul.mubr.msk.f32.gmra.mrb[230].mxu0 %vm411_vm3, %v9243_v46  ;;  %v6403_v18 = vunpack.c.l.s4 %v9415_v17 }
 0x205   : > { %v5239_v48 = vand.u32 2147483647, %v1540_v43  ;;  %v5238_v59 = vand.u32 2147483647, %v1093_v44  ;;  %v1542_v49 = vpop.f32.mrb[125].mxu1  ;;  %8748 = vmatmul.mubr.msk.f32.gmra.mrb[230].mxu1 %vm411_vm3, %v9243_v46  ;;  %1927 = vmatprep.mubr.f32.mxu0 %v9413_v32  ;;  %13334 = vst [vmem:[#allocation6_spill] sm:$0xff] %v10532_v24 }
 0x206   : > { %v5330_v50 = vadd.f32 %v5329_v27, %v5237_v40  ;;  %v5240_v53 = vand.u32 2147483647, %v1542_v49  ;;  %2376 = vmatprep.mubr.f32.mxu1 %v9413_v32  ;;  %v9246_v44 = vld [vmem:[%s13227_s2 + $0x1b0] sm:$0xff]  ;;  %v6404_v46 = vunpack.c.0.s8 %v6403_v18 }
 0x207   : > { %v5468_v54 = vadd.f32 %v5467_v29, %v5239_v48  ;;  %v5399_v55 = vadd.f32 %v5398_v30, %v5238_v59  ;;  %v1097_v57 = vpop.f32.mrb[126].mxu0 }
 0x208   : > { %v5537_v62 = vadd.f32 %v5536_v35, %v5240_v53  ;;  %v5253_v63 = vand.u32 2147483647, %v1097_v57  ;;  %v1546_v0 = vpop.f32.mrb[126].mxu1  ;;  %v1099_v1 = vpop.f32.mrb[127].mxu0  ;;  %8683 = vmatmul.mubr.msk.f32.gmra.mrb[232].mxu0 %vm411_vm3, %v9244_v2 }
 0x209   : > { %v5255_v5 = vand.u32 2147483647, %v1546_v0  ;;  %v5254_v7 = vand.u32 2147483647, %v1099_v1  ;;  %v1548_v8 = vpop.f32.mrb[127].mxu1  ;;  %8749 = vmatmul.mubr.msk.f32.gmra.mrb[232].mxu1 %vm411_vm3, %v9244_v2  ;;  %1933 = vmatprep.mubr.f32.mxu0 %v9413_v32 }
 0x20a   : > { %v5331_v9 = vadd.f32 %v5330_v50, %v5253_v63  ;;  %v5256_v10 = vand.u32 2147483647, %v1548_v8  ;;  %2382 = vmatprep.mubr.f32.mxu1 %v9413_v32 }
 0x20b   : > { %v5469_v12 = vadd.f32 %v5468_v54, %v5255_v5  ;;  %v5400_v13 = vadd.f32 %v5399_v55, %v5254_v7  ;;  %v1617_v61 = vpop.f32.mrb[128].mxu0 }
 0x20c   : > { %v5332_v14 = vrot.slane %v5331_v9, 4  ;;  %v5538_v36 = vadd.f32 %v5537_v62, %v5256_v10  ;;  %v2066_v15 = vpop.f32.mrb[128].mxu1  ;;  %v1619_v39 = vpop.f32.mrb[129].mxu0  ;;  %8684 = vmatmul.mubr.msk.f32.gmra.mrb[234].mxu0 %vm411_vm3, %v9245_v16  ;;  %v4249_v22 = vand.u32 2147483647, %v1617_v61 }
 0x20d   : > { %v5470_v19 = vrot.slane %v5469_v12, 4  ;;  %v5401_v20 = vrot.slane %v5400_v13, 4  ;;  %8750 = vmatmul.mubr.msk.f32.gmra.mrb[234].mxu1 %vm411_vm3, %v9245_v16  ;;  %1939 = vmatprep.mubr.f32.mxu0 %v9413_v32  ;;  %v2068_v23 = vpop.f32.mrb[129].mxu1  ;;  %v4251_v27 = vand.u32 2147483647, %v2066_v15 }
 0x20e   : > { %v5333_v21 = vadd.f32 %v5332_v14, %v5331_v9  ;;  %v5539_v45 = vrot.slane %v5538_v36, 4  ;;  %2388 = vmatprep.mubr.f32.mxu1 %v9413_v32  ;;  %v4250_v28 = vand.u32 2147483647, %v1619_v39  ;;  %v4252_v55 = vand.u32 2147483647, %v2068_v23 }
 0x20f   : > { %v5471_v25 = vadd.f32 %v5470_v19, %v5469_v12  ;;  %v5402_v26 = vadd.f32 %v5401_v20, %v5400_v13  ;;  %v1623_v29 = vpop.f32.mrb[130].mxu0  ;;  %v9247_v12 = vld [vmem:[%s13227_s2 + $0x1b8] sm:$0xff]  ;;  %v10548_v39 = vsub.s32 %v6404_v46, %v10532_v24 }
 0x210   : > { %v5334_v30 = vrot.slane %v5333_v21, 2  ;;  %v5540_v31 = vadd.f32 %v5539_v45, %v5538_v36  ;;  %v4265_v35 = vand.u32 2147483647, %v1623_v29  ;;  %v2072_v40 = vpop.f32.mrb[130].mxu1  ;;  %v1625_v43 = vpop.f32.mrb[131].mxu0  ;;  %8685 = vmatmul.mubr.msk.f32.gmra.mrb[236].mxu0 %vm411_vm3, %v9246_v44 }
 0x211   : > { %v5472_v48 = vrot.slane %v5471_v25, 2  ;;  %v5403_v59 = vrot.slane %v5402_v26, 2  ;;  %v4267_v49 = vand.u32 2147483647, %v2072_v40  ;;  %v4266_v50 = vand.u32 2147483647, %v1625_v43  ;;  %8751 = vmatmul.mubr.msk.f32.gmra.mrb[236].mxu1 %vm411_vm3, %v9246_v44  ;;  %1945 = vmatprep.mubr.f32.mxu0 %v9413_v32 }
 0x212   : > { %v5335_v53 = vadd.f32 %v5334_v30, %v5333_v21  ;;  %v5541_v54 = vrot.slane %v5540_v31, 2  ;;  %v5545_v57 = vadd.f32 %v4265_v35, %v4249_v22  ;;  %v2074_v62 = vpop.f32.mrb[131].mxu1  ;;  %2394 = vmatprep.mubr.f32.mxu1 %v9413_v32  ;;  %v9248_v30 = vld [vmem:[%s13227_s2 + $0x1c0] sm:$0xff] }
 0x213   : > { %v5473_v63 = vadd.f32 %v5472_v48, %v5471_v25  ;;  %v5404_v0 = vadd.f32 %v5403_v59, %v5402_v26  ;;  %v5683_v1 = vadd.f32 %v4267_v49, %v4251_v27  ;;  %v5614_v2 = vadd.f32 %v4266_v50, %v4250_v28  ;;  %v1629_v5 = vpop.f32.mrb[132].mxu0 }
 0x214   : > { %v5336_v7 = vrot.slane %v5335_v53, 1  ;;  %v5542_v8 = vadd.f32 %v5541_v54, %v5540_v31  ;;  %v4268_v9 = vand.u32 2147483647, %v2074_v62  ;;  %v4281_v10 = vand.u32 2147483647, %v1629_v5  ;;  %v2078_v11 = vpop.f32.mrb[132].mxu1  ;;  %8686 = vmatmul.mubr.msk.f32.gmra.mrb[238].mxu0 %vm411_vm3, %v9247_v12 }
 0x215   : > { %v5474_v13 = vrot.slane %v5473_v63, 1  ;;  %v5405_v61 = vrot.slane %v5404_v0, 1  ;;  %v4283_v14 = vand.u32 2147483647, %v2078_v11  ;;  %v1631_v36 = vpop.f32.mrb[133].mxu0  ;;  %v2080_v15 = vpop.f32.mrb[133].mxu1  ;;  %8752 = vmatmul.mubr.msk.f32.gmra.mrb[238].mxu1 %vm411_vm3, %v9247_v12  ;;  %1951 = vmatprep.mubr.f32.mxu0 %v9413_v32 }
 0x216   : > { %v5337_v16 = vadd.f32 %v5336_v7, %v5335_v53  ;;  %v5543_v17 = vrot.slane %v5542_v8, 1  ;;  %v5752_v18 = vadd.f32 %v4268_v9, %v4252_v55  ;;  %v5546_v19 = vadd.f32 %v5545_v57, %v4281_v10  ;;  %2400 = vmatprep.mubr.f32.mxu1 %v9413_v32 }
 0x217   : > { %v5475_v20 = vadd.f32 %v5474_v13, %v5473_v63  ;;  %v5406_v21 = vadd.f32 %v5405_v61, %v5404_v0  ;;  %v5684_v45 = vadd.f32 %v5683_v1, %v4283_v14  ;;  %v4282_v22 = vand.u32 2147483647, %v1631_v36  ;;  %v1635_v23 = vpop.f32.mrb[134].mxu0  ;;  %v9249_v1 = vld [vmem:[%s13227_s2 + $0x1c8] sm:$0xff] }
 0x218   : > { %v5544_v25 = vadd.f32 %v5543_v17, %v5542_v8  ;;  %v4284_v26 = vand.u32 2147483647, %v2080_v15  ;;  %v4297_v27 = vand.u32 2147483647, %v1635_v23  ;;  %v2084_v28 = vpop.f32.mrb[134].mxu1  ;;  %v1637_v29 = vpop.f32.mrb[135].mxu0  ;;  %8687 = vmatmul.mubr.msk.f32.gmra.mrb[240].mxu0 %vm411_vm3, %v9248_v30 }
 0x219   : > { %v6398_v31 = vcombine.low %v5337_v16, %v5406_v21  ;;  %v5615_v35 = vadd.f32 %v5614_v2, %v4282_v22  ;;  %v4299_v40 = vand.u32 2147483647, %v2084_v28  ;;  %v4298_v43 = vand.u32 2147483647, %v1637_v29  ;;  %v2086_v44 = vpop.f32.mrb[135].mxu1  ;;  %8753 = vmatmul.mubr.msk.f32.gmra.mrb[240].mxu1 %vm411_vm3, %v9248_v30  ;;  %1957 = vmatprep.mubr.f32.mxu0 %v9413_v32  ;;  %v9250_v17 = vld [vmem:[%s13227_s2 + $0x1d0] sm:$0xff] }
 0x21a   : > { %v6399_v46 = vcombine.low %v5475_v20, %v5544_v25  ;;  %v5753_v48 = vadd.f32 %v5752_v18, %v4284_v26  ;;  %v5547_v59 = vadd.f32 %v5546_v19, %v4297_v27  ;;  %v4300_v49 = vand.u32 2147483647, %v2086_v44  ;;  %2406 = vmatprep.mubr.f32.mxu1 %v9413_v32  ;;  %v346_v27 = vld [vmem:[%s13228_s3] sm:$0xff] }
 0x21b   : > { %v5685_v50 = vadd.f32 %v5684_v45, %v4299_v40  ;;  %v5616_v53 = vadd.f32 %v5615_v35, %v4298_v43  ;;  %v1641_v54 = vpop.f32.mrb[136].mxu0  ;;  %v10559_v55 = vrot.slane %v6398_v31, %v10548_v39  ;;  %v9416_v26 = vmov 10   ;;  %v9251_v35 = vld [vmem:[%s13227_s2 + $0x1d8] sm:$0xff] }
 0x21c   : > { %v5754_v57 = vadd.f32 %v5753_v48, %v4300_v49  ;;  %v4313_v62 = vand.u32 2147483647, %v1641_v54  ;;  %v2090_v63 = vpop.f32.mrb[136].mxu1  ;;  %v1643_v0 = vpop.f32.mrb[137].mxu0  ;;  %8688 = vmatmul.mubr.msk.f32.gmra.mrb[242].mxu0 %vm411_vm3, %v9249_v1  ;;  %v10566_v2 = vrot.slane %v6399_v46, %v10548_v39  ;;  %9194 = vset.pattern.permute.xlu0 %v9416_v26 }
 0x21d   : > { %v4315_v5 = vand.u32 2147483647, %v2090_v63  ;;  %v4314_v7 = vand.u32 2147483647, %v1643_v0  ;;  %v2092_v8 = vpop.f32.mrb[137].mxu1  ;;  %8754 = vmatmul.mubr.msk.f32.gmra.mrb[242].mxu1 %vm411_vm3, %v9249_v1  ;;  %1963 = vmatprep.mubr.f32.mxu0 %v9413_v32  ;;  %v9252_v63 = vld [vmem:[%s13227_s2 + $0x1e0] sm:$0xff] }
 0x21e   : > { %v5548_v9 = vadd.f32 %v5547_v59, %v4313_v62  ;;  %v4316_v10 = vand.u32 2147483647, %v2092_v8  ;;  %2412 = vmatprep.mubr.f32.mxu1 %v9413_v32  ;;  %v6430_v11 = vcombine.low %v10559_v55, %v10566_v2  ;;  %6375 = vperm.xlu0 %9194, %v346_v27  }
 0x21f   : > { %v5686_v12 = vadd.f32 %v5685_v50, %v4315_v5  ;;  %v5617_v13 = vadd.f32 %v5616_v53, %v4314_v7  ;;  %v1647_v61 = vpop.f32.mrb[138].mxu0 }
 0x220   : > { %v5755_v14 = vadd.f32 %v5754_v57, %v4316_v10  ;;  %v4329_v36 = vand.u32 2147483647, %v1647_v61  ;;  %v2096_v15 = vpop.f32.mrb[138].mxu1  ;;  %v1649_v16 = vpop.f32.mrb[139].mxu0  ;;  %8689 = vmatmul.mubr.msk.f32.gmra.mrb[244].mxu0 %vm411_vm3, %v9250_v17 }
 0x221   : > { %v4331_v18 = vand.u32 2147483647, %v2096_v15  ;;  %v4330_v19 = vand.u32 2147483647, %v1649_v16  ;;  %v2098_v20 = vpop.f32.mrb[139].mxu1  ;;  %8755 = vmatmul.mubr.msk.f32.gmra.mrb[244].mxu1 %vm411_vm3, %v9250_v17  ;;  %1969 = vmatprep.mubr.f32.mxu0 %v9413_v32  ;;  %v9253_v15 = vld [vmem:[%s13227_s2 + $0x1e8] sm:$0xff] }
 0x222   : > { %v5549_v21 = vadd.f32 %v5548_v9, %v4329_v36  ;;  %v4332_v45 = vand.u32 2147483647, %v2098_v20  ;;  %2418 = vmatprep.mubr.f32.mxu1 %v9413_v32 }
 0x223   : > { %v5687_v22 = vadd.f32 %v5686_v12, %v4331_v18  ;;  %v5618_v23 = vadd.f32 %v5617_v13, %v4330_v19  ;;  %v1653_v25 = vpop.f32.mrb[140].mxu0 }
 0x224   : > { %v5756_v28 = vadd.f32 %v5755_v14, %v4332_v45  ;;  %v4345_v29 = vand.u32 2147483647, %v1653_v25  ;;  %v2102_v30 = vpop.f32.mrb[140].mxu1  ;;  %v1655_v31 = vpop.f32.mrb[141].mxu0  ;;  %8690 = vmatmul.mubr.msk.f32.gmra.mrb[246].mxu0 %vm411_vm3, %v9251_v35 }
 0x225   : > { %v4347_v40 = vand.u32 2147483647, %v2102_v30  ;;  %v4346_v43 = vand.u32 2147483647, %v1655_v31  ;;  %v2104_v44 = vpop.f32.mrb[141].mxu1  ;;  %8756 = vmatmul.mubr.msk.f32.gmra.mrb[246].mxu1 %vm411_vm3, %v9251_v35  ;;  %1975 = vmatprep.mubr.f32.mxu0 %v9413_v32 }
 0x226   : > { %v5550_v46 = vadd.f32 %v5549_v21, %v4345_v29  ;;  %v4348_v48 = vand.u32 2147483647, %v2104_v44  ;;  %2424 = vmatprep.mubr.f32.mxu1 %v9413_v32 }
 0x227   : > { %v5688_v59 = vadd.f32 %v5687_v22, %v4347_v40  ;;  %v5619_v49 = vadd.f32 %v5618_v23, %v4346_v43  ;;  %v1659_v50 = vpop.f32.mrb[142].mxu0  ;;  %v338_v43 = vld [vmem:[%s9564_s11 + $0xe0] sm:$0x1] }
 0x228   : > { %v5757_v53 = vadd.f32 %v5756_v28, %v4348_v48  ;;  %v4361_v54 = vand.u32 2147483647, %v1659_v50  ;;  %v2108_v57 = vpop.f32.mrb[142].mxu1  ;;  %v1661_v62 = vpop.f32.mrb[143].mxu0  ;;  %8691 = vmatmul.mubr.msk.f32.gmra.mrb[248].mxu0 %vm411_vm3, %v9252_v63  ;;  %v9254_v28 = vld [vmem:[%s13227_s2 + $0x1f0] sm:$0xff] }
 0x229   : > { %v4363_v0 = vand.u32 2147483647, %v2108_v57  ;;  %v4362_v1 = vand.u32 2147483647, %v1661_v62  ;;  %v2110_v5 = vpop.f32.mrb[143].mxu1  ;;  %8757 = vmatmul.mubr.msk.f32.gmra.mrb[248].mxu1 %vm411_vm3, %v9252_v63  ;;  %1981 = vmatprep.mubr.f32.mxu0 %v9413_v32  ;;  %v9255_v57 = vld [vmem:[%s13227_s2 + $0x1f8] sm:$0xff] }
 0x22a   : > { %v5551_v7 = vadd.f32 %v5550_v46, %v4361_v54  ;;  %v4364_v8 = vand.u32 2147483647, %v2110_v5  ;;  %2430 = vmatprep.mubr.f32.mxu1 %v9413_v32 }
 0x22b   : > { %v5689_v9 = vadd.f32 %v5688_v59, %v4363_v0  ;;  %v5620_v10 = vadd.f32 %v5619_v49, %v4362_v1  ;;  %v1665_v12 = vpop.f32.mrb[144].mxu0  ;;  %v340_v59 = vld [vmem:[%s9564_s11 + $0xf0] sm:$0x1]  ;;  %v9256_v1 = vld [vmem:[%s9573_s12 + $0x60] sm:$0xff] }
 0x22c   : > { %v5758_v13 = vadd.f32 %v5757_v53, %v4364_v8  ;;  %v4377_v61 = vand.u32 2147483647, %v1665_v12  ;;  %v2114_v14 = vpop.f32.mrb[144].mxu1  ;;  %v1667_v36 = vpop.f32.mrb[145].mxu0  ;;  %8692 = vmatmul.mubr.msk.f32.gmra.mrb[250].mxu0 %vm411_vm3, %v9253_v15  ;;  %v10620_v5 = vpack.c.bf16 %v338_v43, %v9256_v1 }
 0x22d   : > { %v4379_v16 = vand.u32 2147483647, %v2114_v14  ;;  %v4378_v17 = vand.u32 2147483647, %v1667_v36  ;;  %v2116_v18 = vpop.f32.mrb[145].mxu1  ;;  %8758 = vmatmul.mubr.msk.f32.gmra.mrb[250].mxu1 %vm411_vm3, %v9253_v15  ;;  %1987 = vmatprep.mubr.f32.mxu0 %v9413_v32 }
 0x22e   : > { %v5552_v19 = vadd.f32 %v5551_v7, %v4377_v61  ;;  %v4380_v20 = vand.u32 2147483647, %v2116_v18  ;;  %2436 = vmatprep.mubr.f32.mxu1 %v9413_v32 }
 0x22f   : > { %v5690_v21 = vadd.f32 %v5689_v9, %v4379_v16  ;;  %v5621_v45 = vadd.f32 %v5620_v10, %v4378_v17  ;;  %v1671_v22 = vpop.f32.mrb[146].mxu0  ;;  %v9257_v9 = vld [vmem:[%s9573_s12 + $0x70] sm:$0xff]  ;;  %v9258_v17 = vld [vmem:[%s13227_s2] sm:$0xff] }
 0x230   : > { %v5759_v23 = vadd.f32 %v5758_v13, %v4380_v20  ;;  %v4393_v25 = vand.u32 2147483647, %v1671_v22  ;;  %v2120_v26 = vpop.f32.mrb[146].mxu1  ;;  %v1673_v27 = vpop.f32.mrb[147].mxu0  ;;  %8693 = vmatmul.mubr.msk.f32.gmra.mrb[252].mxu0 %vm411_vm3, %v9254_v28  ;;  %v10624_v10 = vpack.c.bf16 %v340_v59, %v9257_v9 }
 0x231   : > { %v4395_v29 = vand.u32 2147483647, %v2120_v26  ;;  %v4394_v30 = vand.u32 2147483647, %v1673_v27  ;;  %v2122_v31 = vpop.f32.mrb[147].mxu1  ;;  %8759 = vmatmul.mubr.msk.f32.gmra.mrb[252].mxu1 %vm411_vm3, %v9254_v28  ;;  %1993 = vmatprep.mubr.f32.mxu0 %v9413_v32 }
 0x232   : > { %v5553_v35 = vadd.f32 %v5552_v19, %v4393_v25  ;;  %v4396_v40 = vand.u32 2147483647, %v2122_v31  ;;  %2442 = vmatprep.mubr.f32.mxu1 %v9413_v32 }
 0x233   : > { %v5691_v44 = vadd.f32 %v5690_v21, %v4395_v29  ;;  %v5622_v46 = vadd.f32 %v5621_v45, %v4394_v30  ;;  %v1677_v48 = vpop.f32.mrb[148].mxu0  ;;  %v9259_v30 = vld [vmem:[%s13227_s2 + $0x8] sm:$0xff] }
 0x234   : > { %v5760_v49 = vadd.f32 %v5759_v23, %v4396_v40  ;;  %v4409_v50 = vand.u32 2147483647, %v1677_v48  ;;  %v2126_v53 = vpop.f32.mrb[148].mxu1  ;;  %v1679_v54 = vpop.f32.mrb[149].mxu0  ;;  %8694 = vmatmul.mubr.msk.f32.gmra.mrb[254].mxu0 %vm411_vm3, %v9255_v57 }
 0x235   : > { %v4411_v62 = vand.u32 2147483647, %v2126_v53  ;;  %v4410_v63 = vand.u32 2147483647, %v1679_v54  ;;  %v2128_v0 = vpop.f32.mrb[149].mxu1  ;;  %8760 = vmatmul.mubr.msk.f32.gmra.mrb[254].mxu1 %vm411_vm3, %v9255_v57  ;;  %2513 = vmatprep.mubr.f32.mxu0 %v9413_v32 }
 0x236   : > { %v5554_v7 = vadd.f32 %v5553_v35, %v4409_v50  ;;  %v4412_v8 = vand.u32 2147483647, %v2128_v0  ;;  %2962 = vmatprep.mubr.f32.mxu1 %v9413_v32 }
 0x237   : > { %v5692_v12 = vadd.f32 %v5691_v44, %v4411_v62  ;;  %v5623_v13 = vadd.f32 %v5622_v46, %v4410_v63  ;;  %v1683_v61 = vpop.f32.mrb[150].mxu0 }
 0x238   : > { %v5761_v14 = vadd.f32 %v5760_v49, %v4412_v8  ;;  %v4425_v36 = vand.u32 2147483647, %v1683_v61  ;;  %v2132_v15 = vpop.f32.mrb[150].mxu1  ;;  %v1685_v16 = vpop.f32.mrb[151].mxu0  ;;  %8763 = vmatmul.mubr.msk.f32.vlgmr.msra.gmra.mrb[0].mxu0 %vm411_vm3, %v9258_v17 }
 0x239   : > { %v4427_v18 = vand.u32 2147483647, %v2132_v15  ;;  %v4426_v19 = vand.u32 2147483647, %v1685_v16  ;;  %v2134_v20 = vpop.f32.mrb[151].mxu1  ;;  %8829 = vmatmul.mubr.msk.f32.vlgmr.msra.gmra.mrb[0].mxu1 %vm411_vm3, %v9258_v17  ;;  %9099 = vmatpush1.bf16.msk.msra.mxu0 %vm9560_vm2, %v10620_v5 }
 0x23a   : > { %v5555_v21 = vadd.f32 %v5554_v7, %v4425_v36  ;;  %v4428_v45 = vand.u32 2147483647, %v2134_v20  ;;  %9105 = vmatpush1.bf16.msk.msra.mxu1 %vm9560_vm2, %v10624_v10  ;;  %2519 = vmatprep.mubr.f32.mxu0 %v9413_v32 }
 0x23b   : > { %v5693_v22 = vadd.f32 %v5692_v12, %v4427_v18  ;;  %v5624_v23 = vadd.f32 %v5623_v13, %v4426_v19  ;;  %v1689_v25 = vpop.f32.mrb[152].mxu0  ;;  %2968 = vmatprep.mubr.f32.mxu1 %v9413_v32  ;;  %9108 = vmatprep.subr.msk.bf16.mxu0 %vm9560_vm2, %v9569_v37 }
 0x23c   : > { %v5762_v26 = vadd.f32 %v5761_v14, %v4428_v45  ;;  %v4441_v27 = vand.u32 2147483647, %v1689_v25  ;;  %v2138_v28 = vpop.f32.mrb[152].mxu1  ;;  %v1691_v29 = vpop.f32.mrb[153].mxu0  ;;  %8764 = vmatmul.mubr.msk.f32.gmra.mrb[2].mxu0 %vm411_vm3, %v9259_v30  ;;  %9114 = vmatprep.subr.msk.bf16.mxu1 %vm9560_vm2, %v9580_v41  ;;  %v9260_v41 = vld [vmem:[%s13227_s2 + $0x10] sm:$0xff]  ;;  %v9261_v14 = vld [vmem:[%s13227_s2 + $0x18] sm:$0xff] }
 0x23d   : > { %v4443_v31 = vand.u32 2147483647, %v2138_v28  ;;  %v4442_v35 = vand.u32 2147483647, %v1691_v29  ;;  %v2140_v40 = vpop.f32.mrb[153].mxu1  ;;  %8830 = vmatmul.mubr.msk.f32.gmra.mrb[2].mxu1 %vm411_vm3, %v9259_v30  ;;  %2525 = vmatprep.mubr.f32.mxu0 %v9413_v32 }
 0x23e   : > { %v5556_v37 = vadd.f32 %v5555_v21, %v4441_v27  ;;  %v4444_v43 = vand.u32 2147483647, %v2140_v40  ;;  %2974 = vmatprep.mubr.f32.mxu1 %v9413_v32 }
 0x23f   : > { %v5694_v44 = vadd.f32 %v5693_v22, %v4443_v31  ;;  %v5625_v46 = vadd.f32 %v5624_v23, %v4442_v35  ;;  %v1695_v48 = vpop.f32.mrb[154].mxu0 }
 0x240   : > { %v5763_v59 = vadd.f32 %v5762_v26, %v4444_v43  ;;  %v4457_v49 = vand.u32 2147483647, %v1695_v48  ;;  %v2144_v50 = vpop.f32.mrb[154].mxu1  ;;  %v1697_v53 = vpop.f32.mrb[155].mxu0  ;;  %8765 = vmatmul.mubr.msk.f32.gmra.mrb[4].mxu0 %vm411_vm3, %v9260_v41  ;;  %v9262_v26 = vld [vmem:[%s13227_s2 + $0x20] sm:$0xff] }
 0x241   : > { %v4459_v54 = vand.u32 2147483647, %v2144_v50  ;;  %v4458_v57 = vand.u32 2147483647, %v1697_v53  ;;  %v2146_v62 = vpop.f32.mrb[155].mxu1  ;;  %8831 = vmatmul.mubr.msk.f32.gmra.mrb[4].mxu1 %vm411_vm3, %v9260_v41  ;;  %2531 = vmatprep.mubr.f32.mxu0 %v9413_v32 }
 0x242   : > { %v5557_v63 = vadd.f32 %v5556_v37, %v4457_v49  ;;  %v4460_v0 = vand.u32 2147483647, %v2146_v62  ;;  %2980 = vmatprep.mubr.f32.mxu1 %v9413_v32 }
 0x243   : > { %v5695_v1 = vadd.f32 %v5694_v44, %v4459_v54  ;;  %v5626_v7 = vadd.f32 %v5625_v46, %v4458_v57  ;;  %v1701_v8 = vpop.f32.mrb[156].mxu0 }
 0x244   : > { %v5764_v9 = vadd.f32 %v5763_v59, %v4460_v0  ;;  %v4473_v12 = vand.u32 2147483647, %v1701_v8  ;;  %v2150_v13 = vpop.f32.mrb[156].mxu1  ;;  %v1703_v61 = vpop.f32.mrb[157].mxu0  ;;  %8766 = vmatmul.mubr.msk.f32.gmra.mrb[6].mxu0 %vm411_vm3, %v9261_v14  ;;  %v9263_v59 = vld [vmem:[%s13227_s2 + $0x28] sm:$0xff] }
 0x245   : > { %v4475_v36 = vand.u32 2147483647, %v2150_v13  ;;  %v4474_v15 = vand.u32 2147483647, %v1703_v61  ;;  %v2152_v16 = vpop.f32.mrb[157].mxu1  ;;  %8832 = vmatmul.mubr.msk.f32.gmra.mrb[6].mxu1 %vm411_vm3, %v9261_v14  ;;  %2537 = vmatprep.mubr.f32.mxu0 %v9413_v32 }
 0x246   : > { %v5558_v17 = vadd.f32 %v5557_v63, %v4473_v12  ;;  %v4476_v18 = vand.u32 2147483647, %v2152_v16  ;;  %2986 = vmatprep.mubr.f32.mxu1 %v9413_v32 }
 0x247   : > { %v5696_v19 = vadd.f32 %v5695_v1, %v4475_v36  ;;  %v5627_v20 = vadd.f32 %v5626_v7, %v4474_v15  ;;  %v1707_v21 = vpop.f32.mrb[158].mxu0 }
 0x248   : > { %v5765_v45 = vadd.f32 %v5764_v9, %v4476_v18  ;;  %v4489_v22 = vand.u32 2147483647, %v1707_v21  ;;  %v2156_v23 = vpop.f32.mrb[158].mxu1  ;;  %v1709_v25 = vpop.f32.mrb[159].mxu0  ;;  %8767 = vmatmul.mubr.msk.f32.gmra.mrb[8].mxu0 %vm411_vm3, %v9262_v26  ;;  %v9264_v9 = vld [vmem:[%s13227_s2 + $0x30] sm:$0xff] }
 0x249   : > { %v4491_v27 = vand.u32 2147483647, %v2156_v23  ;;  %v4490_v28 = vand.u32 2147483647, %v1709_v25  ;;  %v2158_v29 = vpop.f32.mrb[159].mxu1  ;;  %8833 = vmatmul.mubr.msk.f32.gmra.mrb[8].mxu1 %vm411_vm3, %v9262_v26  ;;  %2543 = vmatprep.mubr.f32.mxu0 %v9413_v32 }
 0x24a   : > { %v5559_v30 = vadd.f32 %v5558_v17, %v4489_v22  ;;  %v4492_v31 = vand.u32 2147483647, %v2158_v29  ;;  %2992 = vmatprep.mubr.f32.mxu1 %v9413_v32 }
 0x24b   : > { %v5697_v35 = vadd.f32 %v5696_v19, %v4491_v27  ;;  %v5628_v40 = vadd.f32 %v5627_v20, %v4490_v28  ;;  %v1713_v37 = vpop.f32.mrb[160].mxu0 }
 0x24c   : > { %v5766_v43 = vadd.f32 %v5765_v45, %v4492_v31  ;;  %v4505_v44 = vand.u32 2147483647, %v1713_v37  ;;  %v2162_v46 = vpop.f32.mrb[160].mxu1  ;;  %v1715_v48 = vpop.f32.mrb[161].mxu0  ;;  %8768 = vmatmul.mubr.msk.f32.gmra.mrb[10].mxu0 %vm411_vm3, %v9263_v59  ;;  %v9265_v45 = vld [vmem:[%s13227_s2 + $0x38] sm:$0xff] }
 0x24d   : > { %v4507_v49 = vand.u32 2147483647, %v2162_v46  ;;  %v4506_v50 = vand.u32 2147483647, %v1715_v48  ;;  %v2164_v53 = vpop.f32.mrb[161].mxu1  ;;  %8834 = vmatmul.mubr.msk.f32.gmra.mrb[10].mxu1 %vm411_vm3, %v9263_v59  ;;  %2549 = vmatprep.mubr.f32.mxu0 %v9413_v32 }
 0x24e   : > { %v5560_v41 = vadd.f32 %v5559_v30, %v4505_v44  ;;  %v4508_v54 = vand.u32 2147483647, %v2164_v53  ;;  %2998 = vmatprep.mubr.f32.mxu1 %v9413_v32 }
 0x24f   : > { %v5698_v57 = vadd.f32 %v5697_v35, %v4507_v49  ;;  %v5629_v62 = vadd.f32 %v5628_v40, %v4506_v50  ;;  %v1719_v63 = vpop.f32.mrb[162].mxu0 }
 0x250   : > { %v5767_v0 = vadd.f32 %v5766_v43, %v4508_v54  ;;  %v4521_v1 = vand.u32 2147483647, %v1719_v63  ;;  %v2168_v7 = vpop.f32.mrb[162].mxu1  ;;  %v1721_v8 = vpop.f32.mrb[163].mxu0  ;;  %8769 = vmatmul.mubr.msk.f32.gmra.mrb[12].mxu0 %vm411_vm3, %v9264_v9  ;;  %v9266_v43 = vld [vmem:[%s13227_s2 + $0x40] sm:$0xff] }
 0x251   : > { %v4523_v12 = vand.u32 2147483647, %v2168_v7  ;;  %v4522_v13 = vand.u32 2147483647, %v1721_v8  ;;  %v2170_v61 = vpop.f32.mrb[163].mxu1  ;;  %8835 = vmatmul.mubr.msk.f32.gmra.mrb[12].mxu1 %vm411_vm3, %v9264_v9  ;;  %2555 = vmatprep.mubr.f32.mxu0 %v9413_v32 }
 0x252   : > { %v5561_v14 = vadd.f32 %v5560_v41, %v4521_v1  ;;  %v4524_v36 = vand.u32 2147483647, %v2170_v61  ;;  %3004 = vmatprep.mubr.f32.mxu1 %v9413_v32 }
 0x253   : > { %v5699_v15 = vadd.f32 %v5698_v57, %v4523_v12  ;;  %v5630_v16 = vadd.f32 %v5629_v62, %v4522_v13  ;;  %v1725_v17 = vpop.f32.mrb[164].mxu0 }
 0x254   : > { %v5768_v18 = vadd.f32 %v5767_v0, %v4524_v36  ;;  %v4537_v19 = vand.u32 2147483647, %v1725_v17  ;;  %v2174_v20 = vpop.f32.mrb[164].mxu1  ;;  %v1727_v21 = vpop.f32.mrb[165].mxu0  ;;  %8770 = vmatmul.mubr.msk.f32.gmra.mrb[14].mxu0 %vm411_vm3, %v9265_v45  ;;  %v9267_v0 = vld [vmem:[%s13227_s2 + $0x48] sm:$0xff] }
 0x255   : > { %v4539_v22 = vand.u32 2147483647, %v2174_v20  ;;  %v4538_v23 = vand.u32 2147483647, %v1727_v21  ;;  %v2176_v25 = vpop.f32.mrb[165].mxu1  ;;  %8836 = vmatmul.mubr.msk.f32.gmra.mrb[14].mxu1 %vm411_vm3, %v9265_v45  ;;  %2561 = vmatprep.mubr.f32.mxu0 %v9413_v32 }
 0x256   : > { %v5562_v26 = vadd.f32 %v5561_v14, %v4537_v19  ;;  %v4540_v27 = vand.u32 2147483647, %v2176_v25  ;;  %3010 = vmatprep.mubr.f32.mxu1 %v9413_v32 }
 0x257   : > { %v5700_v28 = vadd.f32 %v5699_v15, %v4539_v22  ;;  %v5631_v29 = vadd.f32 %v5630_v16, %v4538_v23  ;;  %v1731_v30 = vpop.f32.mrb[166].mxu0 }
 0x258   : > { %v5769_v31 = vadd.f32 %v5768_v18, %v4540_v27  ;;  %v4553_v35 = vand.u32 2147483647, %v1731_v30  ;;  %v2180_v40 = vpop.f32.mrb[166].mxu1  ;;  %v1733_v37 = vpop.f32.mrb[167].mxu0  ;;  %8771 = vmatmul.mubr.msk.f32.gmra.mrb[16].mxu0 %vm411_vm3, %v9266_v43  ;;  %v9268_v18 = vld [vmem:[%s13227_s2 + $0x50] sm:$0xff] }
 0x259   : > { %v4555_v44 = vand.u32 2147483647, %v2180_v40  ;;  %v4554_v46 = vand.u32 2147483647, %v1733_v37  ;;  %v2182_v48 = vpop.f32.mrb[167].mxu1  ;;  %8837 = vmatmul.mubr.msk.f32.gmra.mrb[16].mxu1 %vm411_vm3, %v9266_v43  ;;  %2567 = vmatprep.mubr.f32.mxu0 %v9413_v32 }
 0x25a   : > { %v5563_v59 = vadd.f32 %v5562_v26, %v4553_v35  ;;  %v4556_v49 = vand.u32 2147483647, %v2182_v48  ;;  %3016 = vmatprep.mubr.f32.mxu1 %v9413_v32 }
 0x25b   : > { %v5701_v50 = vadd.f32 %v5700_v28, %v4555_v44  ;;  %v5632_v53 = vadd.f32 %v5631_v29, %v4554_v46  ;;  %v1737_v41 = vpop.f32.mrb[168].mxu0 }
 0x25c   : > { %v5770_v54 = vadd.f32 %v5769_v31, %v4556_v49  ;;  %v4569_v57 = vand.u32 2147483647, %v1737_v41  ;;  %v2186_v62 = vpop.f32.mrb[168].mxu1  ;;  %v1739_v63 = vpop.f32.mrb[169].mxu0  ;;  %8772 = vmatmul.mubr.msk.f32.gmra.mrb[18].mxu0 %vm411_vm3, %v9267_v0  ;;  %v9269_v31 = vld [vmem:[%s13227_s2 + $0x58] sm:$0xff] }
 0x25d   : > { %v4571_v1 = vand.u32 2147483647, %v2186_v62  ;;  %v4570_v7 = vand.u32 2147483647, %v1739_v63  ;;  %v2188_v8 = vpop.f32.mrb[169].mxu1  ;;  %8838 = vmatmul.mubr.msk.f32.gmra.mrb[18].mxu1 %vm411_vm3, %v9267_v0  ;;  %2573 = vmatprep.mubr.f32.mxu0 %v9413_v32 }
 0x25e   : > { %v5564_v9 = vadd.f32 %v5563_v59, %v4569_v57  ;;  %v4572_v12 = vand.u32 2147483647, %v2188_v8  ;;  %3022 = vmatprep.mubr.f32.mxu1 %v9413_v32 }
 0x25f   : > { %v5702_v13 = vadd.f32 %v5701_v50, %v4571_v1  ;;  %v5633_v61 = vadd.f32 %v5632_v53, %v4570_v7  ;;  %v1743_v14 = vpop.f32.mrb[170].mxu0 }
 0x260   : > { %v5771_v36 = vadd.f32 %v5770_v54, %v4572_v12  ;;  %v4585_v15 = vand.u32 2147483647, %v1743_v14  ;;  %v2192_v16 = vpop.f32.mrb[170].mxu1  ;;  %v1745_v17 = vpop.f32.mrb[171].mxu0  ;;  %8773 = vmatmul.mubr.msk.f32.gmra.mrb[20].mxu0 %vm411_vm3, %v9268_v18  ;;  %v9270_v54 = vld [vmem:[%s13227_s2 + $0x60] sm:$0xff] }
 0x261   : > { %v4587_v19 = vand.u32 2147483647, %v2192_v16  ;;  %v4586_v20 = vand.u32 2147483647, %v1745_v17  ;;  %v2194_v21 = vpop.f32.mrb[171].mxu1  ;;  %8839 = vmatmul.mubr.msk.f32.gmra.mrb[20].mxu1 %vm411_vm3, %v9268_v18  ;;  %2579 = vmatprep.mubr.f32.mxu0 %v9413_v32 }
 0x262   : > { %v5565_v45 = vadd.f32 %v5564_v9, %v4585_v15  ;;  %v4588_v22 = vand.u32 2147483647, %v2194_v21  ;;  %3028 = vmatprep.mubr.f32.mxu1 %v9413_v32 }
 0x263   : > { %v5703_v23 = vadd.f32 %v5702_v13, %v4587_v19  ;;  %v5634_v25 = vadd.f32 %v5633_v61, %v4586_v20  ;;  %v1749_v26 = vpop.f32.mrb[172].mxu0 }
 0x264   : > { %v5772_v27 = vadd.f32 %v5771_v36, %v4588_v22  ;;  %v4601_v28 = vand.u32 2147483647, %v1749_v26  ;;  %v2198_v29 = vpop.f32.mrb[172].mxu1  ;;  %v1751_v30 = vpop.f32.mrb[173].mxu0  ;;  %8774 = vmatmul.mubr.msk.f32.gmra.mrb[22].mxu0 %vm411_vm3, %v9269_v31  ;;  %v9271_v36 = vld [vmem:[%s13227_s2 + $0x68] sm:$0xff] }
 0x265   : > { %v4603_v35 = vand.u32 2147483647, %v2198_v29  ;;  %v4602_v40 = vand.u32 2147483647, %v1751_v30  ;;  %v2200_v37 = vpop.f32.mrb[173].mxu1  ;;  %8840 = vmatmul.mubr.msk.f32.gmra.mrb[22].mxu1 %vm411_vm3, %v9269_v31  ;;  %2585 = vmatprep.mubr.f32.mxu0 %v9413_v32 }
 0x266   : > { %v5566_v43 = vadd.f32 %v5565_v45, %v4601_v28  ;;  %v4604_v44 = vand.u32 2147483647, %v2200_v37  ;;  %3034 = vmatprep.mubr.f32.mxu1 %v9413_v32 }
 0x267   : > { %v5704_v46 = vadd.f32 %v5703_v23, %v4603_v35  ;;  %v5635_v48 = vadd.f32 %v5634_v25, %v4602_v40  ;;  %v1755_v59 = vpop.f32.mrb[174].mxu0 }
 0x268   : > { %v5773_v49 = vadd.f32 %v5772_v27, %v4604_v44  ;;  %v4617_v50 = vand.u32 2147483647, %v1755_v59  ;;  %v2204_v53 = vpop.f32.mrb[174].mxu1  ;;  %v1757_v41 = vpop.f32.mrb[175].mxu0  ;;  %8775 = vmatmul.mubr.msk.f32.gmra.mrb[24].mxu0 %vm411_vm3, %v9270_v54  ;;  %v9272_v27 = vld [vmem:[%s13227_s2 + $0x70] sm:$0xff] }
 0x269   : > { %v4619_v57 = vand.u32 2147483647, %v2204_v53  ;;  %v4618_v62 = vand.u32 2147483647, %v1757_v41  ;;  %v2206_v63 = vpop.f32.mrb[175].mxu1  ;;  %8841 = vmatmul.mubr.msk.f32.gmra.mrb[24].mxu1 %vm411_vm3, %v9270_v54  ;;  %2591 = vmatprep.mubr.f32.mxu0 %v9413_v32 }
 0x26a   : > { %v5567_v0 = vadd.f32 %v5566_v43, %v4617_v50  ;;  %v4620_v1 = vand.u32 2147483647, %v2206_v63  ;;  %3040 = vmatprep.mubr.f32.mxu1 %v9413_v32 }
 0x26b   : > { %v5705_v7 = vadd.f32 %v5704_v46, %v4619_v57  ;;  %v5636_v8 = vadd.f32 %v5635_v48, %v4618_v62  ;;  %v1761_v9 = vpop.f32.mrb[176].mxu0 }
 0x26c   : > { %v5774_v12 = vadd.f32 %v5773_v49, %v4620_v1  ;;  %v4633_v13 = vand.u32 2147483647, %v1761_v9  ;;  %v2210_v61 = vpop.f32.mrb[176].mxu1  ;;  %v1763_v14 = vpop.f32.mrb[177].mxu0  ;;  %8776 = vmatmul.mubr.msk.f32.gmra.mrb[26].mxu0 %vm411_vm3, %v9271_v36  ;;  %v9273_v49 = vld [vmem:[%s13227_s2 + $0x78] sm:$0xff] }
 0x26d   : > { %v4635_v15 = vand.u32 2147483647, %v2210_v61  ;;  %v4634_v16 = vand.u32 2147483647, %v1763_v14  ;;  %v2212_v17 = vpop.f32.mrb[177].mxu1  ;;  %8842 = vmatmul.mubr.msk.f32.gmra.mrb[26].mxu1 %vm411_vm3, %v9271_v36  ;;  %2597 = vmatprep.mubr.f32.mxu0 %v9413_v32 }
 0x26e   : > { %v5568_v18 = vadd.f32 %v5567_v0, %v4633_v13  ;;  %v4636_v19 = vand.u32 2147483647, %v2212_v17  ;;  %3046 = vmatprep.mubr.f32.mxu1 %v9413_v32 }
 0x26f   : > { %v5706_v20 = vadd.f32 %v5705_v7, %v4635_v15  ;;  %v5637_v21 = vadd.f32 %v5636_v8, %v4634_v16  ;;  %v1767_v45 = vpop.f32.mrb[178].mxu0 }
 0x270   : > { %v5775_v22 = vadd.f32 %v5774_v12, %v4636_v19  ;;  %v4649_v23 = vand.u32 2147483647, %v1767_v45  ;;  %v2216_v25 = vpop.f32.mrb[178].mxu1  ;;  %v1769_v26 = vpop.f32.mrb[179].mxu0  ;;  %8777 = vmatmul.mubr.msk.f32.gmra.mrb[28].mxu0 %vm411_vm3, %v9272_v27  ;;  %v9274_v12 = vld [vmem:[%s13227_s2 + $0x80] sm:$0xff] }
 0x271   : > { %v4651_v28 = vand.u32 2147483647, %v2216_v25  ;;  %v4650_v29 = vand.u32 2147483647, %v1769_v26  ;;  %v2218_v30 = vpop.f32.mrb[179].mxu1  ;;  %8843 = vmatmul.mubr.msk.f32.gmra.mrb[28].mxu1 %vm411_vm3, %v9272_v27  ;;  %2603 = vmatprep.mubr.f32.mxu0 %v9413_v32 }
 0x272   : > { %v5569_v31 = vadd.f32 %v5568_v18, %v4649_v23  ;;  %v4652_v35 = vand.u32 2147483647, %v2218_v30  ;;  %3052 = vmatprep.mubr.f32.mxu1 %v9413_v32 }
 0x273   : > { %v5707_v40 = vadd.f32 %v5706_v20, %v4651_v28  ;;  %v5638_v37 = vadd.f32 %v5637_v21, %v4650_v29  ;;  %v1773_v43 = vpop.f32.mrb[180].mxu0 }
 0x274   : > { %v5776_v44 = vadd.f32 %v5775_v22, %v4652_v35  ;;  %v4665_v46 = vand.u32 2147483647, %v1773_v43  ;;  %v2222_v48 = vpop.f32.mrb[180].mxu1  ;;  %v1775_v59 = vpop.f32.mrb[181].mxu0  ;;  %8778 = vmatmul.mubr.msk.f32.gmra.mrb[30].mxu0 %vm411_vm3, %v9273_v49  ;;  %v9275_v22 = vld [vmem:[%s13227_s2 + $0x88] sm:$0xff] }
 0x275   : > { %v4667_v50 = vand.u32 2147483647, %v2222_v48  ;;  %v4666_v53 = vand.u32 2147483647, %v1775_v59  ;;  %v2224_v41 = vpop.f32.mrb[181].mxu1  ;;  %8844 = vmatmul.mubr.msk.f32.gmra.mrb[30].mxu1 %vm411_vm3, %v9273_v49  ;;  %2609 = vmatprep.mubr.f32.mxu0 %v9413_v32 }
 0x276   : > { %v5570_v54 = vadd.f32 %v5569_v31, %v4665_v46  ;;  %v4668_v57 = vand.u32 2147483647, %v2224_v41  ;;  %3058 = vmatprep.mubr.f32.mxu1 %v9413_v32 }
 0x277   : > { %v5708_v62 = vadd.f32 %v5707_v40, %v4667_v50  ;;  %v5639_v63 = vadd.f32 %v5638_v37, %v4666_v53  ;;  %v1779_v0 = vpop.f32.mrb[182].mxu0 }
 0x278   : > { %v5777_v1 = vadd.f32 %v5776_v44, %v4668_v57  ;;  %v4681_v7 = vand.u32 2147483647, %v1779_v0  ;;  %v2228_v8 = vpop.f32.mrb[182].mxu1  ;;  %v1781_v9 = vpop.f32.mrb[183].mxu0  ;;  %8779 = vmatmul.mubr.msk.f32.gmra.mrb[32].mxu0 %vm411_vm3, %v9274_v12  ;;  %v9276_v44 = vld [vmem:[%s13227_s2 + $0x90] sm:$0xff] }
 0x279   : > { %v4683_v13 = vand.u32 2147483647, %v2228_v8  ;;  %v4682_v61 = vand.u32 2147483647, %v1781_v9  ;;  %v2230_v14 = vpop.f32.mrb[183].mxu1  ;;  %8845 = vmatmul.mubr.msk.f32.gmra.mrb[32].mxu1 %vm411_vm3, %v9274_v12  ;;  %2615 = vmatprep.mubr.f32.mxu0 %v9413_v32 }
 0x27a   : > { %v5571_v36 = vadd.f32 %v5570_v54, %v4681_v7  ;;  %v4684_v15 = vand.u32 2147483647, %v2230_v14  ;;  %3064 = vmatprep.mubr.f32.mxu1 %v9413_v32 }
 0x27b   : > { %v5709_v16 = vadd.f32 %v5708_v62, %v4683_v13  ;;  %v5640_v17 = vadd.f32 %v5639_v63, %v4682_v61  ;;  %v1785_v18 = vpop.f32.mrb[184].mxu0 }
 0x27c   : > { %v5778_v19 = vadd.f32 %v5777_v1, %v4684_v15  ;;  %v4697_v20 = vand.u32 2147483647, %v1785_v18  ;;  %v2234_v21 = vpop.f32.mrb[184].mxu1  ;;  %v1787_v45 = vpop.f32.mrb[185].mxu0  ;;  %8780 = vmatmul.mubr.msk.f32.gmra.mrb[34].mxu0 %vm411_vm3, %v9275_v22  ;;  %v9277_v1 = vld [vmem:[%s13227_s2 + $0x98] sm:$0xff] }
 0x27d   : > { %v4699_v23 = vand.u32 2147483647, %v2234_v21  ;;  %v4698_v25 = vand.u32 2147483647, %v1787_v45  ;;  %v2236_v26 = vpop.f32.mrb[185].mxu1  ;;  %8846 = vmatmul.mubr.msk.f32.gmra.mrb[34].mxu1 %vm411_vm3, %v9275_v22  ;;  %2621 = vmatprep.mubr.f32.mxu0 %v9413_v32 }
 0x27e   : > { %v5572_v27 = vadd.f32 %v5571_v36, %v4697_v20  ;;  %v4700_v28 = vand.u32 2147483647, %v2236_v26  ;;  %3070 = vmatprep.mubr.f32.mxu1 %v9413_v32 }
 0x27f   : > { %v5710_v29 = vadd.f32 %v5709_v16, %v4699_v23  ;;  %v5641_v30 = vadd.f32 %v5640_v17, %v4698_v25  ;;  %v1791_v31 = vpop.f32.mrb[186].mxu0 }
 0x280   : > { %v5779_v35 = vadd.f32 %v5778_v19, %v4700_v28  ;;  %v4713_v40 = vand.u32 2147483647, %v1791_v31  ;;  %v2240_v37 = vpop.f32.mrb[186].mxu1  ;;  %v1793_v43 = vpop.f32.mrb[187].mxu0  ;;  %8781 = vmatmul.mubr.msk.f32.gmra.mrb[36].mxu0 %vm411_vm3, %v9276_v44  ;;  %v9278_v19 = vld [vmem:[%s13227_s2 + $0xa0] sm:$0xff] }
 0x281   : > { %v4715_v46 = vand.u32 2147483647, %v2240_v37  ;;  %v4714_v48 = vand.u32 2147483647, %v1793_v43  ;;  %v2242_v59 = vpop.f32.mrb[187].mxu1  ;;  %8847 = vmatmul.mubr.msk.f32.gmra.mrb[36].mxu1 %vm411_vm3, %v9276_v44  ;;  %2627 = vmatprep.mubr.f32.mxu0 %v9413_v32 }
 0x282   : > { %v5573_v49 = vadd.f32 %v5572_v27, %v4713_v40  ;;  %v4716_v50 = vand.u32 2147483647, %v2242_v59  ;;  %3076 = vmatprep.mubr.f32.mxu1 %v9413_v32 }
 0x283   : > { %v5711_v53 = vadd.f32 %v5710_v29, %v4715_v46  ;;  %v5642_v41 = vadd.f32 %v5641_v30, %v4714_v48  ;;  %v1797_v54 = vpop.f32.mrb[188].mxu0 }
 0x284   : > { %v5780_v57 = vadd.f32 %v5779_v35, %v4716_v50  ;;  %v4729_v62 = vand.u32 2147483647, %v1797_v54  ;;  %v2246_v63 = vpop.f32.mrb[188].mxu1  ;;  %v1799_v0 = vpop.f32.mrb[189].mxu0  ;;  %8782 = vmatmul.mubr.msk.f32.gmra.mrb[38].mxu0 %vm411_vm3, %v9277_v1  ;;  %v9279_v35 = vld [vmem:[%s13227_s2 + $0xa8] sm:$0xff] }
 0x285   : > { %v4731_v7 = vand.u32 2147483647, %v2246_v63  ;;  %v4730_v8 = vand.u32 2147483647, %v1799_v0  ;;  %v2248_v9 = vpop.f32.mrb[189].mxu1  ;;  %8848 = vmatmul.mubr.msk.f32.gmra.mrb[38].mxu1 %vm411_vm3, %v9277_v1  ;;  %2633 = vmatprep.mubr.f32.mxu0 %v9413_v32 }
 0x286   : > { %v5574_v12 = vadd.f32 %v5573_v49, %v4729_v62  ;;  %v4732_v13 = vand.u32 2147483647, %v2248_v9  ;;  %3082 = vmatprep.mubr.f32.mxu1 %v9413_v32 }
 0x287   : > { %v5712_v61 = vadd.f32 %v5711_v53, %v4731_v7  ;;  %v5643_v14 = vadd.f32 %v5642_v41, %v4730_v8  ;;  %v1803_v36 = vpop.f32.mrb[190].mxu0 }
 0x288   : > { %v5781_v15 = vadd.f32 %v5780_v57, %v4732_v13  ;;  %v4745_v16 = vand.u32 2147483647, %v1803_v36  ;;  %v2252_v17 = vpop.f32.mrb[190].mxu1  ;;  %v1805_v18 = vpop.f32.mrb[191].mxu0  ;;  %8783 = vmatmul.mubr.msk.f32.gmra.mrb[40].mxu0 %vm411_vm3, %v9278_v19  ;;  %v9280_v57 = vld [vmem:[%s13227_s2 + $0xb0] sm:$0xff] }
 0x289   : > { %v4747_v20 = vand.u32 2147483647, %v2252_v17  ;;  %v4746_v21 = vand.u32 2147483647, %v1805_v18  ;;  %v2254_v45 = vpop.f32.mrb[191].mxu1  ;;  %8849 = vmatmul.mubr.msk.f32.gmra.mrb[40].mxu1 %vm411_vm3, %v9278_v19  ;;  %2639 = vmatprep.mubr.f32.mxu0 %v9413_v32 }
 0x28a   : > { %v5575_v22 = vadd.f32 %v5574_v12, %v4745_v16  ;;  %v4748_v23 = vand.u32 2147483647, %v2254_v45  ;;  %3088 = vmatprep.mubr.f32.mxu1 %v9413_v32 }
 0x28b   : > { %v5713_v25 = vadd.f32 %v5712_v61, %v4747_v20  ;;  %v5644_v26 = vadd.f32 %v5643_v14, %v4746_v21  ;;  %v1809_v27 = vpop.f32.mrb[192].mxu0 }
 0x28c   : > { %v5782_v28 = vadd.f32 %v5781_v15, %v4748_v23  ;;  %v4761_v29 = vand.u32 2147483647, %v1809_v27  ;;  %v2258_v30 = vpop.f32.mrb[192].mxu1  ;;  %v1811_v31 = vpop.f32.mrb[193].mxu0  ;;  %8784 = vmatmul.mubr.msk.f32.gmra.mrb[42].mxu0 %vm411_vm3, %v9279_v35  ;;  %v9281_v15 = vld [vmem:[%s13227_s2 + $0xb8] sm:$0xff] }
 0x28d   : > { %v4763_v40 = vand.u32 2147483647, %v2258_v30  ;;  %v4762_v37 = vand.u32 2147483647, %v1811_v31  ;;  %v2260_v43 = vpop.f32.mrb[193].mxu1  ;;  %8850 = vmatmul.mubr.msk.f32.gmra.mrb[42].mxu1 %vm411_vm3, %v9279_v35  ;;  %2645 = vmatprep.mubr.f32.mxu0 %v9413_v32 }
 0x28e   : > { %v5576_v44 = vadd.f32 %v5575_v22, %v4761_v29  ;;  %v4764_v46 = vand.u32 2147483647, %v2260_v43  ;;  %3094 = vmatprep.mubr.f32.mxu1 %v9413_v32 }
 0x28f   : > { %v5714_v48 = vadd.f32 %v5713_v25, %v4763_v40  ;;  %v5645_v59 = vadd.f32 %v5644_v26, %v4762_v37  ;;  %v1815_v49 = vpop.f32.mrb[194].mxu0 }
 0x290   : > { %v5783_v50 = vadd.f32 %v5782_v28, %v4764_v46  ;;  %v4777_v53 = vand.u32 2147483647, %v1815_v49  ;;  %v2264_v41 = vpop.f32.mrb[194].mxu1  ;;  %v1817_v54 = vpop.f32.mrb[195].mxu0  ;;  %8785 = vmatmul.mubr.msk.f32.gmra.mrb[44].mxu0 %vm411_vm3, %v9280_v57  ;;  %v9282_v28 = vld [vmem:[%s13227_s2 + $0xc0] sm:$0xff] }
 0x291   : > { %v4779_v62 = vand.u32 2147483647, %v2264_v41  ;;  %v4778_v63 = vand.u32 2147483647, %v1817_v54  ;;  %v2266_v0 = vpop.f32.mrb[195].mxu1  ;;  %8851 = vmatmul.mubr.msk.f32.gmra.mrb[44].mxu1 %vm411_vm3, %v9280_v57  ;;  %2651 = vmatprep.mubr.f32.mxu0 %v9413_v32 }
 0x292   : > { %v5577_v1 = vadd.f32 %v5576_v44, %v4777_v53  ;;  %v4780_v7 = vand.u32 2147483647, %v2266_v0  ;;  %3100 = vmatprep.mubr.f32.mxu1 %v9413_v32 }
 0x293   : > { %v5715_v8 = vadd.f32 %v5714_v48, %v4779_v62  ;;  %v5646_v9 = vadd.f32 %v5645_v59, %v4778_v63  ;;  %v1821_v12 = vpop.f32.mrb[196].mxu0 }
 0x294   : > { %v5784_v13 = vadd.f32 %v5783_v50, %v4780_v7  ;;  %v4793_v61 = vand.u32 2147483647, %v1821_v12  ;;  %v2270_v14 = vpop.f32.mrb[196].mxu1  ;;  %v1823_v36 = vpop.f32.mrb[197].mxu0  ;;  %8786 = vmatmul.mubr.msk.f32.gmra.mrb[46].mxu0 %vm411_vm3, %v9281_v15  ;;  %v9283_v50 = vld [vmem:[%s13227_s2 + $0xc8] sm:$0xff] }
 0x295   : > { %v4795_v16 = vand.u32 2147483647, %v2270_v14  ;;  %v4794_v17 = vand.u32 2147483647, %v1823_v36  ;;  %v2272_v18 = vpop.f32.mrb[197].mxu1  ;;  %8852 = vmatmul.mubr.msk.f32.gmra.mrb[46].mxu1 %vm411_vm3, %v9281_v15  ;;  %2657 = vmatprep.mubr.f32.mxu0 %v9413_v32 }
 0x296   : > { %v5578_v19 = vadd.f32 %v5577_v1, %v4793_v61  ;;  %v4796_v20 = vand.u32 2147483647, %v2272_v18  ;;  %3106 = vmatprep.mubr.f32.mxu1 %v9413_v32 }
 0x297   : > { %v5716_v21 = vadd.f32 %v5715_v8, %v4795_v16  ;;  %v5647_v45 = vadd.f32 %v5646_v9, %v4794_v17  ;;  %v1827_v22 = vpop.f32.mrb[198].mxu0 }
 0x298   : > { %v5785_v23 = vadd.f32 %v5784_v13, %v4796_v20  ;;  %v4809_v25 = vand.u32 2147483647, %v1827_v22  ;;  %v2276_v26 = vpop.f32.mrb[198].mxu1  ;;  %v1829_v27 = vpop.f32.mrb[199].mxu0  ;;  %8787 = vmatmul.mubr.msk.f32.gmra.mrb[48].mxu0 %vm411_vm3, %v9282_v28  ;;  %v9284_v13 = vld [vmem:[%s13227_s2 + $0xd0] sm:$0xff] }
 0x299   : > { %v4811_v29 = vand.u32 2147483647, %v2276_v26  ;;  %v4810_v30 = vand.u32 2147483647, %v1829_v27  ;;  %v2278_v31 = vpop.f32.mrb[199].mxu1  ;;  %8853 = vmatmul.mubr.msk.f32.gmra.mrb[48].mxu1 %vm411_vm3, %v9282_v28  ;;  %2663 = vmatprep.mubr.f32.mxu0 %v9413_v32 }
 0x29a   : > { %v5579_v35 = vadd.f32 %v5578_v19, %v4809_v25  ;;  %v4812_v40 = vand.u32 2147483647, %v2278_v31  ;;  %3112 = vmatprep.mubr.f32.mxu1 %v9413_v32 }
 0x29b   : > { %v5717_v37 = vadd.f32 %v5716_v21, %v4811_v29  ;;  %v5648_v43 = vadd.f32 %v5647_v45, %v4810_v30  ;;  %v1833_v44 = vpop.f32.mrb[200].mxu0 }
 0x29c   : > { %v5786_v46 = vadd.f32 %v5785_v23, %v4812_v40  ;;  %v4825_v48 = vand.u32 2147483647, %v1833_v44  ;;  %v2282_v59 = vpop.f32.mrb[200].mxu1  ;;  %v1835_v49 = vpop.f32.mrb[201].mxu0  ;;  %8788 = vmatmul.mubr.msk.f32.gmra.mrb[50].mxu0 %vm411_vm3, %v9283_v50  ;;  %v9285_v23 = vld [vmem:[%s13227_s2 + $0xd8] sm:$0xff] }
 0x29d   : > { %v4827_v53 = vand.u32 2147483647, %v2282_v59  ;;  %v4826_v41 = vand.u32 2147483647, %v1835_v49  ;;  %v2284_v54 = vpop.f32.mrb[201].mxu1  ;;  %8854 = vmatmul.mubr.msk.f32.gmra.mrb[50].mxu1 %vm411_vm3, %v9283_v50  ;;  %2669 = vmatprep.mubr.f32.mxu0 %v9413_v32 }
 0x29e   : > { %v5580_v57 = vadd.f32 %v5579_v35, %v4825_v48  ;;  %v4828_v62 = vand.u32 2147483647, %v2284_v54  ;;  %3118 = vmatprep.mubr.f32.mxu1 %v9413_v32 }
 0x29f   : > { %v5718_v63 = vadd.f32 %v5717_v37, %v4827_v53  ;;  %v5649_v0 = vadd.f32 %v5648_v43, %v4826_v41  ;;  %v1839_v1 = vpop.f32.mrb[202].mxu0 }
 0x2a0   : > { %v5787_v7 = vadd.f32 %v5786_v46, %v4828_v62  ;;  %v4841_v8 = vand.u32 2147483647, %v1839_v1  ;;  %v2288_v9 = vpop.f32.mrb[202].mxu1  ;;  %v1841_v12 = vpop.f32.mrb[203].mxu0  ;;  %8789 = vmatmul.mubr.msk.f32.gmra.mrb[52].mxu0 %vm411_vm3, %v9284_v13  ;;  %v9286_v46 = vld [vmem:[%s13227_s2 + $0xe0] sm:$0xff] }
 0x2a1   : > { %v4843_v61 = vand.u32 2147483647, %v2288_v9  ;;  %v4842_v14 = vand.u32 2147483647, %v1841_v12  ;;  %v2290_v36 = vpop.f32.mrb[203].mxu1  ;;  %8855 = vmatmul.mubr.msk.f32.gmra.mrb[52].mxu1 %vm411_vm3, %v9284_v13  ;;  %2675 = vmatprep.mubr.f32.mxu0 %v9413_v32 }
 0x2a2   : > { %v5581_v15 = vadd.f32 %v5580_v57, %v4841_v8  ;;  %v4844_v16 = vand.u32 2147483647, %v2290_v36  ;;  %3124 = vmatprep.mubr.f32.mxu1 %v9413_v32 }
 0x2a3   : > { %v5719_v17 = vadd.f32 %v5718_v63, %v4843_v61  ;;  %v5650_v18 = vadd.f32 %v5649_v0, %v4842_v14  ;;  %v1845_v19 = vpop.f32.mrb[204].mxu0 }
 0x2a4   : > { %v5788_v20 = vadd.f32 %v5787_v7, %v4844_v16  ;;  %v4857_v21 = vand.u32 2147483647, %v1845_v19  ;;  %v2294_v45 = vpop.f32.mrb[204].mxu1  ;;  %v1847_v22 = vpop.f32.mrb[205].mxu0  ;;  %8790 = vmatmul.mubr.msk.f32.gmra.mrb[54].mxu0 %vm411_vm3, %v9285_v23  ;;  %v9287_v7 = vld [vmem:[%s13227_s2 + $0xe8] sm:$0xff] }
 0x2a5   : > { %v4859_v25 = vand.u32 2147483647, %v2294_v45  ;;  %v4858_v26 = vand.u32 2147483647, %v1847_v22  ;;  %v2296_v27 = vpop.f32.mrb[205].mxu1  ;;  %8856 = vmatmul.mubr.msk.f32.gmra.mrb[54].mxu1 %vm411_vm3, %v9285_v23  ;;  %2681 = vmatprep.mubr.f32.mxu0 %v9413_v32 }
 0x2a6   : > { %v5582_v28 = vadd.f32 %v5581_v15, %v4857_v21  ;;  %v4860_v29 = vand.u32 2147483647, %v2296_v27  ;;  %3130 = vmatprep.mubr.f32.mxu1 %v9413_v32 }
 0x2a7   : > { %v5720_v30 = vadd.f32 %v5719_v17, %v4859_v25  ;;  %v5651_v31 = vadd.f32 %v5650_v18, %v4858_v26  ;;  %v1851_v35 = vpop.f32.mrb[206].mxu0 }
 0x2a8   : > { %v5789_v40 = vadd.f32 %v5788_v20, %v4860_v29  ;;  %v4873_v37 = vand.u32 2147483647, %v1851_v35  ;;  %v2300_v43 = vpop.f32.mrb[206].mxu1  ;;  %v1853_v44 = vpop.f32.mrb[207].mxu0  ;;  %8791 = vmatmul.mubr.msk.f32.gmra.mrb[56].mxu0 %vm411_vm3, %v9286_v46  ;;  %v9288_v20 = vld [vmem:[%s13227_s2 + $0xf0] sm:$0xff] }
 0x2a9   : > { %v4875_v48 = vand.u32 2147483647, %v2300_v43  ;;  %v4874_v59 = vand.u32 2147483647, %v1853_v44  ;;  %v2302_v49 = vpop.f32.mrb[207].mxu1  ;;  %8857 = vmatmul.mubr.msk.f32.gmra.mrb[56].mxu1 %vm411_vm3, %v9286_v46  ;;  %2687 = vmatprep.mubr.f32.mxu0 %v9413_v32 }
 0x2aa   : > { %v5583_v50 = vadd.f32 %v5582_v28, %v4873_v37  ;;  %v4876_v53 = vand.u32 2147483647, %v2302_v49  ;;  %3136 = vmatprep.mubr.f32.mxu1 %v9413_v32 }
 0x2ab   : > { %v5721_v41 = vadd.f32 %v5720_v30, %v4875_v48  ;;  %v5652_v54 = vadd.f32 %v5651_v31, %v4874_v59  ;;  %v1857_v57 = vpop.f32.mrb[208].mxu0 }
 0x2ac   : > { %v5790_v62 = vadd.f32 %v5789_v40, %v4876_v53  ;;  %v4889_v63 = vand.u32 2147483647, %v1857_v57  ;;  %v2306_v0 = vpop.f32.mrb[208].mxu1  ;;  %v1859_v1 = vpop.f32.mrb[209].mxu0  ;;  %8792 = vmatmul.mubr.msk.f32.gmra.mrb[58].mxu0 %vm411_vm3, %v9287_v7  ;;  %v9289_v40 = vld [vmem:[%s13227_s2 + $0xf8] sm:$0xff] }
 0x2ad   : > { %v4891_v8 = vand.u32 2147483647, %v2306_v0  ;;  %v4890_v9 = vand.u32 2147483647, %v1859_v1  ;;  %v2308_v12 = vpop.f32.mrb[209].mxu1  ;;  %8858 = vmatmul.mubr.msk.f32.gmra.mrb[58].mxu1 %vm411_vm3, %v9287_v7  ;;  %2693 = vmatprep.mubr.f32.mxu0 %v9413_v32 }
 0x2ae   : > { %v5584_v13 = vadd.f32 %v5583_v50, %v4889_v63  ;;  %v4892_v61 = vand.u32 2147483647, %v2308_v12  ;;  %3142 = vmatprep.mubr.f32.mxu1 %v9413_v32 }
 0x2af   : > { %v5722_v14 = vadd.f32 %v5721_v41, %v4891_v8  ;;  %v5653_v36 = vadd.f32 %v5652_v54, %v4890_v9  ;;  %v1863_v15 = vpop.f32.mrb[210].mxu0 }
 0x2b0   : > { %v5791_v16 = vadd.f32 %v5790_v62, %v4892_v61  ;;  %v4905_v17 = vand.u32 2147483647, %v1863_v15  ;;  %v2312_v18 = vpop.f32.mrb[210].mxu1  ;;  %v1865_v19 = vpop.f32.mrb[211].mxu0  ;;  %8793 = vmatmul.mubr.msk.f32.gmra.mrb[60].mxu0 %vm411_vm3, %v9288_v20  ;;  %v9290_v62 = vld [vmem:[%s13227_s2 + $0x100] sm:$0xff] }
 0x2b1   : > { %v4907_v21 = vand.u32 2147483647, %v2312_v18  ;;  %v4906_v45 = vand.u32 2147483647, %v1865_v19  ;;  %v2314_v22 = vpop.f32.mrb[211].mxu1  ;;  %8859 = vmatmul.mubr.msk.f32.gmra.mrb[60].mxu1 %vm411_vm3, %v9288_v20  ;;  %2699 = vmatprep.mubr.f32.mxu0 %v9413_v32 }
 0x2b2   : > { %v5585_v23 = vadd.f32 %v5584_v13, %v4905_v17  ;;  %v4908_v25 = vand.u32 2147483647, %v2314_v22  ;;  %3148 = vmatprep.mubr.f32.mxu1 %v9413_v32 }
 0x2b3   : > { %v5723_v26 = vadd.f32 %v5722_v14, %v4907_v21  ;;  %v5654_v27 = vadd.f32 %v5653_v36, %v4906_v45  ;;  %v1869_v28 = vpop.f32.mrb[212].mxu0 }
 0x2b4   : > { %v5792_v29 = vadd.f32 %v5791_v16, %v4908_v25  ;;  %v4921_v30 = vand.u32 2147483647, %v1869_v28  ;;  %v2318_v31 = vpop.f32.mrb[212].mxu1  ;;  %v1871_v35 = vpop.f32.mrb[213].mxu0  ;;  %8794 = vmatmul.mubr.msk.f32.gmra.mrb[62].mxu0 %vm411_vm3, %v9289_v40  ;;  %v9291_v16 = vld [vmem:[%s13227_s2 + $0x108] sm:$0xff] }
 0x2b5   : > { %v4923_v37 = vand.u32 2147483647, %v2318_v31  ;;  %v4922_v43 = vand.u32 2147483647, %v1871_v35  ;;  %v2320_v44 = vpop.f32.mrb[213].mxu1  ;;  %8860 = vmatmul.mubr.msk.f32.gmra.mrb[62].mxu1 %vm411_vm3, %v9289_v40  ;;  %2705 = vmatprep.mubr.f32.mxu0 %v9413_v32 }
 0x2b6   : > { %v5586_v46 = vadd.f32 %v5585_v23, %v4921_v30  ;;  %v4924_v48 = vand.u32 2147483647, %v2320_v44  ;;  %3154 = vmatprep.mubr.f32.mxu1 %v9413_v32 }
 0x2b7   : > { %v5724_v59 = vadd.f32 %v5723_v26, %v4923_v37  ;;  %v5655_v49 = vadd.f32 %v5654_v27, %v4922_v43  ;;  %v1875_v50 = vpop.f32.mrb[214].mxu0 }
 0x2b8   : > { %v5793_v53 = vadd.f32 %v5792_v29, %v4924_v48  ;;  %v4937_v41 = vand.u32 2147483647, %v1875_v50  ;;  %v2324_v54 = vpop.f32.mrb[214].mxu1  ;;  %v1877_v57 = vpop.f32.mrb[215].mxu0  ;;  %8795 = vmatmul.mubr.msk.f32.gmra.mrb[64].mxu0 %vm411_vm3, %v9290_v62  ;;  %v9292_v29 = vld [vmem:[%s13227_s2 + $0x110] sm:$0xff] }
 0x2b9   : > { %v4939_v63 = vand.u32 2147483647, %v2324_v54  ;;  %v4938_v0 = vand.u32 2147483647, %v1877_v57  ;;  %v2326_v1 = vpop.f32.mrb[215].mxu1  ;;  %8861 = vmatmul.mubr.msk.f32.gmra.mrb[64].mxu1 %vm411_vm3, %v9290_v62  ;;  %2711 = vmatprep.mubr.f32.mxu0 %v9413_v32 }
 0x2ba   : > { %v5587_v7 = vadd.f32 %v5586_v46, %v4937_v41  ;;  %v4940_v8 = vand.u32 2147483647, %v2326_v1  ;;  %3160 = vmatprep.mubr.f32.mxu1 %v9413_v32 }
 0x2bb   : > { %v5725_v9 = vadd.f32 %v5724_v59, %v4939_v63  ;;  %v5656_v12 = vadd.f32 %v5655_v49, %v4938_v0  ;;  %v1881_v13 = vpop.f32.mrb[216].mxu0 }
 0x2bc   : > { %v5794_v61 = vadd.f32 %v5793_v53, %v4940_v8  ;;  %v4953_v14 = vand.u32 2147483647, %v1881_v13  ;;  %v2330_v36 = vpop.f32.mrb[216].mxu1  ;;  %v1883_v15 = vpop.f32.mrb[217].mxu0  ;;  %8796 = vmatmul.mubr.msk.f32.gmra.mrb[66].mxu0 %vm411_vm3, %v9291_v16  ;;  %v9293_v53 = vld [vmem:[%s13227_s2 + $0x118] sm:$0xff] }
 0x2bd   : > { %v4955_v17 = vand.u32 2147483647, %v2330_v36  ;;  %v4954_v18 = vand.u32 2147483647, %v1883_v15  ;;  %v2332_v19 = vpop.f32.mrb[217].mxu1  ;;  %8862 = vmatmul.mubr.msk.f32.gmra.mrb[66].mxu1 %vm411_vm3, %v9291_v16  ;;  %2717 = vmatprep.mubr.f32.mxu0 %v9413_v32 }
 0x2be   : > { %v5588_v20 = vadd.f32 %v5587_v7, %v4953_v14  ;;  %v4956_v21 = vand.u32 2147483647, %v2332_v19  ;;  %3166 = vmatprep.mubr.f32.mxu1 %v9413_v32 }
 0x2bf   : > { %v5726_v45 = vadd.f32 %v5725_v9, %v4955_v17  ;;  %v5657_v22 = vadd.f32 %v5656_v12, %v4954_v18  ;;  %v1887_v23 = vpop.f32.mrb[218].mxu0 }
 0x2c0   : > { %v5795_v25 = vadd.f32 %v5794_v61, %v4956_v21  ;;  %v4969_v26 = vand.u32 2147483647, %v1887_v23  ;;  %v2336_v27 = vpop.f32.mrb[218].mxu1  ;;  %v1889_v28 = vpop.f32.mrb[219].mxu0  ;;  %8797 = vmatmul.mubr.msk.f32.gmra.mrb[68].mxu0 %vm411_vm3, %v9292_v29  ;;  %v9294_v61 = vld [vmem:[%s13227_s2 + $0x120] sm:$0xff] }
 0x2c1   : > { %v4971_v30 = vand.u32 2147483647, %v2336_v27  ;;  %v4970_v31 = vand.u32 2147483647, %v1889_v28  ;;  %v2338_v35 = vpop.f32.mrb[219].mxu1  ;;  %8863 = vmatmul.mubr.msk.f32.gmra.mrb[68].mxu1 %vm411_vm3, %v9292_v29  ;;  %2723 = vmatprep.mubr.f32.mxu0 %v9413_v32 }
 0x2c2   : > { %v5589_v40 = vadd.f32 %v5588_v20, %v4969_v26  ;;  %v4972_v37 = vand.u32 2147483647, %v2338_v35  ;;  %3172 = vmatprep.mubr.f32.mxu1 %v9413_v32 }
 0x2c3   : > { %v5727_v43 = vadd.f32 %v5726_v45, %v4971_v30  ;;  %v5658_v44 = vadd.f32 %v5657_v22, %v4970_v31  ;;  %v1893_v46 = vpop.f32.mrb[220].mxu0 }
 0x2c4   : > { %v5796_v48 = vadd.f32 %v5795_v25, %v4972_v37  ;;  %v4985_v59 = vand.u32 2147483647, %v1893_v46  ;;  %v2342_v49 = vpop.f32.mrb[220].mxu1  ;;  %v1895_v50 = vpop.f32.mrb[221].mxu0  ;;  %8798 = vmatmul.mubr.msk.f32.gmra.mrb[70].mxu0 %vm411_vm3, %v9293_v53  ;;  %v9295_v25 = vld [vmem:[%s13227_s2 + $0x128] sm:$0xff] }
 0x2c5   : > { %v4987_v41 = vand.u32 2147483647, %v2342_v49  ;;  %v4986_v54 = vand.u32 2147483647, %v1895_v50  ;;  %v2344_v57 = vpop.f32.mrb[221].mxu1  ;;  %8864 = vmatmul.mubr.msk.f32.gmra.mrb[70].mxu1 %vm411_vm3, %v9293_v53  ;;  %2729 = vmatprep.mubr.f32.mxu0 %v9413_v32 }
 0x2c6   : > { %v5590_v62 = vadd.f32 %v5589_v40, %v4985_v59  ;;  %v4988_v63 = vand.u32 2147483647, %v2344_v57  ;;  %3178 = vmatprep.mubr.f32.mxu1 %v9413_v32 }
 0x2c7   : > { %v5728_v0 = vadd.f32 %v5727_v43, %v4987_v41  ;;  %v5659_v1 = vadd.f32 %v5658_v44, %v4986_v54  ;;  %v1899_v7 = vpop.f32.mrb[222].mxu0 }
 0x2c8   : > { %v5797_v8 = vadd.f32 %v5796_v48, %v4988_v63  ;;  %v5001_v9 = vand.u32 2147483647, %v1899_v7  ;;  %v2348_v12 = vpop.f32.mrb[222].mxu1  ;;  %v1901_v13 = vpop.f32.mrb[223].mxu0  ;;  %8799 = vmatmul.mubr.msk.f32.gmra.mrb[72].mxu0 %vm411_vm3, %v9294_v61  ;;  %v9296_v48 = vld [vmem:[%s13227_s2 + $0x130] sm:$0xff] }
 0x2c9   : > { %v5003_v14 = vand.u32 2147483647, %v2348_v12  ;;  %v5002_v36 = vand.u32 2147483647, %v1901_v13  ;;  %v2350_v15 = vpop.f32.mrb[223].mxu1  ;;  %8865 = vmatmul.mubr.msk.f32.gmra.mrb[72].mxu1 %vm411_vm3, %v9294_v61  ;;  %2735 = vmatprep.mubr.f32.mxu0 %v9413_v32 }
 0x2ca   : > { %v5591_v16 = vadd.f32 %v5590_v62, %v5001_v9  ;;  %v5004_v17 = vand.u32 2147483647, %v2350_v15  ;;  %3184 = vmatprep.mubr.f32.mxu1 %v9413_v32 }
 0x2cb   : > { %v5729_v18 = vadd.f32 %v5728_v0, %v5003_v14  ;;  %v5660_v19 = vadd.f32 %v5659_v1, %v5002_v36  ;;  %v1905_v20 = vpop.f32.mrb[224].mxu0 }
 0x2cc   : > { %v5798_v21 = vadd.f32 %v5797_v8, %v5004_v17  ;;  %v5017_v45 = vand.u32 2147483647, %v1905_v20  ;;  %v2354_v22 = vpop.f32.mrb[224].mxu1  ;;  %v1907_v23 = vpop.f32.mrb[225].mxu0  ;;  %8800 = vmatmul.mubr.msk.f32.gmra.mrb[74].mxu0 %vm411_vm3, %v9295_v25  ;;  %v9297_v8 = vld [vmem:[%s13227_s2 + $0x138] sm:$0xff] }
 0x2cd   : > { %v5019_v26 = vand.u32 2147483647, %v2354_v22  ;;  %v5018_v27 = vand.u32 2147483647, %v1907_v23  ;;  %v2356_v28 = vpop.f32.mrb[225].mxu1  ;;  %8866 = vmatmul.mubr.msk.f32.gmra.mrb[74].mxu1 %vm411_vm3, %v9295_v25  ;;  %2741 = vmatprep.mubr.f32.mxu0 %v9413_v32 }
 0x2ce   : > { %v5592_v29 = vadd.f32 %v5591_v16, %v5017_v45  ;;  %v5020_v30 = vand.u32 2147483647, %v2356_v28  ;;  %3190 = vmatprep.mubr.f32.mxu1 %v9413_v32 }
 0x2cf   : > { %v5730_v31 = vadd.f32 %v5729_v18, %v5019_v26  ;;  %v5661_v35 = vadd.f32 %v5660_v19, %v5018_v27  ;;  %v1911_v40 = vpop.f32.mrb[226].mxu0 }
 0x2d0   : > { %v5799_v37 = vadd.f32 %v5798_v21, %v5020_v30  ;;  %v5033_v43 = vand.u32 2147483647, %v1911_v40  ;;  %v2360_v44 = vpop.f32.mrb[226].mxu1  ;;  %v1913_v46 = vpop.f32.mrb[227].mxu0  ;;  %8801 = vmatmul.mubr.msk.f32.gmra.mrb[76].mxu0 %vm411_vm3, %v9296_v48  ;;  %v9298_v21 = vld [vmem:[%s13227_s2 + $0x140] sm:$0xff] }
 0x2d1   : > { %v5035_v59 = vand.u32 2147483647, %v2360_v44  ;;  %v5034_v49 = vand.u32 2147483647, %v1913_v46  ;;  %v2362_v50 = vpop.f32.mrb[227].mxu1  ;;  %8867 = vmatmul.mubr.msk.f32.gmra.mrb[76].mxu1 %vm411_vm3, %v9296_v48  ;;  %2747 = vmatprep.mubr.f32.mxu0 %v9413_v32 }
 0x2d2   : > { %v5593_v53 = vadd.f32 %v5592_v29, %v5033_v43  ;;  %v5036_v41 = vand.u32 2147483647, %v2362_v50  ;;  %3196 = vmatprep.mubr.f32.mxu1 %v9413_v32 }
 0x2d3   : > { %v5731_v54 = vadd.f32 %v5730_v31, %v5035_v59  ;;  %v5662_v57 = vadd.f32 %v5661_v35, %v5034_v49  ;;  %v1917_v62 = vpop.f32.mrb[228].mxu0 }
 0x2d4   : > { %v5800_v63 = vadd.f32 %v5799_v37, %v5036_v41  ;;  %v5049_v0 = vand.u32 2147483647, %v1917_v62  ;;  %v2366_v1 = vpop.f32.mrb[228].mxu1  ;;  %v1919_v7 = vpop.f32.mrb[229].mxu0  ;;  %8802 = vmatmul.mubr.msk.f32.gmra.mrb[78].mxu0 %vm411_vm3, %v9297_v8  ;;  %v9299_v37 = vld [vmem:[%s13227_s2 + $0x148] sm:$0xff] }
 0x2d5   : > { %v5051_v9 = vand.u32 2147483647, %v2366_v1  ;;  %v5050_v12 = vand.u32 2147483647, %v1919_v7  ;;  %v2368_v13 = vpop.f32.mrb[229].mxu1  ;;  %8868 = vmatmul.mubr.msk.f32.gmra.mrb[78].mxu1 %vm411_vm3, %v9297_v8  ;;  %2753 = vmatprep.mubr.f32.mxu0 %v9413_v32 }
 0x2d6   : > { %v5594_v61 = vadd.f32 %v5593_v53, %v5049_v0  ;;  %v5052_v14 = vand.u32 2147483647, %v2368_v13  ;;  %3202 = vmatprep.mubr.f32.mxu1 %v9413_v32 }
 0x2d7   : > { %v5732_v36 = vadd.f32 %v5731_v54, %v5051_v9  ;;  %v5663_v15 = vadd.f32 %v5662_v57, %v5050_v12  ;;  %v1923_v16 = vpop.f32.mrb[230].mxu0 }
 0x2d8   : > { %v5801_v17 = vadd.f32 %v5800_v63, %v5052_v14  ;;  %v5065_v18 = vand.u32 2147483647, %v1923_v16  ;;  %v2372_v19 = vpop.f32.mrb[230].mxu1  ;;  %v1925_v20 = vpop.f32.mrb[231].mxu0  ;;  %8803 = vmatmul.mubr.msk.f32.gmra.mrb[80].mxu0 %vm411_vm3, %v9298_v21  ;;  %v9300_v63 = vld [vmem:[%s13227_s2 + $0x150] sm:$0xff] }
 0x2d9   : > { %v5067_v45 = vand.u32 2147483647, %v2372_v19  ;;  %v5066_v22 = vand.u32 2147483647, %v1925_v20  ;;  %v2374_v23 = vpop.f32.mrb[231].mxu1  ;;  %8869 = vmatmul.mubr.msk.f32.gmra.mrb[80].mxu1 %vm411_vm3, %v9298_v21  ;;  %2759 = vmatprep.mubr.f32.mxu0 %v9413_v32 }
 0x2da   : > { %v5595_v25 = vadd.f32 %v5594_v61, %v5065_v18  ;;  %v5068_v26 = vand.u32 2147483647, %v2374_v23  ;;  %3208 = vmatprep.mubr.f32.mxu1 %v9413_v32 }
 0x2db   : > { %v5733_v27 = vadd.f32 %v5732_v36, %v5067_v45  ;;  %v5664_v28 = vadd.f32 %v5663_v15, %v5066_v22  ;;  %v1929_v29 = vpop.f32.mrb[232].mxu0 }
 0x2dc   : > { %v5802_v30 = vadd.f32 %v5801_v17, %v5068_v26  ;;  %v5081_v31 = vand.u32 2147483647, %v1929_v29  ;;  %v2378_v35 = vpop.f32.mrb[232].mxu1  ;;  %v1931_v40 = vpop.f32.mrb[233].mxu0  ;;  %8804 = vmatmul.mubr.msk.f32.gmra.mrb[82].mxu0 %vm411_vm3, %v9299_v37  ;;  %v9301_v17 = vld [vmem:[%s13227_s2 + $0x158] sm:$0xff] }
 0x2dd   : > { %v5083_v43 = vand.u32 2147483647, %v2378_v35  ;;  %v5082_v44 = vand.u32 2147483647, %v1931_v40  ;;  %v2380_v46 = vpop.f32.mrb[233].mxu1  ;;  %8870 = vmatmul.mubr.msk.f32.gmra.mrb[82].mxu1 %vm411_vm3, %v9299_v37  ;;  %2765 = vmatprep.mubr.f32.mxu0 %v9413_v32 }
 0x2de   : > { %v5596_v48 = vadd.f32 %v5595_v25, %v5081_v31  ;;  %v5084_v59 = vand.u32 2147483647, %v2380_v46  ;;  %3214 = vmatprep.mubr.f32.mxu1 %v9413_v32 }
 0x2df   : > { %v5734_v49 = vadd.f32 %v5733_v27, %v5083_v43  ;;  %v5665_v50 = vadd.f32 %v5664_v28, %v5082_v44  ;;  %v1935_v53 = vpop.f32.mrb[234].mxu0 }
 0x2e0   : > { %v5803_v41 = vadd.f32 %v5802_v30, %v5084_v59  ;;  %v5097_v54 = vand.u32 2147483647, %v1935_v53  ;;  %v2384_v57 = vpop.f32.mrb[234].mxu1  ;;  %v1937_v62 = vpop.f32.mrb[235].mxu0  ;;  %8805 = vmatmul.mubr.msk.f32.gmra.mrb[84].mxu0 %vm411_vm3, %v9300_v63  ;;  %v9302_v30 = vld [vmem:[%s13227_s2 + $0x160] sm:$0xff] }
 0x2e1   : > { %v5099_v0 = vand.u32 2147483647, %v2384_v57  ;;  %v5098_v1 = vand.u32 2147483647, %v1937_v62  ;;  %v2386_v7 = vpop.f32.mrb[235].mxu1  ;;  %8871 = vmatmul.mubr.msk.f32.gmra.mrb[84].mxu1 %vm411_vm3, %v9300_v63  ;;  %2771 = vmatprep.mubr.f32.mxu0 %v9413_v32 }
 0x2e2   : > { %v5597_v8 = vadd.f32 %v5596_v48, %v5097_v54  ;;  %v5100_v9 = vand.u32 2147483647, %v2386_v7  ;;  %3220 = vmatprep.mubr.f32.mxu1 %v9413_v32 }
 0x2e3   : > { %v5735_v12 = vadd.f32 %v5734_v49, %v5099_v0  ;;  %v5666_v13 = vadd.f32 %v5665_v50, %v5098_v1  ;;  %v1941_v61 = vpop.f32.mrb[236].mxu0 }
 0x2e4   : > { %v5804_v14 = vadd.f32 %v5803_v41, %v5100_v9  ;;  %v5113_v36 = vand.u32 2147483647, %v1941_v61  ;;  %v2390_v15 = vpop.f32.mrb[236].mxu1  ;;  %v1943_v16 = vpop.f32.mrb[237].mxu0  ;;  %8806 = vmatmul.mubr.msk.f32.gmra.mrb[86].mxu0 %vm411_vm3, %v9301_v17  ;;  %v9303_v41 = vld [vmem:[%s13227_s2 + $0x168] sm:$0xff] }
 0x2e5   : > { %v5115_v18 = vand.u32 2147483647, %v2390_v15  ;;  %v5114_v19 = vand.u32 2147483647, %v1943_v16  ;;  %v2392_v20 = vpop.f32.mrb[237].mxu1  ;;  %8872 = vmatmul.mubr.msk.f32.gmra.mrb[86].mxu1 %vm411_vm3, %v9301_v17  ;;  %2777 = vmatprep.mubr.f32.mxu0 %v9413_v32 }
 0x2e6   : > { %v5598_v21 = vadd.f32 %v5597_v8, %v5113_v36  ;;  %v5116_v45 = vand.u32 2147483647, %v2392_v20  ;;  %3226 = vmatprep.mubr.f32.mxu1 %v9413_v32 }
 0x2e7   : > { %v5736_v22 = vadd.f32 %v5735_v12, %v5115_v18  ;;  %v5667_v23 = vadd.f32 %v5666_v13, %v5114_v19  ;;  %v1947_v25 = vpop.f32.mrb[238].mxu0 }
 0x2e8   : > { %v5805_v26 = vadd.f32 %v5804_v14, %v5116_v45  ;;  %v5129_v27 = vand.u32 2147483647, %v1947_v25  ;;  %v2396_v28 = vpop.f32.mrb[238].mxu1  ;;  %v1949_v29 = vpop.f32.mrb[239].mxu0  ;;  %8807 = vmatmul.mubr.msk.f32.gmra.mrb[88].mxu0 %vm411_vm3, %v9302_v30  ;;  %v9304_v14 = vld [vmem:[%s13227_s2 + $0x170] sm:$0xff] }
 0x2e9   : > { %v5131_v31 = vand.u32 2147483647, %v2396_v28  ;;  %v5130_v35 = vand.u32 2147483647, %v1949_v29  ;;  %v2398_v40 = vpop.f32.mrb[239].mxu1  ;;  %8873 = vmatmul.mubr.msk.f32.gmra.mrb[88].mxu1 %vm411_vm3, %v9302_v30  ;;  %2783 = vmatprep.mubr.f32.mxu0 %v9413_v32 }
 0x2ea   : > { %v5599_v37 = vadd.f32 %v5598_v21, %v5129_v27  ;;  %v5132_v43 = vand.u32 2147483647, %v2398_v40  ;;  %3232 = vmatprep.mubr.f32.mxu1 %v9413_v32 }
 0x2eb   : > { %v5737_v44 = vadd.f32 %v5736_v22, %v5131_v31  ;;  %v5668_v46 = vadd.f32 %v5667_v23, %v5130_v35  ;;  %v1953_v48 = vpop.f32.mrb[240].mxu0 }
 0x2ec   : > { %v5806_v59 = vadd.f32 %v5805_v26, %v5132_v43  ;;  %v5145_v49 = vand.u32 2147483647, %v1953_v48  ;;  %v2402_v50 = vpop.f32.mrb[240].mxu1  ;;  %v1955_v53 = vpop.f32.mrb[241].mxu0  ;;  %8808 = vmatmul.mubr.msk.f32.gmra.mrb[90].mxu0 %vm411_vm3, %v9303_v41  ;;  %v9305_v26 = vld [vmem:[%s13227_s2 + $0x178] sm:$0xff] }
 0x2ed   : > { %v5147_v54 = vand.u32 2147483647, %v2402_v50  ;;  %v5146_v57 = vand.u32 2147483647, %v1955_v53  ;;  %v2404_v62 = vpop.f32.mrb[241].mxu1  ;;  %8874 = vmatmul.mubr.msk.f32.gmra.mrb[90].mxu1 %vm411_vm3, %v9303_v41  ;;  %2789 = vmatprep.mubr.f32.mxu0 %v9413_v32 }
 0x2ee   : > { %v5600_v63 = vadd.f32 %v5599_v37, %v5145_v49  ;;  %v5148_v0 = vand.u32 2147483647, %v2404_v62  ;;  %3238 = vmatprep.mubr.f32.mxu1 %v9413_v32 }
 0x2ef   : > { %v5738_v1 = vadd.f32 %v5737_v44, %v5147_v54  ;;  %v5669_v7 = vadd.f32 %v5668_v46, %v5146_v57  ;;  %v1959_v8 = vpop.f32.mrb[242].mxu0 }
 0x2f0   : > { %v5807_v9 = vadd.f32 %v5806_v59, %v5148_v0  ;;  %v5161_v12 = vand.u32 2147483647, %v1959_v8  ;;  %v2408_v13 = vpop.f32.mrb[242].mxu1  ;;  %v1961_v61 = vpop.f32.mrb[243].mxu0  ;;  %8809 = vmatmul.mubr.msk.f32.gmra.mrb[92].mxu0 %vm411_vm3, %v9304_v14  ;;  %v9306_v59 = vld [vmem:[%s13227_s2 + $0x180] sm:$0xff] }
 0x2f1   : > { %v5163_v36 = vand.u32 2147483647, %v2408_v13  ;;  %v5162_v15 = vand.u32 2147483647, %v1961_v61  ;;  %v2410_v16 = vpop.f32.mrb[243].mxu1  ;;  %8875 = vmatmul.mubr.msk.f32.gmra.mrb[92].mxu1 %vm411_vm3, %v9304_v14  ;;  %2795 = vmatprep.mubr.f32.mxu0 %v9413_v32 }
 0x2f2   : > { %v5601_v17 = vadd.f32 %v5600_v63, %v5161_v12  ;;  %v5164_v18 = vand.u32 2147483647, %v2410_v16  ;;  %3244 = vmatprep.mubr.f32.mxu1 %v9413_v32 }
 0x2f3   : > { %v5739_v19 = vadd.f32 %v5738_v1, %v5163_v36  ;;  %v5670_v20 = vadd.f32 %v5669_v7, %v5162_v15  ;;  %v1965_v21 = vpop.f32.mrb[244].mxu0 }
 0x2f4   : > { %v5808_v45 = vadd.f32 %v5807_v9, %v5164_v18  ;;  %v5177_v22 = vand.u32 2147483647, %v1965_v21  ;;  %v2414_v23 = vpop.f32.mrb[244].mxu1  ;;  %v1967_v25 = vpop.f32.mrb[245].mxu0  ;;  %8810 = vmatmul.mubr.msk.f32.gmra.mrb[94].mxu0 %vm411_vm3, %v9305_v26  ;;  %v9307_v9 = vld [vmem:[%s13227_s2 + $0x188] sm:$0xff] }
 0x2f5   : > { %v5179_v27 = vand.u32 2147483647, %v2414_v23  ;;  %v5178_v28 = vand.u32 2147483647, %v1967_v25  ;;  %v2416_v29 = vpop.f32.mrb[245].mxu1  ;;  %8876 = vmatmul.mubr.msk.f32.gmra.mrb[94].mxu1 %vm411_vm3, %v9305_v26  ;;  %2801 = vmatprep.mubr.f32.mxu0 %v9413_v32 }
 0x2f6   : > { %v5602_v30 = vadd.f32 %v5601_v17, %v5177_v22  ;;  %v5180_v31 = vand.u32 2147483647, %v2416_v29  ;;  %3250 = vmatprep.mubr.f32.mxu1 %v9413_v32 }
 0x2f7   : > { %v5740_v35 = vadd.f32 %v5739_v19, %v5179_v27  ;;  %v5671_v40 = vadd.f32 %v5670_v20, %v5178_v28  ;;  %v1971_v37 = vpop.f32.mrb[246].mxu0 }
 0x2f8   : > { %v5809_v43 = vadd.f32 %v5808_v45, %v5180_v31  ;;  %v5193_v44 = vand.u32 2147483647, %v1971_v37  ;;  %v2420_v46 = vpop.f32.mrb[246].mxu1  ;;  %v1973_v48 = vpop.f32.mrb[247].mxu0  ;;  %8811 = vmatmul.mubr.msk.f32.gmra.mrb[96].mxu0 %vm411_vm3, %v9306_v59  ;;  %v9308_v45 = vld [vmem:[%s13227_s2 + $0x190] sm:$0xff] }
 0x2f9   : > { %v5195_v49 = vand.u32 2147483647, %v2420_v46  ;;  %v5194_v50 = vand.u32 2147483647, %v1973_v48  ;;  %v2422_v53 = vpop.f32.mrb[247].mxu1  ;;  %8877 = vmatmul.mubr.msk.f32.gmra.mrb[96].mxu1 %vm411_vm3, %v9306_v59  ;;  %2807 = vmatprep.mubr.f32.mxu0 %v9413_v32 }
 0x2fa   : > { %v5603_v41 = vadd.f32 %v5602_v30, %v5193_v44  ;;  %v5196_v54 = vand.u32 2147483647, %v2422_v53  ;;  %3256 = vmatprep.mubr.f32.mxu1 %v9413_v32 }
 0x2fb   : > { %v5741_v57 = vadd.f32 %v5740_v35, %v5195_v49  ;;  %v5672_v62 = vadd.f32 %v5671_v40, %v5194_v50  ;;  %v1977_v63 = vpop.f32.mrb[248].mxu0 }
 0x2fc   : > { %v5810_v0 = vadd.f32 %v5809_v43, %v5196_v54  ;;  %v5209_v1 = vand.u32 2147483647, %v1977_v63  ;;  %v2426_v7 = vpop.f32.mrb[248].mxu1  ;;  %v1979_v8 = vpop.f32.mrb[249].mxu0  ;;  %8812 = vmatmul.mubr.msk.f32.gmra.mrb[98].mxu0 %vm411_vm3, %v9307_v9  ;;  %v9309_v43 = vld [vmem:[%s13227_s2 + $0x198] sm:$0xff] }
 0x2fd   : > { %v5211_v12 = vand.u32 2147483647, %v2426_v7  ;;  %v5210_v13 = vand.u32 2147483647, %v1979_v8  ;;  %v2428_v61 = vpop.f32.mrb[249].mxu1  ;;  %8878 = vmatmul.mubr.msk.f32.gmra.mrb[98].mxu1 %vm411_vm3, %v9307_v9  ;;  %2813 = vmatprep.mubr.f32.mxu0 %v9413_v32 }
 0x2fe   : > { %v5604_v14 = vadd.f32 %v5603_v41, %v5209_v1  ;;  %v5212_v36 = vand.u32 2147483647, %v2428_v61  ;;  %3262 = vmatprep.mubr.f32.mxu1 %v9413_v32 }
 0x2ff   : > { %v5742_v15 = vadd.f32 %v5741_v57, %v5211_v12  ;;  %v5673_v16 = vadd.f32 %v5672_v62, %v5210_v13  ;;  %v1983_v17 = vpop.f32.mrb[250].mxu0 }
 0x300   : > { %v5811_v18 = vadd.f32 %v5810_v0, %v5212_v36  ;;  %v5225_v19 = vand.u32 2147483647, %v1983_v17  ;;  %v2432_v20 = vpop.f32.mrb[250].mxu1  ;;  %v1985_v21 = vpop.f32.mrb[251].mxu0  ;;  %8813 = vmatmul.mubr.msk.f32.gmra.mrb[100].mxu0 %vm411_vm3, %v9308_v45  ;;  %v9310_v0 = vld [vmem:[%s13227_s2 + $0x1a0] sm:$0xff] }
 0x301   : > { %v5227_v22 = vand.u32 2147483647, %v2432_v20  ;;  %v5226_v23 = vand.u32 2147483647, %v1985_v21  ;;  %v2434_v25 = vpop.f32.mrb[251].mxu1  ;;  %8879 = vmatmul.mubr.msk.f32.gmra.mrb[100].mxu1 %vm411_vm3, %v9308_v45  ;;  %2819 = vmatprep.mubr.f32.mxu0 %v9413_v32 }
 0x302   : > { %v5605_v26 = vadd.f32 %v5604_v14, %v5225_v19  ;;  %v5228_v27 = vand.u32 2147483647, %v2434_v25  ;;  %3268 = vmatprep.mubr.f32.mxu1 %v9413_v32 }
 0x303   : > { %v5743_v28 = vadd.f32 %v5742_v15, %v5227_v22  ;;  %v5674_v29 = vadd.f32 %v5673_v16, %v5226_v23  ;;  %v1989_v30 = vpop.f32.mrb[252].mxu0 }
 0x304   : > { %v5812_v31 = vadd.f32 %v5811_v18, %v5228_v27  ;;  %v5241_v35 = vand.u32 2147483647, %v1989_v30  ;;  %v2438_v40 = vpop.f32.mrb[252].mxu1  ;;  %v1991_v37 = vpop.f32.mrb[253].mxu0  ;;  %8814 = vmatmul.mubr.msk.f32.gmra.mrb[102].mxu0 %vm411_vm3, %v9309_v43  ;;  %v9311_v18 = vld [vmem:[%s13227_s2 + $0x1a8] sm:$0xff] }
 0x305   : > { %v5243_v44 = vand.u32 2147483647, %v2438_v40  ;;  %v5242_v46 = vand.u32 2147483647, %v1991_v37  ;;  %v2440_v48 = vpop.f32.mrb[253].mxu1  ;;  %8880 = vmatmul.mubr.msk.f32.gmra.mrb[102].mxu1 %vm411_vm3, %v9309_v43  ;;  %2825 = vmatprep.mubr.f32.mxu0 %v9413_v32  ;;  %v9312_v43 = vld [vmem:[%s13227_s2 + $0x1b0] sm:$0xff] }
 0x306   : > { %v5606_v59 = vadd.f32 %v5605_v26, %v5241_v35  ;;  %v5244_v49 = vand.u32 2147483647, %v2440_v48  ;;  %3274 = vmatprep.mubr.f32.mxu1 %v9413_v32 }
 0x307   : > { %v5744_v50 = vadd.f32 %v5743_v28, %v5243_v44  ;;  %v5675_v53 = vadd.f32 %v5674_v29, %v5242_v46  ;;  %v1995_v41 = vpop.f32.mrb[254].mxu0 }
 0x308   : > { %v5813_v54 = vadd.f32 %v5812_v31, %v5244_v49  ;;  %v5257_v57 = vand.u32 2147483647, %v1995_v41  ;;  %v2444_v62 = vpop.f32.mrb[254].mxu1  ;;  %v1997_v63 = vpop.f32.mrb[255].mxu0  ;;  %8815 = vmatmul.mubr.msk.f32.gmra.mrb[104].mxu0 %vm411_vm3, %v9310_v0 }
 0x309   : > { %v5259_v1 = vand.u32 2147483647, %v2444_v62  ;;  %v5258_v7 = vand.u32 2147483647, %v1997_v63  ;;  %v2446_v8 = vpop.f32.mrb[255].mxu1  ;;  %8881 = vmatmul.mubr.msk.f32.gmra.mrb[104].mxu1 %vm411_vm3, %v9310_v0  ;;  %2831 = vmatprep.mubr.f32.mxu0 %v9413_v32 }
 0x30a   : > { %v5607_v9 = vadd.f32 %v5606_v59, %v5257_v57  ;;  %v5260_v12 = vand.u32 2147483647, %v2446_v8  ;;  %3280 = vmatprep.mubr.f32.mxu1 %v9413_v32 }
 0x30b   : > { %v5745_v13 = vadd.f32 %v5744_v50, %v5259_v1  ;;  %v5676_v61 = vadd.f32 %v5675_v53, %v5258_v7  ;;  %v2515_v14 = vpop.f32.mrb[0].mxu0 }
 0x30c   : > { %v5608_v36 = vrot.slane %v5607_v9, 4  ;;  %v5814_v15 = vadd.f32 %v5813_v54, %v5260_v12  ;;  %v2964_v16 = vpop.f32.mrb[0].mxu1  ;;  %v2517_v17 = vpop.f32.mrb[1].mxu0  ;;  %8816 = vmatmul.mubr.msk.f32.gmra.mrb[106].mxu0 %vm411_vm3, %v9311_v18  ;;  %v4253_v22 = vand.u32 2147483647, %v2515_v14 }
 0x30d   : > { %v5746_v19 = vrot.slane %v5745_v13, 4  ;;  %v5677_v20 = vrot.slane %v5676_v61, 4  ;;  %8882 = vmatmul.mubr.msk.f32.gmra.mrb[106].mxu1 %vm411_vm3, %v9311_v18  ;;  %2837 = vmatprep.mubr.f32.mxu0 %v9413_v32  ;;  %v2966_v23 = vpop.f32.mrb[1].mxu1  ;;  %v4255_v27 = vand.u32 2147483647, %v2964_v16 }
 0x30e   : > { %v5609_v21 = vadd.f32 %v5608_v36, %v5607_v9  ;;  %v5815_v45 = vrot.slane %v5814_v15, 4  ;;  %3286 = vmatprep.mubr.f32.mxu1 %v9413_v32  ;;  %v4254_v28 = vand.u32 2147483647, %v2517_v17  ;;  %v4256_v53 = vand.u32 2147483647, %v2966_v23 }
 0x30f   : > { %v5747_v25 = vadd.f32 %v5746_v19, %v5745_v13  ;;  %v5678_v26 = vadd.f32 %v5677_v20, %v5676_v61  ;;  %v2521_v29 = vpop.f32.mrb[2].mxu0  ;;  %v9313_v61 = vld [vmem:[%s13227_s2 + $0x1b8] sm:$0xff] }
 0x310   : > { %v5610_v30 = vrot.slane %v5609_v21, 2  ;;  %v5816_v31 = vadd.f32 %v5815_v45, %v5814_v15  ;;  %v4269_v35 = vand.u32 2147483647, %v2521_v29  ;;  %v2970_v40 = vpop.f32.mrb[2].mxu1  ;;  %v2523_v37 = vpop.f32.mrb[3].mxu0  ;;  %8817 = vmatmul.mubr.msk.f32.gmra.mrb[108].mxu0 %vm411_vm3, %v9312_v43 }
 0x311   : > { %v5748_v44 = vrot.slane %v5747_v25, 2  ;;  %v5679_v46 = vrot.slane %v5678_v26, 2  ;;  %v4271_v48 = vand.u32 2147483647, %v2970_v40  ;;  %v4270_v59 = vand.u32 2147483647, %v2523_v37  ;;  %8883 = vmatmul.mubr.msk.f32.gmra.mrb[108].mxu1 %vm411_vm3, %v9312_v43  ;;  %2843 = vmatprep.mubr.f32.mxu0 %v9413_v32 }
 0x312   : > { %v5611_v49 = vadd.f32 %v5610_v30, %v5609_v21  ;;  %v5817_v50 = vrot.slane %v5816_v31, 2  ;;  %v5821_v41 = vadd.f32 %v4269_v35, %v4253_v22  ;;  %v2972_v54 = vpop.f32.mrb[3].mxu1  ;;  %3292 = vmatprep.mubr.f32.mxu1 %v9413_v32  ;;  %v9314_v35 = vld [vmem:[%s13227_s2 + $0x1c0] sm:$0xff] }
 0x313   : > { %v5749_v57 = vadd.f32 %v5748_v44, %v5747_v25  ;;  %v5680_v62 = vadd.f32 %v5679_v46, %v5678_v26  ;;  %v5959_v63 = vadd.f32 %v4271_v48, %v4255_v27  ;;  %v5890_v0 = vadd.f32 %v4270_v59, %v4254_v28  ;;  %v2527_v1 = vpop.f32.mrb[4].mxu0 }
 0x314   : > { %v5612_v7 = vrot.slane %v5611_v49, 1  ;;  %v5818_v8 = vadd.f32 %v5817_v50, %v5816_v31  ;;  %v4272_v9 = vand.u32 2147483647, %v2972_v54  ;;  %v4285_v12 = vand.u32 2147483647, %v2527_v1  ;;  %v2976_v13 = vpop.f32.mrb[4].mxu1  ;;  %8818 = vmatmul.mubr.msk.f32.gmra.mrb[110].mxu0 %vm411_vm3, %v9313_v61 }
 0x315   : > { %v5750_v14 = vrot.slane %v5749_v57, 1  ;;  %v5681_v36 = vrot.slane %v5680_v62, 1  ;;  %v4287_v15 = vand.u32 2147483647, %v2976_v13  ;;  %v2529_v16 = vpop.f32.mrb[5].mxu0  ;;  %v2978_v17 = vpop.f32.mrb[5].mxu1  ;;  %8884 = vmatmul.mubr.msk.f32.gmra.mrb[110].mxu1 %vm411_vm3, %v9313_v61  ;;  %2849 = vmatprep.mubr.f32.mxu0 %v9413_v32 }
 0x316   : > { %v5613_v18 = vadd.f32 %v5612_v7, %v5611_v49  ;;  %v5819_v19 = vrot.slane %v5818_v8, 1  ;;  %v6028_v20 = vadd.f32 %v4272_v9, %v4256_v53  ;;  %v5822_v21 = vadd.f32 %v5821_v41, %v4285_v12  ;;  %3298 = vmatprep.mubr.f32.mxu1 %v9413_v32  ;;  %v9315_v7 = vld [vmem:[%s13227_s2 + $0x1c8] sm:$0xff] }
 0x317   : > { %v5751_v45 = vadd.f32 %v5750_v14, %v5749_v57  ;;  %v5682_v22 = vadd.f32 %v5681_v36, %v5680_v62  ;;  %v5960_v23 = vadd.f32 %v5959_v63, %v4287_v15  ;;  %v4286_v25 = vand.u32 2147483647, %v2529_v16  ;;  %v2533_v26 = vpop.f32.mrb[6].mxu0  ;;  %v6376_v14 = vpop.permute.xlu0 %6375  ;;  %v11062_v16 = vld [vmem:[%s11047_s6] sm:$0xff] }
 0x318   : > { %v5820_v27 = vadd.f32 %v5819_v19, %v5818_v8  ;;  %v4288_v28 = vand.u32 2147483647, %v2978_v17  ;;  %v4301_v29 = vand.u32 2147483647, %v2533_v26  ;;  %v2982_v30 = vpop.f32.mrb[6].mxu1  ;;  %v2535_v31 = vpop.f32.mrb[7].mxu0  ;;  %8819 = vmatmul.mubr.msk.f32.gmra.mrb[112].mxu0 %vm411_vm3, %v9314_v35 }
 0x319   : > { %v6400_v40 = vcombine.low %v5613_v18, %v5682_v22  ;;  %v5891_v37 = vadd.f32 %v5890_v0, %v4286_v25  ;;  %v4303_v43 = vand.u32 2147483647, %v2982_v30  ;;  %v4302_v44 = vand.u32 2147483647, %v2535_v31  ;;  %v2984_v46 = vpop.f32.mrb[7].mxu1  ;;  %8885 = vmatmul.mubr.msk.f32.gmra.mrb[112].mxu1 %vm411_vm3, %v9314_v35  ;;  %2855 = vmatprep.mubr.f32.mxu0 %v9413_v32 }
 0x31a   : > { %v6401_v48 = vcombine.low %v5751_v45, %v5820_v27  ;;  %v6029_v59 = vadd.f32 %v6028_v20, %v4288_v28  ;;  %v5823_v49 = vadd.f32 %v5822_v21, %v4301_v29  ;;  %v4304_v50 = vand.u32 2147483647, %v2984_v46  ;;  %3304 = vmatprep.mubr.f32.mxu1 %v9413_v32  ;;  %v9316_v28 = vld [vmem:[%s13227_s2 + $0x1d0] sm:$0xff] }
 0x31b   : > { %v5961_v53 = vadd.f32 %v5960_v23, %v4303_v43  ;;  %v5892_v41 = vadd.f32 %v5891_v37, %v4302_v44  ;;  %v2539_v54 = vpop.f32.mrb[8].mxu0  ;;  %v6422_v57 = vrot.slane %v6400_v40, %v10548_v39  ;;  %v11055_v8 = vsub.s32 0, %v10532_v24 }
 0x31c   : > { %v6030_v62 = vadd.f32 %v6029_v59, %v4304_v50  ;;  %v4317_v63 = vand.u32 2147483647, %v2539_v54  ;;  %v2988_v0 = vpop.f32.mrb[8].mxu1  ;;  %v2541_v1 = vpop.f32.mrb[9].mxu0  ;;  %8820 = vmatmul.mubr.msk.f32.gmra.mrb[114].mxu0 %vm411_vm3, %v9315_v7  ;;  %v6429_v9 = vrot.slane %v6401_v48, %v10548_v39  ;;  %v6438_v21 = vrot.slane %v6430_v11, %v10548_v39 }
 0x31d   : > { %13335 = vst [vmem:[#allocation7_spill] sm:$0xff] %v11055_v8  ;;  %v4319_v12 = vand.u32 2147483647, %v2988_v0  ;;  %v4318_v13 = vand.u32 2147483647, %v2541_v1  ;;  %v2990_v61 = vpop.f32.mrb[9].mxu1  ;;  %8886 = vmatmul.mubr.msk.f32.gmra.mrb[114].mxu1 %vm411_vm3, %v9315_v7  ;;  %2861 = vmatprep.mubr.f32.mxu0 %v9413_v32  ;;  %v11069_v25 = vrot.slane %v6376_v14, %v11055_v8 }
 0x31e   : > { %v5824_v36 = vadd.f32 %v5823_v49, %v4317_v63  ;;  %v4320_v15 = vand.u32 2147483647, %v2990_v61  ;;  %3310 = vmatprep.mubr.f32.mxu1 %v9413_v32  ;;  %v6431_v17 = vcombine.low %v6422_v57, %v6429_v9  ;;  %vm344_vm4 = vcmp.gt.f32.partialorder %v11062_v16, 0.5  ;;  %v9317_v49 = vld [vmem:[%s13227_s2 + $0x1d8] sm:$0xff] }
 0x31f   : > { %v5962_v18 = vadd.f32 %v5961_v53, %v4319_v12  ;;  %v5893_v19 = vadd.f32 %v5892_v41, %v4318_v13  ;;  %v2545_v20 = vpop.f32.mrb[10].mxu0  ;;  %v9318_v13 = vld [vmem:[%s13227_s2 + $0x1e0] sm:$0xff]  ;;  %v11663_v16 = vsub.s32 3, %v10532_v24 }
 0x320   : > { %v6031_v45 = vadd.f32 %v6030_v62, %v4320_v15  ;;  %v4333_v22 = vand.u32 2147483647, %v2545_v20  ;;  %v2994_v23 = vpop.f32.mrb[10].mxu1  ;;  %v6445_v26 = vrot.slane %v6431_v17, %v10548_v39  ;;  %v2547_v27 = vpop.f32.mrb[11].mxu0  ;;  %8821 = vmatmul.mubr.msk.f32.gmra.mrb[116].mxu0 %vm411_vm3, %v9316_v28 }
 0x321   : > { %v4335_v29 = vand.u32 2147483647, %v2994_v23  ;;  %v4334_v55 = vand.u32 2147483647, %v2547_v27  ;;  %v2996_v2 = vpop.f32.mrb[11].mxu1  ;;  %8887 = vmatmul.mubr.msk.f32.gmra.mrb[116].mxu1 %vm411_vm3, %v9316_v28  ;;  %2867 = vmatprep.mubr.f32.mxu0 %v9413_v32  ;;  %13337 = vst [vmem:[#allocation9_spill] sm:$0xff] %v11663_v16 }
 0x322   : > { %v5825_v11 = vadd.f32 %v5824_v36, %v4333_v22  ;;  %v6446_v30 = vcombine.low %v6438_v21, %v6445_v26  ;;  %v4336_v31 = vand.u32 2147483647, %v2996_v2  ;;  %3316 = vmatprep.mubr.f32.mxu1 %v9413_v32  ;;  %v9319_v26 = vld [vmem:[%s13227_s2 + $0x1e8] sm:$0xff] }
 0x323   : > { %v5963_v35 = vadd.f32 %v5962_v18, %v4335_v29  ;;  %v5894_v40 = vadd.f32 %v5893_v19, %v4334_v55  ;;  %v2551_v37 = vpop.f32.mrb[12].mxu0 }
 0x324   : > { %v6498_v43 = vsel %vm344_vm4, %v11069_v25, %v6446_v30  ;;  %v6032_v44 = vadd.f32 %v6031_v45, %v4336_v31  ;;  %v4349_v46 = vand.u32 2147483647, %v2551_v37  ;;  %v3000_v48 = vpop.f32.mrb[12].mxu1  ;;  %v2553_v59 = vpop.f32.mrb[13].mxu0  ;;  %8822 = vmatmul.mubr.msk.f32.gmra.mrb[118].mxu0 %vm411_vm3, %v9317_v49 }
 0x325   : > { %6502 = vst [vmem:[%s6501_s14] sm:$0xff] %v6498_v43  ;;  %v4351_v50 = vand.u32 2147483647, %v3000_v48  ;;  %v4350_v53 = vand.u32 2147483647, %v2553_v59  ;;  %v3002_v41 = vpop.f32.mrb[13].mxu1  ;;  %8888 = vmatmul.mubr.msk.f32.gmra.mrb[118].mxu1 %vm411_vm3, %v9317_v49  ;;  %2873 = vmatprep.mubr.f32.mxu0 %v9413_v32 }
 0x326   : > { %v5826_v54 = vadd.f32 %v5825_v11, %v4349_v46  ;;  %v4352_v57 = vand.u32 2147483647, %v3002_v41  ;;  %3322 = vmatprep.mubr.f32.mxu1 %v9413_v32 }
 0x327   : > { %v5964_v62 = vadd.f32 %v5963_v35, %v4351_v50  ;;  %v5895_v63 = vadd.f32 %v5894_v40, %v4350_v53  ;;  %v2557_v0 = vpop.f32.mrb[14].mxu0 }
 0x328   : > { %v6033_v1 = vadd.f32 %v6032_v44, %v4352_v57  ;;  %v4365_v7 = vand.u32 2147483647, %v2557_v0  ;;  %v3006_v9 = vpop.f32.mrb[14].mxu1  ;;  %v2559_v12 = vpop.f32.mrb[15].mxu0  ;;  %8823 = vmatmul.mubr.msk.f32.gmra.mrb[120].mxu0 %vm411_vm3, %v9318_v13  ;;  %v9320_v44 = vld [vmem:[%s13227_s2 + $0x1f0] sm:$0xff] }
 0x329   : > { %v4367_v61 = vand.u32 2147483647, %v3006_v9  ;;  %v4366_v14 = vand.u32 2147483647, %v2559_v12  ;;  %v3008_v36 = vpop.f32.mrb[15].mxu1  ;;  %8889 = vmatmul.mubr.msk.f32.gmra.mrb[120].mxu1 %vm411_vm3, %v9318_v13  ;;  %2879 = vmatprep.mubr.f32.mxu0 %v9413_v32 }
 0x32a   : > { %v5827_v15 = vadd.f32 %v5826_v54, %v4365_v7  ;;  %v4368_v17 = vand.u32 2147483647, %v3008_v36  ;;  %3328 = vmatprep.mubr.f32.mxu1 %v9413_v32 }
 0x32b   : > { %v5965_v18 = vadd.f32 %v5964_v62, %v4367_v61  ;;  %v5896_v19 = vadd.f32 %v5895_v63, %v4366_v14  ;;  %v2563_v20 = vpop.f32.mrb[16].mxu0 }
 0x32c   : > { %v6034_v21 = vadd.f32 %v6033_v1, %v4368_v17  ;;  %v4381_v45 = vand.u32 2147483647, %v2563_v20  ;;  %v3012_v22 = vpop.f32.mrb[16].mxu1  ;;  %v2565_v23 = vpop.f32.mrb[17].mxu0  ;;  %8824 = vmatmul.mubr.msk.f32.gmra.mrb[122].mxu0 %vm411_vm3, %v9319_v26  ;;  %v9321_v1 = vld [vmem:[%s13227_s2 + $0x1f8] sm:$0xff] }
 0x32d   : > { %v4383_v27 = vand.u32 2147483647, %v3012_v22  ;;  %v4382_v28 = vand.u32 2147483647, %v2565_v23  ;;  %v3014_v29 = vpop.f32.mrb[17].mxu1  ;;  %8890 = vmatmul.mubr.msk.f32.gmra.mrb[122].mxu1 %vm411_vm3, %v9319_v26  ;;  %2885 = vmatprep.mubr.f32.mxu0 %v9413_v32 }
 0x32e   : > { %v5828_v55 = vadd.f32 %v5827_v15, %v4381_v45  ;;  %v4384_v2 = vand.u32 2147483647, %v3014_v29  ;;  %3334 = vmatprep.mubr.f32.mxu1 %v9413_v32 }
 0x32f   : > { %v5966_v11 = vadd.f32 %v5965_v18, %v4383_v27  ;;  %v5897_v30 = vadd.f32 %v5896_v19, %v4382_v28  ;;  %v2569_v31 = vpop.f32.mrb[18].mxu0 }
 0x330   : > { %v6035_v35 = vadd.f32 %v6034_v21, %v4384_v2  ;;  %v4397_v40 = vand.u32 2147483647, %v2569_v31  ;;  %v3018_v37 = vpop.f32.mrb[18].mxu1  ;;  %v2571_v43 = vpop.f32.mrb[19].mxu0  ;;  %8825 = vmatmul.mubr.msk.f32.gmra.mrb[124].mxu0 %vm411_vm3, %v9320_v44  ;;  %v9322_v21 = vld [vmem:[%s13227_s2] sm:$0xff] }
 0x331   : > { %v4399_v46 = vand.u32 2147483647, %v3018_v37  ;;  %v4398_v48 = vand.u32 2147483647, %v2571_v43  ;;  %v3020_v59 = vpop.f32.mrb[19].mxu1  ;;  %8891 = vmatmul.mubr.msk.f32.gmra.mrb[124].mxu1 %vm411_vm3, %v9320_v44  ;;  %2891 = vmatprep.mubr.f32.mxu0 %v9413_v32 }
 0x332   : > { %v5829_v49 = vadd.f32 %v5828_v55, %v4397_v40  ;;  %v4400_v50 = vand.u32 2147483647, %v3020_v59  ;;  %3340 = vmatprep.mubr.f32.mxu1 %v9413_v32 }
 0x333   : > { %v5967_v53 = vadd.f32 %v5966_v11, %v4399_v46  ;;  %v5898_v41 = vadd.f32 %v5897_v30, %v4398_v48  ;;  %v2575_v54 = vpop.f32.mrb[20].mxu0 }
 0x334   : > { %v6036_v57 = vadd.f32 %v6035_v35, %v4400_v50  ;;  %v4413_v62 = vand.u32 2147483647, %v2575_v54  ;;  %v3024_v63 = vpop.f32.mrb[20].mxu1  ;;  %v2577_v0 = vpop.f32.mrb[21].mxu0  ;;  %8826 = vmatmul.mubr.msk.f32.gmra.mrb[126].mxu0 %vm411_vm3, %v9321_v1  ;;  %v9323_v35 = vld [vmem:[%s13227_s2 + $0x8] sm:$0xff] }
 0x335   : > { %v4415_v7 = vand.u32 2147483647, %v3024_v63  ;;  %v4414_v9 = vand.u32 2147483647, %v2577_v0  ;;  %v3026_v12 = vpop.f32.mrb[21].mxu1  ;;  %8892 = vmatmul.mubr.msk.f32.gmra.mrb[126].mxu1 %vm411_vm3, %v9321_v1  ;;  %3411 = vmatprep.mubr.f32.mxu0 %v9413_v32 }
 0x336   : > { %v5830_v13 = vadd.f32 %v5829_v49, %v4413_v62  ;;  %v4416_v61 = vand.u32 2147483647, %v3026_v12  ;;  %3860 = vmatprep.mubr.f32.mxu1 %v9413_v32 }
 0x337   : > { %v5968_v14 = vadd.f32 %v5967_v53, %v4415_v7  ;;  %v5899_v36 = vadd.f32 %v5898_v41, %v4414_v9  ;;  %v2581_v15 = vpop.f32.mrb[22].mxu0 }
 0x338   : > { %v6037_v17 = vadd.f32 %v6036_v57, %v4416_v61  ;;  %v4429_v18 = vand.u32 2147483647, %v2581_v15  ;;  %v3030_v19 = vpop.f32.mrb[22].mxu1  ;;  %v2583_v20 = vpop.f32.mrb[23].mxu0  ;;  %8895 = vmatmul.mubr.msk.f32.vlgmr.msra.gmra.mrb[128].mxu0 %vm411_vm3, %v9322_v21  ;;  %v9325_v61 = vld [vmem:[%s13227_s2 + $0x18] sm:$0xff] }
 0x339   : > { %v4431_v45 = vand.u32 2147483647, %v3030_v19  ;;  %v4430_v22 = vand.u32 2147483647, %v2583_v20  ;;  %v3032_v23 = vpop.f32.mrb[23].mxu1  ;;  %8961 = vmatmul.mubr.msk.f32.vlgmr.msra.gmra.mrb[128].mxu1 %vm411_vm3, %v9322_v21  ;;  %3417 = vmatprep.mubr.f32.mxu0 %v9413_v32 }
 0x33a   : > { %v5831_v26 = vadd.f32 %v5830_v13, %v4429_v18  ;;  %v4432_v27 = vand.u32 2147483647, %v3032_v23  ;;  %3866 = vmatprep.mubr.f32.mxu1 %v9413_v32  ;;  %9111 = vmatpush1.bf16.msk.msra.mxu0 %vm9560_vm2, %v9582_v42 }
 0x33b   : > { %v5969_v28 = vadd.f32 %v5968_v14, %v4431_v45  ;;  %v5900_v29 = vadd.f32 %v5899_v36, %v4430_v22  ;;  %v2587_v55 = vpop.f32.mrb[24].mxu0  ;;  %9117 = vmatpush1.bf16.msk.msra.mxu1 %vm9560_vm2, %v9596_v47  ;;  %9120 = vmatprep.subr.msk.bf16.mxu0 %vm9560_vm2, %v9609_v51 }
 0x33c   : > { %v6038_v2 = vadd.f32 %v6037_v17, %v4432_v27  ;;  %v4445_v11 = vand.u32 2147483647, %v2587_v55  ;;  %v3036_v30 = vpop.f32.mrb[24].mxu1  ;;  %v2589_v31 = vpop.f32.mrb[25].mxu0  ;;  %8896 = vmatmul.mubr.msk.f32.gmra.mrb[130].mxu0 %vm411_vm3, %v9323_v35  ;;  %9126 = vmatprep.subr.msk.bf16.mxu1 %vm9560_vm2, %v9611_v52  ;;  %v9324_v52 = vld [vmem:[%s13227_s2 + $0x10] sm:$0xff]  ;;  %v9326_v27 = vld [vmem:[%s13227_s2 + $0x20] sm:$0xff] }
 0x33d   : > { %v4447_v42 = vand.u32 2147483647, %v3036_v30  ;;  %v4446_v47 = vand.u32 2147483647, %v2589_v31  ;;  %v3038_v40 = vpop.f32.mrb[25].mxu1  ;;  %8962 = vmatmul.mubr.msk.f32.gmra.mrb[130].mxu1 %vm411_vm3, %v9323_v35  ;;  %3423 = vmatprep.mubr.f32.mxu0 %v9413_v32 }
 0x33e   : > { %v5832_v51 = vadd.f32 %v5831_v26, %v4445_v11  ;;  %v4448_v37 = vand.u32 2147483647, %v3038_v40  ;;  %3872 = vmatprep.mubr.f32.mxu1 %v9413_v32 }
 0x33f   : > { %v5970_v43 = vadd.f32 %v5969_v28, %v4447_v42  ;;  %v5901_v44 = vadd.f32 %v5900_v29, %v4446_v47  ;;  %v2593_v46 = vpop.f32.mrb[26].mxu0 }
 0x340   : > { %v6039_v48 = vadd.f32 %v6038_v2, %v4448_v37  ;;  %v4461_v59 = vand.u32 2147483647, %v2593_v46  ;;  %v3042_v49 = vpop.f32.mrb[26].mxu1  ;;  %v2595_v50 = vpop.f32.mrb[27].mxu0  ;;  %8897 = vmatmul.mubr.msk.f32.gmra.mrb[132].mxu0 %vm411_vm3, %v9324_v52  ;;  %v9327_v37 = vld [vmem:[%s13227_s2 + $0x28] sm:$0xff] }
 0x341   : > { %v4463_v53 = vand.u32 2147483647, %v3042_v49  ;;  %v4462_v41 = vand.u32 2147483647, %v2595_v50  ;;  %v3044_v54 = vpop.f32.mrb[27].mxu1  ;;  %8963 = vmatmul.mubr.msk.f32.gmra.mrb[132].mxu1 %vm411_vm3, %v9324_v52  ;;  %3429 = vmatprep.mubr.f32.mxu0 %v9413_v32 }
 0x342   : > { %v5833_v57 = vadd.f32 %v5832_v51, %v4461_v59  ;;  %v4464_v62 = vand.u32 2147483647, %v3044_v54  ;;  %3878 = vmatprep.mubr.f32.mxu1 %v9413_v32 }
 0x343   : > { %v5971_v63 = vadd.f32 %v5970_v43, %v4463_v53  ;;  %v5902_v0 = vadd.f32 %v5901_v44, %v4462_v41  ;;  %v2599_v1 = vpop.f32.mrb[28].mxu0 }
 0x344   : > { %v6040_v7 = vadd.f32 %v6039_v48, %v4464_v62  ;;  %v4477_v9 = vand.u32 2147483647, %v2599_v1  ;;  %v3048_v12 = vpop.f32.mrb[28].mxu1  ;;  %v2601_v13 = vpop.f32.mrb[29].mxu0  ;;  %8898 = vmatmul.mubr.msk.f32.gmra.mrb[134].mxu0 %vm411_vm3, %v9325_v61  ;;  %v9328_v62 = vld [vmem:[%s13227_s2 + $0x30] sm:$0xff] }
 0x345   : > { %v4479_v14 = vand.u32 2147483647, %v3048_v12  ;;  %v4478_v36 = vand.u32 2147483647, %v2601_v13  ;;  %v3050_v15 = vpop.f32.mrb[29].mxu1  ;;  %8964 = vmatmul.mubr.msk.f32.gmra.mrb[134].mxu1 %vm411_vm3, %v9325_v61  ;;  %3435 = vmatprep.mubr.f32.mxu0 %v9413_v32 }
 0x346   : > { %v5834_v17 = vadd.f32 %v5833_v57, %v4477_v9  ;;  %v4480_v18 = vand.u32 2147483647, %v3050_v15  ;;  %3884 = vmatprep.mubr.f32.mxu1 %v9413_v32 }
 0x347   : > { %v5972_v19 = vadd.f32 %v5971_v63, %v4479_v14  ;;  %v5903_v20 = vadd.f32 %v5902_v0, %v4478_v36  ;;  %v2605_v21 = vpop.f32.mrb[30].mxu0 }
 0x348   : > { %v6041_v45 = vadd.f32 %v6040_v7, %v4480_v18  ;;  %v4493_v22 = vand.u32 2147483647, %v2605_v21  ;;  %v3054_v23 = vpop.f32.mrb[30].mxu1  ;;  %v2607_v26 = vpop.f32.mrb[31].mxu0  ;;  %8899 = vmatmul.mubr.msk.f32.gmra.mrb[136].mxu0 %vm411_vm3, %v9326_v27  ;;  %v9329_v18 = vld [vmem:[%s13227_s2 + $0x38] sm:$0xff] }
 0x349   : > { %v4495_v28 = vand.u32 2147483647, %v3054_v23  ;;  %v4494_v29 = vand.u32 2147483647, %v2607_v26  ;;  %v3056_v55 = vpop.f32.mrb[31].mxu1  ;;  %8965 = vmatmul.mubr.msk.f32.gmra.mrb[136].mxu1 %vm411_vm3, %v9326_v27  ;;  %3441 = vmatprep.mubr.f32.mxu0 %v9413_v32 }
 0x34a   : > { %v5835_v2 = vadd.f32 %v5834_v17, %v4493_v22  ;;  %v4496_v11 = vand.u32 2147483647, %v3056_v55  ;;  %3890 = vmatprep.mubr.f32.mxu1 %v9413_v32 }
 0x34b   : > { %v5973_v30 = vadd.f32 %v5972_v19, %v4495_v28  ;;  %v5904_v31 = vadd.f32 %v5903_v20, %v4494_v29  ;;  %v2611_v35 = vpop.f32.mrb[32].mxu0 }
 0x34c   : > { %v6042_v42 = vadd.f32 %v6041_v45, %v4496_v11  ;;  %v4509_v47 = vand.u32 2147483647, %v2611_v35  ;;  %v3060_v40 = vpop.f32.mrb[32].mxu1  ;;  %v2613_v51 = vpop.f32.mrb[33].mxu0  ;;  %8900 = vmatmul.mubr.msk.f32.gmra.mrb[138].mxu0 %vm411_vm3, %v9327_v37  ;;  %v9330_v11 = vld [vmem:[%s13227_s2 + $0x40] sm:$0xff] }
 0x34d   : > { %v4511_v43 = vand.u32 2147483647, %v3060_v40  ;;  %v4510_v44 = vand.u32 2147483647, %v2613_v51  ;;  %v3062_v46 = vpop.f32.mrb[33].mxu1  ;;  %8966 = vmatmul.mubr.msk.f32.gmra.mrb[138].mxu1 %vm411_vm3, %v9327_v37  ;;  %3447 = vmatprep.mubr.f32.mxu0 %v9413_v32 }
 0x34e   : > { %v5836_v48 = vadd.f32 %v5835_v2, %v4509_v47  ;;  %v4512_v59 = vand.u32 2147483647, %v3062_v46  ;;  %3896 = vmatprep.mubr.f32.mxu1 %v9413_v32 }
 0x34f   : > { %v5974_v49 = vadd.f32 %v5973_v30, %v4511_v43  ;;  %v5905_v50 = vadd.f32 %v5904_v31, %v4510_v44  ;;  %v2617_v52 = vpop.f32.mrb[34].mxu0 }
 0x350   : > { %v6043_v53 = vadd.f32 %v6042_v42, %v4512_v59  ;;  %v4525_v41 = vand.u32 2147483647, %v2617_v52  ;;  %v3066_v54 = vpop.f32.mrb[34].mxu1  ;;  %v2619_v57 = vpop.f32.mrb[35].mxu0  ;;  %8901 = vmatmul.mubr.msk.f32.gmra.mrb[140].mxu0 %vm411_vm3, %v9328_v62  ;;  %v9331_v59 = vld [vmem:[%s13227_s2 + $0x48] sm:$0xff] }
 0x351   : > { %v4527_v63 = vand.u32 2147483647, %v3066_v54  ;;  %v4526_v0 = vand.u32 2147483647, %v2619_v57  ;;  %v3068_v1 = vpop.f32.mrb[35].mxu1  ;;  %8967 = vmatmul.mubr.msk.f32.gmra.mrb[140].mxu1 %vm411_vm3, %v9328_v62  ;;  %3453 = vmatprep.mubr.f32.mxu0 %v9413_v32 }
 0x352   : > { %v5837_v7 = vadd.f32 %v5836_v48, %v4525_v41  ;;  %v4528_v9 = vand.u32 2147483647, %v3068_v1  ;;  %3902 = vmatprep.mubr.f32.mxu1 %v9413_v32 }
 0x353   : > { %v5975_v12 = vadd.f32 %v5974_v49, %v4527_v63  ;;  %v5906_v13 = vadd.f32 %v5905_v50, %v4526_v0  ;;  %v2623_v61 = vpop.f32.mrb[36].mxu0 }
 0x354   : > { %v6044_v14 = vadd.f32 %v6043_v53, %v4528_v9  ;;  %v4541_v36 = vand.u32 2147483647, %v2623_v61  ;;  %v3072_v15 = vpop.f32.mrb[36].mxu1  ;;  %v2625_v17 = vpop.f32.mrb[37].mxu0  ;;  %8902 = vmatmul.mubr.msk.f32.gmra.mrb[142].mxu0 %vm411_vm3, %v9329_v18  ;;  %v9332_v9 = vld [vmem:[%s13227_s2 + $0x50] sm:$0xff] }
 0x355   : > { %v4543_v19 = vand.u32 2147483647, %v3072_v15  ;;  %v4542_v20 = vand.u32 2147483647, %v2625_v17  ;;  %v3074_v21 = vpop.f32.mrb[37].mxu1  ;;  %8968 = vmatmul.mubr.msk.f32.gmra.mrb[142].mxu1 %vm411_vm3, %v9329_v18  ;;  %3459 = vmatprep.mubr.f32.mxu0 %v9413_v32 }
 0x356   : > { %v5838_v45 = vadd.f32 %v5837_v7, %v4541_v36  ;;  %v4544_v22 = vand.u32 2147483647, %v3074_v21  ;;  %3908 = vmatprep.mubr.f32.mxu1 %v9413_v32 }
 0x357   : > { %v5976_v23 = vadd.f32 %v5975_v12, %v4543_v19  ;;  %v5907_v26 = vadd.f32 %v5906_v13, %v4542_v20  ;;  %v2629_v27 = vpop.f32.mrb[38].mxu0 }
 0x358   : > { %v6045_v28 = vadd.f32 %v6044_v14, %v4544_v22  ;;  %v4557_v29 = vand.u32 2147483647, %v2629_v27  ;;  %v3078_v55 = vpop.f32.mrb[38].mxu1  ;;  %v2631_v2 = vpop.f32.mrb[39].mxu0  ;;  %8903 = vmatmul.mubr.msk.f32.gmra.mrb[144].mxu0 %vm411_vm3, %v9330_v11  ;;  %v9333_v22 = vld [vmem:[%s13227_s2 + $0x58] sm:$0xff] }
 0x359   : > { %v4559_v30 = vand.u32 2147483647, %v3078_v55  ;;  %v4558_v31 = vand.u32 2147483647, %v2631_v2  ;;  %v3080_v35 = vpop.f32.mrb[39].mxu1  ;;  %8969 = vmatmul.mubr.msk.f32.gmra.mrb[144].mxu1 %vm411_vm3, %v9330_v11  ;;  %3465 = vmatprep.mubr.f32.mxu0 %v9413_v32 }
 0x35a   : > { %v5839_v42 = vadd.f32 %v5838_v45, %v4557_v29  ;;  %v4560_v47 = vand.u32 2147483647, %v3080_v35  ;;  %3914 = vmatprep.mubr.f32.mxu1 %v9413_v32 }
 0x35b   : > { %v5977_v40 = vadd.f32 %v5976_v23, %v4559_v30  ;;  %v5908_v51 = vadd.f32 %v5907_v26, %v4558_v31  ;;  %v2635_v37 = vpop.f32.mrb[40].mxu0 }
 0x35c   : > { %v6046_v43 = vadd.f32 %v6045_v28, %v4560_v47  ;;  %v4573_v44 = vand.u32 2147483647, %v2635_v37  ;;  %v3084_v46 = vpop.f32.mrb[40].mxu1  ;;  %v2637_v48 = vpop.f32.mrb[41].mxu0  ;;  %8904 = vmatmul.mubr.msk.f32.gmra.mrb[146].mxu0 %vm411_vm3, %v9331_v59  ;;  %v9334_v47 = vld [vmem:[%s13227_s2 + $0x60] sm:$0xff] }
 0x35d   : > { %v4575_v49 = vand.u32 2147483647, %v3084_v46  ;;  %v4574_v50 = vand.u32 2147483647, %v2637_v48  ;;  %v3086_v52 = vpop.f32.mrb[41].mxu1  ;;  %8970 = vmatmul.mubr.msk.f32.gmra.mrb[146].mxu1 %vm411_vm3, %v9331_v59  ;;  %3471 = vmatprep.mubr.f32.mxu0 %v9413_v32 }
 0x35e   : > { %v5840_v53 = vadd.f32 %v5839_v42, %v4573_v44  ;;  %v4576_v41 = vand.u32 2147483647, %v3086_v52  ;;  %3920 = vmatprep.mubr.f32.mxu1 %v9413_v32 }
 0x35f   : > { %v5978_v54 = vadd.f32 %v5977_v40, %v4575_v49  ;;  %v5909_v57 = vadd.f32 %v5908_v51, %v4574_v50  ;;  %v2641_v62 = vpop.f32.mrb[42].mxu0 }
 0x360   : > { %v6047_v63 = vadd.f32 %v6046_v43, %v4576_v41  ;;  %v4589_v0 = vand.u32 2147483647, %v2641_v62  ;;  %v3090_v1 = vpop.f32.mrb[42].mxu1  ;;  %v2643_v7 = vpop.f32.mrb[43].mxu0  ;;  %8905 = vmatmul.mubr.msk.f32.gmra.mrb[148].mxu0 %vm411_vm3, %v9332_v9  ;;  %v9335_v41 = vld [vmem:[%s13227_s2 + $0x68] sm:$0xff] }
 0x361   : > { %v4591_v12 = vand.u32 2147483647, %v3090_v1  ;;  %v4590_v13 = vand.u32 2147483647, %v2643_v7  ;;  %v3092_v61 = vpop.f32.mrb[43].mxu1  ;;  %8971 = vmatmul.mubr.msk.f32.gmra.mrb[148].mxu1 %vm411_vm3, %v9332_v9  ;;  %3477 = vmatprep.mubr.f32.mxu0 %v9413_v32 }
 0x362   : > { %v5841_v14 = vadd.f32 %v5840_v53, %v4589_v0  ;;  %v4592_v36 = vand.u32 2147483647, %v3092_v61  ;;  %3926 = vmatprep.mubr.f32.mxu1 %v9413_v32 }
 0x363   : > { %v5979_v15 = vadd.f32 %v5978_v54, %v4591_v12  ;;  %v5910_v17 = vadd.f32 %v5909_v57, %v4590_v13  ;;  %v2647_v18 = vpop.f32.mrb[44].mxu0 }
 0x364   : > { %v6048_v19 = vadd.f32 %v6047_v63, %v4592_v36  ;;  %v4605_v20 = vand.u32 2147483647, %v2647_v18  ;;  %v3096_v21 = vpop.f32.mrb[44].mxu1  ;;  %v2649_v45 = vpop.f32.mrb[45].mxu0  ;;  %8906 = vmatmul.mubr.msk.f32.gmra.mrb[150].mxu0 %vm411_vm3, %v9333_v22  ;;  %v9336_v36 = vld [vmem:[%s13227_s2 + $0x70] sm:$0xff] }
 0x365   : > { %v4607_v23 = vand.u32 2147483647, %v3096_v21  ;;  %v4606_v26 = vand.u32 2147483647, %v2649_v45  ;;  %v3098_v27 = vpop.f32.mrb[45].mxu1  ;;  %8972 = vmatmul.mubr.msk.f32.gmra.mrb[150].mxu1 %vm411_vm3, %v9333_v22  ;;  %3483 = vmatprep.mubr.f32.mxu0 %v9413_v32 }
 0x366   : > { %v5842_v28 = vadd.f32 %v5841_v14, %v4605_v20  ;;  %v4608_v29 = vand.u32 2147483647, %v3098_v27  ;;  %3932 = vmatprep.mubr.f32.mxu1 %v9413_v32 }
 0x367   : > { %v5980_v55 = vadd.f32 %v5979_v15, %v4607_v23  ;;  %v5911_v2 = vadd.f32 %v5910_v17, %v4606_v26  ;;  %v2653_v11 = vpop.f32.mrb[46].mxu0 }
 0x368   : > { %v6049_v30 = vadd.f32 %v6048_v19, %v4608_v29  ;;  %v4621_v31 = vand.u32 2147483647, %v2653_v11  ;;  %v3102_v35 = vpop.f32.mrb[46].mxu1  ;;  %v2655_v42 = vpop.f32.mrb[47].mxu0  ;;  %8907 = vmatmul.mubr.msk.f32.gmra.mrb[152].mxu0 %vm411_vm3, %v9334_v47  ;;  %v9337_v29 = vld [vmem:[%s13227_s2 + $0x78] sm:$0xff] }
 0x369   : > { %v4623_v40 = vand.u32 2147483647, %v3102_v35  ;;  %v4622_v51 = vand.u32 2147483647, %v2655_v42  ;;  %v3104_v37 = vpop.f32.mrb[47].mxu1  ;;  %8973 = vmatmul.mubr.msk.f32.gmra.mrb[152].mxu1 %vm411_vm3, %v9334_v47  ;;  %3489 = vmatprep.mubr.f32.mxu0 %v9413_v32 }
 0x36a   : > { %v5843_v43 = vadd.f32 %v5842_v28, %v4621_v31  ;;  %v4624_v44 = vand.u32 2147483647, %v3104_v37  ;;  %3938 = vmatprep.mubr.f32.mxu1 %v9413_v32 }
 0x36b   : > { %v5981_v46 = vadd.f32 %v5980_v55, %v4623_v40  ;;  %v5912_v48 = vadd.f32 %v5911_v2, %v4622_v51  ;;  %v2659_v59 = vpop.f32.mrb[48].mxu0 }
 0x36c   : > { %v6050_v49 = vadd.f32 %v6049_v30, %v4624_v44  ;;  %v4637_v50 = vand.u32 2147483647, %v2659_v59  ;;  %v3108_v52 = vpop.f32.mrb[48].mxu1  ;;  %v2661_v53 = vpop.f32.mrb[49].mxu0  ;;  %8908 = vmatmul.mubr.msk.f32.gmra.mrb[154].mxu0 %vm411_vm3, %v9335_v41  ;;  %v9338_v44 = vld [vmem:[%s13227_s2 + $0x80] sm:$0xff] }
 0x36d   : > { %v4639_v54 = vand.u32 2147483647, %v3108_v52  ;;  %v4638_v57 = vand.u32 2147483647, %v2661_v53  ;;  %v3110_v62 = vpop.f32.mrb[49].mxu1  ;;  %8974 = vmatmul.mubr.msk.f32.gmra.mrb[154].mxu1 %vm411_vm3, %v9335_v41  ;;  %3495 = vmatprep.mubr.f32.mxu0 %v9413_v32 }
 0x36e   : > { %v5844_v63 = vadd.f32 %v5843_v43, %v4637_v50  ;;  %v4640_v0 = vand.u32 2147483647, %v3110_v62  ;;  %3944 = vmatprep.mubr.f32.mxu1 %v9413_v32 }
 0x36f   : > { %v5982_v1 = vadd.f32 %v5981_v46, %v4639_v54  ;;  %v5913_v7 = vadd.f32 %v5912_v48, %v4638_v57  ;;  %v2665_v9 = vpop.f32.mrb[50].mxu0 }
 0x370   : > { %v6051_v12 = vadd.f32 %v6050_v49, %v4640_v0  ;;  %v4653_v13 = vand.u32 2147483647, %v2665_v9  ;;  %v3114_v61 = vpop.f32.mrb[50].mxu1  ;;  %v2667_v14 = vpop.f32.mrb[51].mxu0  ;;  %8909 = vmatmul.mubr.msk.f32.gmra.mrb[156].mxu0 %vm411_vm3, %v9336_v36  ;;  %v9339_v0 = vld [vmem:[%s13227_s2 + $0x88] sm:$0xff] }
 0x371   : > { %v4655_v15 = vand.u32 2147483647, %v3114_v61  ;;  %v4654_v17 = vand.u32 2147483647, %v2667_v14  ;;  %v3116_v18 = vpop.f32.mrb[51].mxu1  ;;  %8975 = vmatmul.mubr.msk.f32.gmra.mrb[156].mxu1 %vm411_vm3, %v9336_v36  ;;  %3501 = vmatprep.mubr.f32.mxu0 %v9413_v32 }
 0x372   : > { %v5845_v19 = vadd.f32 %v5844_v63, %v4653_v13  ;;  %v4656_v20 = vand.u32 2147483647, %v3116_v18  ;;  %3950 = vmatprep.mubr.f32.mxu1 %v9413_v32 }
 0x373   : > { %v5983_v21 = vadd.f32 %v5982_v1, %v4655_v15  ;;  %v5914_v45 = vadd.f32 %v5913_v7, %v4654_v17  ;;  %v2671_v22 = vpop.f32.mrb[52].mxu0 }
 0x374   : > { %v6052_v23 = vadd.f32 %v6051_v12, %v4656_v20  ;;  %v4669_v26 = vand.u32 2147483647, %v2671_v22  ;;  %v3120_v27 = vpop.f32.mrb[52].mxu1  ;;  %v2673_v28 = vpop.f32.mrb[53].mxu0  ;;  %8910 = vmatmul.mubr.msk.f32.gmra.mrb[158].mxu0 %vm411_vm3, %v9337_v29  ;;  %v9340_v20 = vld [vmem:[%s13227_s2 + $0x90] sm:$0xff] }
 0x375   : > { %v4671_v55 = vand.u32 2147483647, %v3120_v27  ;;  %v4670_v2 = vand.u32 2147483647, %v2673_v28  ;;  %v3122_v11 = vpop.f32.mrb[53].mxu1  ;;  %8976 = vmatmul.mubr.msk.f32.gmra.mrb[158].mxu1 %vm411_vm3, %v9337_v29  ;;  %3507 = vmatprep.mubr.f32.mxu0 %v9413_v32 }
 0x376   : > { %v5846_v30 = vadd.f32 %v5845_v19, %v4669_v26  ;;  %v4672_v31 = vand.u32 2147483647, %v3122_v11  ;;  %3956 = vmatprep.mubr.f32.mxu1 %v9413_v32 }
 0x377   : > { %v5984_v35 = vadd.f32 %v5983_v21, %v4671_v55  ;;  %v5915_v42 = vadd.f32 %v5914_v45, %v4670_v2  ;;  %v2677_v47 = vpop.f32.mrb[54].mxu0 }
 0x378   : > { %v6053_v40 = vadd.f32 %v6052_v23, %v4672_v31  ;;  %v4685_v51 = vand.u32 2147483647, %v2677_v47  ;;  %v3126_v37 = vpop.f32.mrb[54].mxu1  ;;  %v2679_v43 = vpop.f32.mrb[55].mxu0  ;;  %8911 = vmatmul.mubr.msk.f32.gmra.mrb[160].mxu0 %vm411_vm3, %v9338_v44  ;;  %v9341_v31 = vld [vmem:[%s13227_s2 + $0x98] sm:$0xff] }
 0x379   : > { %v4687_v46 = vand.u32 2147483647, %v3126_v37  ;;  %v4686_v48 = vand.u32 2147483647, %v2679_v43  ;;  %v3128_v59 = vpop.f32.mrb[55].mxu1  ;;  %8977 = vmatmul.mubr.msk.f32.gmra.mrb[160].mxu1 %vm411_vm3, %v9338_v44  ;;  %3513 = vmatprep.mubr.f32.mxu0 %v9413_v32 }
 0x37a   : > { %v5847_v49 = vadd.f32 %v5846_v30, %v4685_v51  ;;  %v4688_v50 = vand.u32 2147483647, %v3128_v59  ;;  %3962 = vmatprep.mubr.f32.mxu1 %v9413_v32 }
 0x37b   : > { %v5985_v52 = vadd.f32 %v5984_v35, %v4687_v46  ;;  %v5916_v53 = vadd.f32 %v5915_v42, %v4686_v48  ;;  %v2683_v41 = vpop.f32.mrb[56].mxu0 }
 0x37c   : > { %v6054_v54 = vadd.f32 %v6053_v40, %v4688_v50  ;;  %v4701_v57 = vand.u32 2147483647, %v2683_v41  ;;  %v3132_v62 = vpop.f32.mrb[56].mxu1  ;;  %v2685_v63 = vpop.f32.mrb[57].mxu0  ;;  %8912 = vmatmul.mubr.msk.f32.gmra.mrb[162].mxu0 %vm411_vm3, %v9339_v0  ;;  %v9342_v50 = vld [vmem:[%s13227_s2 + $0xa0] sm:$0xff] }
 0x37d   : > { %v4703_v1 = vand.u32 2147483647, %v3132_v62  ;;  %v4702_v7 = vand.u32 2147483647, %v2685_v63  ;;  %v3134_v9 = vpop.f32.mrb[57].mxu1  ;;  %8978 = vmatmul.mubr.msk.f32.gmra.mrb[162].mxu1 %vm411_vm3, %v9339_v0  ;;  %3519 = vmatprep.mubr.f32.mxu0 %v9413_v32 }
 0x37e   : > { %v5848_v12 = vadd.f32 %v5847_v49, %v4701_v57  ;;  %v4704_v13 = vand.u32 2147483647, %v3134_v9  ;;  %3968 = vmatprep.mubr.f32.mxu1 %v9413_v32 }
 0x37f   : > { %v5986_v61 = vadd.f32 %v5985_v52, %v4703_v1  ;;  %v5917_v14 = vadd.f32 %v5916_v53, %v4702_v7  ;;  %v2689_v36 = vpop.f32.mrb[58].mxu0 }
 0x380   : > { %v6055_v15 = vadd.f32 %v6054_v54, %v4704_v13  ;;  %v4717_v17 = vand.u32 2147483647, %v2689_v36  ;;  %v3138_v18 = vpop.f32.mrb[58].mxu1  ;;  %v2691_v19 = vpop.f32.mrb[59].mxu0  ;;  %8913 = vmatmul.mubr.msk.f32.gmra.mrb[164].mxu0 %vm411_vm3, %v9340_v20  ;;  %v9343_v13 = vld [vmem:[%s13227_s2 + $0xa8] sm:$0xff] }
 0x381   : > { %v4719_v21 = vand.u32 2147483647, %v3138_v18  ;;  %v4718_v45 = vand.u32 2147483647, %v2691_v19  ;;  %v3140_v22 = vpop.f32.mrb[59].mxu1  ;;  %8979 = vmatmul.mubr.msk.f32.gmra.mrb[164].mxu1 %vm411_vm3, %v9340_v20  ;;  %3525 = vmatprep.mubr.f32.mxu0 %v9413_v32 }
 0x382   : > { %v5849_v23 = vadd.f32 %v5848_v12, %v4717_v17  ;;  %v4720_v26 = vand.u32 2147483647, %v3140_v22  ;;  %3974 = vmatprep.mubr.f32.mxu1 %v9413_v32 }
 0x383   : > { %v5987_v27 = vadd.f32 %v5986_v61, %v4719_v21  ;;  %v5918_v28 = vadd.f32 %v5917_v14, %v4718_v45  ;;  %v2695_v29 = vpop.f32.mrb[60].mxu0 }
 0x384   : > { %v6056_v55 = vadd.f32 %v6055_v15, %v4720_v26  ;;  %v4733_v2 = vand.u32 2147483647, %v2695_v29  ;;  %v3144_v11 = vpop.f32.mrb[60].mxu1  ;;  %v2697_v30 = vpop.f32.mrb[61].mxu0  ;;  %8914 = vmatmul.mubr.msk.f32.gmra.mrb[166].mxu0 %vm411_vm3, %v9341_v31  ;;  %v9344_v26 = vld [vmem:[%s13227_s2 + $0xb0] sm:$0xff] }
 0x385   : > { %v4735_v35 = vand.u32 2147483647, %v3144_v11  ;;  %v4734_v42 = vand.u32 2147483647, %v2697_v30  ;;  %v3146_v47 = vpop.f32.mrb[61].mxu1  ;;  %8980 = vmatmul.mubr.msk.f32.gmra.mrb[166].mxu1 %vm411_vm3, %v9341_v31  ;;  %3531 = vmatprep.mubr.f32.mxu0 %v9413_v32 }
 0x386   : > { %v5850_v40 = vadd.f32 %v5849_v23, %v4733_v2  ;;  %v4736_v51 = vand.u32 2147483647, %v3146_v47  ;;  %3980 = vmatprep.mubr.f32.mxu1 %v9413_v32 }
 0x387   : > { %v5988_v37 = vadd.f32 %v5987_v27, %v4735_v35  ;;  %v5919_v43 = vadd.f32 %v5918_v28, %v4734_v42  ;;  %v2701_v44 = vpop.f32.mrb[62].mxu0 }
 0x388   : > { %v6057_v46 = vadd.f32 %v6056_v55, %v4736_v51  ;;  %v4749_v48 = vand.u32 2147483647, %v2701_v44  ;;  %v3150_v59 = vpop.f32.mrb[62].mxu1  ;;  %v2703_v49 = vpop.f32.mrb[63].mxu0  ;;  %8915 = vmatmul.mubr.msk.f32.gmra.mrb[168].mxu0 %vm411_vm3, %v9342_v50  ;;  %v9345_v51 = vld [vmem:[%s13227_s2 + $0xb8] sm:$0xff] }
 0x389   : > { %v4751_v52 = vand.u32 2147483647, %v3150_v59  ;;  %v4750_v53 = vand.u32 2147483647, %v2703_v49  ;;  %v3152_v41 = vpop.f32.mrb[63].mxu1  ;;  %8981 = vmatmul.mubr.msk.f32.gmra.mrb[168].mxu1 %vm411_vm3, %v9342_v50  ;;  %3537 = vmatprep.mubr.f32.mxu0 %v9413_v32 }
 0x38a   : > { %v5851_v54 = vadd.f32 %v5850_v40, %v4749_v48  ;;  %v4752_v57 = vand.u32 2147483647, %v3152_v41  ;;  %3986 = vmatprep.mubr.f32.mxu1 %v9413_v32 }
 0x38b   : > { %v5989_v62 = vadd.f32 %v5988_v37, %v4751_v52  ;;  %v5920_v63 = vadd.f32 %v5919_v43, %v4750_v53  ;;  %v2707_v0 = vpop.f32.mrb[64].mxu0 }
 0x38c   : > { %v6058_v1 = vadd.f32 %v6057_v46, %v4752_v57  ;;  %v4765_v7 = vand.u32 2147483647, %v2707_v0  ;;  %v3156_v9 = vpop.f32.mrb[64].mxu1  ;;  %v2709_v12 = vpop.f32.mrb[65].mxu0  ;;  %8916 = vmatmul.mubr.msk.f32.gmra.mrb[170].mxu0 %vm411_vm3, %v9343_v13  ;;  %v9346_v57 = vld [vmem:[%s13227_s2 + $0xc0] sm:$0xff] }
 0x38d   : > { %v4767_v61 = vand.u32 2147483647, %v3156_v9  ;;  %v4766_v14 = vand.u32 2147483647, %v2709_v12  ;;  %v3158_v36 = vpop.f32.mrb[65].mxu1  ;;  %8982 = vmatmul.mubr.msk.f32.gmra.mrb[170].mxu1 %vm411_vm3, %v9343_v13  ;;  %3543 = vmatprep.mubr.f32.mxu0 %v9413_v32 }
 0x38e   : > { %v5852_v15 = vadd.f32 %v5851_v54, %v4765_v7  ;;  %v4768_v17 = vand.u32 2147483647, %v3158_v36  ;;  %3992 = vmatprep.mubr.f32.mxu1 %v9413_v32 }
 0x38f   : > { %v5990_v18 = vadd.f32 %v5989_v62, %v4767_v61  ;;  %v5921_v19 = vadd.f32 %v5920_v63, %v4766_v14  ;;  %v2713_v20 = vpop.f32.mrb[66].mxu0 }
 0x390   : > { %v6059_v21 = vadd.f32 %v6058_v1, %v4768_v17  ;;  %v4781_v45 = vand.u32 2147483647, %v2713_v20  ;;  %v3162_v22 = vpop.f32.mrb[66].mxu1  ;;  %v2715_v23 = vpop.f32.mrb[67].mxu0  ;;  %8917 = vmatmul.mubr.msk.f32.gmra.mrb[172].mxu0 %vm411_vm3, %v9344_v26  ;;  %v9347_v17 = vld [vmem:[%s13227_s2 + $0xc8] sm:$0xff] }
 0x391   : > { %v4783_v27 = vand.u32 2147483647, %v3162_v22  ;;  %v4782_v28 = vand.u32 2147483647, %v2715_v23  ;;  %v3164_v29 = vpop.f32.mrb[67].mxu1  ;;  %8983 = vmatmul.mubr.msk.f32.gmra.mrb[172].mxu1 %vm411_vm3, %v9344_v26  ;;  %3549 = vmatprep.mubr.f32.mxu0 %v9413_v32 }
 0x392   : > { %v5853_v55 = vadd.f32 %v5852_v15, %v4781_v45  ;;  %v4784_v2 = vand.u32 2147483647, %v3164_v29  ;;  %3998 = vmatprep.mubr.f32.mxu1 %v9413_v32 }
 0x393   : > { %v5991_v11 = vadd.f32 %v5990_v18, %v4783_v27  ;;  %v5922_v30 = vadd.f32 %v5921_v19, %v4782_v28  ;;  %v2719_v31 = vpop.f32.mrb[68].mxu0 }
 0x394   : > { %v6060_v35 = vadd.f32 %v6059_v21, %v4784_v2  ;;  %v4797_v42 = vand.u32 2147483647, %v2719_v31  ;;  %v3168_v47 = vpop.f32.mrb[68].mxu1  ;;  %v2721_v40 = vpop.f32.mrb[69].mxu0  ;;  %8918 = vmatmul.mubr.msk.f32.gmra.mrb[174].mxu0 %vm411_vm3, %v9345_v51  ;;  %v9348_v2 = vld [vmem:[%s13227_s2 + $0xd0] sm:$0xff] }
 0x395   : > { %v4799_v37 = vand.u32 2147483647, %v3168_v47  ;;  %v4798_v43 = vand.u32 2147483647, %v2721_v40  ;;  %v3170_v44 = vpop.f32.mrb[69].mxu1  ;;  %8984 = vmatmul.mubr.msk.f32.gmra.mrb[174].mxu1 %vm411_vm3, %v9345_v51  ;;  %3555 = vmatprep.mubr.f32.mxu0 %v9413_v32 }
 0x396   : > { %v5854_v46 = vadd.f32 %v5853_v55, %v4797_v42  ;;  %v4800_v48 = vand.u32 2147483647, %v3170_v44  ;;  %4004 = vmatprep.mubr.f32.mxu1 %v9413_v32 }
 0x397   : > { %v5992_v59 = vadd.f32 %v5991_v11, %v4799_v37  ;;  %v5923_v49 = vadd.f32 %v5922_v30, %v4798_v43  ;;  %v2725_v50 = vpop.f32.mrb[70].mxu0 }
 0x398   : > { %v6061_v52 = vadd.f32 %v6060_v35, %v4800_v48  ;;  %v4813_v53 = vand.u32 2147483647, %v2725_v50  ;;  %v3174_v41 = vpop.f32.mrb[70].mxu1  ;;  %v2727_v54 = vpop.f32.mrb[71].mxu0  ;;  %8919 = vmatmul.mubr.msk.f32.gmra.mrb[176].mxu0 %vm411_vm3, %v9346_v57  ;;  %v9349_v48 = vld [vmem:[%s13227_s2 + $0xd8] sm:$0xff] }
 0x399   : > { %v4815_v62 = vand.u32 2147483647, %v3174_v41  ;;  %v4814_v63 = vand.u32 2147483647, %v2727_v54  ;;  %v3176_v0 = vpop.f32.mrb[71].mxu1  ;;  %8985 = vmatmul.mubr.msk.f32.gmra.mrb[176].mxu1 %vm411_vm3, %v9346_v57  ;;  %3561 = vmatprep.mubr.f32.mxu0 %v9413_v32 }
 0x39a   : > { %v5855_v1 = vadd.f32 %v5854_v46, %v4813_v53  ;;  %v4816_v7 = vand.u32 2147483647, %v3176_v0  ;;  %4010 = vmatprep.mubr.f32.mxu1 %v9413_v32 }
 0x39b   : > { %v5993_v9 = vadd.f32 %v5992_v59, %v4815_v62  ;;  %v5924_v12 = vadd.f32 %v5923_v49, %v4814_v63  ;;  %v2731_v13 = vpop.f32.mrb[72].mxu0 }
 0x39c   : > { %v6062_v61 = vadd.f32 %v6061_v52, %v4816_v7  ;;  %v4829_v14 = vand.u32 2147483647, %v2731_v13  ;;  %v3180_v36 = vpop.f32.mrb[72].mxu1  ;;  %v2733_v15 = vpop.f32.mrb[73].mxu0  ;;  %8920 = vmatmul.mubr.msk.f32.gmra.mrb[178].mxu0 %vm411_vm3, %v9347_v17  ;;  %v9350_v7 = vld [vmem:[%s13227_s2 + $0xe0] sm:$0xff] }
 0x39d   : > { %v4831_v18 = vand.u32 2147483647, %v3180_v36  ;;  %v4830_v19 = vand.u32 2147483647, %v2733_v15  ;;  %v3182_v20 = vpop.f32.mrb[73].mxu1  ;;  %8986 = vmatmul.mubr.msk.f32.gmra.mrb[178].mxu1 %vm411_vm3, %v9347_v17  ;;  %3567 = vmatprep.mubr.f32.mxu0 %v9413_v32 }
 0x39e   : > { %v5856_v21 = vadd.f32 %v5855_v1, %v4829_v14  ;;  %v4832_v45 = vand.u32 2147483647, %v3182_v20  ;;  %4016 = vmatprep.mubr.f32.mxu1 %v9413_v32 }
 0x39f   : > { %v5994_v22 = vadd.f32 %v5993_v9, %v4831_v18  ;;  %v5925_v23 = vadd.f32 %v5924_v12, %v4830_v19  ;;  %v2737_v26 = vpop.f32.mrb[74].mxu0 }
 0x3a0   : > { %v6063_v27 = vadd.f32 %v6062_v61, %v4832_v45  ;;  %v4845_v28 = vand.u32 2147483647, %v2737_v26  ;;  %v3186_v29 = vpop.f32.mrb[74].mxu1  ;;  %v2739_v55 = vpop.f32.mrb[75].mxu0  ;;  %8921 = vmatmul.mubr.msk.f32.gmra.mrb[180].mxu0 %vm411_vm3, %v9348_v2  ;;  %v9351_v45 = vld [vmem:[%s13227_s2 + $0xe8] sm:$0xff] }
 0x3a1   : > { %v4847_v11 = vand.u32 2147483647, %v3186_v29  ;;  %v4846_v30 = vand.u32 2147483647, %v2739_v55  ;;  %v3188_v31 = vpop.f32.mrb[75].mxu1  ;;  %8987 = vmatmul.mubr.msk.f32.gmra.mrb[180].mxu1 %vm411_vm3, %v9348_v2  ;;  %3573 = vmatprep.mubr.f32.mxu0 %v9413_v32 }
 0x3a2   : > { %v5857_v35 = vadd.f32 %v5856_v21, %v4845_v28  ;;  %v4848_v42 = vand.u32 2147483647, %v3188_v31  ;;  %4022 = vmatprep.mubr.f32.mxu1 %v9413_v32 }
 0x3a3   : > { %v5995_v47 = vadd.f32 %v5994_v22, %v4847_v11  ;;  %v5926_v40 = vadd.f32 %v5925_v23, %v4846_v30  ;;  %v2743_v51 = vpop.f32.mrb[76].mxu0 }
 0x3a4   : > { %v6064_v37 = vadd.f32 %v6063_v27, %v4848_v42  ;;  %v4861_v43 = vand.u32 2147483647, %v2743_v51  ;;  %v3192_v44 = vpop.f32.mrb[76].mxu1  ;;  %v2745_v46 = vpop.f32.mrb[77].mxu0  ;;  %8922 = vmatmul.mubr.msk.f32.gmra.mrb[182].mxu0 %vm411_vm3, %v9349_v48  ;;  %v9352_v42 = vld [vmem:[%s13227_s2 + $0xf0] sm:$0xff] }
 0x3a5   : > { %v4863_v59 = vand.u32 2147483647, %v3192_v44  ;;  %v4862_v49 = vand.u32 2147483647, %v2745_v46  ;;  %v3194_v50 = vpop.f32.mrb[77].mxu1  ;;  %8988 = vmatmul.mubr.msk.f32.gmra.mrb[182].mxu1 %vm411_vm3, %v9349_v48  ;;  %3579 = vmatprep.mubr.f32.mxu0 %v9413_v32 }
 0x3a6   : > { %v5858_v52 = vadd.f32 %v5857_v35, %v4861_v43  ;;  %v4864_v53 = vand.u32 2147483647, %v3194_v50  ;;  %4028 = vmatprep.mubr.f32.mxu1 %v9413_v32 }
 0x3a7   : > { %v5996_v41 = vadd.f32 %v5995_v47, %v4863_v59  ;;  %v5927_v54 = vadd.f32 %v5926_v40, %v4862_v49  ;;  %v2749_v57 = vpop.f32.mrb[78].mxu0 }
 0x3a8   : > { %v6065_v62 = vadd.f32 %v6064_v37, %v4864_v53  ;;  %v4877_v63 = vand.u32 2147483647, %v2749_v57  ;;  %v3198_v0 = vpop.f32.mrb[78].mxu1  ;;  %v2751_v1 = vpop.f32.mrb[79].mxu0  ;;  %8923 = vmatmul.mubr.msk.f32.gmra.mrb[184].mxu0 %vm411_vm3, %v9350_v7  ;;  %v9353_v53 = vld [vmem:[%s13227_s2 + $0xf8] sm:$0xff] }
 0x3a9   : > { %v4879_v9 = vand.u32 2147483647, %v3198_v0  ;;  %v4878_v12 = vand.u32 2147483647, %v2751_v1  ;;  %v3200_v13 = vpop.f32.mrb[79].mxu1  ;;  %8989 = vmatmul.mubr.msk.f32.gmra.mrb[184].mxu1 %vm411_vm3, %v9350_v7  ;;  %3585 = vmatprep.mubr.f32.mxu0 %v9413_v32 }
 0x3aa   : > { %v5859_v61 = vadd.f32 %v5858_v52, %v4877_v63  ;;  %v4880_v14 = vand.u32 2147483647, %v3200_v13  ;;  %4034 = vmatprep.mubr.f32.mxu1 %v9413_v32 }
 0x3ab   : > { %v5997_v36 = vadd.f32 %v5996_v41, %v4879_v9  ;;  %v5928_v15 = vadd.f32 %v5927_v54, %v4878_v12  ;;  %v2755_v17 = vpop.f32.mrb[80].mxu0 }
 0x3ac   : > { %v6066_v18 = vadd.f32 %v6065_v62, %v4880_v14  ;;  %v4893_v19 = vand.u32 2147483647, %v2755_v17  ;;  %v3204_v20 = vpop.f32.mrb[80].mxu1  ;;  %v2757_v21 = vpop.f32.mrb[81].mxu0  ;;  %8924 = vmatmul.mubr.msk.f32.gmra.mrb[186].mxu0 %vm411_vm3, %v9351_v45  ;;  %v9354_v14 = vld [vmem:[%s13227_s2 + $0x100] sm:$0xff] }
 0x3ad   : > { %v4895_v22 = vand.u32 2147483647, %v3204_v20  ;;  %v4894_v23 = vand.u32 2147483647, %v2757_v21  ;;  %v3206_v26 = vpop.f32.mrb[81].mxu1  ;;  %8990 = vmatmul.mubr.msk.f32.gmra.mrb[186].mxu1 %vm411_vm3, %v9351_v45  ;;  %3591 = vmatprep.mubr.f32.mxu0 %v9413_v32 }
 0x3ae   : > { %v5860_v27 = vadd.f32 %v5859_v61, %v4893_v19  ;;  %v4896_v28 = vand.u32 2147483647, %v3206_v26  ;;  %4040 = vmatprep.mubr.f32.mxu1 %v9413_v32 }
 0x3af   : > { %v5998_v29 = vadd.f32 %v5997_v36, %v4895_v22  ;;  %v5929_v55 = vadd.f32 %v5928_v15, %v4894_v23  ;;  %v2761_v2 = vpop.f32.mrb[82].mxu0 }
 0x3b0   : > { %v6067_v11 = vadd.f32 %v6066_v18, %v4896_v28  ;;  %v4909_v30 = vand.u32 2147483647, %v2761_v2  ;;  %v3210_v31 = vpop.f32.mrb[82].mxu1  ;;  %v2763_v35 = vpop.f32.mrb[83].mxu0  ;;  %8925 = vmatmul.mubr.msk.f32.gmra.mrb[188].mxu0 %vm411_vm3, %v9352_v42  ;;  %v9355_v28 = vld [vmem:[%s13227_s2 + $0x108] sm:$0xff] }
 0x3b1   : > { %v4911_v47 = vand.u32 2147483647, %v3210_v31  ;;  %v4910_v40 = vand.u32 2147483647, %v2763_v35  ;;  %v3212_v51 = vpop.f32.mrb[83].mxu1  ;;  %8991 = vmatmul.mubr.msk.f32.gmra.mrb[188].mxu1 %vm411_vm3, %v9352_v42  ;;  %3597 = vmatprep.mubr.f32.mxu0 %v9413_v32 }
 0x3b2   : > { %v5861_v37 = vadd.f32 %v5860_v27, %v4909_v30  ;;  %v4912_v43 = vand.u32 2147483647, %v3212_v51  ;;  %4046 = vmatprep.mubr.f32.mxu1 %v9413_v32 }
 0x3b3   : > { %v5999_v44 = vadd.f32 %v5998_v29, %v4911_v47  ;;  %v5930_v46 = vadd.f32 %v5929_v55, %v4910_v40  ;;  %v2767_v48 = vpop.f32.mrb[84].mxu0 }
 0x3b4   : > { %v6068_v59 = vadd.f32 %v6067_v11, %v4912_v43  ;;  %v4925_v49 = vand.u32 2147483647, %v2767_v48  ;;  %v3216_v50 = vpop.f32.mrb[84].mxu1  ;;  %v2769_v52 = vpop.f32.mrb[85].mxu0  ;;  %8926 = vmatmul.mubr.msk.f32.gmra.mrb[190].mxu0 %vm411_vm3, %v9353_v53  ;;  %v9356_v43 = vld [vmem:[%s13227_s2 + $0x110] sm:$0xff] }
 0x3b5   : > { %v4927_v41 = vand.u32 2147483647, %v3216_v50  ;;  %v4926_v54 = vand.u32 2147483647, %v2769_v52  ;;  %v3218_v57 = vpop.f32.mrb[85].mxu1  ;;  %8992 = vmatmul.mubr.msk.f32.gmra.mrb[190].mxu1 %vm411_vm3, %v9353_v53  ;;  %3603 = vmatprep.mubr.f32.mxu0 %v9413_v32 }
 0x3b6   : > { %v5862_v62 = vadd.f32 %v5861_v37, %v4925_v49  ;;  %v4928_v63 = vand.u32 2147483647, %v3218_v57  ;;  %4052 = vmatprep.mubr.f32.mxu1 %v9413_v32 }
 0x3b7   : > { %v6000_v0 = vadd.f32 %v5999_v44, %v4927_v41  ;;  %v5931_v1 = vadd.f32 %v5930_v46, %v4926_v54  ;;  %v2773_v7 = vpop.f32.mrb[86].mxu0 }
 0x3b8   : > { %v6069_v9 = vadd.f32 %v6068_v59, %v4928_v63  ;;  %v4941_v12 = vand.u32 2147483647, %v2773_v7  ;;  %v3222_v13 = vpop.f32.mrb[86].mxu1  ;;  %v2775_v61 = vpop.f32.mrb[87].mxu0  ;;  %8927 = vmatmul.mubr.msk.f32.gmra.mrb[192].mxu0 %vm411_vm3, %v9354_v14  ;;  %v9357_v63 = vld [vmem:[%s13227_s2 + $0x118] sm:$0xff] }
 0x3b9   : > { %v4943_v36 = vand.u32 2147483647, %v3222_v13  ;;  %v4942_v15 = vand.u32 2147483647, %v2775_v61  ;;  %v3224_v17 = vpop.f32.mrb[87].mxu1  ;;  %8993 = vmatmul.mubr.msk.f32.gmra.mrb[192].mxu1 %vm411_vm3, %v9354_v14  ;;  %3609 = vmatprep.mubr.f32.mxu0 %v9413_v32 }
 0x3ba   : > { %v5863_v18 = vadd.f32 %v5862_v62, %v4941_v12  ;;  %v4944_v19 = vand.u32 2147483647, %v3224_v17  ;;  %4058 = vmatprep.mubr.f32.mxu1 %v9413_v32 }
 0x3bb   : > { %v6001_v20 = vadd.f32 %v6000_v0, %v4943_v36  ;;  %v5932_v21 = vadd.f32 %v5931_v1, %v4942_v15  ;;  %v2779_v45 = vpop.f32.mrb[88].mxu0 }
 0x3bc   : > { %v6070_v22 = vadd.f32 %v6069_v9, %v4944_v19  ;;  %v4957_v23 = vand.u32 2147483647, %v2779_v45  ;;  %v3228_v26 = vpop.f32.mrb[88].mxu1  ;;  %v2781_v27 = vpop.f32.mrb[89].mxu0  ;;  %8928 = vmatmul.mubr.msk.f32.gmra.mrb[194].mxu0 %vm411_vm3, %v9355_v28  ;;  %v9358_v19 = vld [vmem:[%s13227_s2 + $0x120] sm:$0xff] }
 0x3bd   : > { %v4959_v29 = vand.u32 2147483647, %v3228_v26  ;;  %v4958_v55 = vand.u32 2147483647, %v2781_v27  ;;  %v3230_v2 = vpop.f32.mrb[89].mxu1  ;;  %8994 = vmatmul.mubr.msk.f32.gmra.mrb[194].mxu1 %vm411_vm3, %v9355_v28  ;;  %3615 = vmatprep.mubr.f32.mxu0 %v9413_v32 }
 0x3be   : > { %v5864_v11 = vadd.f32 %v5863_v18, %v4957_v23  ;;  %v4960_v30 = vand.u32 2147483647, %v3230_v2  ;;  %4064 = vmatprep.mubr.f32.mxu1 %v9413_v32 }
 0x3bf   : > { %v6002_v31 = vadd.f32 %v6001_v20, %v4959_v29  ;;  %v5933_v35 = vadd.f32 %v5932_v21, %v4958_v55  ;;  %v2785_v42 = vpop.f32.mrb[90].mxu0 }
 0x3c0   : > { %v6071_v47 = vadd.f32 %v6070_v22, %v4960_v30  ;;  %v4973_v40 = vand.u32 2147483647, %v2785_v42  ;;  %v3234_v51 = vpop.f32.mrb[90].mxu1  ;;  %v2787_v37 = vpop.f32.mrb[91].mxu0  ;;  %8929 = vmatmul.mubr.msk.f32.gmra.mrb[196].mxu0 %vm411_vm3, %v9356_v43  ;;  %v9359_v30 = vld [vmem:[%s13227_s2 + $0x128] sm:$0xff] }
 0x3c1   : > { %v4975_v44 = vand.u32 2147483647, %v3234_v51  ;;  %v4974_v46 = vand.u32 2147483647, %v2787_v37  ;;  %v3236_v48 = vpop.f32.mrb[91].mxu1  ;;  %8995 = vmatmul.mubr.msk.f32.gmra.mrb[196].mxu1 %vm411_vm3, %v9356_v43  ;;  %3621 = vmatprep.mubr.f32.mxu0 %v9413_v32 }
 0x3c2   : > { %v5865_v59 = vadd.f32 %v5864_v11, %v4973_v40  ;;  %v4976_v49 = vand.u32 2147483647, %v3236_v48  ;;  %4070 = vmatprep.mubr.f32.mxu1 %v9413_v32 }
 0x3c3   : > { %v6003_v50 = vadd.f32 %v6002_v31, %v4975_v44  ;;  %v5934_v52 = vadd.f32 %v5933_v35, %v4974_v46  ;;  %v2791_v53 = vpop.f32.mrb[92].mxu0 }
 0x3c4   : > { %v6072_v41 = vadd.f32 %v6071_v47, %v4976_v49  ;;  %v4989_v54 = vand.u32 2147483647, %v2791_v53  ;;  %v3240_v57 = vpop.f32.mrb[92].mxu1  ;;  %v2793_v62 = vpop.f32.mrb[93].mxu0  ;;  %8930 = vmatmul.mubr.msk.f32.gmra.mrb[198].mxu0 %vm411_vm3, %v9357_v63  ;;  %v9360_v49 = vld [vmem:[%s13227_s2 + $0x130] sm:$0xff] }
 0x3c5   : > { %v4991_v0 = vand.u32 2147483647, %v3240_v57  ;;  %v4990_v1 = vand.u32 2147483647, %v2793_v62  ;;  %v3242_v7 = vpop.f32.mrb[93].mxu1  ;;  %8996 = vmatmul.mubr.msk.f32.gmra.mrb[198].mxu1 %vm411_vm3, %v9357_v63  ;;  %3627 = vmatprep.mubr.f32.mxu0 %v9413_v32 }
 0x3c6   : > { %v5866_v9 = vadd.f32 %v5865_v59, %v4989_v54  ;;  %v4992_v12 = vand.u32 2147483647, %v3242_v7  ;;  %4076 = vmatprep.mubr.f32.mxu1 %v9413_v32 }
 0x3c7   : > { %v6004_v13 = vadd.f32 %v6003_v50, %v4991_v0  ;;  %v5935_v61 = vadd.f32 %v5934_v52, %v4990_v1  ;;  %v2797_v14 = vpop.f32.mrb[94].mxu0 }
 0x3c8   : > { %v6073_v36 = vadd.f32 %v6072_v41, %v4992_v12  ;;  %v5005_v15 = vand.u32 2147483647, %v2797_v14  ;;  %v3246_v17 = vpop.f32.mrb[94].mxu1  ;;  %v2799_v18 = vpop.f32.mrb[95].mxu0  ;;  %8931 = vmatmul.mubr.msk.f32.gmra.mrb[200].mxu0 %vm411_vm3, %v9358_v19  ;;  %v9361_v12 = vld [vmem:[%s13227_s2 + $0x138] sm:$0xff] }
 0x3c9   : > { %v5007_v20 = vand.u32 2147483647, %v3246_v17  ;;  %v5006_v21 = vand.u32 2147483647, %v2799_v18  ;;  %v3248_v45 = vpop.f32.mrb[95].mxu1  ;;  %8997 = vmatmul.mubr.msk.f32.gmra.mrb[200].mxu1 %vm411_vm3, %v9358_v19  ;;  %3633 = vmatprep.mubr.f32.mxu0 %v9413_v32 }
 0x3ca   : > { %v5867_v22 = vadd.f32 %v5866_v9, %v5005_v15  ;;  %v5008_v23 = vand.u32 2147483647, %v3248_v45  ;;  %4082 = vmatprep.mubr.f32.mxu1 %v9413_v32 }
 0x3cb   : > { %v6005_v26 = vadd.f32 %v6004_v13, %v5007_v20  ;;  %v5936_v27 = vadd.f32 %v5935_v61, %v5006_v21  ;;  %v2803_v28 = vpop.f32.mrb[96].mxu0 }
 0x3cc   : > { %v6074_v29 = vadd.f32 %v6073_v36, %v5008_v23  ;;  %v5021_v55 = vand.u32 2147483647, %v2803_v28  ;;  %v3252_v2 = vpop.f32.mrb[96].mxu1  ;;  %v2805_v11 = vpop.f32.mrb[97].mxu0  ;;  %8932 = vmatmul.mubr.msk.f32.gmra.mrb[202].mxu0 %vm411_vm3, %v9359_v30  ;;  %v9362_v23 = vld [vmem:[%s13227_s2 + $0x140] sm:$0xff] }
 0x3cd   : > { %v5023_v31 = vand.u32 2147483647, %v3252_v2  ;;  %v5022_v35 = vand.u32 2147483647, %v2805_v11  ;;  %v3254_v42 = vpop.f32.mrb[97].mxu1  ;;  %8998 = vmatmul.mubr.msk.f32.gmra.mrb[202].mxu1 %vm411_vm3, %v9359_v30  ;;  %3639 = vmatprep.mubr.f32.mxu0 %v9413_v32 }
 0x3ce   : > { %v5868_v47 = vadd.f32 %v5867_v22, %v5021_v55  ;;  %v5024_v40 = vand.u32 2147483647, %v3254_v42  ;;  %4088 = vmatprep.mubr.f32.mxu1 %v9413_v32 }
 0x3cf   : > { %v6006_v51 = vadd.f32 %v6005_v26, %v5023_v31  ;;  %v5937_v37 = vadd.f32 %v5936_v27, %v5022_v35  ;;  %v2809_v43 = vpop.f32.mrb[98].mxu0 }
 0x3d0   : > { %v6075_v44 = vadd.f32 %v6074_v29, %v5024_v40  ;;  %v5037_v46 = vand.u32 2147483647, %v2809_v43  ;;  %v3258_v48 = vpop.f32.mrb[98].mxu1  ;;  %v2811_v59 = vpop.f32.mrb[99].mxu0  ;;  %8933 = vmatmul.mubr.msk.f32.gmra.mrb[204].mxu0 %vm411_vm3, %v9360_v49  ;;  %v9363_v40 = vld [vmem:[%s13227_s2 + $0x148] sm:$0xff] }
 0x3d1   : > { %v5039_v50 = vand.u32 2147483647, %v3258_v48  ;;  %v5038_v52 = vand.u32 2147483647, %v2811_v59  ;;  %v3260_v53 = vpop.f32.mrb[99].mxu1  ;;  %8999 = vmatmul.mubr.msk.f32.gmra.mrb[204].mxu1 %vm411_vm3, %v9360_v49  ;;  %3645 = vmatprep.mubr.f32.mxu0 %v9413_v32 }
 0x3d2   : > { %v5869_v41 = vadd.f32 %v5868_v47, %v5037_v46  ;;  %v5040_v54 = vand.u32 2147483647, %v3260_v53  ;;  %4094 = vmatprep.mubr.f32.mxu1 %v9413_v32 }
 0x3d3   : > { %v6007_v57 = vadd.f32 %v6006_v51, %v5039_v50  ;;  %v5938_v62 = vadd.f32 %v5937_v37, %v5038_v52  ;;  %v2815_v63 = vpop.f32.mrb[100].mxu0 }
 0x3d4   : > { %v6076_v0 = vadd.f32 %v6075_v44, %v5040_v54  ;;  %v5053_v1 = vand.u32 2147483647, %v2815_v63  ;;  %v3264_v7 = vpop.f32.mrb[100].mxu1  ;;  %v2817_v9 = vpop.f32.mrb[101].mxu0  ;;  %8934 = vmatmul.mubr.msk.f32.gmra.mrb[206].mxu0 %vm411_vm3, %v9361_v12  ;;  %v9364_v54 = vld [vmem:[%s13227_s2 + $0x150] sm:$0xff] }
 0x3d5   : > { %v5055_v13 = vand.u32 2147483647, %v3264_v7  ;;  %v5054_v61 = vand.u32 2147483647, %v2817_v9  ;;  %v3266_v14 = vpop.f32.mrb[101].mxu1  ;;  %9000 = vmatmul.mubr.msk.f32.gmra.mrb[206].mxu1 %vm411_vm3, %v9361_v12  ;;  %3651 = vmatprep.mubr.f32.mxu0 %v9413_v32 }
 0x3d6   : > { %v5870_v36 = vadd.f32 %v5869_v41, %v5053_v1  ;;  %v5056_v15 = vand.u32 2147483647, %v3266_v14  ;;  %4100 = vmatprep.mubr.f32.mxu1 %v9413_v32 }
 0x3d7   : > { %v6008_v17 = vadd.f32 %v6007_v57, %v5055_v13  ;;  %v5939_v18 = vadd.f32 %v5938_v62, %v5054_v61  ;;  %v2821_v19 = vpop.f32.mrb[102].mxu0 }
 0x3d8   : > { %v6077_v20 = vadd.f32 %v6076_v0, %v5056_v15  ;;  %v5069_v21 = vand.u32 2147483647, %v2821_v19  ;;  %v3270_v45 = vpop.f32.mrb[102].mxu1  ;;  %v2823_v22 = vpop.f32.mrb[103].mxu0  ;;  %8935 = vmatmul.mubr.msk.f32.gmra.mrb[208].mxu0 %vm411_vm3, %v9362_v23  ;;  %v9365_v15 = vld [vmem:[%s13227_s2 + $0x158] sm:$0xff] }
 0x3d9   : > { %v5071_v26 = vand.u32 2147483647, %v3270_v45  ;;  %v5070_v27 = vand.u32 2147483647, %v2823_v22  ;;  %v3272_v28 = vpop.f32.mrb[103].mxu1  ;;  %9001 = vmatmul.mubr.msk.f32.gmra.mrb[208].mxu1 %vm411_vm3, %v9362_v23  ;;  %3657 = vmatprep.mubr.f32.mxu0 %v9413_v32 }
 0x3da   : > { %v5871_v29 = vadd.f32 %v5870_v36, %v5069_v21  ;;  %v5072_v55 = vand.u32 2147483647, %v3272_v28  ;;  %4106 = vmatprep.mubr.f32.mxu1 %v9413_v32 }
 0x3db   : > { %v6009_v2 = vadd.f32 %v6008_v17, %v5071_v26  ;;  %v5940_v11 = vadd.f32 %v5939_v18, %v5070_v27  ;;  %v2827_v30 = vpop.f32.mrb[104].mxu0 }
 0x3dc   : > { %v6078_v31 = vadd.f32 %v6077_v20, %v5072_v55  ;;  %v5085_v35 = vand.u32 2147483647, %v2827_v30  ;;  %v3276_v42 = vpop.f32.mrb[104].mxu1  ;;  %v2829_v47 = vpop.f32.mrb[105].mxu0  ;;  %8936 = vmatmul.mubr.msk.f32.gmra.mrb[210].mxu0 %vm411_vm3, %v9363_v40  ;;  %v9366_v55 = vld [vmem:[%s13227_s2 + $0x160] sm:$0xff] }
 0x3dd   : > { %v5087_v51 = vand.u32 2147483647, %v3276_v42  ;;  %v5086_v37 = vand.u32 2147483647, %v2829_v47  ;;  %v3278_v43 = vpop.f32.mrb[105].mxu1  ;;  %9002 = vmatmul.mubr.msk.f32.gmra.mrb[210].mxu1 %vm411_vm3, %v9363_v40  ;;  %3663 = vmatprep.mubr.f32.mxu0 %v9413_v32 }
 0x3de   : > { %v5872_v44 = vadd.f32 %v5871_v29, %v5085_v35  ;;  %v5088_v46 = vand.u32 2147483647, %v3278_v43  ;;  %4112 = vmatprep.mubr.f32.mxu1 %v9413_v32 }
 0x3df   : > { %v6010_v48 = vadd.f32 %v6009_v2, %v5087_v51  ;;  %v5941_v59 = vadd.f32 %v5940_v11, %v5086_v37  ;;  %v2833_v49 = vpop.f32.mrb[106].mxu0 }
 0x3e0   : > { %v6079_v50 = vadd.f32 %v6078_v31, %v5088_v46  ;;  %v5101_v52 = vand.u32 2147483647, %v2833_v49  ;;  %v3282_v53 = vpop.f32.mrb[106].mxu1  ;;  %v2835_v41 = vpop.f32.mrb[107].mxu0  ;;  %8937 = vmatmul.mubr.msk.f32.gmra.mrb[212].mxu0 %vm411_vm3, %v9364_v54  ;;  %v9367_v46 = vld [vmem:[%s13227_s2 + $0x168] sm:$0xff] }
 0x3e1   : > { %v5103_v57 = vand.u32 2147483647, %v3282_v53  ;;  %v5102_v62 = vand.u32 2147483647, %v2835_v41  ;;  %v3284_v63 = vpop.f32.mrb[107].mxu1  ;;  %9003 = vmatmul.mubr.msk.f32.gmra.mrb[212].mxu1 %vm411_vm3, %v9364_v54  ;;  %3669 = vmatprep.mubr.f32.mxu0 %v9413_v32 }
 0x3e2   : > { %v5873_v0 = vadd.f32 %v5872_v44, %v5101_v52  ;;  %v5104_v1 = vand.u32 2147483647, %v3284_v63  ;;  %4118 = vmatprep.mubr.f32.mxu1 %v9413_v32 }
 0x3e3   : > { %v6011_v7 = vadd.f32 %v6010_v48, %v5103_v57  ;;  %v5942_v9 = vadd.f32 %v5941_v59, %v5102_v62  ;;  %v2839_v12 = vpop.f32.mrb[108].mxu0 }
 0x3e4   : > { %v6080_v13 = vadd.f32 %v6079_v50, %v5104_v1  ;;  %v5117_v61 = vand.u32 2147483647, %v2839_v12  ;;  %v3288_v14 = vpop.f32.mrb[108].mxu1  ;;  %v2841_v36 = vpop.f32.mrb[109].mxu0  ;;  %8938 = vmatmul.mubr.msk.f32.gmra.mrb[214].mxu0 %vm411_vm3, %v9365_v15  ;;  %v9368_v1 = vld [vmem:[%s13227_s2 + $0x170] sm:$0xff] }
 0x3e5   : > { %v5119_v17 = vand.u32 2147483647, %v3288_v14  ;;  %v5118_v18 = vand.u32 2147483647, %v2841_v36  ;;  %v3290_v19 = vpop.f32.mrb[109].mxu1  ;;  %9004 = vmatmul.mubr.msk.f32.gmra.mrb[214].mxu1 %vm411_vm3, %v9365_v15  ;;  %3675 = vmatprep.mubr.f32.mxu0 %v9413_v32 }
 0x3e6   : > { %v5874_v20 = vadd.f32 %v5873_v0, %v5117_v61  ;;  %v5120_v21 = vand.u32 2147483647, %v3290_v19  ;;  %4124 = vmatprep.mubr.f32.mxu1 %v9413_v32 }
 0x3e7   : > { %v6012_v45 = vadd.f32 %v6011_v7, %v5119_v17  ;;  %v5943_v22 = vadd.f32 %v5942_v9, %v5118_v18  ;;  %v2845_v23 = vpop.f32.mrb[110].mxu0 }
 0x3e8   : > { %v6081_v26 = vadd.f32 %v6080_v13, %v5120_v21  ;;  %v5133_v27 = vand.u32 2147483647, %v2845_v23  ;;  %v3294_v28 = vpop.f32.mrb[110].mxu1  ;;  %v2847_v29 = vpop.f32.mrb[111].mxu0  ;;  %8939 = vmatmul.mubr.msk.f32.gmra.mrb[216].mxu0 %vm411_vm3, %v9366_v55  ;;  %v9369_v21 = vld [vmem:[%s13227_s2 + $0x178] sm:$0xff] }
 0x3e9   : > { %v5135_v2 = vand.u32 2147483647, %v3294_v28  ;;  %v5134_v11 = vand.u32 2147483647, %v2847_v29  ;;  %v3296_v30 = vpop.f32.mrb[111].mxu1  ;;  %9005 = vmatmul.mubr.msk.f32.gmra.mrb[216].mxu1 %vm411_vm3, %v9366_v55  ;;  %3681 = vmatprep.mubr.f32.mxu0 %v9413_v32 }
 0x3ea   : > { %v5875_v31 = vadd.f32 %v5874_v20, %v5133_v27  ;;  %v5136_v35 = vand.u32 2147483647, %v3296_v30  ;;  %4130 = vmatprep.mubr.f32.mxu1 %v9413_v32 }
 0x3eb   : > { %v6013_v42 = vadd.f32 %v6012_v45, %v5135_v2  ;;  %v5944_v47 = vadd.f32 %v5943_v22, %v5134_v11  ;;  %v2851_v40 = vpop.f32.mrb[112].mxu0 }
 0x3ec   : > { %v6082_v51 = vadd.f32 %v6081_v26, %v5136_v35  ;;  %v5149_v37 = vand.u32 2147483647, %v2851_v40  ;;  %v3300_v43 = vpop.f32.mrb[112].mxu1  ;;  %v2853_v44 = vpop.f32.mrb[113].mxu0  ;;  %8940 = vmatmul.mubr.msk.f32.gmra.mrb[218].mxu0 %vm411_vm3, %v9367_v46  ;;  %v9370_v35 = vld [vmem:[%s13227_s2 + $0x180] sm:$0xff] }
 0x3ed   : > { %v5151_v48 = vand.u32 2147483647, %v3300_v43  ;;  %v5150_v59 = vand.u32 2147483647, %v2853_v44  ;;  %v3302_v49 = vpop.f32.mrb[113].mxu1  ;;  %9006 = vmatmul.mubr.msk.f32.gmra.mrb[218].mxu1 %vm411_vm3, %v9367_v46  ;;  %3687 = vmatprep.mubr.f32.mxu0 %v9413_v32 }
 0x3ee   : > { %v5876_v50 = vadd.f32 %v5875_v31, %v5149_v37  ;;  %v5152_v52 = vand.u32 2147483647, %v3302_v49  ;;  %4136 = vmatprep.mubr.f32.mxu1 %v9413_v32 }
 0x3ef   : > { %v6014_v53 = vadd.f32 %v6013_v42, %v5151_v48  ;;  %v5945_v41 = vadd.f32 %v5944_v47, %v5150_v59  ;;  %v2857_v54 = vpop.f32.mrb[114].mxu0 }
 0x3f0   : > { %v6083_v57 = vadd.f32 %v6082_v51, %v5152_v52  ;;  %v5165_v62 = vand.u32 2147483647, %v2857_v54  ;;  %v3306_v63 = vpop.f32.mrb[114].mxu1  ;;  %v2859_v0 = vpop.f32.mrb[115].mxu0  ;;  %8941 = vmatmul.mubr.msk.f32.gmra.mrb[220].mxu0 %vm411_vm3, %v9368_v1  ;;  %v9371_v52 = vld [vmem:[%s13227_s2 + $0x188] sm:$0xff] }
 0x3f1   : > { %v5167_v7 = vand.u32 2147483647, %v3306_v63  ;;  %v5166_v9 = vand.u32 2147483647, %v2859_v0  ;;  %v3308_v12 = vpop.f32.mrb[115].mxu1  ;;  %9007 = vmatmul.mubr.msk.f32.gmra.mrb[220].mxu1 %vm411_vm3, %v9368_v1  ;;  %3693 = vmatprep.mubr.f32.mxu0 %v9413_v32 }
 0x3f2   : > { %v5877_v13 = vadd.f32 %v5876_v50, %v5165_v62  ;;  %v5168_v61 = vand.u32 2147483647, %v3308_v12  ;;  %4142 = vmatprep.mubr.f32.mxu1 %v9413_v32 }
 0x3f3   : > { %v6015_v14 = vadd.f32 %v6014_v53, %v5167_v7  ;;  %v5946_v36 = vadd.f32 %v5945_v41, %v5166_v9  ;;  %v2863_v15 = vpop.f32.mrb[116].mxu0 }
 0x3f4   : > { %v6084_v17 = vadd.f32 %v6083_v57, %v5168_v61  ;;  %v5181_v18 = vand.u32 2147483647, %v2863_v15  ;;  %v3312_v19 = vpop.f32.mrb[116].mxu1  ;;  %v2865_v20 = vpop.f32.mrb[117].mxu0  ;;  %8942 = vmatmul.mubr.msk.f32.gmra.mrb[222].mxu0 %vm411_vm3, %v9369_v21  ;;  %v9372_v61 = vld [vmem:[%s13227_s2 + $0x190] sm:$0xff] }
 0x3f5   : > { %v5183_v45 = vand.u32 2147483647, %v3312_v19  ;;  %v5182_v22 = vand.u32 2147483647, %v2865_v20  ;;  %v3314_v23 = vpop.f32.mrb[117].mxu1  ;;  %9008 = vmatmul.mubr.msk.f32.gmra.mrb[222].mxu1 %vm411_vm3, %v9369_v21  ;;  %3699 = vmatprep.mubr.f32.mxu0 %v9413_v32 }
 0x3f6   : > { %v5878_v26 = vadd.f32 %v5877_v13, %v5181_v18  ;;  %v5184_v27 = vand.u32 2147483647, %v3314_v23  ;;  %4148 = vmatprep.mubr.f32.mxu1 %v9413_v32 }
 0x3f7   : > { %v6016_v28 = vadd.f32 %v6015_v14, %v5183_v45  ;;  %v5947_v29 = vadd.f32 %v5946_v36, %v5182_v22  ;;  %v2869_v55 = vpop.f32.mrb[118].mxu0 }
 0x3f8   : > { %v6085_v2 = vadd.f32 %v6084_v17, %v5184_v27  ;;  %v5197_v11 = vand.u32 2147483647, %v2869_v55  ;;  %v3318_v30 = vpop.f32.mrb[118].mxu1  ;;  %v2871_v31 = vpop.f32.mrb[119].mxu0  ;;  %8943 = vmatmul.mubr.msk.f32.gmra.mrb[224].mxu0 %vm411_vm3, %v9370_v35  ;;  %v9373_v27 = vld [vmem:[%s13227_s2 + $0x198] sm:$0xff] }
 0x3f9   : > { %v5199_v42 = vand.u32 2147483647, %v3318_v30  ;;  %v5198_v47 = vand.u32 2147483647, %v2871_v31  ;;  %v3320_v40 = vpop.f32.mrb[119].mxu1  ;;  %9009 = vmatmul.mubr.msk.f32.gmra.mrb[224].mxu1 %vm411_vm3, %v9370_v35  ;;  %3705 = vmatprep.mubr.f32.mxu0 %v9413_v32 }
 0x3fa   : > { %v5879_v51 = vadd.f32 %v5878_v26, %v5197_v11  ;;  %v5200_v37 = vand.u32 2147483647, %v3320_v40  ;;  %4154 = vmatprep.mubr.f32.mxu1 %v9413_v32 }
 0x3fb   : > { %v6017_v43 = vadd.f32 %v6016_v28, %v5199_v42  ;;  %v5948_v44 = vadd.f32 %v5947_v29, %v5198_v47  ;;  %v2875_v46 = vpop.f32.mrb[120].mxu0 }
 0x3fc   : > { %v6086_v48 = vadd.f32 %v6085_v2, %v5200_v37  ;;  %v5213_v59 = vand.u32 2147483647, %v2875_v46  ;;  %v3324_v49 = vpop.f32.mrb[120].mxu1  ;;  %v2877_v50 = vpop.f32.mrb[121].mxu0  ;;  %8944 = vmatmul.mubr.msk.f32.gmra.mrb[226].mxu0 %vm411_vm3, %v9371_v52  ;;  %v9374_v37 = vld [vmem:[%s13227_s2 + $0x1a0] sm:$0xff] }
 0x3fd   : > { %v5215_v53 = vand.u32 2147483647, %v3324_v49  ;;  %v5214_v41 = vand.u32 2147483647, %v2877_v50  ;;  %v3326_v54 = vpop.f32.mrb[121].mxu1  ;;  %9010 = vmatmul.mubr.msk.f32.gmra.mrb[226].mxu1 %vm411_vm3, %v9371_v52  ;;  %3711 = vmatprep.mubr.f32.mxu0 %v9413_v32 }
 0x3fe   : > { %v5880_v57 = vadd.f32 %v5879_v51, %v5213_v59  ;;  %v5216_v62 = vand.u32 2147483647, %v3326_v54  ;;  %4160 = vmatprep.mubr.f32.mxu1 %v9413_v32 }
 0x3ff   : > { %v6018_v63 = vadd.f32 %v6017_v43, %v5215_v53  ;;  %v5949_v0 = vadd.f32 %v5948_v44, %v5214_v41  ;;  %v2881_v1 = vpop.f32.mrb[122].mxu0 }
 0x400   : > { %v6087_v7 = vadd.f32 %v6086_v48, %v5216_v62  ;;  %v5229_v9 = vand.u32 2147483647, %v2881_v1  ;;  %v3330_v12 = vpop.f32.mrb[122].mxu1  ;;  %v2883_v13 = vpop.f32.mrb[123].mxu0  ;;  %8945 = vmatmul.mubr.msk.f32.gmra.mrb[228].mxu0 %vm411_vm3, %v9372_v61  ;;  %v9375_v62 = vld [vmem:[%s13227_s2 + $0x1a8] sm:$0xff] }
 0x401   : > { %v5231_v14 = vand.u32 2147483647, %v3330_v12  ;;  %v5230_v36 = vand.u32 2147483647, %v2883_v13  ;;  %v3332_v15 = vpop.f32.mrb[123].mxu1  ;;  %9011 = vmatmul.mubr.msk.f32.gmra.mrb[228].mxu1 %vm411_vm3, %v9372_v61  ;;  %3717 = vmatprep.mubr.f32.mxu0 %v9413_v32 }
 0x402   : > { %v5881_v17 = vadd.f32 %v5880_v57, %v5229_v9  ;;  %v5232_v18 = vand.u32 2147483647, %v3332_v15  ;;  %4166 = vmatprep.mubr.f32.mxu1 %v9413_v32 }
 0x403   : > { %v6019_v19 = vadd.f32 %v6018_v63, %v5231_v14  ;;  %v5950_v20 = vadd.f32 %v5949_v0, %v5230_v36  ;;  %v2887_v21 = vpop.f32.mrb[124].mxu0 }
 0x404   : > { %v6088_v45 = vadd.f32 %v6087_v7, %v5232_v18  ;;  %v5245_v22 = vand.u32 2147483647, %v2887_v21  ;;  %v3336_v23 = vpop.f32.mrb[124].mxu1  ;;  %v2889_v26 = vpop.f32.mrb[125].mxu0  ;;  %8946 = vmatmul.mubr.msk.f32.gmra.mrb[230].mxu0 %vm411_vm3, %v9373_v27 }
 0x405   : > { %v5247_v28 = vand.u32 2147483647, %v3336_v23  ;;  %v5246_v29 = vand.u32 2147483647, %v2889_v26  ;;  %v3338_v55 = vpop.f32.mrb[125].mxu1  ;;  %9012 = vmatmul.mubr.msk.f32.gmra.mrb[230].mxu1 %vm411_vm3, %v9373_v27  ;;  %3723 = vmatprep.mubr.f32.mxu0 %v9413_v32 }
 0x406   : > { %v5882_v2 = vadd.f32 %v5881_v17, %v5245_v22  ;;  %v5248_v11 = vand.u32 2147483647, %v3338_v55  ;;  %4172 = vmatprep.mubr.f32.mxu1 %v9413_v32 }
 0x407   : > { %v6020_v30 = vadd.f32 %v6019_v19, %v5247_v28  ;;  %v5951_v31 = vadd.f32 %v5950_v20, %v5246_v29  ;;  %v2893_v35 = vpop.f32.mrb[126].mxu0 }
 0x408   : > { %v6089_v42 = vadd.f32 %v6088_v45, %v5248_v11  ;;  %v5261_v47 = vand.u32 2147483647, %v2893_v35  ;;  %v3342_v40 = vpop.f32.mrb[126].mxu1  ;;  %v2895_v51 = vpop.f32.mrb[127].mxu0  ;;  %8947 = vmatmul.mubr.msk.f32.gmra.mrb[232].mxu0 %vm411_vm3, %v9374_v37  ;;  %v9376_v45 = vld [vmem:[%s13227_s2 + $0x1b0] sm:$0xff] }
 0x409   : > { %v5263_v43 = vand.u32 2147483647, %v3342_v40  ;;  %v5262_v44 = vand.u32 2147483647, %v2895_v51  ;;  %v3344_v46 = vpop.f32.mrb[127].mxu1  ;;  %9013 = vmatmul.mubr.msk.f32.gmra.mrb[232].mxu1 %vm411_vm3, %v9374_v37  ;;  %3729 = vmatprep.mubr.f32.mxu0 %v9413_v32 }
 0x40a   : > { %v5883_v48 = vadd.f32 %v5882_v2, %v5261_v47  ;;  %v5264_v59 = vand.u32 2147483647, %v3344_v46  ;;  %4178 = vmatprep.mubr.f32.mxu1 %v9413_v32  ;;  %v9377_v46 = vld [vmem:[%s13227_s2 + $0x1b8] sm:$0xff] }
 0x40b   : > { %v6021_v49 = vadd.f32 %v6020_v30, %v5263_v43  ;;  %v5952_v50 = vadd.f32 %v5951_v31, %v5262_v44  ;;  %v3413_v52 = vpop.f32.mrb[128].mxu0 }
 0x40c   : > { %v5884_v53 = vrot.slane %v5883_v48, 4  ;;  %v6090_v41 = vadd.f32 %v6089_v42, %v5264_v59  ;;  %v3862_v54 = vpop.f32.mrb[128].mxu1  ;;  %v3415_v57 = vpop.f32.mrb[129].mxu0  ;;  %8948 = vmatmul.mubr.msk.f32.gmra.mrb[234].mxu0 %vm411_vm3, %v9375_v62  ;;  %v4257_v9 = vand.u32 2147483647, %v3413_v52 }
 0x40d   : > { %v6022_v63 = vrot.slane %v6021_v49, 4  ;;  %v5953_v0 = vrot.slane %v5952_v50, 4  ;;  %9014 = vmatmul.mubr.msk.f32.gmra.mrb[234].mxu1 %vm411_vm3, %v9375_v62  ;;  %3735 = vmatprep.mubr.f32.mxu0 %v9413_v32  ;;  %v3864_v12 = vpop.f32.mrb[129].mxu1  ;;  %v4259_v14 = vand.u32 2147483647, %v3862_v54 }
 0x40e   : > { %v5885_v1 = vadd.f32 %v5884_v53, %v5883_v48  ;;  %v6091_v7 = vrot.slane %v6090_v41, 4  ;;  %4184 = vmatprep.mubr.f32.mxu1 %v9413_v32  ;;  %v4258_v36 = vand.u32 2147483647, %v3415_v57  ;;  %v4260_v55 = vand.u32 2147483647, %v3864_v12 }
 0x40f   : > { %v6023_v13 = vadd.f32 %v6022_v63, %v6021_v49  ;;  %v5954_v61 = vadd.f32 %v5953_v0, %v5952_v50  ;;  %v3419_v15 = vpop.f32.mrb[130].mxu0 }
 0x410   : > { %v5886_v17 = vrot.slane %v5885_v1, 2  ;;  %v6092_v18 = vadd.f32 %v6091_v7, %v6090_v41  ;;  %v4273_v19 = vand.u32 2147483647, %v3419_v15  ;;  %v3868_v20 = vpop.f32.mrb[130].mxu1  ;;  %v3421_v21 = vpop.f32.mrb[131].mxu0  ;;  %8949 = vmatmul.mubr.msk.f32.gmra.mrb[236].mxu0 %vm411_vm3, %v9376_v45 }
 0x411   : > { %v6024_v22 = vrot.slane %v6023_v13, 2  ;;  %v5955_v23 = vrot.slane %v5954_v61, 2  ;;  %v4275_v26 = vand.u32 2147483647, %v3868_v20  ;;  %v4274_v27 = vand.u32 2147483647, %v3421_v21  ;;  %9015 = vmatmul.mubr.msk.f32.gmra.mrb[236].mxu1 %vm411_vm3, %v9376_v45  ;;  %3741 = vmatprep.mubr.f32.mxu0 %v9413_v32 }
 0x412   : > { %v5887_v28 = vadd.f32 %v5886_v17, %v5885_v1  ;;  %v6093_v29 = vrot.slane %v6092_v18, 2  ;;  %v6097_v2 = vadd.f32 %v4273_v19, %v4257_v9  ;;  %v3870_v11 = vpop.f32.mrb[131].mxu1  ;;  %4190 = vmatprep.mubr.f32.mxu1 %v9413_v32 }
 0x413   : > { %v6025_v30 = vadd.f32 %v6024_v22, %v6023_v13  ;;  %v5956_v31 = vadd.f32 %v5955_v23, %v5954_v61  ;;  %v6235_v35 = vadd.f32 %v4275_v26, %v4259_v14  ;;  %v6166_v42 = vadd.f32 %v4274_v27, %v4258_v36  ;;  %v3425_v47 = vpop.f32.mrb[132].mxu0  ;;  %v9378_v36 = vld [vmem:[%s13227_s2 + $0x1c0] sm:$0xff] }
 0x414   : > { %v5888_v40 = vrot.slane %v5887_v28, 1  ;;  %v6094_v51 = vadd.f32 %v6093_v29, %v6092_v18  ;;  %v4276_v37 = vand.u32 2147483647, %v3870_v11  ;;  %v4289_v43 = vand.u32 2147483647, %v3425_v47  ;;  %v3874_v44 = vpop.f32.mrb[132].mxu1  ;;  %8950 = vmatmul.mubr.msk.f32.gmra.mrb[238].mxu0 %vm411_vm3, %v9377_v46 }
 0x415   : > { %v6026_v48 = vrot.slane %v6025_v30, 1  ;;  %v5957_v59 = vrot.slane %v5956_v31, 1  ;;  %v4291_v49 = vand.u32 2147483647, %v3874_v44  ;;  %v3427_v50 = vpop.f32.mrb[133].mxu0  ;;  %v3876_v52 = vpop.f32.mrb[133].mxu1  ;;  %9016 = vmatmul.mubr.msk.f32.gmra.mrb[238].mxu1 %vm411_vm3, %v9377_v46  ;;  %3747 = vmatprep.mubr.f32.mxu0 %v9413_v32 }
 0x416   : > { %v5889_v53 = vadd.f32 %v5888_v40, %v5887_v28  ;;  %v6095_v41 = vrot.slane %v6094_v51, 1  ;;  %v6304_v54 = vadd.f32 %v4276_v37, %v4260_v55  ;;  %v6098_v57 = vadd.f32 %v6097_v2, %v4289_v43  ;;  %4196 = vmatprep.mubr.f32.mxu1 %v9413_v32  ;;  %v11550_v46 = vld [vmem:[%s13228_s3] sm:$0xff] }
 0x417   : > { %v6027_v62 = vadd.f32 %v6026_v48, %v6025_v30  ;;  %v5958_v63 = vadd.f32 %v5957_v59, %v5956_v31  ;;  %v6236_v0 = vadd.f32 %v6235_v35, %v4291_v49  ;;  %v4290_v1 = vand.u32 2147483647, %v3427_v50  ;;  %v3431_v7 = vpop.f32.mrb[134].mxu0  ;;  %v9379_v35 = vld [vmem:[%s13227_s2 + $0x1c8] sm:$0xff] }
 0x418   : > { %v6096_v9 = vadd.f32 %v6095_v41, %v6094_v51  ;;  %v4292_v12 = vand.u32 2147483647, %v3876_v52  ;;  %v4305_v13 = vand.u32 2147483647, %v3431_v7  ;;  %v3880_v61 = vpop.f32.mrb[134].mxu1  ;;  %v3433_v14 = vpop.f32.mrb[135].mxu0  ;;  %8951 = vmatmul.mubr.msk.f32.gmra.mrb[240].mxu0 %vm411_vm3, %v9378_v36 }
 0x419   : > { %v6447_v15 = vcombine.low %v5889_v53, %v5958_v63  ;;  %v6167_v17 = vadd.f32 %v6166_v42, %v4290_v1  ;;  %v4307_v18 = vand.u32 2147483647, %v3880_v61  ;;  %v4306_v19 = vand.u32 2147483647, %v3433_v14  ;;  %v3882_v20 = vpop.f32.mrb[135].mxu1  ;;  %9017 = vmatmul.mubr.msk.f32.gmra.mrb[240].mxu1 %vm411_vm3, %v9378_v36  ;;  %3753 = vmatprep.mubr.f32.mxu0 %v9413_v32 }
 0x41a   : > { %v6448_v21 = vcombine.low %v6027_v62, %v6096_v9  ;;  %v6305_v45 = vadd.f32 %v6304_v54, %v4292_v12  ;;  %v6099_v22 = vadd.f32 %v6098_v57, %v4305_v13  ;;  %v4308_v23 = vand.u32 2147483647, %v3882_v20  ;;  %4202 = vmatprep.mubr.f32.mxu1 %v9413_v32  ;;  %v9381_v54 = vld [vmem:[%s13227_s2 + $0x1d0] sm:$0xff] }
 0x41b   : > { %v11533_v26 = vrot.slane %v6447_v15, %v10548_v39  ;;  %v6237_v27 = vadd.f32 %v6236_v0, %v4307_v18  ;;  %v6168_v28 = vadd.f32 %v6167_v17, %v4306_v19  ;;  %v3437_v29 = vpop.f32.mrb[136].mxu0  ;;  %v9417_v42 = vmov 9   ;;  %v9382_v15 = vld [vmem:[%s13227_s2 + $0x1d8] sm:$0xff] }
 0x41c   : > { %v11536_v55 = vrot.slane %v6448_v21, %v10548_v39  ;;  %v6306_v2 = vadd.f32 %v6305_v45, %v4308_v23  ;;  %v4321_v11 = vand.u32 2147483647, %v3437_v29  ;;  %v3886_v30 = vpop.f32.mrb[136].mxu1  ;;  %v3439_v31 = vpop.f32.mrb[137].mxu0  ;;  %8952 = vmatmul.mubr.msk.f32.gmra.mrb[242].mxu0 %vm411_vm3, %v9379_v35  ;;  %9195 = vset.pattern.permute.xlu0 %v9417_v42 }
 0x41d   : > { %v4323_v47 = vand.u32 2147483647, %v3886_v30  ;;  %v4322_v40 = vand.u32 2147483647, %v3439_v31  ;;  %v3888_v51 = vpop.f32.mrb[137].mxu1  ;;  %9018 = vmatmul.mubr.msk.f32.gmra.mrb[242].mxu1 %vm411_vm3, %v9379_v35  ;;  %3759 = vmatprep.mubr.f32.mxu0 %v9413_v32 }
 0x41e   : > { %v6479_v37 = vcombine.low %v11533_v26, %v11536_v55  ;;  %v6100_v43 = vadd.f32 %v6099_v22, %v4321_v11  ;;  %v4324_v44 = vand.u32 2147483647, %v3888_v51  ;;  %4208 = vmatprep.mubr.f32.mxu1 %v9413_v32  ;;  %7157 = vperm.xlu0 %9195, %v11550_v46   ;;  %v9383_v11 = vld [vmem:[%s13227_s2 + $0x1e0] sm:$0xff] }
 0x41f   : > { %v6238_v48 = vadd.f32 %v6237_v27, %v4323_v47  ;;  %v6169_v59 = vadd.f32 %v6168_v28, %v4322_v40  ;;  %v3443_v49 = vpop.f32.mrb[138].mxu0 }
 0x420   : > { %v6307_v50 = vadd.f32 %v6306_v2, %v4324_v44  ;;  %v4337_v52 = vand.u32 2147483647, %v3443_v49  ;;  %v3892_v53 = vpop.f32.mrb[138].mxu1  ;;  %v3445_v41 = vpop.f32.mrb[139].mxu0  ;;  %8953 = vmatmul.mubr.msk.f32.gmra.mrb[244].mxu0 %vm411_vm3, %v9381_v54 }
 0x421   : > { %v4339_v57 = vand.u32 2147483647, %v3892_v53  ;;  %v4338_v62 = vand.u32 2147483647, %v3445_v41  ;;  %v3894_v63 = vpop.f32.mrb[139].mxu1  ;;  %9019 = vmatmul.mubr.msk.f32.gmra.mrb[244].mxu1 %vm411_vm3, %v9381_v54  ;;  %3765 = vmatprep.mubr.f32.mxu0 %v9413_v32 }
 0x422   : > { %v6101_v0 = vadd.f32 %v6100_v43, %v4337_v52  ;;  %v4340_v1 = vand.u32 2147483647, %v3894_v63  ;;  %4214 = vmatprep.mubr.f32.mxu1 %v9413_v32 }
 0x423   : > { %v6239_v7 = vadd.f32 %v6238_v48, %v4339_v57  ;;  %v6170_v9 = vadd.f32 %v6169_v59, %v4338_v62  ;;  %v3449_v12 = vpop.f32.mrb[140].mxu0 }
 0x424   : > { %v6308_v13 = vadd.f32 %v6307_v50, %v4340_v1  ;;  %v4353_v61 = vand.u32 2147483647, %v3449_v12  ;;  %v3898_v14 = vpop.f32.mrb[140].mxu1  ;;  %v3451_v36 = vpop.f32.mrb[141].mxu0  ;;  %8954 = vmatmul.mubr.msk.f32.gmra.mrb[246].mxu0 %vm411_vm3, %v9382_v15  ;;  %v9384_v50 = vld [vmem:[%s13227_s2 + $0x1e8] sm:$0xff] }
 0x425   : > { %v4355_v17 = vand.u32 2147483647, %v3898_v14  ;;  %v4354_v18 = vand.u32 2147483647, %v3451_v36  ;;  %v3900_v19 = vpop.f32.mrb[141].mxu1  ;;  %9020 = vmatmul.mubr.msk.f32.gmra.mrb[246].mxu1 %vm411_vm3, %v9382_v15  ;;  %3771 = vmatprep.mubr.f32.mxu0 %v9413_v32 }
 0x426   : > { %v6102_v20 = vadd.f32 %v6101_v0, %v4353_v61  ;;  %v4356_v21 = vand.u32 2147483647, %v3900_v19  ;;  %4220 = vmatprep.mubr.f32.mxu1 %v9413_v32 }
 0x427   : > { %v6240_v45 = vadd.f32 %v6239_v7, %v4355_v17  ;;  %v6171_v22 = vadd.f32 %v6170_v9, %v4354_v18  ;;  %v3455_v23 = vpop.f32.mrb[142].mxu0 }
 0x428   : > { %v6309_v27 = vadd.f32 %v6308_v13, %v4356_v21  ;;  %v4369_v28 = vand.u32 2147483647, %v3455_v23  ;;  %v3904_v29 = vpop.f32.mrb[142].mxu1  ;;  %v3457_v2 = vpop.f32.mrb[143].mxu0  ;;  %8955 = vmatmul.mubr.msk.f32.gmra.mrb[248].mxu0 %vm411_vm3, %v9383_v11  ;;  %v9385_v13 = vld [vmem:[%s13227_s2 + $0x1f0] sm:$0xff] }
 0x429   : > { %v4371_v30 = vand.u32 2147483647, %v3904_v29  ;;  %v4370_v31 = vand.u32 2147483647, %v3457_v2  ;;  %v3906_v35 = vpop.f32.mrb[143].mxu1  ;;  %9021 = vmatmul.mubr.msk.f32.gmra.mrb[248].mxu1 %vm411_vm3, %v9383_v11  ;;  %3777 = vmatprep.mubr.f32.mxu0 %v9413_v32 }
 0x42a   : > { %v6103_v42 = vadd.f32 %v6102_v20, %v4369_v28  ;;  %v4372_v47 = vand.u32 2147483647, %v3906_v35  ;;  %4226 = vmatprep.mubr.f32.mxu1 %v9413_v32 }
 0x42b   : > { %v6241_v40 = vadd.f32 %v6240_v45, %v4371_v30  ;;  %v6172_v51 = vadd.f32 %v6171_v22, %v4370_v31  ;;  %v3461_v43 = vpop.f32.mrb[144].mxu0 }
 0x42c   : > { %v6310_v44 = vadd.f32 %v6309_v27, %v4372_v47  ;;  %v4385_v48 = vand.u32 2147483647, %v3461_v43  ;;  %v3910_v59 = vpop.f32.mrb[144].mxu1  ;;  %v3463_v49 = vpop.f32.mrb[145].mxu0  ;;  %8956 = vmatmul.mubr.msk.f32.gmra.mrb[250].mxu0 %vm411_vm3, %v9384_v50  ;;  %v9386_v27 = vld [vmem:[%s13227_s2 + $0x1f8] sm:$0xff] }
 0x42d   : > { %v4387_v52 = vand.u32 2147483647, %v3910_v59  ;;  %v4386_v53 = vand.u32 2147483647, %v3463_v49  ;;  %v3912_v41 = vpop.f32.mrb[145].mxu1  ;;  %9022 = vmatmul.mubr.msk.f32.gmra.mrb[250].mxu1 %vm411_vm3, %v9384_v50  ;;  %3783 = vmatprep.mubr.f32.mxu0 %v9413_v32 }
 0x42e   : > { %v6104_v54 = vadd.f32 %v6103_v42, %v4385_v48  ;;  %v4388_v57 = vand.u32 2147483647, %v3912_v41  ;;  %4232 = vmatprep.mubr.f32.mxu1 %v9413_v32 }
 0x42f   : > { %v6242_v62 = vadd.f32 %v6241_v40, %v4387_v52  ;;  %v6173_v63 = vadd.f32 %v6172_v51, %v4386_v53  ;;  %v3467_v0 = vpop.f32.mrb[146].mxu0 }
 0x430   : > { %v6311_v1 = vadd.f32 %v6310_v44, %v4388_v57  ;;  %v4401_v7 = vand.u32 2147483647, %v3467_v0  ;;  %v3916_v9 = vpop.f32.mrb[146].mxu1  ;;  %v3469_v12 = vpop.f32.mrb[147].mxu0  ;;  %8957 = vmatmul.mubr.msk.f32.gmra.mrb[252].mxu0 %vm411_vm3, %v9385_v13 }
 0x431   : > { %v4403_v61 = vand.u32 2147483647, %v3916_v9  ;;  %v4402_v14 = vand.u32 2147483647, %v3469_v12  ;;  %v3918_v36 = vpop.f32.mrb[147].mxu1  ;;  %9023 = vmatmul.mubr.msk.f32.gmra.mrb[252].mxu1 %vm411_vm3, %v9385_v13  ;;  %3789 = vmatprep.mubr.f32.mxu0 %v9413_v32 }
 0x432   : > { %v6105_v15 = vadd.f32 %v6104_v54, %v4401_v7  ;;  %v4404_v17 = vand.u32 2147483647, %v3918_v36  ;;  %4238 = vmatprep.mubr.f32.mxu1 %v9413_v32 }
 0x433   : > { %v6243_v18 = vadd.f32 %v6242_v62, %v4403_v61  ;;  %v6174_v19 = vadd.f32 %v6173_v63, %v4402_v14  ;;  %v3473_v20 = vpop.f32.mrb[148].mxu0 }
 0x434   : > { %v6312_v21 = vadd.f32 %v6311_v1, %v4404_v17  ;;  %v4417_v45 = vand.u32 2147483647, %v3473_v20  ;;  %v3922_v22 = vpop.f32.mrb[148].mxu1  ;;  %v3475_v23 = vpop.f32.mrb[149].mxu0  ;;  %8958 = vmatmul.mubr.msk.f32.gmra.mrb[254].mxu0 %vm411_vm3, %v9386_v27 }
 0x435   : > { %v4419_v28 = vand.u32 2147483647, %v3922_v22  ;;  %v4418_v29 = vand.u32 2147483647, %v3475_v23  ;;  %v3924_v2 = vpop.f32.mrb[149].mxu1  ;;  %9024 = vmatmul.mubr.msk.f32.gmra.mrb[254].mxu1 %vm411_vm3, %v9386_v27  ;;  %6570 = vmatprep.mubr.f32.mxu0 %v9413_v32 }
 0x436   : > { %v6106_v11 = vadd.f32 %v6105_v15, %v4417_v45  ;;  %v4420_v30 = vand.u32 2147483647, %v3924_v2  ;;  %6641 = vmatprep.mubr.f32.mxu1 %v9413_v32 }
 0x437   : > { %v6244_v31 = vadd.f32 %v6243_v18, %v4419_v28  ;;  %v6175_v35 = vadd.f32 %v6174_v19, %v4418_v29  ;;  %v3479_v42 = vpop.f32.mrb[150].mxu0 }
 0x438   : > { %v6313_v47 = vadd.f32 %v6312_v21, %v4420_v30  ;;  %v4433_v40 = vand.u32 2147483647, %v3479_v42  ;;  %v3928_v51 = vpop.f32.mrb[150].mxu1  ;;  %v3481_v43 = vpop.f32.mrb[151].mxu0  ;;  %9028 = vmatmul.mubr.msk.f32.vlgmr.msra.gmra.mrb[0].mxu0 %vm411_vm3, %v11550_v46 }
 0x439   : > { %v4435_v44 = vand.u32 2147483647, %v3928_v51  ;;  %v4434_v48 = vand.u32 2147483647, %v3481_v43  ;;  %v3930_v59 = vpop.f32.mrb[151].mxu1  ;;  %9031 = vmatmul.mubr.msk.f32.vlgmr.msra.gmra.mrb[0].mxu1 %vm411_vm3, %v11550_v46  ;;  %9123 = vmatpush1.bf16.msk.msra.mxu0 %vm9560_vm2, %v9620_v56 }
 0x43a   : > { %v6107_v49 = vadd.f32 %v6106_v11, %v4433_v40  ;;  %v4436_v50 = vand.u32 2147483647, %v3930_v59  ;;  %9129 = vmatpush1.bf16.msk.msra.mxu1 %vm9560_vm2, %v9631_v58  ;;  %6712 = vmatprep.mubr.f32.mxu0 %v9413_v32 }
 0x43b   : > { %v6245_v52 = vadd.f32 %v6244_v31, %v4435_v44  ;;  %v6176_v53 = vadd.f32 %v6175_v35, %v4434_v48  ;;  %v3485_v41 = vpop.f32.mrb[152].mxu0  ;;  %6783 = vmatprep.mubr.f32.mxu1 %v9413_v32  ;;  %9132 = vmatprep.subr.msk.bf16.mxu0 %vm9560_vm2, %v9893_v34 }
 0x43c   : > { %v6314_v54 = vadd.f32 %v6313_v47, %v4436_v50  ;;  %v4449_v57 = vand.u32 2147483647, %v3485_v41  ;;  %v3934_v56 = vpop.f32.mrb[152].mxu1  ;;  %v3487_v62 = vpop.f32.mrb[153].mxu0  ;;  %9034 = vmatmul.mubr.msk.f32.vlgmr.msra.gmra.mrb[2].mxu0 %vm411_vm3, %v11550_v46  ;;  %9138 = vmatprep.subr.msk.bf16.mxu1 %vm9560_vm2, %v9902_v38 }
 0x43d   : > { %v4451_v58 = vand.u32 2147483647, %v3934_v56  ;;  %v4450_v63 = vand.u32 2147483647, %v3487_v62  ;;  %v3936_v0 = vpop.f32.mrb[153].mxu1  ;;  %9037 = vmatmul.mubr.msk.f32.vlgmr.msra.gmra.mrb[2].mxu1 %vm411_vm3, %v11550_v46  ;;  %9135 = vmatpush1.bf16.msk.msra.mxu0 %vm9560_vm2, %v10126_v3 }
 0x43e   : > { %v6108_v34 = vadd.f32 %v6107_v49, %v4449_v57  ;;  %v4452_v1 = vand.u32 2147483647, %v3936_v0  ;;  %9141 = vmatpush1.bf16.msk.msra.mxu1 %vm9560_vm2, %v10130_v6  ;;  %6854 = vmatprep.mubr.f32.mxu0 %v9413_v32 }
 0x43f   : > { %v6246_v7 = vadd.f32 %v6245_v52, %v4451_v58  ;;  %v6177_v38 = vadd.f32 %v6176_v53, %v4450_v63  ;;  %v3491_v9 = vpop.f32.mrb[154].mxu0  ;;  %6925 = vmatprep.mubr.f32.mxu1 %v9413_v32  ;;  %9144 = vmatprep.subr.msk.bf16.mxu0 %vm9560_vm2, %v10380_v60 }
 0x440   : > { %v6315_v12 = vadd.f32 %v6314_v54, %v4452_v1  ;;  %v4465_v13 = vand.u32 2147483647, %v3491_v9  ;;  %v3940_v3 = vpop.f32.mrb[154].mxu1  ;;  %v3493_v61 = vpop.f32.mrb[155].mxu0  ;;  %9040 = vmatmul.mubr.msk.f32.vlgmr.msra.gmra.mrb[4].mxu0 %vm411_vm3, %v11550_v46  ;;  %9150 = vmatprep.subr.msk.bf16.mxu1 %vm9560_vm2, %v10382_v4 }
 0x441   : > { %v4467_v6 = vand.u32 2147483647, %v3940_v3  ;;  %v4466_v14 = vand.u32 2147483647, %v3493_v61  ;;  %v3942_v36 = vpop.f32.mrb[155].mxu1  ;;  %9043 = vmatmul.mubr.msk.f32.vlgmr.msra.gmra.mrb[4].mxu1 %vm411_vm3, %v11550_v46  ;;  %9147 = vmatpush1.bf16.msk.msra.mxu0 %vm9560_vm2, %v10620_v5 }
 0x442   : > { %v6109_v60 = vadd.f32 %v6108_v34, %v4465_v13  ;;  %v4468_v15 = vand.u32 2147483647, %v3942_v36  ;;  %9153 = vmatpush1.bf16.msk.msra.mxu1 %vm9560_vm2, %v10624_v10  ;;  %6996 = vmatprep.mubr.f32.mxu0 %v9413_v32 }
 0x443   : > { %v6247_v17 = vadd.f32 %v6246_v7, %v4467_v6  ;;  %v6178_v4 = vadd.f32 %v6177_v38, %v4466_v14  ;;  %v3497_v18 = vpop.f32.mrb[156].mxu0  ;;  %7067 = vmatprep.mubr.f32.mxu1 %v9413_v32 }
 0x444   : > { %v6316_v19 = vadd.f32 %v6315_v12, %v4468_v15  ;;  %v4481_v20 = vand.u32 2147483647, %v3497_v18  ;;  %v3946_v21 = vpop.f32.mrb[156].mxu1  ;;  %v3499_v45 = vpop.f32.mrb[157].mxu0  ;;  %9046 = vmatmul.mubr.msk.f32.vlgmr.msra.gmra.mrb[6].mxu0 %vm411_vm3, %v11550_v46 }
 0x445   : > { %v4483_v5 = vand.u32 2147483647, %v3946_v21  ;;  %v4482_v22 = vand.u32 2147483647, %v3499_v45  ;;  %v3948_v23 = vpop.f32.mrb[157].mxu1  ;;  %9049 = vmatmul.mubr.msk.f32.vlgmr.msra.gmra.mrb[6].mxu1 %vm411_vm3, %v11550_v46 }
 0x446   : > { %v6110_v33 = vadd.f32 %v6109_v60, %v4481_v20  ;;  %v4484_v10 = vand.u32 2147483647, %v3948_v23 }
 0x447   : > { %v6248_v27 = vadd.f32 %v6247_v17, %v4483_v5  ;;  %v6179_v28 = vadd.f32 %v6178_v4, %v4482_v22  ;;  %v3503_v29 = vpop.f32.mrb[158].mxu0 }
 0x448   : > { %v6317_v2 = vadd.f32 %v6316_v19, %v4484_v10  ;;  %v4497_v32 = vand.u32 2147483647, %v3503_v29  ;;  %v3952_v11 = vpop.f32.mrb[158].mxu1  ;;  %v3505_v30 = vpop.f32.mrb[159].mxu0 }
 0x449   : > { %v4499_v31 = vand.u32 2147483647, %v3952_v11  ;;  %v4498_v35 = vand.u32 2147483647, %v3505_v30  ;;  %v3954_v42 = vpop.f32.mrb[159].mxu1 }
 0x44a   : > { %v6111_v47 = vadd.f32 %v6110_v33, %v4497_v32  ;;  %v4500_v40 = vand.u32 2147483647, %v3954_v42 }
 0x44b   : > { %v6249_v51 = vadd.f32 %v6248_v27, %v4499_v31  ;;  %v6180_v43 = vadd.f32 %v6179_v28, %v4498_v35  ;;  %v3509_v44 = vpop.f32.mrb[160].mxu0 }
 0x44c   : > { %v6318_v48 = vadd.f32 %v6317_v2, %v4500_v40  ;;  %v4513_v59 = vand.u32 2147483647, %v3509_v44  ;;  %v3958_v46 = vpop.f32.mrb[160].mxu1  ;;  %v3511_v49 = vpop.f32.mrb[161].mxu0 }
 0x44d   : > { %v4515_v50 = vand.u32 2147483647, %v3958_v46  ;;  %v4514_v52 = vand.u32 2147483647, %v3511_v49  ;;  %v3960_v53 = vpop.f32.mrb[161].mxu1 }
 0x44e   : > { %v6112_v41 = vadd.f32 %v6111_v47, %v4513_v59  ;;  %v4516_v54 = vand.u32 2147483647, %v3960_v53 }
 0x44f   : > { %v6250_v57 = vadd.f32 %v6249_v51, %v4515_v50  ;;  %v6181_v56 = vadd.f32 %v6180_v43, %v4514_v52  ;;  %v3515_v62 = vpop.f32.mrb[162].mxu0 }
 0x450   : > { %v6319_v58 = vadd.f32 %v6318_v48, %v4516_v54  ;;  %v4529_v63 = vand.u32 2147483647, %v3515_v62  ;;  %v3964_v0 = vpop.f32.mrb[162].mxu1  ;;  %v3517_v34 = vpop.f32.mrb[163].mxu0 }
 0x451   : > { %v4531_v1 = vand.u32 2147483647, %v3964_v0  ;;  %v4530_v7 = vand.u32 2147483647, %v3517_v34  ;;  %v3966_v38 = vpop.f32.mrb[163].mxu1 }
 0x452   : > { %v6113_v9 = vadd.f32 %v6112_v41, %v4529_v63  ;;  %v4532_v12 = vand.u32 2147483647, %v3966_v38 }
 0x453   : > { %v6251_v13 = vadd.f32 %v6250_v57, %v4531_v1  ;;  %v6182_v3 = vadd.f32 %v6181_v56, %v4530_v7  ;;  %v3521_v61 = vpop.f32.mrb[164].mxu0 }
 0x454   : > { %v6320_v6 = vadd.f32 %v6319_v58, %v4532_v12  ;;  %v4545_v14 = vand.u32 2147483647, %v3521_v61  ;;  %v3970_v36 = vpop.f32.mrb[164].mxu1  ;;  %v3523_v60 = vpop.f32.mrb[165].mxu0 }
 0x455   : > { %v4547_v15 = vand.u32 2147483647, %v3970_v36  ;;  %v4546_v17 = vand.u32 2147483647, %v3523_v60  ;;  %v3972_v4 = vpop.f32.mrb[165].mxu1 }
 0x456   : > { %v6114_v18 = vadd.f32 %v6113_v9, %v4545_v14  ;;  %v4548_v19 = vand.u32 2147483647, %v3972_v4 }
 0x457   : > { %v6252_v20 = vadd.f32 %v6251_v13, %v4547_v15  ;;  %v6183_v21 = vadd.f32 %v6182_v3, %v4546_v17  ;;  %v3527_v45 = vpop.f32.mrb[166].mxu0 }
 0x458   : > { %v6321_v5 = vadd.f32 %v6320_v6, %v4548_v19  ;;  %v4561_v22 = vand.u32 2147483647, %v3527_v45  ;;  %v3976_v23 = vpop.f32.mrb[166].mxu1  ;;  %v3529_v33 = vpop.f32.mrb[167].mxu0 }
 0x459   : > { %v4563_v10 = vand.u32 2147483647, %v3976_v23  ;;  %v4562_v27 = vand.u32 2147483647, %v3529_v33  ;;  %v3978_v28 = vpop.f32.mrb[167].mxu1 }
 0x45a   : > { %v6115_v29 = vadd.f32 %v6114_v18, %v4561_v22  ;;  %v4564_v2 = vand.u32 2147483647, %v3978_v28 }
 0x45b   : > { %v6253_v32 = vadd.f32 %v6252_v20, %v4563_v10  ;;  %v6184_v11 = vadd.f32 %v6183_v21, %v4562_v27  ;;  %v3533_v30 = vpop.f32.mrb[168].mxu0 }
 0x45c   : > { %v6322_v31 = vadd.f32 %v6321_v5, %v4564_v2  ;;  %v4577_v35 = vand.u32 2147483647, %v3533_v30  ;;  %v3982_v42 = vpop.f32.mrb[168].mxu1  ;;  %v3535_v47 = vpop.f32.mrb[169].mxu0 }
 0x45d   : > { %v4579_v40 = vand.u32 2147483647, %v3982_v42  ;;  %v4578_v51 = vand.u32 2147483647, %v3535_v47  ;;  %v3984_v43 = vpop.f32.mrb[169].mxu1 }
 0x45e   : > { %v6116_v44 = vadd.f32 %v6115_v29, %v4577_v35  ;;  %v4580_v48 = vand.u32 2147483647, %v3984_v43 }
 0x45f   : > { %v6254_v59 = vadd.f32 %v6253_v32, %v4579_v40  ;;  %v6185_v46 = vadd.f32 %v6184_v11, %v4578_v51  ;;  %v3539_v49 = vpop.f32.mrb[170].mxu0 }
 0x460   : > { %v6323_v50 = vadd.f32 %v6322_v31, %v4580_v48  ;;  %v4593_v52 = vand.u32 2147483647, %v3539_v49  ;;  %v3988_v53 = vpop.f32.mrb[170].mxu1  ;;  %v3541_v41 = vpop.f32.mrb[171].mxu0 }
 0x461   : > { %v4595_v54 = vand.u32 2147483647, %v3988_v53  ;;  %v4594_v57 = vand.u32 2147483647, %v3541_v41  ;;  %v3990_v56 = vpop.f32.mrb[171].mxu1 }
 0x462   : > { %v6117_v62 = vadd.f32 %v6116_v44, %v4593_v52  ;;  %v4596_v58 = vand.u32 2147483647, %v3990_v56 }
 0x463   : > { %v6255_v63 = vadd.f32 %v6254_v59, %v4595_v54  ;;  %v6186_v0 = vadd.f32 %v6185_v46, %v4594_v57  ;;  %v3545_v34 = vpop.f32.mrb[172].mxu0 }
 0x464   : > { %v6324_v1 = vadd.f32 %v6323_v50, %v4596_v58  ;;  %v4609_v7 = vand.u32 2147483647, %v3545_v34  ;;  %v3994_v38 = vpop.f32.mrb[172].mxu1  ;;  %v3547_v9 = vpop.f32.mrb[173].mxu0 }
 0x465   : > { %v4611_v12 = vand.u32 2147483647, %v3994_v38  ;;  %v4610_v13 = vand.u32 2147483647, %v3547_v9  ;;  %v3996_v3 = vpop.f32.mrb[173].mxu1 }
 0x466   : > { %v6118_v61 = vadd.f32 %v6117_v62, %v4609_v7  ;;  %v4612_v6 = vand.u32 2147483647, %v3996_v3 }
 0x467   : > { %v6256_v14 = vadd.f32 %v6255_v63, %v4611_v12  ;;  %v6187_v36 = vadd.f32 %v6186_v0, %v4610_v13  ;;  %v3551_v60 = vpop.f32.mrb[174].mxu0 }
 0x468   : > { %v6325_v15 = vadd.f32 %v6324_v1, %v4612_v6  ;;  %v4625_v17 = vand.u32 2147483647, %v3551_v60  ;;  %v4000_v4 = vpop.f32.mrb[174].mxu1  ;;  %v3553_v18 = vpop.f32.mrb[175].mxu0 }
 0x469   : > { %v4627_v19 = vand.u32 2147483647, %v4000_v4  ;;  %v4626_v20 = vand.u32 2147483647, %v3553_v18  ;;  %v4002_v21 = vpop.f32.mrb[175].mxu1 }
 0x46a   : > { %v6119_v45 = vadd.f32 %v6118_v61, %v4625_v17  ;;  %v4628_v5 = vand.u32 2147483647, %v4002_v21 }
 0x46b   : > { %v6257_v22 = vadd.f32 %v6256_v14, %v4627_v19  ;;  %v6188_v23 = vadd.f32 %v6187_v36, %v4626_v20  ;;  %v3557_v33 = vpop.f32.mrb[176].mxu0 }
 0x46c   : > { %v6326_v10 = vadd.f32 %v6325_v15, %v4628_v5  ;;  %v4641_v27 = vand.u32 2147483647, %v3557_v33  ;;  %v4006_v28 = vpop.f32.mrb[176].mxu1  ;;  %v3559_v29 = vpop.f32.mrb[177].mxu0 }
 0x46d   : > { %v4643_v2 = vand.u32 2147483647, %v4006_v28  ;;  %v4642_v32 = vand.u32 2147483647, %v3559_v29  ;;  %v4008_v11 = vpop.f32.mrb[177].mxu1 }
 0x46e   : > { %v6120_v30 = vadd.f32 %v6119_v45, %v4641_v27  ;;  %v4644_v31 = vand.u32 2147483647, %v4008_v11 }
 0x46f   : > { %v6258_v35 = vadd.f32 %v6257_v22, %v4643_v2  ;;  %v6189_v42 = vadd.f32 %v6188_v23, %v4642_v32  ;;  %v3563_v47 = vpop.f32.mrb[178].mxu0 }
 0x470   : > { %v6327_v40 = vadd.f32 %v6326_v10, %v4644_v31  ;;  %v4657_v51 = vand.u32 2147483647, %v3563_v47  ;;  %v4012_v43 = vpop.f32.mrb[178].mxu1  ;;  %v3565_v44 = vpop.f32.mrb[179].mxu0 }
 0x471   : > { %v4659_v48 = vand.u32 2147483647, %v4012_v43  ;;  %v4658_v59 = vand.u32 2147483647, %v3565_v44  ;;  %v4014_v46 = vpop.f32.mrb[179].mxu1 }
 0x472   : > { %v6121_v49 = vadd.f32 %v6120_v30, %v4657_v51  ;;  %v4660_v50 = vand.u32 2147483647, %v4014_v46 }
 0x473   : > { %v6259_v52 = vadd.f32 %v6258_v35, %v4659_v48  ;;  %v6190_v53 = vadd.f32 %v6189_v42, %v4658_v59  ;;  %v3569_v41 = vpop.f32.mrb[180].mxu0 }
 0x474   : > { %v6328_v54 = vadd.f32 %v6327_v40, %v4660_v50  ;;  %v4673_v57 = vand.u32 2147483647, %v3569_v41  ;;  %v4018_v56 = vpop.f32.mrb[180].mxu1  ;;  %v3571_v62 = vpop.f32.mrb[181].mxu0 }
 0x475   : > { %v4675_v58 = vand.u32 2147483647, %v4018_v56  ;;  %v4674_v63 = vand.u32 2147483647, %v3571_v62  ;;  %v4020_v0 = vpop.f32.mrb[181].mxu1 }
 0x476   : > { %v6122_v34 = vadd.f32 %v6121_v49, %v4673_v57  ;;  %v4676_v1 = vand.u32 2147483647, %v4020_v0 }
 0x477   : > { %v6260_v7 = vadd.f32 %v6259_v52, %v4675_v58  ;;  %v6191_v38 = vadd.f32 %v6190_v53, %v4674_v63  ;;  %v3575_v9 = vpop.f32.mrb[182].mxu0 }
 0x478   : > { %v6329_v12 = vadd.f32 %v6328_v54, %v4676_v1  ;;  %v4689_v13 = vand.u32 2147483647, %v3575_v9  ;;  %v4024_v3 = vpop.f32.mrb[182].mxu1  ;;  %v3577_v61 = vpop.f32.mrb[183].mxu0 }
 0x479   : > { %v4691_v6 = vand.u32 2147483647, %v4024_v3  ;;  %v4690_v14 = vand.u32 2147483647, %v3577_v61  ;;  %v4026_v36 = vpop.f32.mrb[183].mxu1 }
 0x47a   : > { %v6123_v60 = vadd.f32 %v6122_v34, %v4689_v13  ;;  %v4692_v15 = vand.u32 2147483647, %v4026_v36 }
 0x47b   : > { %v6261_v17 = vadd.f32 %v6260_v7, %v4691_v6  ;;  %v6192_v4 = vadd.f32 %v6191_v38, %v4690_v14  ;;  %v3581_v18 = vpop.f32.mrb[184].mxu0 }
 0x47c   : > { %v6330_v19 = vadd.f32 %v6329_v12, %v4692_v15  ;;  %v4705_v20 = vand.u32 2147483647, %v3581_v18  ;;  %v4030_v21 = vpop.f32.mrb[184].mxu1  ;;  %v3583_v45 = vpop.f32.mrb[185].mxu0 }
 0x47d   : > { %v4707_v5 = vand.u32 2147483647, %v4030_v21  ;;  %v4706_v22 = vand.u32 2147483647, %v3583_v45  ;;  %v4032_v23 = vpop.f32.mrb[185].mxu1 }
 0x47e   : > { %v6124_v33 = vadd.f32 %v6123_v60, %v4705_v20  ;;  %v4708_v10 = vand.u32 2147483647, %v4032_v23 }
 0x47f   : > { %v6262_v27 = vadd.f32 %v6261_v17, %v4707_v5  ;;  %v6193_v28 = vadd.f32 %v6192_v4, %v4706_v22  ;;  %v3587_v29 = vpop.f32.mrb[186].mxu0 }
 0x480   : > { %v6331_v2 = vadd.f32 %v6330_v19, %v4708_v10  ;;  %v4721_v32 = vand.u32 2147483647, %v3587_v29  ;;  %v4036_v11 = vpop.f32.mrb[186].mxu1  ;;  %v3589_v30 = vpop.f32.mrb[187].mxu0 }
 0x481   : > { %v4723_v31 = vand.u32 2147483647, %v4036_v11  ;;  %v4722_v35 = vand.u32 2147483647, %v3589_v30  ;;  %v4038_v42 = vpop.f32.mrb[187].mxu1 }
 0x482   : > { %v6125_v47 = vadd.f32 %v6124_v33, %v4721_v32  ;;  %v4724_v40 = vand.u32 2147483647, %v4038_v42 }
 0x483   : > { %v6263_v51 = vadd.f32 %v6262_v27, %v4723_v31  ;;  %v6194_v43 = vadd.f32 %v6193_v28, %v4722_v35  ;;  %v3593_v44 = vpop.f32.mrb[188].mxu0 }
 0x484   : > { %v6332_v48 = vadd.f32 %v6331_v2, %v4724_v40  ;;  %v4737_v59 = vand.u32 2147483647, %v3593_v44  ;;  %v4042_v46 = vpop.f32.mrb[188].mxu1  ;;  %v3595_v49 = vpop.f32.mrb[189].mxu0 }
 0x485   : > { %v4739_v50 = vand.u32 2147483647, %v4042_v46  ;;  %v4738_v52 = vand.u32 2147483647, %v3595_v49  ;;  %v4044_v53 = vpop.f32.mrb[189].mxu1 }
 0x486   : > { %v6126_v41 = vadd.f32 %v6125_v47, %v4737_v59  ;;  %v4740_v54 = vand.u32 2147483647, %v4044_v53 }
 0x487   : > { %v6264_v57 = vadd.f32 %v6263_v51, %v4739_v50  ;;  %v6195_v56 = vadd.f32 %v6194_v43, %v4738_v52  ;;  %v3599_v62 = vpop.f32.mrb[190].mxu0 }
 0x488   : > { %v6333_v58 = vadd.f32 %v6332_v48, %v4740_v54  ;;  %v4753_v63 = vand.u32 2147483647, %v3599_v62  ;;  %v4048_v0 = vpop.f32.mrb[190].mxu1  ;;  %v3601_v34 = vpop.f32.mrb[191].mxu0 }
 0x489   : > { %v4755_v1 = vand.u32 2147483647, %v4048_v0  ;;  %v4754_v7 = vand.u32 2147483647, %v3601_v34  ;;  %v4050_v38 = vpop.f32.mrb[191].mxu1 }
 0x48a   : > { %v6127_v9 = vadd.f32 %v6126_v41, %v4753_v63  ;;  %v4756_v12 = vand.u32 2147483647, %v4050_v38 }
 0x48b   : > { %v6265_v13 = vadd.f32 %v6264_v57, %v4755_v1  ;;  %v6196_v3 = vadd.f32 %v6195_v56, %v4754_v7  ;;  %v3605_v61 = vpop.f32.mrb[192].mxu0 }
 0x48c   : > { %v6334_v6 = vadd.f32 %v6333_v58, %v4756_v12  ;;  %v4769_v14 = vand.u32 2147483647, %v3605_v61  ;;  %v4054_v36 = vpop.f32.mrb[192].mxu1  ;;  %v3607_v60 = vpop.f32.mrb[193].mxu0 }
 0x48d   : > { %v4771_v15 = vand.u32 2147483647, %v4054_v36  ;;  %v4770_v17 = vand.u32 2147483647, %v3607_v60  ;;  %v4056_v4 = vpop.f32.mrb[193].mxu1 }
 0x48e   : > { %v6128_v18 = vadd.f32 %v6127_v9, %v4769_v14  ;;  %v4772_v19 = vand.u32 2147483647, %v4056_v4 }
 0x48f   : > { %v6266_v20 = vadd.f32 %v6265_v13, %v4771_v15  ;;  %v6197_v21 = vadd.f32 %v6196_v3, %v4770_v17  ;;  %v3611_v45 = vpop.f32.mrb[194].mxu0 }
 0x490   : > { %v6335_v5 = vadd.f32 %v6334_v6, %v4772_v19  ;;  %v4785_v22 = vand.u32 2147483647, %v3611_v45  ;;  %v4060_v23 = vpop.f32.mrb[194].mxu1  ;;  %v3613_v33 = vpop.f32.mrb[195].mxu0 }
 0x491   : > { %v4787_v10 = vand.u32 2147483647, %v4060_v23  ;;  %v4786_v27 = vand.u32 2147483647, %v3613_v33  ;;  %v4062_v28 = vpop.f32.mrb[195].mxu1 }
 0x492   : > { %v6129_v29 = vadd.f32 %v6128_v18, %v4785_v22  ;;  %v4788_v2 = vand.u32 2147483647, %v4062_v28 }
 0x493   : > { %v6267_v32 = vadd.f32 %v6266_v20, %v4787_v10  ;;  %v6198_v11 = vadd.f32 %v6197_v21, %v4786_v27  ;;  %v3617_v30 = vpop.f32.mrb[196].mxu0 }
 0x494   : > { %v6336_v31 = vadd.f32 %v6335_v5, %v4788_v2  ;;  %v4801_v35 = vand.u32 2147483647, %v3617_v30  ;;  %v4066_v42 = vpop.f32.mrb[196].mxu1  ;;  %v3619_v47 = vpop.f32.mrb[197].mxu0 }
 0x495   : > { %v4803_v40 = vand.u32 2147483647, %v4066_v42  ;;  %v4802_v51 = vand.u32 2147483647, %v3619_v47  ;;  %v4068_v43 = vpop.f32.mrb[197].mxu1 }
 0x496   : > { %v6130_v44 = vadd.f32 %v6129_v29, %v4801_v35  ;;  %v4804_v48 = vand.u32 2147483647, %v4068_v43 }
 0x497   : > { %v6268_v59 = vadd.f32 %v6267_v32, %v4803_v40  ;;  %v6199_v46 = vadd.f32 %v6198_v11, %v4802_v51  ;;  %v3623_v49 = vpop.f32.mrb[198].mxu0 }
 0x498   : > { %v6337_v50 = vadd.f32 %v6336_v31, %v4804_v48  ;;  %v4817_v52 = vand.u32 2147483647, %v3623_v49  ;;  %v4072_v53 = vpop.f32.mrb[198].mxu1  ;;  %v3625_v41 = vpop.f32.mrb[199].mxu0 }
 0x499   : > { %v4819_v54 = vand.u32 2147483647, %v4072_v53  ;;  %v4818_v57 = vand.u32 2147483647, %v3625_v41  ;;  %v4074_v56 = vpop.f32.mrb[199].mxu1 }
 0x49a   : > { %v6131_v62 = vadd.f32 %v6130_v44, %v4817_v52  ;;  %v4820_v58 = vand.u32 2147483647, %v4074_v56 }
 0x49b   : > { %v6269_v63 = vadd.f32 %v6268_v59, %v4819_v54  ;;  %v6200_v0 = vadd.f32 %v6199_v46, %v4818_v57  ;;  %v3629_v34 = vpop.f32.mrb[200].mxu0 }
 0x49c   : > { %v6338_v1 = vadd.f32 %v6337_v50, %v4820_v58  ;;  %v4833_v7 = vand.u32 2147483647, %v3629_v34  ;;  %v4078_v38 = vpop.f32.mrb[200].mxu1  ;;  %v3631_v9 = vpop.f32.mrb[201].mxu0 }
 0x49d   : > { %v4835_v12 = vand.u32 2147483647, %v4078_v38  ;;  %v4834_v13 = vand.u32 2147483647, %v3631_v9  ;;  %v4080_v3 = vpop.f32.mrb[201].mxu1 }
 0x49e   : > { %v6132_v61 = vadd.f32 %v6131_v62, %v4833_v7  ;;  %v4836_v6 = vand.u32 2147483647, %v4080_v3 }
 0x49f   : > { %v6270_v14 = vadd.f32 %v6269_v63, %v4835_v12  ;;  %v6201_v36 = vadd.f32 %v6200_v0, %v4834_v13  ;;  %v3635_v60 = vpop.f32.mrb[202].mxu0 }
 0x4a0   : > { %v6339_v15 = vadd.f32 %v6338_v1, %v4836_v6  ;;  %v4849_v17 = vand.u32 2147483647, %v3635_v60  ;;  %v4084_v4 = vpop.f32.mrb[202].mxu1  ;;  %v3637_v18 = vpop.f32.mrb[203].mxu0 }
 0x4a1   : > { %v4851_v19 = vand.u32 2147483647, %v4084_v4  ;;  %v4850_v20 = vand.u32 2147483647, %v3637_v18  ;;  %v4086_v21 = vpop.f32.mrb[203].mxu1 }
 0x4a2   : > { %v6133_v45 = vadd.f32 %v6132_v61, %v4849_v17  ;;  %v4852_v5 = vand.u32 2147483647, %v4086_v21 }
 0x4a3   : > { %v6271_v22 = vadd.f32 %v6270_v14, %v4851_v19  ;;  %v6202_v23 = vadd.f32 %v6201_v36, %v4850_v20  ;;  %v3641_v33 = vpop.f32.mrb[204].mxu0 }
 0x4a4   : > { %v6340_v10 = vadd.f32 %v6339_v15, %v4852_v5  ;;  %v4865_v27 = vand.u32 2147483647, %v3641_v33  ;;  %v4090_v28 = vpop.f32.mrb[204].mxu1  ;;  %v3643_v29 = vpop.f32.mrb[205].mxu0 }
 0x4a5   : > { %v4867_v2 = vand.u32 2147483647, %v4090_v28  ;;  %v4866_v32 = vand.u32 2147483647, %v3643_v29  ;;  %v4092_v11 = vpop.f32.mrb[205].mxu1 }
 0x4a6   : > { %v6134_v30 = vadd.f32 %v6133_v45, %v4865_v27  ;;  %v4868_v31 = vand.u32 2147483647, %v4092_v11 }
 0x4a7   : > { %v6272_v35 = vadd.f32 %v6271_v22, %v4867_v2  ;;  %v6203_v42 = vadd.f32 %v6202_v23, %v4866_v32  ;;  %v3647_v47 = vpop.f32.mrb[206].mxu0 }
 0x4a8   : > { %v6341_v40 = vadd.f32 %v6340_v10, %v4868_v31  ;;  %v4881_v51 = vand.u32 2147483647, %v3647_v47  ;;  %v4096_v43 = vpop.f32.mrb[206].mxu1  ;;  %v3649_v44 = vpop.f32.mrb[207].mxu0 }
 0x4a9   : > { %v4883_v48 = vand.u32 2147483647, %v4096_v43  ;;  %v4882_v59 = vand.u32 2147483647, %v3649_v44  ;;  %v4098_v46 = vpop.f32.mrb[207].mxu1 }
 0x4aa   : > { %v6135_v49 = vadd.f32 %v6134_v30, %v4881_v51  ;;  %v4884_v50 = vand.u32 2147483647, %v4098_v46 }
 0x4ab   : > { %v6273_v52 = vadd.f32 %v6272_v35, %v4883_v48  ;;  %v6204_v53 = vadd.f32 %v6203_v42, %v4882_v59  ;;  %v3653_v41 = vpop.f32.mrb[208].mxu0 }
 0x4ac   : > { %v6342_v54 = vadd.f32 %v6341_v40, %v4884_v50  ;;  %v4897_v57 = vand.u32 2147483647, %v3653_v41  ;;  %v4102_v56 = vpop.f32.mrb[208].mxu1  ;;  %v3655_v62 = vpop.f32.mrb[209].mxu0 }
 0x4ad   : > { %v4899_v58 = vand.u32 2147483647, %v4102_v56  ;;  %v4898_v63 = vand.u32 2147483647, %v3655_v62  ;;  %v4104_v0 = vpop.f32.mrb[209].mxu1 }
 0x4ae   : > { %v6136_v34 = vadd.f32 %v6135_v49, %v4897_v57  ;;  %v4900_v1 = vand.u32 2147483647, %v4104_v0 }
 0x4af   : > { %v6274_v7 = vadd.f32 %v6273_v52, %v4899_v58  ;;  %v6205_v38 = vadd.f32 %v6204_v53, %v4898_v63  ;;  %v3659_v9 = vpop.f32.mrb[210].mxu0 }
 0x4b0   : > { %v6343_v12 = vadd.f32 %v6342_v54, %v4900_v1  ;;  %v4913_v13 = vand.u32 2147483647, %v3659_v9  ;;  %v4108_v3 = vpop.f32.mrb[210].mxu1  ;;  %v3661_v61 = vpop.f32.mrb[211].mxu0 }
 0x4b1   : > { %v4915_v6 = vand.u32 2147483647, %v4108_v3  ;;  %v4914_v14 = vand.u32 2147483647, %v3661_v61  ;;  %v4110_v36 = vpop.f32.mrb[211].mxu1 }
 0x4b2   : > { %v6137_v60 = vadd.f32 %v6136_v34, %v4913_v13  ;;  %v4916_v15 = vand.u32 2147483647, %v4110_v36 }
 0x4b3   : > { %v6275_v17 = vadd.f32 %v6274_v7, %v4915_v6  ;;  %v6206_v4 = vadd.f32 %v6205_v38, %v4914_v14  ;;  %v3665_v18 = vpop.f32.mrb[212].mxu0 }
 0x4b4   : > { %v6344_v19 = vadd.f32 %v6343_v12, %v4916_v15  ;;  %v4929_v20 = vand.u32 2147483647, %v3665_v18  ;;  %v4114_v21 = vpop.f32.mrb[212].mxu1  ;;  %v3667_v45 = vpop.f32.mrb[213].mxu0 }
 0x4b5   : > { %v4931_v5 = vand.u32 2147483647, %v4114_v21  ;;  %v4930_v22 = vand.u32 2147483647, %v3667_v45  ;;  %v4116_v23 = vpop.f32.mrb[213].mxu1 }
 0x4b6   : > { %v6138_v33 = vadd.f32 %v6137_v60, %v4929_v20  ;;  %v4932_v10 = vand.u32 2147483647, %v4116_v23 }
 0x4b7   : > { %v6276_v27 = vadd.f32 %v6275_v17, %v4931_v5  ;;  %v6207_v28 = vadd.f32 %v6206_v4, %v4930_v22  ;;  %v3671_v29 = vpop.f32.mrb[214].mxu0 }
 0x4b8   : > { %v6345_v2 = vadd.f32 %v6344_v19, %v4932_v10  ;;  %v4945_v32 = vand.u32 2147483647, %v3671_v29  ;;  %v4120_v11 = vpop.f32.mrb[214].mxu1  ;;  %v3673_v30 = vpop.f32.mrb[215].mxu0 }
 0x4b9   : > { %v4947_v31 = vand.u32 2147483647, %v4120_v11  ;;  %v4946_v35 = vand.u32 2147483647, %v3673_v30  ;;  %v4122_v42 = vpop.f32.mrb[215].mxu1 }
 0x4ba   : > { %v6139_v47 = vadd.f32 %v6138_v33, %v4945_v32  ;;  %v4948_v40 = vand.u32 2147483647, %v4122_v42 }
 0x4bb   : > { %v6277_v51 = vadd.f32 %v6276_v27, %v4947_v31  ;;  %v6208_v43 = vadd.f32 %v6207_v28, %v4946_v35  ;;  %v3677_v44 = vpop.f32.mrb[216].mxu0 }
 0x4bc   : > { %v6346_v48 = vadd.f32 %v6345_v2, %v4948_v40  ;;  %v4961_v59 = vand.u32 2147483647, %v3677_v44  ;;  %v4126_v46 = vpop.f32.mrb[216].mxu1  ;;  %v3679_v49 = vpop.f32.mrb[217].mxu0 }
 0x4bd   : > { %v4963_v50 = vand.u32 2147483647, %v4126_v46  ;;  %v4962_v52 = vand.u32 2147483647, %v3679_v49  ;;  %v4128_v53 = vpop.f32.mrb[217].mxu1 }
 0x4be   : > { %v6140_v41 = vadd.f32 %v6139_v47, %v4961_v59  ;;  %v4964_v54 = vand.u32 2147483647, %v4128_v53 }
 0x4bf   : > { %v6278_v57 = vadd.f32 %v6277_v51, %v4963_v50  ;;  %v6209_v56 = vadd.f32 %v6208_v43, %v4962_v52  ;;  %v3683_v62 = vpop.f32.mrb[218].mxu0 }
 0x4c0   : > { %v6347_v58 = vadd.f32 %v6346_v48, %v4964_v54  ;;  %v4977_v63 = vand.u32 2147483647, %v3683_v62  ;;  %v4132_v0 = vpop.f32.mrb[218].mxu1  ;;  %v3685_v34 = vpop.f32.mrb[219].mxu0 }
 0x4c1   : > { %v4979_v1 = vand.u32 2147483647, %v4132_v0  ;;  %v4978_v7 = vand.u32 2147483647, %v3685_v34  ;;  %v4134_v38 = vpop.f32.mrb[219].mxu1 }
 0x4c2   : > { %v6141_v9 = vadd.f32 %v6140_v41, %v4977_v63  ;;  %v4980_v12 = vand.u32 2147483647, %v4134_v38 }
 0x4c3   : > { %v6279_v13 = vadd.f32 %v6278_v57, %v4979_v1  ;;  %v6210_v3 = vadd.f32 %v6209_v56, %v4978_v7  ;;  %v3689_v61 = vpop.f32.mrb[220].mxu0 }
 0x4c4   : > { %v6348_v6 = vadd.f32 %v6347_v58, %v4980_v12  ;;  %v4993_v14 = vand.u32 2147483647, %v3689_v61  ;;  %v4138_v36 = vpop.f32.mrb[220].mxu1  ;;  %v3691_v60 = vpop.f32.mrb[221].mxu0 }
 0x4c5   : > { %v4995_v15 = vand.u32 2147483647, %v4138_v36  ;;  %v4994_v17 = vand.u32 2147483647, %v3691_v60  ;;  %v4140_v4 = vpop.f32.mrb[221].mxu1 }
 0x4c6   : > { %v6142_v18 = vadd.f32 %v6141_v9, %v4993_v14  ;;  %v4996_v19 = vand.u32 2147483647, %v4140_v4 }
 0x4c7   : > { %v6280_v20 = vadd.f32 %v6279_v13, %v4995_v15  ;;  %v6211_v21 = vadd.f32 %v6210_v3, %v4994_v17  ;;  %v3695_v45 = vpop.f32.mrb[222].mxu0 }
 0x4c8   : > { %v6349_v5 = vadd.f32 %v6348_v6, %v4996_v19  ;;  %v5009_v22 = vand.u32 2147483647, %v3695_v45  ;;  %v4144_v23 = vpop.f32.mrb[222].mxu1  ;;  %v3697_v33 = vpop.f32.mrb[223].mxu0 }
 0x4c9   : > { %v5011_v10 = vand.u32 2147483647, %v4144_v23  ;;  %v5010_v27 = vand.u32 2147483647, %v3697_v33  ;;  %v4146_v28 = vpop.f32.mrb[223].mxu1 }
 0x4ca   : > { %v6143_v29 = vadd.f32 %v6142_v18, %v5009_v22  ;;  %v5012_v2 = vand.u32 2147483647, %v4146_v28 }
 0x4cb   : > { %v6281_v32 = vadd.f32 %v6280_v20, %v5011_v10  ;;  %v6212_v11 = vadd.f32 %v6211_v21, %v5010_v27  ;;  %v3701_v30 = vpop.f32.mrb[224].mxu0 }
 0x4cc   : > { %v6350_v31 = vadd.f32 %v6349_v5, %v5012_v2  ;;  %v5025_v35 = vand.u32 2147483647, %v3701_v30  ;;  %v4150_v42 = vpop.f32.mrb[224].mxu1  ;;  %v3703_v47 = vpop.f32.mrb[225].mxu0 }
 0x4cd   : > { %v5027_v40 = vand.u32 2147483647, %v4150_v42  ;;  %v5026_v51 = vand.u32 2147483647, %v3703_v47  ;;  %v4152_v43 = vpop.f32.mrb[225].mxu1 }
 0x4ce   : > { %v6144_v44 = vadd.f32 %v6143_v29, %v5025_v35  ;;  %v5028_v48 = vand.u32 2147483647, %v4152_v43 }
 0x4cf   : > { %v6282_v59 = vadd.f32 %v6281_v32, %v5027_v40  ;;  %v6213_v46 = vadd.f32 %v6212_v11, %v5026_v51  ;;  %v3707_v49 = vpop.f32.mrb[226].mxu0 }
 0x4d0   : > { %v6351_v50 = vadd.f32 %v6350_v31, %v5028_v48  ;;  %v5041_v52 = vand.u32 2147483647, %v3707_v49  ;;  %v4156_v53 = vpop.f32.mrb[226].mxu1  ;;  %v3709_v41 = vpop.f32.mrb[227].mxu0 }
 0x4d1   : > { %v5043_v54 = vand.u32 2147483647, %v4156_v53  ;;  %v5042_v57 = vand.u32 2147483647, %v3709_v41  ;;  %v4158_v56 = vpop.f32.mrb[227].mxu1 }
 0x4d2   : > { %v6145_v62 = vadd.f32 %v6144_v44, %v5041_v52  ;;  %v5044_v58 = vand.u32 2147483647, %v4158_v56 }
 0x4d3   : > { %v6283_v63 = vadd.f32 %v6282_v59, %v5043_v54  ;;  %v6214_v0 = vadd.f32 %v6213_v46, %v5042_v57  ;;  %v3713_v34 = vpop.f32.mrb[228].mxu0 }
 0x4d4   : > { %v6352_v1 = vadd.f32 %v6351_v50, %v5044_v58  ;;  %v5057_v7 = vand.u32 2147483647, %v3713_v34  ;;  %v4162_v38 = vpop.f32.mrb[228].mxu1  ;;  %v3715_v9 = vpop.f32.mrb[229].mxu0 }
 0x4d5   : > { %v5059_v12 = vand.u32 2147483647, %v4162_v38  ;;  %v5058_v13 = vand.u32 2147483647, %v3715_v9  ;;  %v4164_v3 = vpop.f32.mrb[229].mxu1 }
 0x4d6   : > { %v6146_v61 = vadd.f32 %v6145_v62, %v5057_v7  ;;  %v5060_v6 = vand.u32 2147483647, %v4164_v3 }
 0x4d7   : > { %v6284_v14 = vadd.f32 %v6283_v63, %v5059_v12  ;;  %v6215_v36 = vadd.f32 %v6214_v0, %v5058_v13  ;;  %v3719_v60 = vpop.f32.mrb[230].mxu0 }
 0x4d8   : > { %v6353_v15 = vadd.f32 %v6352_v1, %v5060_v6  ;;  %v5073_v17 = vand.u32 2147483647, %v3719_v60  ;;  %v4168_v4 = vpop.f32.mrb[230].mxu1  ;;  %v3721_v18 = vpop.f32.mrb[231].mxu0 }
 0x4d9   : > { %v5075_v19 = vand.u32 2147483647, %v4168_v4  ;;  %v5074_v20 = vand.u32 2147483647, %v3721_v18  ;;  %v4170_v21 = vpop.f32.mrb[231].mxu1 }
 0x4da   : > { %v6147_v45 = vadd.f32 %v6146_v61, %v5073_v17  ;;  %v5076_v5 = vand.u32 2147483647, %v4170_v21 }
 0x4db   : > { %v6285_v22 = vadd.f32 %v6284_v14, %v5075_v19  ;;  %v6216_v23 = vadd.f32 %v6215_v36, %v5074_v20  ;;  %v3725_v33 = vpop.f32.mrb[232].mxu0 }
 0x4dc   : > { %v6354_v10 = vadd.f32 %v6353_v15, %v5076_v5  ;;  %v5089_v27 = vand.u32 2147483647, %v3725_v33  ;;  %v4174_v28 = vpop.f32.mrb[232].mxu1  ;;  %v3727_v29 = vpop.f32.mrb[233].mxu0 }
 0x4dd   : > { %v5091_v2 = vand.u32 2147483647, %v4174_v28  ;;  %v5090_v32 = vand.u32 2147483647, %v3727_v29  ;;  %v4176_v11 = vpop.f32.mrb[233].mxu1 }
 0x4de   : > { %v6148_v30 = vadd.f32 %v6147_v45, %v5089_v27  ;;  %v5092_v31 = vand.u32 2147483647, %v4176_v11 }
 0x4df   : > { %v6286_v35 = vadd.f32 %v6285_v22, %v5091_v2  ;;  %v6217_v42 = vadd.f32 %v6216_v23, %v5090_v32  ;;  %v3731_v47 = vpop.f32.mrb[234].mxu0 }
 0x4e0   : > { %v6355_v40 = vadd.f32 %v6354_v10, %v5092_v31  ;;  %v5105_v51 = vand.u32 2147483647, %v3731_v47  ;;  %v4180_v43 = vpop.f32.mrb[234].mxu1  ;;  %v3733_v44 = vpop.f32.mrb[235].mxu0 }
 0x4e1   : > { %v5107_v48 = vand.u32 2147483647, %v4180_v43  ;;  %v5106_v59 = vand.u32 2147483647, %v3733_v44  ;;  %v4182_v46 = vpop.f32.mrb[235].mxu1 }
 0x4e2   : > { %v6149_v49 = vadd.f32 %v6148_v30, %v5105_v51  ;;  %v5108_v50 = vand.u32 2147483647, %v4182_v46 }
 0x4e3   : > { %v6287_v52 = vadd.f32 %v6286_v35, %v5107_v48  ;;  %v6218_v53 = vadd.f32 %v6217_v42, %v5106_v59  ;;  %v3737_v41 = vpop.f32.mrb[236].mxu0 }
 0x4e4   : > { %v6356_v54 = vadd.f32 %v6355_v40, %v5108_v50  ;;  %v5121_v57 = vand.u32 2147483647, %v3737_v41  ;;  %v4186_v56 = vpop.f32.mrb[236].mxu1  ;;  %v3739_v62 = vpop.f32.mrb[237].mxu0  ;;  %v11648_v41 = vld [vmem:[%s11047_s6 + $0x8] sm:$0xff]  ;;  %s11751_s6 = scalar_lea.vmem [#allocation2], %s9056_s9 }
 0x4e5   : > { %v5123_v58 = vand.u32 2147483647, %v4186_v56  ;;  %v5122_v63 = vand.u32 2147483647, %v3739_v62  ;;  %v4188_v0 = vpop.f32.mrb[237].mxu1  ;;  %vm345_vm5 = vcmp.gt.f32.partialorder %v11648_v41, 0.5 }
 0x4e6   : > { %v6150_v34 = vadd.f32 %v6149_v49, %v5121_v57  ;;  %v5124_v1 = vand.u32 2147483647, %v4188_v0 }
 0x4e7   : > { %v6288_v7 = vadd.f32 %v6287_v52, %v5123_v58  ;;  %v6219_v38 = vadd.f32 %v6218_v53, %v5122_v63  ;;  %v3743_v9 = vpop.f32.mrb[238].mxu0 }
 0x4e8   : > { %v6357_v12 = vadd.f32 %v6356_v54, %v5124_v1  ;;  %v5137_v13 = vand.u32 2147483647, %v3743_v9  ;;  %v4192_v3 = vpop.f32.mrb[238].mxu1  ;;  %v3745_v61 = vpop.f32.mrb[239].mxu0 }
 0x4e9   : > { %v5139_v6 = vand.u32 2147483647, %v4192_v3  ;;  %v5138_v14 = vand.u32 2147483647, %v3745_v61  ;;  %v4194_v36 = vpop.f32.mrb[239].mxu1 }
 0x4ea   : > { %v6151_v60 = vadd.f32 %v6150_v34, %v5137_v13  ;;  %v5140_v15 = vand.u32 2147483647, %v4194_v36 }
 0x4eb   : > { %v6289_v17 = vadd.f32 %v6288_v7, %v5139_v6  ;;  %v6220_v4 = vadd.f32 %v6219_v38, %v5138_v14  ;;  %v3749_v18 = vpop.f32.mrb[240].mxu0  ;;  %v9418_v14 = vmov 0  }
 0x4ec   : > { %v6358_v19 = vadd.f32 %v6357_v12, %v5140_v15  ;;  %v5153_v20 = vand.u32 2147483647, %v3749_v18  ;;  %v4198_v21 = vpop.f32.mrb[240].mxu1  ;;  %v3751_v45 = vpop.f32.mrb[241].mxu0  ;;  %v11653_v36 = vsel %vm344_vm4, 1, %v9418_v14 }
 0x4ed   : > { %v5155_v5 = vand.u32 2147483647, %v4198_v21  ;;  %v5154_v22 = vand.u32 2147483647, %v3751_v45  ;;  %v4200_v23 = vpop.f32.mrb[241].mxu1  ;;  %v11660_v45 = vsub.s32 1, %v10532_v24 }
 0x4ee   : > { %v6152_v33 = vadd.f32 %v6151_v60, %v5153_v20  ;;  %v5156_v10 = vand.u32 2147483647, %v4200_v23  ;;  %v11657_v60 = vsel %vm345_vm5, 1, %v9418_v14  ;;  %v11666_v23 = vsub.s32 4, %v10532_v24 }
 0x4ef   : > { %v6290_v27 = vadd.f32 %v6289_v17, %v5155_v5  ;;  %v6221_v28 = vadd.f32 %v6220_v4, %v5154_v22  ;;  %v3755_v29 = vpop.f32.mrb[242].mxu0  ;;  %13336 = vst [vmem:[#allocation8_spill] sm:$0xff] %v11660_v45 }
 0x4f0   : > { %v6359_v2 = vadd.f32 %v6358_v19, %v5156_v10  ;;  %v5169_v32 = vand.u32 2147483647, %v3755_v29  ;;  %v4204_v11 = vpop.f32.mrb[242].mxu1  ;;  %v3757_v30 = vpop.f32.mrb[243].mxu0  ;;  %13338 = vst [vmem:[#allocation10_spill] sm:$0xff] %v11666_v23  ;;  %v11671_v29 = vsub.s32 2, %v10532_v24 }
 0x4f1   : > { %v5171_v31 = vand.u32 2147483647, %v4204_v11  ;;  %v5170_v35 = vand.u32 2147483647, %v3757_v30  ;;  %v4206_v42 = vpop.f32.mrb[243].mxu1 }
 0x4f2   : > { %v6153_v47 = vadd.f32 %v6152_v33, %v5169_v32  ;;  %v5172_v40 = vand.u32 2147483647, %v4206_v42  ;;  %v7079_v33 = vrot.slane %v11653_v36, %v11055_v8  ;;  %13339 = vst [vmem:[#allocation11_spill] sm:$0xff] %v11671_v29 }
 0x4f3   : > { %v6291_v51 = vadd.f32 %v6290_v27, %v5171_v31  ;;  %v6222_v43 = vadd.f32 %v6221_v28, %v5170_v35  ;;  %v3761_v44 = vpop.f32.mrb[244].mxu0  ;;  %v11674_v31 = vsub.s32 6, %v10532_v24  ;;  %v11677_v35 = vsub.s32 5, %v10532_v24 }
 0x4f4   : > { %v6360_v48 = vadd.f32 %v6359_v2, %v5172_v40  ;;  %v5185_v59 = vand.u32 2147483647, %v3761_v44  ;;  %v4210_v46 = vpop.f32.mrb[244].mxu1  ;;  %v3763_v49 = vpop.f32.mrb[245].mxu0  ;;  %vm11688_vm6 = vcmp.eq.s32.totalorder %v7079_v33, 1 }
 0x4f5   : > { %v5187_v50 = vand.u32 2147483647, %v4210_v46  ;;  %v5186_v52 = vand.u32 2147483647, %v3763_v49  ;;  %v4212_v53 = vpop.f32.mrb[245].mxu1  ;;  %13340 = vst [vmem:[#allocation12_spill] sm:$0xff] %v11677_v35  ;;  %v7095_v46 = vrot.slane %v11653_v36, %v11666_v23 }
 0x4f6   : > { %v6154_v54 = vadd.f32 %v6153_v47, %v5185_v59  ;;  %v5188_v57 = vand.u32 2147483647, %v4212_v53  ;;  %v7091_v59 = vrot.slane %v11653_v36, %v11663_v16 }
 0x4f7   : > { %v6292_v56 = vadd.f32 %v6291_v51, %v5187_v50  ;;  %v6223_v62 = vadd.f32 %v6222_v43, %v5186_v52  ;;  %v3767_v58 = vpop.f32.mrb[246].mxu0  ;;  %v7083_v51 = vrot.slane %v11653_v36, %v11660_v45  ;;  %v11682_v43 = vsub.s32 7, %v10532_v24 }
 0x4f8   : > { %v6361_v63 = vadd.f32 %v6360_v48, %v5188_v57  ;;  %v5201_v0 = vand.u32 2147483647, %v3767_v58  ;;  %v4216_v34 = vpop.f32.mrb[246].mxu1  ;;  %v3769_v1 = vpop.f32.mrb[247].mxu0  ;;  %vm11704_vm8 = vcmp.eq.s32.totalorder %v7091_v59, 1  ;;  %vm11708_vm9 = vcmp.eq.s32.totalorder %v7095_v46, 1 }
 0x4f9   : > { %v5203_v7 = vand.u32 2147483647, %v4216_v34  ;;  %v5202_v38 = vand.u32 2147483647, %v3769_v1  ;;  %v4218_v9 = vpop.f32.mrb[247].mxu1  ;;  %13341 = vst [vmem:[#allocation13_spill] sm:$0xff] %v11682_v43 }
 0x4fa   : > { %v6155_v12 = vadd.f32 %v6154_v54, %v5201_v0  ;;  %v5204_v13 = vand.u32 2147483647, %v4218_v9  ;;  %v7087_v54 = vrot.slane %v11653_v36, %v11671_v29  ;;  %v7099_v0 = vrot.slane %v11653_v36, %v11677_v35 }
 0x4fb   : > { %v6293_v3 = vadd.f32 %v6292_v56, %v5203_v7  ;;  %v6224_v61 = vadd.f32 %v6223_v62, %v5202_v38  ;;  %v3773_v6 = vpop.f32.mrb[248].mxu0  ;;  %vm11698_vm7 = vcmp.eq.s32.totalorder %v7083_v51, 1  ;;  %v7107_v9 = vrot.slane %v11653_v36, %v11682_v43 }
 0x4fc   : > { %v6362_v15 = vadd.f32 %v6361_v63, %v5204_v13  ;;  %v5217_v17 = vand.u32 2147483647, %v3773_v6  ;;  %v4222_v4 = vpop.f32.mrb[248].mxu1  ;;  %v3775_v18 = vpop.f32.mrb[249].mxu0  ;;  %v7103_v63 = vrot.slane %v11653_v36, %v11674_v31  ;;  %vm11720_vm11 = vcmp.eq.s32.totalorder %v7099_v0, 1 }
 0x4fd   : > { %v5219_v19 = vand.u32 2147483647, %v4222_v4  ;;  %v5218_v20 = vand.u32 2147483647, %v3775_v18  ;;  %v4224_v21 = vpop.f32.mrb[249].mxu1  ;;  %v7119_v4 = vrot.slane %v11657_v60, %v11671_v29  ;;  %vm11726_vm12 = vcmp.eq.s32.totalorder %v7107_v9, 1 }
 0x4fe   : > { %v6156_v5 = vadd.f32 %v6155_v12, %v5217_v17  ;;  %v5220_v22 = vand.u32 2147483647, %v4224_v21  ;;  %v7111_v17 = vrot.slane %v11657_v60, %v11055_v8  ;;  %vm11716_vm10 = vcmp.eq.s32.totalorder %v7103_v63, 1 }
 0x4ff   : > { %v6294_v10 = vadd.f32 %v6293_v3, %v5219_v19  ;;  %v6225_v27 = vadd.f32 %v6224_v61, %v5218_v20  ;;  %v3779_v28 = vpop.f32.mrb[250].mxu0  ;;  %vm11730_vm13 = vcmp.eq.s32.totalorder %v7087_v54, 1  ;;  %vm11740_vm15 = vcmp.eq.s32.totalorder %v7119_v4, 1 }
 0x500   : > { %v6363_v2 = vadd.f32 %v6362_v15, %v5220_v22  ;;  %v5233_v32 = vand.u32 2147483647, %v3779_v28  ;;  %v4228_v11 = vpop.f32.mrb[250].mxu1  ;;  %v3781_v30 = vpop.f32.mrb[251].mxu0  ;;  %vm11736_vm14 = vcmp.eq.s32.totalorder %v7111_v17, 1  ;;  %v7127_v9 = vrot.slane %v11657_v60, %v11666_v23 }
 0x501   : > { %v5235_v42 = vand.u32 2147483647, %v4228_v11  ;;  %v5234_v47 = vand.u32 2147483647, %v3781_v30  ;;  %v4230_v40 = vpop.f32.mrb[251].mxu1  ;;  %v7115_v30 = vrot.slane %v11657_v60, %v11660_v45  ;;  %v7139_v11 = vrot.slane %v11657_v60, %v11682_v43 }
 0x502   : > { %v6157_v44 = vadd.f32 %v6156_v5, %v5233_v32  ;;  %v5236_v48 = vand.u32 2147483647, %v4230_v40  ;;  %vm11796_vm3 = vcmp.eq.s32.totalorder %v7127_v9, 1 }
 0x503   : > { %v6295_v50 = vadd.f32 %v6294_v10, %v5235_v42  ;;  %v6226_v52 = vadd.f32 %v6225_v27, %v5234_v47  ;;  %v3785_v53 = vpop.f32.mrb[252].mxu0  ;;  %v11724_v27 = vpop.permute.xlu0 %7157  ;;  %vm11765_vm1 = vcmp.eq.s32.totalorder %v7115_v30, 1 }
 0x504   : > { %v6364_v57 = vadd.f32 %v6363_v2, %v5236_v48  ;;  %v5249_v56 = vand.u32 2147483647, %v3785_v53  ;;  %v4234_v62 = vpop.f32.mrb[252].mxu1  ;;  %v3787_v58 = vpop.f32.mrb[253].mxu0  ;;  %v7123_v53 = vrot.slane %v11657_v60, %v11663_v16 }
 0x505   : > { %v5251_v34 = vand.u32 2147483647, %v4234_v62  ;;  %v5250_v1 = vand.u32 2147483647, %v3787_v58  ;;  %v4236_v7 = vpop.f32.mrb[253].mxu1 }
 0x506   : > { %v6158_v12 = vadd.f32 %v6157_v44, %v5249_v56  ;;  %v5252_v13 = vand.u32 2147483647, %v4236_v7  ;;  %vm11777_vm2 = vcmp.eq.s32.totalorder %v7123_v53, 1 }
 0x507   : > { %v6296_v6 = vadd.f32 %v6295_v50, %v5251_v34  ;;  %v6227_v14 = vadd.f32 %v6226_v52, %v5250_v1  ;;  %v3791_v15 = vpop.f32.mrb[254].mxu0 }
 0x508   : > { %v6365_v36 = vadd.f32 %v6364_v57, %v5252_v13  ;;  %v5265_v18 = vand.u32 2147483647, %v3791_v15  ;;  %v4240_v19 = vpop.f32.mrb[254].mxu1  ;;  %v3793_v20 = vpop.f32.mrb[255].mxu0 }
 0x509   : > { %v5267_v22 = vand.u32 2147483647, %v4240_v19  ;;  %v5266_v33 = vand.u32 2147483647, %v3793_v20  ;;  %v4242_v10 = vpop.f32.mrb[255].mxu1 }
 0x50a   : > { %v6159_v2 = vadd.f32 %v6158_v12, %v5265_v18  ;;  %v5268_v32 = vand.u32 2147483647, %v4242_v10  ;;  %v7135_v12 = vrot.slane %v11657_v60, %v11674_v31  ;;  %v7131_v10 = vrot.slane %v11657_v60, %v11677_v35 }
 0x50b   : > { %v6297_v42 = vadd.f32 %v6296_v6, %v5267_v22  ;;  %v6228_v47 = vadd.f32 %v6227_v14, %v5266_v33  ;;  %v6572_v40 = vpop.f32.mrb[0].mxu0 }
 0x50c   : > { %v6160_v48 = vrot.slane %v6159_v2, 4  ;;  %v6366_v59 = vadd.f32 %v6365_v36, %v5268_v32  ;;  %v6643_v46 = vpop.f32.mrb[0].mxu1  ;;  %v7160_v50 = vsel %vm11688_vm6, %v11724_v27, %v6572_v40  ;;  %v6574_v52 = vpop.f32.mrb[1].mxu0  ;;  %vm11805_vm4 = vcmp.eq.s32.totalorder %v7135_v12, 1 }
 0x50d   : > { %v6298_v54 = vrot.slane %v6297_v42, 4  ;;  %v6229_v57 = vrot.slane %v6228_v47, 4  ;;  %7178 = vst [vmem:[%s11751_s6] sm:$0xff] %v7160_v50  ;;  %v7161_v56 = vsel %vm11698_vm7, %v11724_v27, %v6574_v52  ;;  %v6645_v49 = vpop.f32.mrb[1].mxu1  ;;  %v7162_v62 = vsel %vm11730_vm13, %v11724_v27, %v6643_v46 }
 0x50e   : > { %v6161_v58 = vadd.f32 %v6160_v48, %v6159_v2  ;;  %v6367_v63 = vrot.slane %v6366_v59, 4  ;;  %7179 = vst [vmem:[%s11751_s6 + $0x8] sm:$0xff] %v7161_v56  ;;  %v7163_v0 = vsel %vm11704_vm8, %v11724_v27, %v6645_v49  ;;  %7180 = vst [vmem:[%s11751_s6 + $0x10] sm:$0xff] %v7162_v62  ;;  %vm11821_vm6 = vcmp.eq.s32.totalorder %v7131_v10, 1 }
 0x50f   : > { %v6299_v1 = vadd.f32 %v6298_v54, %v6297_v42  ;;  %v6230_v7 = vadd.f32 %v6229_v57, %v6228_v47  ;;  %7181 = vst [vmem:[%s11751_s6 + $0x18] sm:$0xff] %v7163_v0  ;;  %v6714_v38 = vpop.f32.mrb[2].mxu0  ;;  %vm7155_vm7 = vcmp.eq.s32.totalorder %v7139_v11, 1 }
 0x510   : > { %v6162_v13 = vrot.slane %v6161_v58, 2  ;;  %v6368_v3 = vadd.f32 %v6367_v63, %v6366_v59  ;;  %v7164_v6 = vsel %vm11708_vm9, %v11724_v27, %v6714_v38  ;;  %v6785_v14 = vpop.f32.mrb[2].mxu1  ;;  %v6716_v15 = vpop.f32.mrb[3].mxu0 }
 0x511   : > { %v6300_v4 = vrot.slane %v6299_v1, 2  ;;  %v6231_v36 = vrot.slane %v6230_v7, 2  ;;  %7182 = vst [vmem:[%s11751_s6 + $0x20] sm:$0xff] %v7164_v6  ;;  %v7166_v18 = vsel %vm11716_vm10, %v11724_v27, %v6785_v14  ;;  %v7165_v19 = vsel %vm11720_vm11, %v11724_v27, %v6716_v15  ;;  %v6787_v61 = vpop.f32.mrb[3].mxu1 }
 0x512   : > { %v6163_v20 = vadd.f32 %v6162_v13, %v6161_v58  ;;  %v6369_v22 = vrot.slane %v6368_v3, 2  ;;  %7184 = vst [vmem:[%s11751_s6 + $0x30] sm:$0xff] %v7166_v18  ;;  %7183 = vst [vmem:[%s11751_s6 + $0x28] sm:$0xff] %v7165_v19  ;;  %v7167_v33 = vsel %vm11726_vm12, %v11724_v27, %v6787_v61  ;;  %v6487_v14 = vrot.slane %v6479_v37, %v10548_v39 }
 0x513   : > { %v6301_v2 = vadd.f32 %v6300_v4, %v6299_v1  ;;  %v6232_v21 = vadd.f32 %v6231_v36, %v6230_v7  ;;  %7185 = vst [vmem:[%s11751_s6 + $0x38] sm:$0xff] %v7167_v33  ;;  %v6856_v32 = vpop.f32.mrb[4].mxu0 }
 0x514   : > { %v6164_v30 = vrot.slane %v6163_v20, 1  ;;  %v6370_v28 = vadd.f32 %v6369_v22, %v6368_v3  ;;  %v7168_v42 = vsel %vm11736_vm14, %v11724_v27, %v6856_v32  ;;  %v6927_v47 = vpop.f32.mrb[4].mxu1  ;;  %v6858_v40 = vpop.f32.mrb[5].mxu0 }
 0x515   : > { %v6302_v59 = vrot.slane %v6301_v2, 1  ;;  %v6233_v46 = vrot.slane %v6232_v21, 1  ;;  %7186 = vst [vmem:[%s11751_s6 + $0x40] sm:$0xff] %v7168_v42  ;;  %v7170_v60 = vsel %vm11740_vm15, %v11724_v27, %v6927_v47  ;;  %v7169_v50 = vsel %vm11765_vm1, %v11724_v27, %v6858_v40  ;;  %v6929_v51 = vpop.f32.mrb[5].mxu1 }
 0x516   : > { %v6165_v52 = vadd.f32 %v6164_v30, %v6163_v20  ;;  %v6371_v53 = vrot.slane %v6370_v28, 1  ;;  %7188 = vst [vmem:[%s11751_s6 + $0x50] sm:$0xff] %v7170_v60  ;;  %7187 = vst [vmem:[%s11751_s6 + $0x48] sm:$0xff] %v7169_v50  ;;  %v7171_v54 = vsel %vm11777_vm2, %v11724_v27, %v6929_v51 }
 0x517   : > { %v6303_v44 = vadd.f32 %v6302_v59, %v6301_v2  ;;  %v6234_v56 = vadd.f32 %v6233_v46, %v6232_v21  ;;  %7189 = vst [vmem:[%s11751_s6 + $0x58] sm:$0xff] %v7171_v54  ;;  %v6998_v49 = vpop.f32.mrb[6].mxu0 }
 0x518   : > { %v6372_v62 = vadd.f32 %v6371_v53, %v6370_v28  ;;  %v7172_v58 = vsel %vm11796_vm3, %v11724_v27, %v6998_v49  ;;  %v7069_v63 = vpop.f32.mrb[6].mxu1  ;;  %v7000_v0 = vpop.f32.mrb[7].mxu0 }
 0x519   : > { %v6449_v34 = vcombine.low %v6165_v52, %v6234_v56  ;;  %7190 = vst [vmem:[%s11751_s6 + $0x60] sm:$0xff] %v7172_v58  ;;  %v7174_v1 = vsel %vm11805_vm4, %v11724_v27, %v7069_v63  ;;  %v7173_v7 = vsel %vm11821_vm6, %v11724_v27, %v7000_v0  ;;  %v7071_v38 = vpop.f32.mrb[7].mxu1 }
 0x51a   : > { %v6450_v9 = vcombine.low %v6303_v44, %v6372_v62  ;;  %7192 = vst [vmem:[%s11751_s6 + $0x70] sm:$0xff] %v7174_v1  ;;  %7191 = vst [vmem:[%s11751_s6 + $0x68] sm:$0xff] %v7173_v7  ;;  %v7175_v12 = vsel %vm7155_vm7, %v11724_v27, %v7071_v38 }
 0x51b   : > { %v6471_v13 = vrot.slane %v6449_v34, %v10548_v39  ;;  %7193 = vst [vmem:[%s11751_s6 + $0x78] sm:$0xff] %v7175_v12 }
 0x51c   : > { %v6478_v3 = vrot.slane %v6450_v9, %v10548_v39 }
 0x51e   : > { %v6480_v6 = vcombine.low %v6471_v13, %v6478_v3 }
 0x51f   : > { %7215 = sbr.rel (%p9052_p9) target bundleno = 2115 (0x843), region = 63 }
 0x520   : > { %v6494_v15 = vrot.slane %v6480_v6, %v10548_v39 }
 0x522   : > { %v6495_v17 = vcombine.low %v6487_v14, %v6494_v15 }
 0x524   : > { %v6499_v4 = vsel %vm345_vm5, %v11069_v25, %v6495_v17 }
 0x525   : > { %6503 = vst [vmem:[%s6501_s14 + $0x8] sm:$0xff] %v6499_v4 }
 0x526   : > { %v11853_v27 = vld [vmem:[#allocation2] sm:$0xff]  ;;  %v11855_v36 = vld [vmem:[#allocation2 + $0x8] sm:$0xff]  ;;  %v11857_v18 = vld [vmem:[#allocation2 + $0x10] sm:$0xff] }
 0x527   : > { %v7280_v26 = vadd.f32 %v11855_v36, %v11853_v27  ;;  %v7353_v39 = vmul.f32 %v11853_v27, %v11853_v27  ;;  %v7354_v25 = vmul.f32 %v11855_v36, %v11855_v36  ;;  %v11865_v55 = vld [vmem:[#allocation2 + $0x18] sm:$0xff]  ;;  %v7355_v37 = vmul.f32 %v11857_v18, %v11857_v18  ;;  %v11870_v19 = vld [vmem:[#allocation2 + $0x20] sm:$0xff]  ;;  %v11875_v33 = vld [vmem:[#allocation2 + $0x28] sm:$0xff] }
 0x528   : > { %v7356_v61 = vmul.f32 %v11865_v55, %v11865_v55  ;;  %v7357_v10 = vmul.f32 %v11870_v19, %v11870_v19  ;;  %v11880_v32 = vld [vmem:[#allocation2 + $0x30] sm:$0xff]  ;;  %v7358_v5 = vmul.f32 %v11875_v33, %v11875_v33  ;;  %v11885_v28 = vld [vmem:[#allocation2 + $0x38] sm:$0xff]  ;;  %v11890_v48 = vld [vmem:[#allocation2 + $0x40] sm:$0xff] }
 0x529   : > { %v7281_v41 = vadd.f32 %v7280_v26, %v11857_v18  ;;  %v7417_v20 = vadd.f32 %v7354_v25, %v7353_v39  ;;  %v7359_v42 = vmul.f32 %v11880_v32, %v11880_v32  ;;  %v7360_v59 = vmul.f32 %v11885_v28, %v11885_v28  ;;  %v11895_v50 = vld [vmem:[#allocation2 + $0x48] sm:$0xff]  ;;  %v11900_v54 = vld [vmem:[#allocation2 + $0x50] sm:$0xff]  ;;  %v11905_v49 = vld [vmem:[#allocation2 + $0x58] sm:$0xff] }
 0x52a   : > { %v7361_v51 = vmul.f32 %v11890_v48, %v11890_v48  ;;  %v7362_v57 = vmul.f32 %v11895_v50, %v11895_v50  ;;  %v7363_v62 = vmul.f32 %v11900_v54, %v11900_v54  ;;  %v11910_v0 = vld [vmem:[#allocation2 + $0x60] sm:$0xff]  ;;  %v7364_v34 = vmul.f32 %v11905_v49, %v11905_v49  ;;  %v11915_v38 = vld [vmem:[#allocation2 + $0x68] sm:$0xff]  ;;  %v11920_v3 = vld [vmem:[#allocation2 + $0x70] sm:$0xff] }
 0x52b   : > { %v7282_v22 = vadd.f32 %v7281_v41, %v11865_v55  ;;  %v7418_v2 = vadd.f32 %v7417_v20, %v7355_v37  ;;  %v7365_v9 = vmul.f32 %v11910_v0, %v11910_v0  ;;  %v7366_v6 = vmul.f32 %v11915_v38, %v11915_v38  ;;  %v11925_v17 = vld [vmem:[#allocation2 + $0x78] sm:$0xff]  ;;  %v11930_v25 = vld [vmem:[#allocation2 + $0x80] sm:$0xff]  ;;  %v11935_v20 = vld [vmem:[#allocation2 + $0x88] sm:$0xff] }
 0x52c   : > { %v7367_v4 = vmul.f32 %v11920_v3, %v11920_v3  ;;  %v7368_v37 = vmul.f32 %v11925_v17, %v11925_v17  ;;  %v12060_v24 = vld [vmem:[#allocation2 + $0x150] sm:$0xff] }
 0x52d   : > { %v7283_v21 = vadd.f32 %v7282_v22, %v11870_v19  ;;  %v7419_v11 = vadd.f32 %v7418_v2, %v7356_v61  ;;  %v7369_v22 = vmul.f32 %v11930_v25, %v11930_v25  ;;  %13380 = vst [vmem:[#allocation22_spill] sm:$0xff] %v12060_v24 }
 0x52f   : > { %v7284_v30 = vadd.f32 %v7283_v21, %v11875_v33  ;;  %v7420_v47 = vadd.f32 %v7419_v11, %v7357_v10  ;;  %v11940_v21 = vld [vmem:[#allocation2 + $0x90] sm:$0xff] }
 0x531   : > { %v7285_v40 = vadd.f32 %v7284_v30, %v11880_v32  ;;  %v7421_v46 = vadd.f32 %v7420_v47, %v7358_v5  ;;  %v7370_v5 = vmul.f32 %v11935_v20, %v11935_v20  ;;  %v7371_v47 = vmul.f32 %v11940_v21, %v11940_v21 }
 0x533   : > { %v7286_v60 = vadd.f32 %v7285_v40, %v11885_v28  ;;  %v7422_v52 = vadd.f32 %v7421_v46, %v7359_v42  ;;  %v11945_v42 = vld [vmem:[#allocation2 + $0x98] sm:$0xff]  ;;  %v11950_v46 = vld [vmem:[#allocation2 + $0xa0] sm:$0xff] }
 0x535   : > { %v7287_v53 = vadd.f32 %v7286_v60, %v11890_v48  ;;  %v7423_v44 = vadd.f32 %v7422_v52, %v7360_v59  ;;  %v7372_v60 = vmul.f32 %v11945_v42, %v11945_v42 }
 0x537   : > { %v7288_v56 = vadd.f32 %v7287_v53, %v11895_v50  ;;  %v7424_v58 = vadd.f32 %v7423_v44, %v7361_v51  ;;  %v11955_v53 = vld [vmem:[#allocation2 + $0xa8] sm:$0xff] }
 0x539   : > { %v7289_v63 = vadd.f32 %v7288_v56, %v11900_v54  ;;  %v7425_v1 = vadd.f32 %v7424_v58, %v7362_v57  ;;  %v7373_v57 = vmul.f32 %v11950_v46, %v11950_v46  ;;  %v7374_v58 = vmul.f32 %v11955_v53, %v11955_v53 }
 0x53b   : > { %v7290_v7 = vadd.f32 %v7289_v63, %v11905_v49  ;;  %v7426_v12 = vadd.f32 %v7425_v1, %v7363_v62  ;;  %v11960_v62 = vld [vmem:[#allocation2 + $0xb0] sm:$0xff]  ;;  %v11965_v1 = vld [vmem:[#allocation2 + $0xb8] sm:$0xff] }
 0x53d   : > { %v7291_v13 = vadd.f32 %v7290_v7, %v11910_v0  ;;  %v7427_v14 = vadd.f32 %v7426_v12, %v7364_v34  ;;  %v7375_v7 = vmul.f32 %v11960_v62, %v11960_v62 }
 0x53f   : > { %v7292_v15 = vadd.f32 %v7291_v13, %v11915_v38  ;;  %v7428_v26 = vadd.f32 %v7427_v14, %v7365_v9  ;;  %v11970_v13 = vld [vmem:[#allocation2 + $0xc0] sm:$0xff] }
 0x541   : > { %v7293_v39 = vadd.f32 %v7292_v15, %v11920_v3  ;;  %v7429_v41 = vadd.f32 %v7428_v26, %v7366_v6  ;;  %v7376_v6 = vmul.f32 %v11965_v1, %v11965_v1  ;;  %v7377_v26 = vmul.f32 %v11970_v13, %v11970_v13 }
 0x543   : > { %v7294_v61 = vadd.f32 %v7293_v39, %v11925_v17  ;;  %v7430_v10 = vadd.f32 %v7429_v41, %v7367_v4  ;;  %v11975_v4 = vld [vmem:[#allocation2 + $0xc8] sm:$0xff]  ;;  %v11980_v41 = vld [vmem:[#allocation2 + $0xd0] sm:$0xff] }
 0x545   : > { %v7295_v2 = vadd.f32 %v7294_v61, %v11930_v25  ;;  %v7431_v11 = vadd.f32 %v7430_v10, %v7368_v37  ;;  %v7378_v61 = vmul.f32 %v11975_v4, %v11975_v4 }
 0x547   : > { %v7296_v30 = vadd.f32 %v7295_v2, %v11935_v20  ;;  %v7432_v40 = vadd.f32 %v7431_v11, %v7369_v22  ;;  %v11985_v2 = vld [vmem:[#allocation2 + $0xd8] sm:$0xff] }
 0x549   : > { %v7297_v59 = vadd.f32 %v7296_v30, %v11940_v21  ;;  %v7433_v51 = vadd.f32 %v7432_v40, %v7370_v5  ;;  %v7379_v5 = vmul.f32 %v11980_v41, %v11980_v41  ;;  %v7380_v40 = vmul.f32 %v11985_v2, %v11985_v2 }
 0x54b   : > { %v7298_v52 = vadd.f32 %v7297_v59, %v11945_v42  ;;  %v7434_v44 = vadd.f32 %v7433_v51, %v7371_v47  ;;  %v11990_v47 = vld [vmem:[#allocation2 + $0xe0] sm:$0xff]  ;;  %v11995_v51 = vld [vmem:[#allocation2 + $0xe8] sm:$0xff] }
 0x54d   : > { %v7299_v56 = vadd.f32 %v7298_v52, %v11950_v46  ;;  %v7435_v63 = vadd.f32 %v7434_v44, %v7372_v60  ;;  %v7381_v52 = vmul.f32 %v11990_v47, %v11990_v47 }
 0x54f   : > { %v7300_v34 = vadd.f32 %v7299_v56, %v11955_v53  ;;  %v7436_v9 = vadd.f32 %v7435_v63, %v7373_v57  ;;  %v12000_v56 = vld [vmem:[#allocation2 + $0xf0] sm:$0xff] }
 0x551   : > { %v7301_v12 = vadd.f32 %v7300_v34, %v11960_v62  ;;  %v7437_v14 = vadd.f32 %v7436_v9, %v7374_v58  ;;  %v7382_v58 = vmul.f32 %v11995_v51, %v11995_v51  ;;  %v7383_v9 = vmul.f32 %v12000_v56, %v12000_v56 }
 0x553   : > { %v7302_v15 = vadd.f32 %v7301_v12, %v11965_v1  ;;  %v7438_v39 = vadd.f32 %v7437_v14, %v7375_v7  ;;  %v12005_v7 = vld [vmem:[#allocation2 + $0xf8] sm:$0xff]  ;;  %v12010_v14 = vld [vmem:[#allocation2 + $0x100] sm:$0xff] }
 0x555   : > { %v7303_v37 = vadd.f32 %v7302_v15, %v11970_v13  ;;  %v7439_v22 = vadd.f32 %v7438_v39, %v7376_v6  ;;  %v7384_v15 = vmul.f32 %v12005_v7, %v12005_v7 }
 0x557   : > { %v7304_v10 = vadd.f32 %v7303_v37, %v11975_v4  ;;  %v7440_v11 = vadd.f32 %v7439_v22, %v7377_v26  ;;  %v12015_v37 = vld [vmem:[#allocation2 + $0x108] sm:$0xff] }
 0x559   : > { %v7305_v30 = vadd.f32 %v7304_v10, %v11980_v41  ;;  %v7441_v59 = vadd.f32 %v7440_v11, %v7378_v61  ;;  %v7385_v61 = vmul.f32 %v12010_v14, %v12010_v14  ;;  %v7386_v11 = vmul.f32 %v12015_v37, %v12015_v37 }
 0x55b   : > { %v7306_v60 = vadd.f32 %v7305_v30, %v11985_v2  ;;  %v7442_v57 = vadd.f32 %v7441_v59, %v7379_v5  ;;  %v12020_v5 = vld [vmem:[#allocation2 + $0x110] sm:$0xff]  ;;  %v12025_v59 = vld [vmem:[#allocation2 + $0x118] sm:$0xff] }
 0x55c   : > { %13372 = vst [vmem:[#allocation14_spill] sm:$0xff] %v12020_v5  ;;  %13373 = vst [vmem:[#allocation15_spill] sm:$0xff] %v12025_v59 }
 0x55d   : > { %v7307_v44 = vadd.f32 %v7306_v60, %v11990_v47  ;;  %v7443_v63 = vadd.f32 %v7442_v57, %v7380_v40  ;;  %v7387_v60 = vmul.f32 %v12020_v5, %v12020_v5 }
 0x55f   : > { %v7308_v34 = vadd.f32 %v7307_v44, %v11995_v51  ;;  %v7444_v12 = vadd.f32 %v7443_v63, %v7381_v52  ;;  %v12030_v44 = vld [vmem:[#allocation2 + $0x120] sm:$0xff] }
 0x560   : > { %13374 = vst [vmem:[#allocation16_spill] sm:$0xff] %v12030_v44 }
 0x561   : > { %v7309_v6 = vadd.f32 %v7308_v34, %v12000_v56  ;;  %v7445_v26 = vadd.f32 %v7444_v12, %v7382_v58  ;;  %v7388_v58 = vmul.f32 %v12025_v59, %v12025_v59  ;;  %v7389_v12 = vmul.f32 %v12030_v44, %v12030_v44 }
 0x563   : > { %v7310_v39 = vadd.f32 %v7309_v6, %v12005_v7  ;;  %v7446_v22 = vadd.f32 %v7445_v26, %v7383_v9  ;;  %v12035_v9 = vld [vmem:[#allocation2 + $0x128] sm:$0xff]  ;;  %v12040_v26 = vld [vmem:[#allocation2 + $0x130] sm:$0xff] }
 0x564   : > { %13375 = vst [vmem:[#allocation17_spill] sm:$0xff] %v12035_v9  ;;  %13376 = vst [vmem:[#allocation18_spill] sm:$0xff] %v12040_v26 }
 0x565   : > { %v7311_v10 = vadd.f32 %v7310_v39, %v12010_v14  ;;  %v7447_v30 = vadd.f32 %v7446_v22, %v7384_v15  ;;  %v7390_v39 = vmul.f32 %v12035_v9, %v12035_v9 }
 0x567   : > { %v7312_v40 = vadd.f32 %v7311_v10, %v12015_v37  ;;  %v7448_v52 = vadd.f32 %v7447_v30, %v7385_v61  ;;  %v12045_v10 = vld [vmem:[#allocation2 + $0x138] sm:$0xff] }
 0x568   : > { %13377 = vst [vmem:[#allocation19_spill] sm:$0xff] %v12045_v10 }
 0x569   : > { %v7313_v57 = vadd.f32 %v7312_v40, %v12020_v5  ;;  %v7449_v63 = vadd.f32 %v7448_v52, %v7386_v11  ;;  %v7391_v11 = vmul.f32 %v12040_v26, %v12040_v26  ;;  %v12050_v52 = vld [vmem:[#allocation2 + $0x140] sm:$0xff] }
 0x56a   : > { %13378 = vst [vmem:[#allocation20_spill] sm:$0xff] %v12050_v52 }
 0x56b   : > { %v7314_v34 = vadd.f32 %v7313_v57, %v12025_v59  ;;  %v7450_v6 = vadd.f32 %v7449_v63, %v7387_v60  ;;  %v7392_v60 = vmul.f32 %v12045_v10, %v12045_v10 }
 0x56d   : > { %v7315_v15 = vadd.f32 %v7314_v34, %v12030_v44  ;;  %v7451_v61 = vadd.f32 %v7450_v6, %v7388_v58  ;;  %v12055_v34 = vld [vmem:[#allocation2 + $0x148] sm:$0xff]  ;;  %v7393_v58 = vmul.f32 %v12050_v52, %v12050_v52 }
 0x56e   : > { %13379 = vst [vmem:[#allocation21_spill] sm:$0xff] %v12055_v34 }
 0x56f   : > { %v7316_v22 = vadd.f32 %v7315_v15, %v12035_v9  ;;  %v7452_v30 = vadd.f32 %v7451_v61, %v7389_v12  ;;  %v7394_v12 = vmul.f32 %v12055_v34, %v12055_v34 }
 0x571   : > { %v7317_v40 = vadd.f32 %v7316_v22, %v12040_v26  ;;  %v7453_v57 = vadd.f32 %v7452_v30, %v7390_v39  ;;  %v12065_v26 = vld [vmem:[#allocation2 + $0x158] sm:$0xff]  ;;  %v7395_v39 = vmul.f32 %v12060_v24, %v12060_v24 }
 0x572   : > { %13381 = vst [vmem:[#allocation23_spill] sm:$0xff] %v12065_v26 }
 0x573   : > { %v7318_v63 = vadd.f32 %v7317_v40, %v12045_v10  ;;  %v7454_v6 = vadd.f32 %v7453_v57, %v7391_v11  ;;  %v12070_v10 = vld [vmem:[#allocation2 + $0x160] sm:$0xff]  ;;  %v7396_v11 = vmul.f32 %v12065_v26, %v12065_v26 }
 0x574   : > { %13382 = vst [vmem:[#allocation24_spill] sm:$0xff] %v12070_v10 }
 0x575   : > { %v7319_v15 = vadd.f32 %v7318_v63, %v12050_v52  ;;  %v7455_v61 = vadd.f32 %v7454_v6, %v7392_v60  ;;  %v12075_v52 = vld [vmem:[#allocation2 + $0x168] sm:$0xff]  ;;  %v7397_v60 = vmul.f32 %v12070_v10, %v12070_v10 }
 0x576   : > { %13383 = vst [vmem:[#allocation25_spill] sm:$0xff] %v12075_v52 }
 0x577   : > { %v7320_v22 = vadd.f32 %v7319_v15, %v12055_v34  ;;  %v7456_v30 = vadd.f32 %v7455_v61, %v7393_v58  ;;  %v12080_v34 = vld [vmem:[#allocation2 + $0x170] sm:$0xff]  ;;  %v7398_v58 = vmul.f32 %v12075_v52, %v12075_v52 }
 0x578   : > { %13384 = vst [vmem:[#allocation26_spill] sm:$0xff] %v12080_v34 }
 0x579   : > { %v7321_v40 = vadd.f32 %v7320_v22, %v12060_v24  ;;  %v7457_v57 = vadd.f32 %v7456_v30, %v7394_v12  ;;  %v12085_v24 = vld [vmem:[#allocation2 + $0x178] sm:$0xff]  ;;  %v7399_v12 = vmul.f32 %v12080_v34, %v12080_v34 }
 0x57a   : > { %13385 = vst [vmem:[#allocation27_spill] sm:$0xff] %v12085_v24 }
 0x57b   : > { %v7322_v63 = vadd.f32 %v7321_v40, %v12065_v26  ;;  %v7458_v6 = vadd.f32 %v7457_v57, %v7395_v39  ;;  %v12090_v26 = vld [vmem:[#allocation2 + $0x180] sm:$0xff]  ;;  %v7400_v39 = vmul.f32 %v12085_v24, %v12085_v24 }
 0x57c   : > { %13386 = vst [vmem:[#allocation28_spill] sm:$0xff] %v12090_v26 }
 0x57d   : > { %v7323_v15 = vadd.f32 %v7322_v63, %v12070_v10  ;;  %v7459_v61 = vadd.f32 %v7458_v6, %v7396_v11  ;;  %v12095_v10 = vld [vmem:[#allocation2 + $0x188] sm:$0xff]  ;;  %v7401_v11 = vmul.f32 %v12090_v26, %v12090_v26 }
 0x57e   : > { %13387 = vst [vmem:[#allocation29_spill] sm:$0xff] %v12095_v10 }
 0x57f   : > { %v7324_v22 = vadd.f32 %v7323_v15, %v12075_v52  ;;  %v7460_v30 = vadd.f32 %v7459_v61, %v7397_v60  ;;  %v12100_v52 = vld [vmem:[#allocation2 + $0x190] sm:$0xff]  ;;  %v7402_v60 = vmul.f32 %v12095_v10, %v12095_v10 }
 0x580   : > { %13388 = vst [vmem:[#allocation30_spill] sm:$0xff] %v12100_v52 }
 0x581   : > { %v7325_v40 = vadd.f32 %v7324_v22, %v12080_v34  ;;  %v7461_v57 = vadd.f32 %v7460_v30, %v7398_v58  ;;  %v12105_v34 = vld [vmem:[#allocation2 + $0x198] sm:$0xff]  ;;  %v7403_v58 = vmul.f32 %v12100_v52, %v12100_v52 }
 0x582   : > { %13389 = vst [vmem:[#allocation31_spill] sm:$0xff] %v12105_v34 }
 0x583   : > { %v7326_v63 = vadd.f32 %v7325_v40, %v12085_v24  ;;  %v7462_v6 = vadd.f32 %v7461_v57, %v7399_v12  ;;  %v12110_v24 = vld [vmem:[#allocation2 + $0x1a0] sm:$0xff]  ;;  %v7404_v12 = vmul.f32 %v12105_v34, %v12105_v34 }
 0x584   : > { %13390 = vst [vmem:[#allocation32_spill] sm:$0xff] %v12110_v24 }
 0x585   : > { %v7327_v15 = vadd.f32 %v7326_v63, %v12090_v26  ;;  %v7463_v61 = vadd.f32 %v7462_v6, %v7400_v39  ;;  %v12115_v26 = vld [vmem:[#allocation2 + $0x1a8] sm:$0xff]  ;;  %v7405_v39 = vmul.f32 %v12110_v24, %v12110_v24 }
 0x586   : > { %13391 = vst [vmem:[#allocation33_spill] sm:$0xff] %v12115_v26 }
 0x587   : > { %v7328_v22 = vadd.f32 %v7327_v15, %v12095_v10  ;;  %v7464_v30 = vadd.f32 %v7463_v61, %v7401_v11  ;;  %v12120_v10 = vld [vmem:[#allocation2 + $0x1b0] sm:$0xff]  ;;  %v7406_v11 = vmul.f32 %v12115_v26, %v12115_v26 }
 0x588   : > { %13392 = vst [vmem:[#allocation34_spill] sm:$0xff] %v12120_v10 }
 0x589   : > { %v7329_v40 = vadd.f32 %v7328_v22, %v12100_v52  ;;  %v7465_v57 = vadd.f32 %v7464_v30, %v7402_v60  ;;  %v12125_v52 = vld [vmem:[#allocation2 + $0x1b8] sm:$0xff]  ;;  %v7407_v60 = vmul.f32 %v12120_v10, %v12120_v10 }
 0x58a   : > { %13393 = vst [vmem:[#allocation35_spill] sm:$0xff] %v12125_v52 }
 0x58b   : > { %v7330_v63 = vadd.f32 %v7329_v40, %v12105_v34  ;;  %v7466_v6 = vadd.f32 %v7465_v57, %v7403_v58  ;;  %v12130_v34 = vld [vmem:[#allocation2 + $0x1c0] sm:$0xff]  ;;  %v7408_v58 = vmul.f32 %v12125_v52, %v12125_v52 }
 0x58c   : > { %13394 = vst [vmem:[#allocation36_spill] sm:$0xff] %v12130_v34 }
 0x58d   : > { %v7331_v15 = vadd.f32 %v7330_v63, %v12110_v24  ;;  %v7467_v61 = vadd.f32 %v7466_v6, %v7404_v12  ;;  %v12135_v24 = vld [vmem:[#allocation2 + $0x1c8] sm:$0xff]  ;;  %v7409_v12 = vmul.f32 %v12130_v34, %v12130_v34 }
 0x58e   : > { %13395 = vst [vmem:[#allocation37_spill] sm:$0xff] %v12135_v24 }
 0x58f   : > { %v7332_v22 = vadd.f32 %v7331_v15, %v12115_v26  ;;  %v7468_v30 = vadd.f32 %v7467_v61, %v7405_v39  ;;  %v12140_v26 = vld [vmem:[#allocation2 + $0x1d0] sm:$0xff]  ;;  %v7410_v39 = vmul.f32 %v12135_v24, %v12135_v24 }
 0x590   : > { %13396 = vst [vmem:[#allocation38_spill] sm:$0xff] %v12140_v26 }
 0x591   : > { %v7333_v40 = vadd.f32 %v7332_v22, %v12120_v10  ;;  %v7469_v57 = vadd.f32 %v7468_v30, %v7406_v11  ;;  %v12145_v10 = vld [vmem:[#allocation2 + $0x1d8] sm:$0xff]  ;;  %v7411_v11 = vmul.f32 %v12140_v26, %v12140_v26 }
 0x592   : > { %13397 = vst [vmem:[#allocation39_spill] sm:$0xff] %v12145_v10 }
 0x593   : > { %v7334_v63 = vadd.f32 %v7333_v40, %v12125_v52  ;;  %v7470_v6 = vadd.f32 %v7469_v57, %v7407_v60  ;;  %v12150_v52 = vld [vmem:[#allocation2 + $0x1e0] sm:$0xff]  ;;  %v7412_v60 = vmul.f32 %v12145_v10, %v12145_v10 }
 0x594   : > { %13398 = vst [vmem:[#allocation40_spill] sm:$0xff] %v12150_v52 }
 0x595   : > { %v7335_v15 = vadd.f32 %v7334_v63, %v12130_v34  ;;  %v7471_v61 = vadd.f32 %v7470_v6, %v7408_v58  ;;  %v12155_v34 = vld [vmem:[#allocation2 + $0x1e8] sm:$0xff]  ;;  %v7413_v58 = vmul.f32 %v12150_v52, %v12150_v52 }
 0x596   : > { %13399 = vst [vmem:[#allocation41_spill] sm:$0xff] %v12155_v34 }
 0x597   : > { %v7336_v22 = vadd.f32 %v7335_v15, %v12135_v24  ;;  %v7472_v30 = vadd.f32 %v7471_v61, %v7409_v12  ;;  %v12160_v24 = vld [vmem:[#allocation2 + $0x1f0] sm:$0xff]  ;;  %v7414_v12 = vmul.f32 %v12155_v34, %v12155_v34 }
 0x598   : > { %13400 = vst [vmem:[#allocation42_spill] sm:$0xff] %v12160_v24 }
 0x599   : > { %v7337_v40 = vadd.f32 %v7336_v22, %v12140_v26  ;;  %v7473_v57 = vadd.f32 %v7472_v30, %v7410_v39  ;;  %v12165_v26 = vld [vmem:[#allocation2 + $0x1f8] sm:$0xff]  ;;  %v7415_v39 = vmul.f32 %v12160_v24, %v12160_v24 }
 0x59b   : > { %v7338_v63 = vadd.f32 %v7337_v40, %v12145_v10  ;;  %v7474_v6 = vadd.f32 %v7473_v57, %v7411_v11  ;;  %v7416_v11 = vmul.f32 %v12165_v26, %v12165_v26 }
 0x59d   : > { %v7339_v15 = vadd.f32 %v7338_v63, %v12150_v52  ;;  %v7475_v61 = vadd.f32 %v7474_v6, %v7412_v60 }
 0x59f   : > { %v7340_v22 = vadd.f32 %v7339_v15, %v12155_v34  ;;  %v7476_v30 = vadd.f32 %v7475_v61, %v7413_v58 }
 0x5a1   : > { %v7341_v40 = vadd.f32 %v7340_v22, %v12160_v24  ;;  %v7477_v57 = vadd.f32 %v7476_v30, %v7414_v12 }
 0x5a3   : > { %v7342_v63 = vadd.f32 %v7341_v40, %v12165_v26  ;;  %v7478_v52 = vadd.f32 %v7477_v57, %v7415_v39 }
 0x5a5   : > { %7343 = vadd.xlane.f32.xlu0 %v7342_v63  ;;  %v7479_v10 = vadd.f32 %v7478_v52, %v7416_v11 }
 0x5a9   : > { %7480 = vadd.xlane.f32.xlu0 %v7479_v10 }
 0x632   : > { %v7344_v60 = vpop.xlane.xlu0 %7343 }
 0x633   : > { %v7345_v6 = vrot.slane %v7344_v60, 4 }
 0x635   : > { %v7346_v15 = vadd.f32 %v7345_v6, %v7344_v60 }
 0x636   : > { %v7481_v34 = vpop.xlane.xlu0 %7480 }
 0x637   : > { %v7347_v9 = vrot.slane %v7346_v15, 2  ;;  %v7482_v44 = vrot.slane %v7481_v34, 4 }
 0x639   : > { %v7483_v59 = vadd.f32 %v7482_v44, %v7481_v34  ;;  %v7348_v58 = vadd.f32 %v7347_v9, %v7346_v15  ;;  %v7954_v44 = vld [vmem:[#allocation4] sm:$0xff] }
 0x63a   : > { %v7973_v10 = vrot.slane %v7954_v44, %v11055_v8  ;;  %v7989_v52 = vrot.slane %v7954_v44, %v11666_v23  ;;  %v7993_v57 = vrot.slane %v7954_v44, %v11677_v35  ;;  %v7997_v6 = vrot.slane %v7954_v44, %v11674_v31 }
 0x63b   : > { %v7484_v61 = vrot.slane %v7483_v59, 2  ;;  %v7349_v22 = vrot.slane %v7348_v58, 1 }
 0x63c   : > { %v8290_v34 = vsel %vm604_vm0, %v7973_v10, 0.0  ;;  %v8297_v15 = vsel %vm604_vm0, %v7989_v52, 0.0  ;;  %v8301_v10 = vsel %vm604_vm0, %v7997_v6, 0.0 }
 0x63d   : > { %v7485_v24 = vadd.f32 %v7484_v61, %v7483_v59  ;;  %v7350_v5 = vadd.f32 %v7349_v22, %v7348_v58  ;;  %v7977_v59 = vrot.slane %v7954_v44, %v11660_v45  ;;  %v7955_v58 = vld [vmem:[#allocation4 + $0x8] sm:$0xff]  ;;  %v8001_v22 = vrot.slane %v7954_v44, %v11682_v43 }
 0x63f   : > { %9154 = vpush %v7350_v5  ;;  %v7486_v12 = vrot.slane %v7485_v24, 1  ;;  %v7981_v5 = vrot.slane %v7954_v44, %v11671_v29  ;;  %v8291_v39 = vsel %vm604_vm0, %v7977_v59, 0.0 }
 0x640   : > { %v8292_v11 = vadd.f32 %v8291_v39, %v8290_v34  ;;  %v8303_v34 = vsel %vm604_vm0, %v8001_v22, 0.0 }
 0x641   : > { %v7487_v30 = vadd.f32 %v7486_v12, %v7485_v24  ;;  %v7985_v24 = vrot.slane %v7954_v44, %v11663_v16  ;;  %v8293_v40 = vsel %vm604_vm0, %v7981_v5, 0.0  ;;  %v8299_v12 = vsel %vm604_vm0, %v7993_v57, 0.0 }
 0x642   : > { %v8294_v60 = vadd.f32 %v8293_v40, %v8292_v11  ;;  %v8013_v40 = vrot.slane %v7955_v58, %v11671_v29 }
 0x643   : > { %9156 = vpush %v7487_v30  ;;  %v8295_v63 = vsel %vm604_vm0, %v7985_v24, 0.0  ;;  %v8009_v24 = vrot.slane %v7955_v58, %v11660_v45 }
 0x644   : > { %v8296_v61 = vadd.f32 %v8295_v63, %v8294_v60  ;;  %v8017_v63 = vrot.slane %v7955_v58, %v11663_v16  ;;  %v8309_v6 = vsel %vm604_vm0, %v8013_v40, 0.0 }
 0x645   : > { %v8307_v11 = vsel %vm604_vm0, %v8009_v24, 0.0 }
 0x646   : > { %v8298_v30 = vadd.f32 %v8297_v15, %v8296_v61  ;;  %v8021_v61 = vrot.slane %v7955_v58, %v11666_v23  ;;  %v8311_v22 = vsel %vm604_vm0, %v8017_v63, 0.0 }
 0x648   : > { %v8300_v5 = vadd.f32 %v8299_v12, %v8298_v30  ;;  %v8025_v30 = vrot.slane %v7955_v58, %v11677_v35 }
 0x64a   : > { %v8302_v39 = vadd.f32 %v8301_v10, %v8300_v5  ;;  %v8315_v5 = vsel %vm604_vm0, %v8025_v30, 0.0 }
 0x64c   : > { %v8304_v44 = vadd.f32 %v8303_v34, %v8302_v39  ;;  %v8033_v34 = vrot.slane %v7955_v58, %v11682_v43 }
 0x670   : > { %s9155_s21 = spop %9154 }
 0x671   : > { %s12173_s20 = smul.f32 1.5258789e-05, %s9155_s21 }
 0x673   : > { %s7490_s17 = smul.f32 %s12173_s20, %s12173_s20 }
 0x674   : > { %s9157_s9 = spop %9156 }
 0x675   : > { %s7489_s14 = smul.f32 1.5258789e-05, %s9157_s9 }
 0x677   : > { %s7491_s18 = ssub.f32 %s7489_s14, %s7490_s17 }
 0x679   : > { %s7492_s23 = sadd.f32 1e-05, %s7491_s18 }
 0x67b   : > { %v7493_v9 = vstv %s7492_s23 }
 0x67c   : > { %9387 = vrsqrt.f32 %v7493_v9  ;;  %v8005_v9 = vrot.slane %v7955_v58, %v11055_v8 }
 0x67e   : > { %v8305_v52 = vsel %vm604_vm0, %v8005_v9, 0.0  ;;  %v8313_v9 = vsel %vm604_vm0, %v8021_v61, 0.0 }
 0x67f   : > { %v8306_v57 = vadd.f32 %v8305_v52, %v8304_v44  ;;  %v12208_v52 = vld [vmem:[#allocation4 + $0x10] sm:$0xff]  ;;  %v12211_v44 = vstv %s12173_s20 }
 0x680   : > { %v8041_v61 = vrot.slane %v12208_v52, %v11660_v45  ;;  %v8057_v63 = vrot.slane %v12208_v52, %v11677_v35  ;;  %v13431_v45 = vsub.f32 %v11855_v36, %v12211_v44 }
 0x681   : > { %v8308_v60 = vadd.f32 %v8307_v11, %v8306_v57  ;;  %v8037_v11 = vrot.slane %v12208_v52, %v11055_v8  ;;  %v8319_v57 = vsel %vm604_vm0, %v8033_v34, 0.0 }
 0x682   : > { %v8323_v34 = vsel %vm604_vm0, %v8041_v61, 0.0  ;;  %v8049_v61 = vrot.slane %v12208_v52, %v11663_v16  ;;  %v13427_v16 = vld [vmem:[#allocation40_spill] sm:$0xff]  ;;  %v12366_v8 = vsel %vm604_vm0, %v8057_v63, 0.0  ;;  %v13433_v63 = vsub.f32 %v11865_v55, %v12211_v44 }
 0x683   : > { %v8310_v15 = vadd.f32 %v8309_v6, %v8308_v60 }
 0x684   : > { %v8327_v30 = vsel %vm604_vm0, %v8049_v61, 0.0  ;;  %v13430_v61 = vsub.f32 %v11853_v27, %v12211_v44 }
 0x685   : > { %v8312_v12 = vadd.f32 %v8311_v22, %v8310_v15  ;;  %v8321_v22 = vsel %vm604_vm0, %v8037_v11, 0.0  ;;  %v13423_v15 = vld [vmem:[#allocation36_spill] sm:$0xff] }
 0x686   : > { %v9388_v59 = vpop.eup %9387 }
 0x687   : > { %9158 = vpush %v9388_v59  ;;  %v8314_v10 = vadd.f32 %v8313_v9, %v8312_v12  ;;  %v8029_v59 = vrot.slane %v7955_v58, %v11674_v31  ;;  %v8053_v9 = vrot.slane %v12208_v52, %v11666_v23  ;;  %v13424_v58 = vld [vmem:[#allocation37_spill] sm:$0xff] }
 0x688   : > { %v13428_v23 = vld [vmem:[#allocation41_spill] sm:$0xff] }
 0x689   : > { %v8316_v24 = vadd.f32 %v8315_v5, %v8314_v10  ;;  %v8317_v39 = vsel %vm604_vm0, %v8029_v59, 0.0  ;;  %v13401_v5 = vld [vmem:[#allocation14_spill] sm:$0xff]  ;;  %v13408_v59 = vld [vmem:[#allocation21_spill] sm:$0xff]  ;;  %v8329_v12 = vsel %vm604_vm0, %v8053_v9, 0.0 }
 0x68a   : > { %v13429_v9 = vld [vmem:[#allocation42_spill] sm:$0xff] }
 0x68b   : > { %v8318_v40 = vadd.f32 %v8317_v39, %v8316_v24  ;;  %v8045_v24 = vrot.slane %v12208_v52, %v11671_v29  ;;  %v13417_v29 = vld [vmem:[#allocation30_spill] sm:$0xff] }
 0x68d   : > { %v8320_v6 = vadd.f32 %v8319_v57, %v8318_v40  ;;  %v8325_v39 = vsel %vm604_vm0, %v8045_v24, 0.0  ;;  %v13403_v24 = vld [vmem:[#allocation16_spill] sm:$0xff]  ;;  %v13404_v40 = vld [vmem:[#allocation17_spill] sm:$0xff] }
 0x68f   : > { %v8322_v57 = vadd.f32 %v8321_v22, %v8320_v6  ;;  %v13402_v22 = vld [vmem:[#allocation15_spill] sm:$0xff]  ;;  %v13405_v6 = vld [vmem:[#allocation18_spill] sm:$0xff] }
 0x691   : > { %v8324_v11 = vadd.f32 %v8323_v34, %v8322_v57  ;;  %v13406_v34 = vld [vmem:[#allocation19_spill] sm:$0xff]  ;;  %v13407_v57 = vld [vmem:[#allocation20_spill] sm:$0xff] }
 0x693   : > { %v8326_v60 = vadd.f32 %v8325_v39, %v8324_v11 }
 0x695   : > { %v8328_v11 = vadd.f32 %v8327_v30, %v8326_v60  ;;  %v13426_v30 = vld [vmem:[#allocation39_spill] sm:$0xff]  ;;  %v13432_v60 = vsub.f32 %v11857_v18, %v12211_v44 }
 0x697   : > { %v12363_v35 = vadd.f32 %v8329_v12, %v8328_v11  ;;  %v13434_v11 = vsub.f32 %v11870_v19, %v12211_v44 }
 0x6b8   : > { %s9159_s24 = spop %9158 }
 0x6b9   : > { %v12359_v39 = vstv %s9159_s24 }
 0x6ba   : > { %v12372_v43 = vmul.f32 %v12359_v39, %v13430_v61  ;;  %v12378_v10 = vmul.f32 %v12359_v39, %v13431_v45  ;;  %v12384_v12 = vmul.f32 %v12359_v39, %v13432_v60  ;;  %v12390_v27 = vmul.f32 %v12359_v39, %v13433_v63 }
 0x6bb   : > { %v12396_v36 = vmul.f32 %v12359_v39, %v13434_v11  ;;  %v13435_v45 = vsub.f32 %v11875_v33, %v12211_v44  ;;  %v13436_v61 = vsub.f32 %v11880_v32, %v12211_v44  ;;  %v13437_v60 = vsub.f32 %v11885_v28, %v12211_v44 }
 0x6bc   : > { %v13438_v63 = vsub.f32 %v11890_v48, %v12211_v44  ;;  %v13439_v11 = vsub.f32 %v11895_v50, %v12211_v44  ;;  %7627 = vst [vmem:[%s13229_s4 + $0x8] sm:$0xff] %v12378_v10  ;;  %7628 = vst [vmem:[%s13229_s4 + $0x10] sm:$0xff] %v12384_v12  ;;  %v13442_v50 = vsub.f32 %v11910_v0, %v12211_v44 }
 0x6bd   : > { %v12402_v18 = vmul.f32 %v12359_v39, %v13435_v45  ;;  %v12408_v55 = vmul.f32 %v12359_v39, %v13436_v61  ;;  %v12414_v19 = vmul.f32 %v12359_v39, %v13437_v60  ;;  %v13440_v45 = vsub.f32 %v11900_v54, %v12211_v44  ;;  %7629 = vst [vmem:[%s13229_s4 + $0x18] sm:$0xff] %v12390_v27 }
 0x6be   : > { %v12420_v33 = vmul.f32 %v12359_v39, %v13438_v63  ;;  %v12426_v32 = vmul.f32 %v12359_v39, %v13439_v11  ;;  %v13441_v61 = vsub.f32 %v11905_v49, %v12211_v44  ;;  %7626 = vst [vmem:[%s13229_s4] sm:$0xff] %v12372_v43  ;;  %v12460_v54 = vmul.f32 %v12359_v39, %v13442_v50 }
 0x6bf   : > { %v12432_v28 = vmul.f32 %v12359_v39, %v13440_v45  ;;  %v13443_v49 = vsub.f32 %v11915_v38, %v12211_v44  ;;  %v13444_v63 = vsub.f32 %v11920_v3, %v12211_v44  ;;  %v13445_v45 = vsub.f32 %v11925_v17, %v12211_v44  ;;  %7630 = vst [vmem:[%s13229_s4 + $0x20] sm:$0xff] %v12396_v36 }
 0x6c0   : > { %v12438_v48 = vmul.f32 %v12359_v39, %v13441_v61  ;;  %7631 = vst [vmem:[%s13229_s4 + $0x28] sm:$0xff] %v12402_v18  ;;  %7632 = vst [vmem:[%s13229_s4 + $0x30] sm:$0xff] %v12408_v55  ;;  %v13446_v38 = vsub.f32 %v11930_v25, %v12211_v44  ;;  %v13447_v17 = vsub.f32 %v11935_v20, %v12211_v44 }
 0x6c1   : > { %v12466_v60 = vmul.f32 %v12359_v39, %v13443_v49  ;;  %v12472_v11 = vmul.f32 %v12359_v39, %v13444_v63  ;;  %v12478_v0 = vmul.f32 %v12359_v39, %v13445_v45  ;;  %7633 = vst [vmem:[%s13229_s4 + $0x38] sm:$0xff] %v12414_v19  ;;  %v13448_v50 = vsub.f32 %v11940_v21, %v12211_v44 }
 0x6c2   : > { %v12500_v3 = vmul.f32 %v12359_v39, %v13446_v38  ;;  %v12506_v61 = vmul.f32 %v12359_v39, %v13447_v17  ;;  %v13449_v63 = vsub.f32 %v11945_v42, %v12211_v44  ;;  %7634 = vst [vmem:[%s13229_s4 + $0x40] sm:$0xff] %v12420_v33  ;;  %7635 = vst [vmem:[%s13229_s4 + $0x48] sm:$0xff] %v12426_v32 }
 0x6c3   : > { %v12512_v49 = vmul.f32 %v12359_v39, %v13448_v50  ;;  %7636 = vst [vmem:[%s13229_s4 + $0x50] sm:$0xff] %v12432_v28  ;;  %7637 = vst [vmem:[%s13229_s4 + $0x58] sm:$0xff] %v12438_v48  ;;  %v13450_v20 = vsub.f32 %v11950_v46, %v12211_v44  ;;  %v13451_v42 = vsub.f32 %v11955_v53, %v12211_v44 }
 0x6c4   : > { %v12518_v25 = vmul.f32 %v12359_v39, %v13449_v63  ;;  %v13452_v38 = vsub.f32 %v11960_v62, %v12211_v44  ;;  %v13453_v50 = vsub.f32 %v11965_v1, %v12211_v44  ;;  %7638 = vst [vmem:[%s13229_s4 + $0x60] sm:$0xff] %v12460_v54  ;;  %7639 = vst [vmem:[%s13229_s4 + $0x68] sm:$0xff] %v12466_v60 }
 0x6c5   : > { %v12540_v21 = vmul.f32 %v12359_v39, %v13450_v20  ;;  %v12546_v45 = vmul.f32 %v12359_v39, %v13451_v42  ;;  %7640 = vst [vmem:[%s13229_s4 + $0x70] sm:$0xff] %v12472_v11  ;;  %7641 = vst [vmem:[%s13229_s4 + $0x78] sm:$0xff] %v12478_v0  ;;  %v13454_v53 = vsub.f32 %v11970_v13, %v12211_v44 }
 0x6c6   : > { %v12552_v17 = vmul.f32 %v12359_v39, %v13452_v38  ;;  %v12558_v46 = vmul.f32 %v12359_v39, %v13453_v50  ;;  %v13455_v1 = vsub.f32 %v11975_v4, %v12211_v44  ;;  %v13456_v20 = vsub.f32 %v11980_v41, %v12211_v44  ;;  %7642 = vst [vmem:[%s13229_s4 + $0x80] sm:$0xff] %v12500_v3 }
 0x6c7   : > { %v12580_v62 = vmul.f32 %v12359_v39, %v13454_v53  ;;  %v13457_v38 = vsub.f32 %v11985_v2, %v12211_v44  ;;  %7643 = vst [vmem:[%s13229_s4 + $0x88] sm:$0xff] %v12506_v61  ;;  %7644 = vst [vmem:[%s13229_s4 + $0x90] sm:$0xff] %v12512_v49  ;;  %v13458_v4 = vsub.f32 %v11990_v47, %v12211_v44 }
 0x6c8   : > { %v12586_v63 = vmul.f32 %v12359_v39, %v13455_v1  ;;  %v12592_v42 = vmul.f32 %v12359_v39, %v13456_v20  ;;  %7645 = vst [vmem:[%s13229_s4 + $0x98] sm:$0xff] %v12518_v25  ;;  %v13459_v2 = vsub.f32 %v11995_v51, %v12211_v44  ;;  %v13460_v53 = vsub.f32 %v12000_v56, %v12211_v44 }
 0x6c9   : > { %v12598_v13 = vmul.f32 %v12359_v39, %v13457_v38  ;;  %v12620_v41 = vmul.f32 %v12359_v39, %v13458_v4  ;;  %v13461_v20 = vsub.f32 %v12005_v7, %v12211_v44  ;;  %7646 = vst [vmem:[%s13229_s4 + $0xa0] sm:$0xff] %v12540_v21  ;;  %7647 = vst [vmem:[%s13229_s4 + $0xa8] sm:$0xff] %v12546_v45 }
 0x6ca   : > { %v12626_v50 = vmul.f32 %v12359_v39, %v13459_v2  ;;  %v12632_v1 = vmul.f32 %v12359_v39, %v13460_v53  ;;  %7648 = vst [vmem:[%s13229_s4 + $0xb0] sm:$0xff] %v12552_v17  ;;  %7649 = vst [vmem:[%s13229_s4 + $0xb8] sm:$0xff] %v12558_v46  ;;  %v13463_v51 = vsub.f32 %v12010_v14, %v12211_v44 }
 0x6cb   : > { %v12638_v47 = vmul.f32 %v12359_v39, %v13461_v20  ;;  %v13465_v7 = vsub.f32 %v12015_v37, %v12211_v44  ;;  %v13467_v4 = vsub.f32 %v13401_v5, %v12211_v44  ;;  %v13469_v53 = vsub.f32 %v13402_v22, %v12211_v44  ;;  %7650 = vst [vmem:[%s13229_s4 + $0xc0] sm:$0xff] %v12580_v62 }
 0x6cc   : > { %v12660_v56 = vmul.f32 %v12359_v39, %v13463_v51  ;;  %7651 = vst [vmem:[%s13229_s4 + $0xc8] sm:$0xff] %v12586_v63  ;;  %7652 = vst [vmem:[%s13229_s4 + $0xd0] sm:$0xff] %v12592_v42  ;;  %v13471_v37 = vsub.f32 %v13403_v24, %v12211_v44  ;;  %v13472_v22 = vsub.f32 %v13404_v40, %v12211_v44 }
 0x6cd   : > { %13462 = vst [vmem:[#allocation14_spill] sm:$0xff] %v12638_v47  ;;  %v12666_v38 = vmul.f32 %v12359_v39, %v13465_v7  ;;  %v12672_v2 = vmul.f32 %v12359_v39, %v13467_v4  ;;  %v12678_v14 = vmul.f32 %v12359_v39, %v13469_v53  ;;  %7653 = vst [vmem:[%s13229_s4 + $0xd8] sm:$0xff] %v12598_v13 }
 0x6ce   : > { %13464 = vst [vmem:[#allocation15_spill] sm:$0xff] %v12660_v56  ;;  %v12700_v5 = vmul.f32 %v12359_v39, %v13471_v37  ;;  %v12706_v20 = vmul.f32 %v12359_v39, %v13472_v22  ;;  %v13474_v51 = vsub.f32 %v13405_v6, %v12211_v44  ;;  %v13476_v4 = vsub.f32 %v13406_v34, %v12211_v44  ;;  %v13482_v37 = vld [vmem:[#allocation22_spill] sm:$0xff] }
 0x6cf   : > { %13466 = vst [vmem:[#allocation16_spill] sm:$0xff] %v12666_v38  ;;  %13468 = vst [vmem:[#allocation17_spill] sm:$0xff] %v12672_v2  ;;  %v13478_v40 = vsub.f32 %v13407_v57, %v12211_v44  ;;  %v13480_v34 = vsub.f32 %v13408_v59, %v12211_v44  ;;  %v13483_v22 = vsub.f32 %v13482_v37, %v12211_v44  ;;  %v13488_v59 = vld [vmem:[#allocation24_spill] sm:$0xff] }
 0x6d0   : > { %13470 = vst [vmem:[#allocation18_spill] sm:$0xff] %v12678_v14  ;;  %13473 = vst [vmem:[#allocation19_spill] sm:$0xff] %v12706_v20  ;;  %v12712_v7 = vmul.f32 %v12359_v39, %v13474_v51  ;;  %v12718_v24 = vmul.f32 %v12359_v39, %v13476_v4  ;;  %v13485_v4 = vld [vmem:[#allocation23_spill] sm:$0xff] }
 0x6d1   : > { %7654 = vst [vmem:[%s13229_s4 + $0xe0] sm:$0xff] %v12620_v41  ;;  %7655 = vst [vmem:[%s13229_s4 + $0xe8] sm:$0xff] %v12626_v50  ;;  %v12740_v6 = vmul.f32 %v12359_v39, %v13478_v40  ;;  %v12746_v53 = vmul.f32 %v12359_v39, %v13480_v34  ;;  %v12752_v51 = vmul.f32 %v12359_v39, %v13483_v22  ;;  %v13490_v34 = vld [vmem:[#allocation25_spill] sm:$0xff] }
 0x6d2   : > { %13475 = vst [vmem:[#allocation20_spill] sm:$0xff] %v12712_v7  ;;  %13477 = vst [vmem:[#allocation21_spill] sm:$0xff] %v12718_v24  ;;  %v13491_v37 = vsub.f32 %v13490_v34, %v12211_v44 }
 0x6d3   : > { %7656 = vst [vmem:[%s13229_s4 + $0xf0] sm:$0xff] %v12632_v1  ;;  %7657 = vst [vmem:[%s13229_s4 + $0xf8] sm:$0xff] %v12638_v47  ;;  %v13486_v47 = vsub.f32 %v13485_v4, %v12211_v44  ;;  %v13492_v4 = vld [vmem:[#allocation26_spill] sm:$0xff] }
 0x6d4   : > { %13479 = vst [vmem:[#allocation30_spill] sm:$0xff] %v12740_v6  ;;  %13481 = vst [vmem:[#allocation36_spill] sm:$0xff] %v12746_v53  ;;  %v12786_v22 = vmul.f32 %v12359_v39, %v13491_v37 }
 0x6d5   : > { %13484 = vst [vmem:[#allocation37_spill] sm:$0xff] %v12752_v51  ;;  %v12758_v57 = vmul.f32 %v12359_v39, %v13486_v47  ;;  %7658 = vst [vmem:[%s13229_s4 + $0x100] sm:$0xff] %v12660_v56  ;;  %v13489_v47 = vsub.f32 %v13488_v59, %v12211_v44  ;;  %v13494_v56 = vld [vmem:[#allocation27_spill] sm:$0xff] }
 0x6d6   : > { %7659 = vst [vmem:[%s13229_s4 + $0x108] sm:$0xff] %v12666_v38  ;;  %7660 = vst [vmem:[%s13229_s4 + $0x110] sm:$0xff] %v12672_v2  ;;  %v13493_v2 = vsub.f32 %v13492_v4, %v12211_v44  ;;  %v13502_v4 = vsub.f32 %v13417_v29, %v12211_v44  ;;  %v13507_v29 = vld [vmem:[#allocation32_spill] sm:$0xff] }
 0x6d7   : > { %13487 = vst [vmem:[#allocation39_spill] sm:$0xff] %v12758_v57  ;;  %7661 = vst [vmem:[%s13229_s4 + $0x118] sm:$0xff] %v12678_v14  ;;  %v12780_v40 = vmul.f32 %v12359_v39, %v13489_v47  ;;  %v13495_v14 = vsub.f32 %v13494_v56, %v12211_v44  ;;  %v13497_v56 = vld [vmem:[#allocation28_spill] sm:$0xff]  ;;  %v13499_v47 = vld [vmem:[#allocation29_spill] sm:$0xff] }
 0x6d8   : > { %v12792_v38 = vmul.f32 %v12359_v39, %v13493_v2  ;;  %7662 = vst [vmem:[%s13229_s4 + $0x120] sm:$0xff] %v12700_v5  ;;  %7663 = vst [vmem:[%s13229_s4 + $0x128] sm:$0xff] %v12706_v20  ;;  %v13498_v2 = vsub.f32 %v13497_v56, %v12211_v44  ;;  %v13500_v34 = vsub.f32 %v13499_v47, %v12211_v44  ;;  %v13504_v20 = vld [vmem:[#allocation31_spill] sm:$0xff] }
 0x6d9   : > { %v12798_v59 = vmul.f32 %v12359_v39, %v13495_v14  ;;  %7664 = vst [vmem:[%s13229_s4 + $0x130] sm:$0xff] %v12712_v7  ;;  %7665 = vst [vmem:[%s13229_s4 + $0x138] sm:$0xff] %v12718_v24  ;;  %v12832_v7 = vmul.f32 %v12359_v39, %v13502_v4  ;;  %v13505_v24 = vsub.f32 %v13504_v20, %v12211_v44  ;;  %v13513_v4 = vld [vmem:[#allocation34_spill] sm:$0xff] }
 0x6da   : > { %v12820_v14 = vmul.f32 %v12359_v39, %v13498_v2  ;;  %v12826_v37 = vmul.f32 %v12359_v39, %v13500_v34  ;;  %7666 = vst [vmem:[%s13229_s4 + $0x140] sm:$0xff] %v12740_v6  ;;  %7667 = vst [vmem:[%s13229_s4 + $0x148] sm:$0xff] %v12746_v53  ;;  %v13508_v20 = vsub.f32 %v13507_v29, %v12211_v44  ;;  %v13510_v2 = vld [vmem:[#allocation33_spill] sm:$0xff]  ;;  %v13516_v6 = vld [vmem:[#allocation35_spill] sm:$0xff] }
 0x6db   : > { %13496 = vst [vmem:[#allocation40_spill] sm:$0xff] %v12798_v59  ;;  %13503 = vst [vmem:[#allocation42_spill] sm:$0xff] %v12832_v7  ;;  %v12838_v56 = vmul.f32 %v12359_v39, %v13505_v24  ;;  %v13511_v47 = vsub.f32 %v13510_v2, %v12211_v44  ;;  %v13523_v2 = vld [vmem:[#allocation38_spill] sm:$0xff] }
 0x6dc   : > { %13501 = vst [vmem:[#allocation41_spill] sm:$0xff] %v12826_v37  ;;  %7668 = vst [vmem:[%s13229_s4 + $0x150] sm:$0xff] %v12752_v51  ;;  %v12860_v24 = vmul.f32 %v12359_v39, %v13508_v20  ;;  %v13514_v51 = vsub.f32 %v13513_v4, %v12211_v44 }
 0x6dd   : > { %13506 = vst [vmem:[#allocation22_spill] sm:$0xff] %v12838_v56  ;;  %7669 = vst [vmem:[%s13229_s4 + $0x158] sm:$0xff] %v12758_v57  ;;  %v12866_v34 = vmul.f32 %v12359_v39, %v13511_v47  ;;  %v13517_v57 = vsub.f32 %v13516_v6, %v12211_v44  ;;  %v13519_v6 = vsub.f32 %v13423_v15, %v12211_v44 }
 0x6de   : > { %13509 = vst [vmem:[#allocation23_spill] sm:$0xff] %v12860_v24  ;;  %v12872_v53 = vmul.f32 %v12359_v39, %v13514_v51  ;;  %7670 = vst [vmem:[%s13229_s4 + $0x160] sm:$0xff] %v12780_v40  ;;  %v13524_v47 = vsub.f32 %v13523_v2, %v12211_v44 }
 0x6df   : > { %13512 = vst [vmem:[#allocation24_spill] sm:$0xff] %v12866_v34  ;;  %v12878_v29 = vmul.f32 %v12359_v39, %v13517_v57  ;;  %7671 = vst [vmem:[%s13229_s4 + $0x168] sm:$0xff] %v12786_v22  ;;  %v12900_v51 = vmul.f32 %v12359_v39, %v13519_v6  ;;  %v13521_v57 = vsub.f32 %v13424_v58, %v12211_v44 }
 0x6e0   : > { %13515 = vst [vmem:[#allocation25_spill] sm:$0xff] %v12872_v53  ;;  %7672 = vst [vmem:[%s13229_s4 + $0x170] sm:$0xff] %v12792_v38  ;;  %v12912_v4 = vmul.f32 %v12359_v39, %v13524_v47  ;;  %v13528_v58 = vsub.f32 %v13427_v16, %v12211_v44  ;;  %v13534_v47 = vsub.f32 %v12165_v26, %v12211_v44  ;;  %v13536_v26 = vld [vmem:[#allocation13_spill] sm:$0xff] }
 0x6e1   : > { %13518 = vst [vmem:[#allocation26_spill] sm:$0xff] %v12878_v29  ;;  %7673 = vst [vmem:[%s13229_s4 + $0x178] sm:$0xff] %v12798_v59  ;;  %v12906_v20 = vmul.f32 %v12359_v39, %v13521_v57  ;;  %v13526_v59 = vsub.f32 %v13426_v30, %v12211_v44  ;;  %v13532_v57 = vsub.f32 %v13429_v9, %v12211_v44 }
 0x6e2   : > { %13520 = vst [vmem:[#allocation27_spill] sm:$0xff] %v12900_v51  ;;  %13525 = vst [vmem:[#allocation29_spill] sm:$0xff] %v12912_v4  ;;  %v12940_v30 = vmul.f32 %v12359_v39, %v13528_v58  ;;  %v12958_v16 = vmul.f32 %v12359_v39, %v13534_v47  ;;  %v13016_v58 = vld [vmem:[#allocation4 + $0x18] sm:$0xff] }
 0x6e3   : > { %13522 = vst [vmem:[#allocation28_spill] sm:$0xff] %v12906_v20  ;;  %v12918_v15 = vmul.f32 %v12359_v39, %v13526_v59  ;;  %7674 = vst [vmem:[%s13229_s4 + $0x180] sm:$0xff] %v12820_v14  ;;  %v13530_v59 = vsub.f32 %v13428_v23, %v12211_v44  ;;  %v12952_v2 = vmul.f32 %v12359_v39, %v13532_v57  ;;  %v13538_v57 = vld [vmem:[#allocation7_spill] sm:$0xff] }
 0x6e4   : > { %7675 = vst [vmem:[%s13229_s4 + $0x188] sm:$0xff] %v12826_v37  ;;  %7676 = vst [vmem:[%s13229_s4 + $0x190] sm:$0xff] %v12832_v7  ;;  %v8332_v23 = vadd.f32 %v12366_v8, %v12363_v35  ;;  %v8065_v44 = vrot.slane %v12208_v52, %v13536_v26  ;;  %v8069_v47 = vrot.slane %v13016_v58, %v13538_v57  ;;  %v13539_v8 = vld [vmem:[#allocation8_spill] sm:$0xff]  ;;  %v7697_v7 = vld [vmem:[#allocation3 + $0x38] sm:$0xff] }
 0x6e5   : > { %13527 = vst [vmem:[#allocation31_spill] sm:$0xff] %v12918_v15  ;;  %7677 = vst [vmem:[%s13229_s4 + $0x198] sm:$0xff] %v12838_v56  ;;  %v12946_v6 = vmul.f32 %v12359_v39, %v13530_v59  ;;  %v13537_v39 = vrot.slane %v12208_v52, %v11674_v31  ;;  %v8073_v35 = vrot.slane %v13016_v58, %v13539_v8 }
 0x6e6   : > { %13529 = vst [vmem:[#allocation32_spill] sm:$0xff] %v12940_v30  ;;  %13533 = vst [vmem:[#allocation34_spill] sm:$0xff] %v12952_v2 }
 0x6e7   : > { %13531 = vst [vmem:[#allocation33_spill] sm:$0xff] %v12946_v6  ;;  %13535 = vst [vmem:[#allocation35_spill] sm:$0xff] %v12958_v16  ;;  %v8333_v9 = vsel %vm604_vm0, %v13537_v39, 0.0 }
 0x6e8   : > { %7678 = vst [vmem:[%s13229_s4 + $0x1a0] sm:$0xff] %v12860_v24  ;;  %7679 = vst [vmem:[%s13229_s4 + $0x1a8] sm:$0xff] %v12866_v34  ;;  %v8334_v59 = vadd.f32 %v8333_v9, %v8332_v23  ;;  %v13541_v24 = vld [vmem:[#allocation9_spill] sm:$0xff] }
 0x6e9   : > { %7680 = vst [vmem:[%s13229_s4 + $0x1b0] sm:$0xff] %v12872_v53  ;;  %7681 = vst [vmem:[%s13229_s4 + $0x1b8] sm:$0xff] %v12878_v29  ;;  %v8339_v29 = vsel %vm604_vm0, %v8073_v35, 0.0 }
 0x6ea   : > { %7682 = vst [vmem:[%s13229_s4 + $0x1c0] sm:$0xff] %v12900_v51  ;;  %7683 = vst [vmem:[%s13229_s4 + $0x1c8] sm:$0xff] %v12906_v20  ;;  %v7693_v20 = vld [vmem:[#allocation3 + $0x18] sm:$0xff]  ;;  %v13540_v51 = vld [vmem:[#allocation11_spill] sm:$0xff] }
 0x6eb   : > { %7684 = vst [vmem:[%s13229_s4 + $0x1d0] sm:$0xff] %v12912_v4  ;;  %7685 = vst [vmem:[%s13229_s4 + $0x1d8] sm:$0xff] %v12918_v15  ;;  %v8337_v15 = vsel %vm604_vm0, %v8069_v47, 0.0  ;;  %v7692_v4 = vld [vmem:[#allocation3 + $0x10] sm:$0xff]  ;;  %v7695_v47 = vld [vmem:[#allocation3 + $0x28] sm:$0xff] }
 0x6ec   : > { %7686 = vst [vmem:[%s13229_s4 + $0x1e0] sm:$0xff] %v12940_v30  ;;  %7687 = vst [vmem:[%s13229_s4 + $0x1e8] sm:$0xff] %v12946_v6  ;;  %v7691_v6 = vld [vmem:[#allocation3 + $0x8] sm:$0xff]  ;;  %v7756_v9 = vsub.f32 %v7692_v4, %v12384_v12  ;;  %v7696_v4 = vld [vmem:[#allocation3 + $0x30] sm:$0xff] }
 0x6ed   : > { %7688 = vst [vmem:[%s13229_s4 + $0x1f0] sm:$0xff] %v12952_v2  ;;  %7689 = vst [vmem:[%s13229_s4 + $0x1f8] sm:$0xff] %v12958_v16  ;;  %v8335_v2 = vsel %vm604_vm0, %v8065_v44, 0.0  ;;  %v7690_v16 = vld [vmem:[#allocation3] sm:$0xff]  ;;  %v7755_v39 = vsub.f32 %v7691_v6, %v12378_v10  ;;  %v8077_v44 = vrot.slane %v13016_v58, %v13540_v51  ;;  %v7759_v6 = vsub.f32 %v7695_v47, %v12402_v18  ;;  %v13543_v18 = vld [vmem:[#allocation12_spill] sm:$0xff] }
 0x6ee   : > { %v8336_v30 = vadd.f32 %v8335_v2, %v8334_v59  ;;  %v7754_v52 = vsub.f32 %v7690_v16, %v12372_v43  ;;  %v7694_v2 = vld [vmem:[#allocation3 + $0x20] sm:$0xff]  ;;  %v7757_v59 = vsub.f32 %v7693_v20, %v12390_v27  ;;  %v8081_v43 = vrot.slane %v13016_v58, %v13541_v24 }
 0x6ef   : > { %v7819_v34 = vand.u32 2147483647, %v7755_v39  ;;  %v7758_v10 = vsub.f32 %v7694_v2, %v12396_v36  ;;  %v8341_v12 = vsel %vm604_vm0, %v8077_v44, 0.0  ;;  %v13542_v27 = vld [vmem:[#allocation10_spill] sm:$0xff]  ;;  %v7760_v39 = vsub.f32 %v7696_v4, %v12408_v55  ;;  %v7699_v44 = vld [vmem:[#allocation3 + $0x48] sm:$0xff] }
 0x6f0   : > { %v8338_v23 = vadd.f32 %v8337_v15, %v8336_v30  ;;  %v7818_v53 = vand.u32 2147483647, %v7754_v52  ;;  %v7820_v15 = vand.u32 2147483647, %v7756_v9  ;;  %v7821_v35 = vand.u32 2147483647, %v7757_v59 }
 0x6f1   : > { %v8085_v20 = vrot.slane %v13016_v58, %v13542_v27  ;;  %v7822_v37 = vand.u32 2147483647, %v7758_v10  ;;  %v8343_v36 = vsel %vm604_vm0, %v8081_v43, 0.0  ;;  %v8089_v2 = vrot.slane %v13016_v58, %v13543_v18  ;;  %v7700_v10 = vld [vmem:[#allocation3 + $0x50] sm:$0xff] }
 0x6f2   : > { %v8340_v16 = vadd.f32 %v8339_v29, %v8338_v23  ;;  %v7882_v30 = vadd.f32 %v7819_v34, %v7818_v53  ;;  %v7698_v23 = vld [vmem:[#allocation3 + $0x40] sm:$0xff]  ;;  %v7761_v53 = vsub.f32 %v7697_v7, %v12414_v19  ;;  %v7823_v34 = vand.u32 2147483647, %v7759_v6 }
 0x6f3   : > { %v7762_v47 = vsub.f32 %v7698_v23, %v12420_v33  ;;  %v8345_v55 = vsel %vm604_vm0, %v8085_v20, 0.0  ;;  %v8093_v19 = vrot.slane %v13016_v58, %v11674_v31  ;;  %v8347_v33 = vsel %vm604_vm0, %v8089_v2, 0.0 }
 0x6f4   : > { %v7883_v56 = vadd.f32 %v7882_v30, %v7820_v15  ;;  %v8342_v52 = vadd.f32 %v8341_v12, %v8340_v16  ;;  %v7824_v15 = vand.u32 2147483647, %v7760_v39  ;;  %v7825_v43 = vand.u32 2147483647, %v7761_v53  ;;  %v7701_v12 = vld [vmem:[#allocation3 + $0x58] sm:$0xff] }
 0x6f5   : > { %v7826_v4 = vand.u32 2147483647, %v7762_v47 }
 0x6f6   : > { %v7884_v29 = vadd.f32 %v7883_v56, %v7821_v35  ;;  %v8344_v59 = vadd.f32 %v8343_v36, %v8342_v52  ;;  %v7763_v56 = vsub.f32 %v7699_v44, %v12426_v32  ;;  %v7702_v35 = vld [vmem:[#allocation3 + $0x60] sm:$0xff]  ;;  %v7765_v52 = vsub.f32 %v7701_v12, %v12438_v48  ;;  %v7704_v44 = vld [vmem:[#allocation3 + $0x70] sm:$0xff] }
 0x6f7   : > { %v13051_v32 = vld [vmem:[#allocation4 + $0x20] sm:$0xff]  ;;  %v8097_v36 = vrot.slane %v13016_v58, %v13536_v26  ;;  %v7766_v53 = vsub.f32 %v7702_v35, %v12460_v54  ;;  %v7768_v58 = vsub.f32 %v7704_v44, %v12472_v11 }
 0x6f8   : > { %v7885_v9 = vadd.f32 %v7884_v29, %v7822_v37  ;;  %v8346_v7 = vadd.f32 %v8345_v55, %v8344_v59  ;;  %v7764_v37 = vsub.f32 %v7700_v10, %v12432_v28  ;;  %v7827_v20 = vand.u32 2147483647, %v7763_v56  ;;  %v7703_v29 = vld [vmem:[#allocation3 + $0x68] sm:$0xff] }
 0x6f9   : > { %v7767_v2 = vsub.f32 %v7703_v29, %v12466_v60  ;;  %v7829_v59 = vand.u32 2147483647, %v7765_v52  ;;  %v8101_v47 = vrot.slane %v13051_v32, %v13538_v57  ;;  %v8351_v55 = vsel %vm604_vm0, %v8097_v36, 0.0 }
 0x6fa   : > { %v7886_v16 = vadd.f32 %v7885_v9, %v7823_v34  ;;  %v8348_v23 = vadd.f32 %v8347_v33, %v8346_v7  ;;  %v7828_v34 = vand.u32 2147483647, %v7764_v37  ;;  %v8349_v9 = vsel %vm604_vm0, %v8093_v19, 0.0  ;;  %v7707_v37 = vld [vmem:[#allocation3 + $0x88] sm:$0xff] }
 0x6fb   : > { %v7830_v10 = vand.u32 2147483647, %v7766_v53  ;;  %v8105_v56 = vrot.slane %v13051_v32, %v13539_v8  ;;  %v8109_v60 = vrot.slane %v13051_v32, %v13540_v51  ;;  %v7831_v12 = vand.u32 2147483647, %v7767_v2 }
 0x6fc   : > { %v7887_v30 = vadd.f32 %v7886_v16, %v7824_v15  ;;  %v7705_v15 = vld [vmem:[#allocation3 + $0x78] sm:$0xff]  ;;  %v8350_v16 = vadd.f32 %v8349_v9, %v8348_v23  ;;  %v8353_v7 = vsel %vm604_vm0, %v8101_v47, 0.0  ;;  %v7832_v33 = vand.u32 2147483647, %v7768_v58 }
 0x6fd   : > { %v8355_v52 = vsel %vm604_vm0, %v8105_v56, 0.0  ;;  %v8357_v29 = vsel %vm604_vm0, %v8109_v60, 0.0  ;;  %v7771_v36 = vsub.f32 %v7707_v37, %v12506_v61  ;;  %v7711_v61 = vld [vmem:[#allocation3 + $0xa8] sm:$0xff]  ;;  %v8125_v58 = vrot.slane %v13051_v32, %v11674_v31  ;;  %v7713_v37 = vld [vmem:[#allocation3 + $0xb8] sm:$0xff] }
 0x6fe   : > { %v7888_v6 = vadd.f32 %v7887_v30, %v7825_v43  ;;  %v7706_v43 = vld [vmem:[#allocation3 + $0x80] sm:$0xff]  ;;  %v7769_v30 = vsub.f32 %v7705_v15, %v12478_v0  ;;  %v8352_v11 = vadd.f32 %v8351_v55, %v8350_v16  ;;  %v7709_v0 = vld [vmem:[#allocation3 + $0x98] sm:$0xff]  ;;  %v13085_v56 = vld [vmem:[#allocation4 + $0x28] sm:$0xff] }
 0x6ff   : > { %v7773_v47 = vsub.f32 %v7709_v0, %v12518_v25  ;;  %v7835_v16 = vand.u32 2147483647, %v7771_v36  ;;  %v8129_v25 = vrot.slane %v13051_v32, %v13536_v26 }
 0x700   : > { %v7889_v39 = vadd.f32 %v7888_v6, %v7826_v4  ;;  %v8113_v4 = vrot.slane %v13051_v32, %v13541_v24  ;;  %v7770_v6 = vsub.f32 %v7706_v43, %v12500_v3  ;;  %v7833_v23 = vand.u32 2147483647, %v7769_v30  ;;  %v7710_v3 = vld [vmem:[#allocation3 + $0xa0] sm:$0xff]  ;;  %v7712_v43 = vld [vmem:[#allocation3 + $0xb0] sm:$0xff] }
 0x702   : > { %v7890_v28 = vadd.f32 %v7889_v39, %v7827_v20  ;;  %v7708_v20 = vld [vmem:[#allocation3 + $0x90] sm:$0xff]  ;;  %v8354_v39 = vadd.f32 %v8353_v7, %v8352_v11  ;;  %v8359_v9 = vsel %vm604_vm0, %v8113_v4, 0.0  ;;  %v7834_v2 = vand.u32 2147483647, %v7770_v6 }
 0x703   : > { %v7772_v44 = vsub.f32 %v7708_v20, %v12512_v49  ;;  %v7837_v4 = vand.u32 2147483647, %v7773_v47  ;;  %v8365_v6 = vsel %vm604_vm0, %v8125_v58, 0.0 }
 0x704   : > { %v7891_v48 = vadd.f32 %v7890_v28, %v7828_v34  ;;  %v8117_v34 = vrot.slane %v13051_v32, %v13542_v27  ;;  %v8356_v28 = vadd.f32 %v8355_v52, %v8354_v39  ;;  %v7714_v52 = vld [vmem:[#allocation3 + $0xc0] sm:$0xff] }
 0x705   : > { %v7836_v60 = vand.u32 2147483647, %v7772_v44 }
 0x706   : > { %v7892_v54 = vadd.f32 %v7891_v48, %v7829_v59  ;;  %v8121_v48 = vrot.slane %v13051_v32, %v13543_v18  ;;  %v8358_v15 = vadd.f32 %v8357_v29, %v8356_v28  ;;  %v8137_v32 = vrot.slane %v13085_v56, %v13539_v8 }
 0x707   : > { %v7777_v29 = vsub.f32 %v7713_v37, %v12558_v46  ;;  %v7778_v28 = vsub.f32 %v7714_v52, %v12580_v62  ;;  %v7716_v46 = vld [vmem:[#allocation3 + $0xd0] sm:$0xff]  ;;  %v8149_v62 = vrot.slane %v13085_v56, %v13542_v27 }
 0x708   : > { %v7893_v19 = vadd.f32 %v7892_v54, %v7830_v10  ;;  %v8361_v10 = vsel %vm604_vm0, %v8117_v34, 0.0  ;;  %v7774_v54 = vsub.f32 %v7710_v3, %v12540_v21  ;;  %v8360_v49 = vadd.f32 %v8359_v9, %v8358_v15 }
 0x709   : > { %v8133_v21 = vrot.slane %v13085_v56, %v13538_v57  ;;  %v7841_v15 = vand.u32 2147483647, %v7777_v29 }
 0x70a   : > { %v7894_v35 = vadd.f32 %v7893_v19, %v7831_v12  ;;  %v8363_v12 = vsel %vm604_vm0, %v8121_v48, 0.0  ;;  %v7775_v19 = vsub.f32 %v7711_v61, %v12546_v45  ;;  %v8362_v7 = vadd.f32 %v8361_v10, %v8360_v49 }
 0x70b   : > { %v7838_v20 = vand.u32 2147483647, %v7774_v54  ;;  %v8367_v45 = vsel %vm604_vm0, %v8129_v25, 0.0  ;;  %v8369_v34 = vsel %vm604_vm0, %v8133_v21, 0.0  ;;  %v7780_v10 = vsub.f32 %v7716_v46, %v12592_v42  ;;  %v13127_v46 = vld [vmem:[#allocation4 + $0x30] sm:$0xff] }
 0x70c   : > { %v7895_v53 = vadd.f32 %v7894_v35, %v7832_v33  ;;  %v7776_v33 = vsub.f32 %v7712_v43, %v12552_v17  ;;  %v8364_v35 = vadd.f32 %v8363_v12, %v8362_v7  ;;  %v7839_v36 = vand.u32 2147483647, %v7775_v19  ;;  %v7715_v17 = vld [vmem:[#allocation3 + $0xc8] sm:$0xff] }
 0x70d   : > { %v7779_v47 = vsub.f32 %v7715_v17, %v12586_v63  ;;  %v7842_v54 = vand.u32 2147483647, %v7778_v28  ;;  %v7719_v19 = vld [vmem:[#allocation3 + $0xe8] sm:$0xff]  ;;  %v8153_v7 = vrot.slane %v13085_v56, %v13543_v18  ;;  %v7844_v42 = vand.u32 2147483647, %v7780_v10 }
 0x70e   : > { %v7896_v59 = vadd.f32 %v7895_v53, %v7833_v23  ;;  %v8366_v0 = vadd.f32 %v8365_v6, %v8364_v35  ;;  %v8141_v53 = vrot.slane %v13085_v56, %v13540_v51  ;;  %v7840_v3 = vand.u32 2147483647, %v7776_v33  ;;  %v7720_v6 = vld [vmem:[#allocation3 + $0xf0] sm:$0xff] }
 0x70f   : > { %v7843_v63 = vand.u32 2147483647, %v7779_v47  ;;  %v7783_v33 = vsub.f32 %v7719_v19, %v12626_v50  ;;  %v7723_v50 = vld [vmem:[#allocation3 + $0x108] sm:$0xff]  ;;  %v8161_v28 = vrot.slane %v13085_v56, %v13536_v26 }
 0x710   : > { %v7897_v55 = vadd.f32 %v7896_v59, %v7834_v2  ;;  %v8368_v9 = vadd.f32 %v8367_v45, %v8366_v0  ;;  %v8145_v2 = vrot.slane %v13085_v56, %v13541_v24  ;;  %v8371_v59 = vsel %vm604_vm0, %v8137_v32, 0.0  ;;  %v7727_v19 = vld [vmem:[#allocation3 + $0x128] sm:$0xff] }
 0x711   : > { %v8379_v32 = vsel %vm604_vm0, %v8153_v7, 0.0  ;;  %v7784_v45 = vsub.f32 %v7720_v6, %v12632_v1  ;;  %v7724_v1 = vld [vmem:[#allocation3 + $0x110] sm:$0xff]  ;;  %v8169_v7 = vrot.slane %v13127_v46, %v13539_v8  ;;  %v13549_v6 = vld [vmem:[#allocation19_spill] sm:$0xff] }
 0x712   : > { %v7898_v30 = vadd.f32 %v7897_v55, %v7835_v16  ;;  %v8370_v48 = vadd.f32 %v8369_v34, %v8368_v9  ;;  %v8373_v16 = vsel %vm604_vm0, %v8141_v53, 0.0  ;;  %v7717_v55 = vld [vmem:[#allocation3 + $0xd8] sm:$0xff]  ;;  %v8375_v43 = vsel %vm604_vm0, %v8145_v2, 0.0 }
 0x713   : > { %v7781_v25 = vsub.f32 %v7717_v55, %v12598_v13  ;;  %v7721_v13 = vld [vmem:[#allocation3 + $0xf8] sm:$0xff]  ;;  %v7847_v53 = vand.u32 2147483647, %v7783_v33  ;;  %v7848_v2 = vand.u32 2147483647, %v7784_v45  ;;  %v7791_v33 = vsub.f32 %v7727_v19, %v13549_v6  ;;  %v13550_v45 = vld [vmem:[#allocation20_spill] sm:$0xff] }
 0x714   : > { %v7899_v11 = vadd.f32 %v7898_v30, %v7836_v60  ;;  %v8372_v58 = vadd.f32 %v8371_v59, %v8370_v48  ;;  %v7718_v60 = vld [vmem:[#allocation3 + $0xe0] sm:$0xff]  ;;  %v13546_v48 = vld [vmem:[#allocation16_spill] sm:$0xff]  ;;  %v7725_v55 = vld [vmem:[#allocation3 + $0x118] sm:$0xff] }
 0x715   : > { %v7845_v35 = vand.u32 2147483647, %v7781_v25  ;;  %v7787_v47 = vsub.f32 %v7723_v50, %v13546_v48  ;;  %v7731_v50 = vld [vmem:[#allocation3 + $0x148] sm:$0xff]  ;;  %v13553_v48 = vld [vmem:[#allocation36_spill] sm:$0xff] }
 0x716   : > { %v7900_v39 = vadd.f32 %v7899_v11, %v7837_v4  ;;  %v8374_v30 = vadd.f32 %v8373_v16, %v8372_v58  ;;  %v8377_v4 = vsel %vm604_vm0, %v8149_v62, 0.0  ;;  %v7782_v11 = vsub.f32 %v7718_v60, %v12620_v41  ;;  %v13544_v41 = vld [vmem:[#allocation14_spill] sm:$0xff]  ;;  %v13547_v58 = vld [vmem:[#allocation17_spill] sm:$0xff]  ;;  %v7735_v19 = vld [vmem:[#allocation3 + $0x168] sm:$0xff] }
 0x717   : > { %v8165_v62 = vrot.slane %v13127_v46, %v13538_v57  ;;  %v7788_v10 = vsub.f32 %v7724_v1, %v13547_v58  ;;  %v13548_v60 = vld [vmem:[#allocation18_spill] sm:$0xff]  ;;  %v7851_v25 = vand.u32 2147483647, %v7787_v47  ;;  %v7732_v1 = vld [vmem:[#allocation3 + $0x150] sm:$0xff]  ;;  %v7795_v47 = vsub.f32 %v7731_v50, %v13553_v48  ;;  %v13554_v58 = vld [vmem:[#allocation37_spill] sm:$0xff] }
 0x718   : > { %v7901_v23 = vadd.f32 %v7900_v39, %v7838_v20  ;;  %v8376_v37 = vadd.f32 %v8375_v43, %v8374_v30  ;;  %v8157_v39 = vrot.slane %v13085_v56, %v11674_v31  ;;  %v7846_v29 = vand.u32 2147483647, %v7782_v11  ;;  %v7726_v43 = vld [vmem:[#allocation3 + $0x120] sm:$0xff]  ;;  %v7741_v48 = vld [vmem:[#allocation3 + $0x198] sm:$0xff] }
 0x719   : > { %v8383_v56 = vsel %vm604_vm0, %v8161_v28, 0.0  ;;  %v7789_v30 = vsub.f32 %v7725_v55, %v13548_v60  ;;  %v7852_v11 = vand.u32 2147483647, %v7788_v10  ;;  %v8177_v28 = vrot.slane %v13127_v46, %v13541_v24  ;;  %v7733_v55 = vld [vmem:[#allocation3 + $0x158] sm:$0xff]  ;;  %v13555_v60 = vld [vmem:[#allocation39_spill] sm:$0xff] }
 0x71a   : > { %v7902_v44 = vadd.f32 %v7901_v23, %v7839_v36  ;;  %v8378_v20 = vadd.f32 %v8377_v4, %v8376_v37  ;;  %v7722_v36 = vld [vmem:[#allocation3 + $0x100] sm:$0xff]  ;;  %v7785_v23 = vsub.f32 %v7721_v13, %v13544_v41  ;;  %v8381_v9 = vsel %vm604_vm0, %v8157_v39, 0.0  ;;  %v7729_v13 = vld [vmem:[#allocation3 + $0x138] sm:$0xff] }
 0x71b   : > { %v8385_v37 = vsel %vm604_vm0, %v8165_v62, 0.0  ;;  %v7790_v4 = vsub.f32 %v7726_v43, %v12700_v5  ;;  %v8173_v39 = vrot.slane %v13127_v46, %v13540_v51  ;;  %v7730_v41 = vld [vmem:[#allocation3 + $0x140] sm:$0xff]  ;;  %v13551_v5 = vld [vmem:[#allocation21_spill] sm:$0xff]  ;;  %v8181_v62 = vrot.slane %v13127_v46, %v13542_v27 }
 0x71c   : > { %v7903_v61 = vadd.f32 %v7902_v44, %v7840_v3  ;;  %v8380_v17 = vadd.f32 %v8379_v32, %v8378_v20  ;;  %v13545_v3 = vld [vmem:[#allocation15_spill] sm:$0xff]  ;;  %v8387_v32 = vsel %vm604_vm0, %v8169_v7, 0.0  ;;  %v7796_v10 = vsub.f32 %v7732_v1, %v13554_v58  ;;  %v7734_v43 = vld [vmem:[#allocation3 + $0x160] sm:$0xff] }
 0x71d   : > { %v7786_v44 = vsub.f32 %v7722_v36, %v13545_v3  ;;  %v13552_v3 = vld [vmem:[#allocation30_spill] sm:$0xff]  ;;  %v8185_v7 = vrot.slane %v13127_v46, %v13543_v18  ;;  %v7799_v6 = vsub.f32 %v7735_v19, %v12786_v22  ;;  %v7739_v22 = vld [vmem:[#allocation3 + $0x188] sm:$0xff]  ;;  %v13561_v19 = vld [vmem:[#allocation24_spill] sm:$0xff] }
 0x71e   : > { %v7904_v49 = vadd.f32 %v7903_v61, %v7841_v15  ;;  %v7849_v15 = vand.u32 2147483647, %v7785_v23  ;;  %v8382_v16 = vadd.f32 %v8381_v9, %v8380_v17  ;;  %v7793_v23 = vsub.f32 %v7729_v13, %v13551_v5 }
 0x71f   : > { %v8389_v9 = vsel %vm604_vm0, %v8173_v39, 0.0  ;;  %v8189_v13 = vrot.slane %v13127_v46, %v11674_v31  ;;  %v8395_v39 = vsel %vm604_vm0, %v8185_v7, 0.0 }
 0x720   : > { %v7905_v12 = vadd.f32 %v7904_v49, %v7842_v54  ;;  %v7850_v54 = vand.u32 2147483647, %v7786_v44  ;;  %v7794_v44 = vsub.f32 %v7730_v41, %v13552_v3  ;;  %v7863_v41 = vand.u32 2147483647, %v7799_v6  ;;  %v13557_v3 = vld [vmem:[#allocation41_spill] sm:$0xff] }
 0x722   : > { %v7906_v21 = vadd.f32 %v7905_v12, %v7843_v63  ;;  %v8384_v12 = vadd.f32 %v8383_v56, %v8382_v16  ;;  %v8391_v56 = vsel %vm604_vm0, %v8177_v28, 0.0 }
 0x724   : > { %v7907_v52 = vadd.f32 %v7906_v21, %v7844_v42  ;;  %v7728_v21 = vld [vmem:[#allocation3 + $0x130] sm:$0xff]  ;;  %v8386_v20 = vadd.f32 %v8385_v37, %v8384_v12  ;;  %v8393_v37 = vsel %vm604_vm0, %v8181_v62, 0.0  ;;  %v13559_v62 = vld [vmem:[#allocation22_spill] sm:$0xff] }
 0x726   : > { %v7908_v0 = vadd.f32 %v7907_v52, %v7845_v35  ;;  %v7853_v35 = vand.u32 2147483647, %v7789_v30  ;;  %v8388_v17 = vadd.f32 %v8387_v32, %v8386_v20  ;;  %v7797_v30 = vsub.f32 %v7733_v55, %v13555_v60  ;;  %v7737_v20 = vld [vmem:[#allocation3 + $0x178] sm:$0xff]  ;;  %v7742_v55 = vld [vmem:[#allocation3 + $0x1a0] sm:$0xff] }
 0x728   : > { %v7909_v34 = vadd.f32 %v7908_v0, %v7846_v29  ;;  %v7792_v29 = vsub.f32 %v7728_v21, %v13550_v45  ;;  %v7854_v0 = vand.u32 2147483647, %v7790_v4  ;;  %v8390_v16 = vadd.f32 %v8389_v9, %v8388_v17  ;;  %v7736_v21 = vld [vmem:[#allocation3 + $0x170] sm:$0xff]  ;;  %v13169_v9 = vld [vmem:[#allocation4 + $0x38] sm:$0xff] }
 0x729   : > { %v7798_v4 = vsub.f32 %v7734_v43, %v12780_v40  ;;  %v7800_v32 = vsub.f32 %v7736_v21, %v12792_v38  ;;  %v13556_v40 = vld [vmem:[#allocation40_spill] sm:$0xff]  ;;  %v8201_v43 = vrot.slane %v13169_v9, %v13539_v8  ;;  %v8205_v21 = vrot.slane %v13169_v9, %v13540_v51 }
 0x72a   : > { %v7910_v59 = vadd.f32 %v7909_v34, %v7847_v53  ;;  %v7855_v53 = vand.u32 2147483647, %v7791_v33  ;;  %v8392_v12 = vadd.f32 %v8391_v56, %v8390_v16  ;;  %v7861_v33 = vand.u32 2147483647, %v7797_v30  ;;  %v7740_v38 = vld [vmem:[#allocation3 + $0x190] sm:$0xff]  ;;  %v13560_v30 = vld [vmem:[#allocation23_spill] sm:$0xff] }
 0x72b   : > { %v7862_v45 = vand.u32 2147483647, %v7798_v4  ;;  %v7864_v50 = vand.u32 2147483647, %v7800_v32  ;;  %v7805_v56 = vsub.f32 %v7741_v48, %v13559_v62  ;;  %v8403_v6 = vsel %vm604_vm0, %v8201_v43, 0.0  ;;  %v7750_v48 = vld [vmem:[#allocation3 + $0x1e0] sm:$0xff] }
 0x72c   : > { %v7911_v61 = vadd.f32 %v7910_v59, %v7848_v2  ;;  %v7856_v2 = vand.u32 2147483647, %v7792_v29 }
 0x72e   : > { %v7912_v49 = vadd.f32 %v7911_v61, %v7849_v15  ;;  %v7857_v15 = vand.u32 2147483647, %v7793_v23 }
 0x730   : > { %v7913_v63 = vadd.f32 %v7912_v49, %v7850_v54  ;;  %v7858_v54 = vand.u32 2147483647, %v7794_v44  ;;  %v7803_v44 = vsub.f32 %v7739_v22, %v13557_v3  ;;  %v7748_v22 = vld [vmem:[#allocation3 + $0x1d0] sm:$0xff]  ;;  %v8213_v3 = vrot.slane %v13169_v9, %v13542_v27 }
 0x732   : > { %v7914_v42 = vadd.f32 %v7913_v63, %v7851_v25  ;;  %v7859_v25 = vand.u32 2147483647, %v7795_v47  ;;  %v8197_v47 = vrot.slane %v13169_v9, %v13538_v57  ;;  %v7867_v58 = vand.u32 2147483647, %v7803_v44 }
 0x733   : > { %v7806_v57 = vsub.f32 %v7742_v55, %v13560_v30  ;;  %v8217_v55 = vrot.slane %v13169_v9, %v13543_v18  ;;  %v8409_v62 = vsel %vm604_vm0, %v8213_v3, 0.0 }
 0x734   : > { %v7915_v52 = vadd.f32 %v7914_v42, %v7852_v11  ;;  %v7860_v11 = vand.u32 2147483647, %v7796_v10  ;;  %v8401_v60 = vsel %vm604_vm0, %v8197_v47, 0.0  ;;  %v13567_v47 = vld [vmem:[#allocation31_spill] sm:$0xff] }
 0x736   : > { %v7916_v36 = vadd.f32 %v7915_v52, %v7853_v35  ;;  %v8394_v52 = vadd.f32 %v8393_v37, %v8392_v12  ;;  %v7744_v12 = vld [vmem:[#allocation3 + $0x1b0] sm:$0xff]  ;;  %v7869_v37 = vand.u32 2147483647, %v7805_v56 }
 0x737   : > { %v13568_v56 = vld [vmem:[#allocation32_spill] sm:$0xff] }
 0x738   : > { %v7917_v34 = vadd.f32 %v7916_v36, %v7854_v0  ;;  %v7738_v0 = vld [vmem:[#allocation3 + $0x180] sm:$0xff]  ;;  %v7801_v36 = vsub.f32 %v7737_v20, %v13556_v40  ;;  %v8396_v23 = vadd.f32 %v8395_v39, %v8394_v52  ;;  %v8209_v40 = vrot.slane %v13169_v9, %v13541_v24 }
 0x739   : > { %v7802_v17 = vsub.f32 %v7738_v0, %v12820_v14  ;;  %v7746_v20 = vld [vmem:[#allocation3 + $0x1c0] sm:$0xff]  ;;  %v7747_v0 = vld [vmem:[#allocation3 + $0x1c8] sm:$0xff]  ;;  %v7814_v27 = vsub.f32 %v7750_v48, %v13568_v56 }
 0x73a   : > { %v7918_v59 = vadd.f32 %v7917_v34, %v7855_v53  ;;  %v8193_v53 = vrot.slane %v13127_v46, %v13536_v26  ;;  %v8397_v34 = vsel %vm604_vm0, %v8189_v13, 0.0  ;;  %v13563_v13 = vld [vmem:[#allocation26_spill] sm:$0xff]  ;;  %v8407_v44 = vsel %vm604_vm0, %v8209_v40, 0.0 }
 0x73b   : > { %v8398_v1 = vadd.f32 %v8397_v34, %v8396_v23  ;;  %v7866_v16 = vand.u32 2147483647, %v7802_v17 }
 0x73c   : > { %v7919_v61 = vadd.f32 %v7918_v59, %v7856_v2  ;;  %v7865_v2 = vand.u32 2147483647, %v7801_v36  ;;  %v8399_v46 = vsel %vm604_vm0, %v8193_v53, 0.0  ;;  %v8405_v36 = vsel %vm604_vm0, %v8205_v21, 0.0  ;;  %v13565_v53 = vld [vmem:[#allocation28_spill] sm:$0xff] }
 0x73d   : > { %v7811_v34 = vsub.f32 %v7747_v0, %v13565_v53 }
 0x73e   : > { %v7920_v49 = vadd.f32 %v7919_v61, %v7857_v15  ;;  %v13558_v15 = vld [vmem:[#allocation42_spill] sm:$0xff] }
 0x73f   : > { %v7804_v61 = vsub.f32 %v7740_v38, %v13558_v15  ;;  %v7749_v38 = vld [vmem:[#allocation3 + $0x1d8] sm:$0xff]  ;;  %v7875_v15 = vand.u32 2147483647, %v7811_v34 }
 0x740   : > { %v7921_v63 = vadd.f32 %v7920_v49, %v7858_v54  ;;  %v8400_v54 = vadd.f32 %v8399_v46, %v8398_v1  ;;  %v7743_v49 = vld [vmem:[#allocation3 + $0x1a8] sm:$0xff]  ;;  %v7813_v46 = vsub.f32 %v7749_v38, %v13567_v47 }
 0x741   : > { %v7807_v7 = vsub.f32 %v7743_v49, %v13561_v19  ;;  %v13569_v49 = vld [vmem:[#allocation33_spill] sm:$0xff]  ;;  %v13570_v19 = vld [vmem:[#allocation34_spill] sm:$0xff] }
 0x742   : > { %v7922_v42 = vadd.f32 %v7921_v63, %v7859_v25  ;;  %v7868_v25 = vand.u32 2147483647, %v7804_v61 }
 0x743   : > { %v7871_v32 = vand.u32 2147483647, %v7807_v7  ;;  %v7878_v7 = vand.u32 2147483647, %v7814_v27 }
 0x744   : > { %v7923_v35 = vadd.f32 %v7922_v42, %v7860_v11  ;;  %v8402_v11 = vadd.f32 %v8401_v60, %v8400_v54  ;;  %v7745_v42 = vld [vmem:[#allocation3 + $0x1b8] sm:$0xff]  ;;  %v7752_v54 = vld [vmem:[#allocation3 + $0x1f0] sm:$0xff]  ;;  %v7877_v60 = vand.u32 2147483647, %v7813_v46 }
 0x745   : > { %v7809_v39 = vsub.f32 %v7745_v42, %v13563_v13  ;;  %v7816_v18 = vsub.f32 %v7752_v54, %v13570_v19 }
 0x746   : > { %v7924_v29 = vadd.f32 %v7923_v35, %v7861_v33  ;;  %v13562_v33 = vld [vmem:[#allocation25_spill] sm:$0xff]  ;;  %v7870_v35 = vand.u32 2147483647, %v7806_v57 }
 0x747   : > { %v7808_v8 = vsub.f32 %v7744_v12, %v13562_v33  ;;  %v7873_v17 = vand.u32 2147483647, %v7809_v39  ;;  %v8411_v12 = vsel %vm604_vm0, %v8217_v55, 0.0  ;;  %v8225_v33 = vrot.slane %v13169_v9, %v13536_v26 }
 0x748   : > { %v7925_v5 = vadd.f32 %v7924_v29, %v7862_v45  ;;  %v8404_v29 = vadd.f32 %v8403_v6, %v8402_v11 }
 0x749   : > { %v8415_v39 = vsel %vm604_vm0, %v8225_v33, 0.0 }
 0x74a   : > { %v7926_v28 = vadd.f32 %v7925_v5, %v7863_v41  ;;  %v13564_v41 = vld [vmem:[#allocation27_spill] sm:$0xff]  ;;  %v7872_v5 = vand.u32 2147483647, %v7808_v8 }
 0x74b   : > { %v7810_v51 = vsub.f32 %v7746_v20, %v13564_v41 }
 0x74c   : > { %v7927_v59 = vadd.f32 %v7926_v28, %v7864_v50  ;;  %v8406_v28 = vadd.f32 %v8405_v36, %v8404_v29 }
 0x74e   : > { %v7928_v14 = vadd.f32 %v7927_v59, %v7865_v2  ;;  %v13566_v2 = vld [vmem:[#allocation29_spill] sm:$0xff]  ;;  %v7874_v59 = vand.u32 2147483647, %v7810_v51 }
 0x74f   : > { %v7812_v24 = vsub.f32 %v7748_v22, %v13566_v2 }
 0x750   : > { %v7929_v10 = vadd.f32 %v7928_v14, %v7866_v16  ;;  %v8408_v16 = vadd.f32 %v8407_v44, %v8406_v28  ;;  %v7751_v14 = vld [vmem:[#allocation3 + $0x1e8] sm:$0xff] }
 0x751   : > { %v7815_v43 = vsub.f32 %v7751_v14, %v13569_v49 }
 0x752   : > { %v7930_v63 = vadd.f32 %v7929_v10, %v7867_v58  ;;  %v7876_v58 = vand.u32 2147483647, %v7812_v24  ;;  %v8410_v57 = vadd.f32 %v8409_v62, %v8408_v16 }
 0x753   : > { %v7879_v42 = vand.u32 2147483647, %v7815_v43 }
 0x754   : > { %v7931_v4 = vadd.f32 %v7930_v63, %v7868_v25  ;;  %v7753_v25 = vld [vmem:[#allocation3 + $0x1f8] sm:$0xff]  ;;  %v8221_v63 = vrot.slane %v13169_v9, %v11674_v31  ;;  %v8412_v6 = vadd.f32 %v8411_v12, %v8410_v57 }
 0x756   : > { %v7932_v52 = vadd.f32 %v7931_v4, %v7869_v37  ;;  %v13571_v4 = vld [vmem:[#allocation35_spill] sm:$0xff]  ;;  %v8413_v8 = vsel %vm604_vm0, %v8221_v63, 0.0 }
 0x757   : > { %v7817_v11 = vsub.f32 %v7753_v25, %v13571_v4  ;;  %v8414_v13 = vadd.f32 %v8413_v8, %v8412_v6 }
 0x758   : > { %v7933_v45 = vadd.f32 %v7932_v52, %v7870_v35  ;;  %v7880_v35 = vand.u32 2147483647, %v7816_v18 }
 0x759   : > { %v7881_v20 = vand.u32 2147483647, %v7817_v11 }
 0x75a   : > { %v7934_v23 = vadd.f32 %v7933_v45, %v7871_v32  ;;  %v8416_v45 = vadd.f32 %v8415_v39, %v8414_v13 }
 0x75c   : > { %v7935_v50 = vadd.f32 %v7934_v23, %v7872_v5 }
 0x75e   : > { %v7936_v1 = vadd.f32 %v7935_v50, %v7873_v17  ;;  %v13572_v50 = vld [vmem:[#allocation6_spill] sm:$0xff] }
 0x75f   : > { %vm8428_vm0 = vcmp.eq.s32.totalorder %v13572_v50, 0 }
 0x760   : > { %v7937_v61 = vadd.f32 %v7936_v1, %v7874_v59 }
 0x762   : > { %v7938_v10 = vadd.f32 %v7937_v61, %v7875_v15 }
 0x764   : > { %v7939_v30 = vadd.f32 %v7938_v10, %v7876_v58 }
 0x766   : > { %v7940_v37 = vadd.f32 %v7939_v30, %v7877_v60 }
 0x768   : > { %v7941_v21 = vadd.f32 %v7940_v37, %v7878_v7 }
 0x76a   : > { %v7942_v52 = vadd.f32 %v7941_v21, %v7879_v42 }
 0x76c   : > { %v7943_v31 = vadd.f32 %v7942_v52, %v7880_v35 }
 0x76e   : > { %v7944_v32 = vadd.f32 %v7943_v31, %v7881_v20 }
 0x770   : > { %7945 = vadd.xlane.f32.xlu1 %v7944_v32 }
 0x774   : > { %8417 = vadd.xlane.f32.xlu1 %v8416_v45 }
 0x7fd   : > { %v7946_v29 = vpop.xlane.xlu1 %7945 }
 0x7fe   : > { %v7947_v0 = vrot.slane %v7946_v29, 4 }
 0x800   : > { %v7948_v40 = vadd.f32 %v7947_v0, %v7946_v29 }
 0x801   : > { %v8418_v36 = vpop.xlane.xlu1 %8417 }
 0x802   : > { %v7949_v41 = vrot.slane %v7948_v40, 2  ;;  %v8419_v51 = vrot.slane %v8418_v36, 4 }
 0x804   : > { %v8420_v26 = vadd.f32 %v8419_v51, %v8418_v36  ;;  %v7950_v9 = vadd.f32 %v7949_v41, %v7948_v40 }
 0x806   : > { %v8421_v5 = vrot.slane %v8420_v26, 2  ;;  %v7951_v23 = vrot.slane %v7950_v9, 1 }
 0x808   : > { %v8422_v22 = vadd.f32 %v8421_v5, %v8420_v26  ;;  %v7952_v53 = vadd.f32 %v7951_v23, %v7950_v9 }
 0x80a   : > { %9160 = vpush %v7952_v53  ;;  %v8423_v34 = vrot.slane %v8422_v22, 1 }
 0x80c   : > { %v8424_v17 = vadd.f32 %v8423_v34, %v8422_v22 }
 0x80e   : > { %9162 = vpush %v8424_v17 }
 0x83b   : > { %s9161_s17 = spop %9160 }
 0x83c   : > { %v8430_v28 = vstv %s9161_s17 }
 0x83f   : > { %s9163_s18 = spop %9162 }
 0x840   : > { %v8429_v38 = vstv %s9163_s18 }
 0x841   : > { %v8431_v3 = vsel %vm8428_vm0, %v8429_v38, %v8430_v28 }
 0x842   : > { %8432 = vst [vmem:[%s13230_s5] sm:$0x3] %v8431_v3 }
 0x843 PF: > { %p13_p10 = scmp.ge.s32.totalorder %s9468_s22, 6   ;;  %s13573_s18 = smov %s9407_s19 }
 0x844   : > { %s13574_s19 = smov %s9477_s25  ;;  %s13575_s20 = smov %s9468_s22 }
 0x845   :  { %15 = sbr.rel (!%p13_p10) target bundleno = 2 (0x2), region = 108 }

</bundles_post_ra>
